<compile_context>
chip_gen: v6e
topology: v6e:2x2x1
jax: 0.10.0
libtpu: 0.0.40
codegen_flags: <defaults>
</compile_context>

<pallas_src>
import jax
import jax.numpy as jnp
from jax.experimental import pallas as pl
from jax.experimental.pallas import tpu as pltpu

_VMEM_LIMIT = 32 * 1024 * 1024  # explicit; v5e scoped default is only 16 MiB


def _round_up(x, m):
    return (x + m - 1) // m * m


# ------------------------------- fused kernel --------------------------------

def _cnn_fused_kernel(x_ref, w1_ref, b1_ref, w2_ref, b2_ref, w3_ref, b3_ref, o_ref):
    """Whole CNN forward for a block of Bt images, entirely in VMEM.

    x : (Bt, 4, 8, 32) bf16  padded 32x32 images, rows regrouped by (row mod 4):
                             x[b, p, m, :] = x_pad[b, 4*m + p, :]
    w1: (160, 448)  bf16  conv1 block-Toeplitz: rows kh*32 + j_pad, cols dw*224 + wp*16 + c
    b1: (1, 448)    f32   conv1 bias tiled over (dw, wp)
    w2: (1120, 448) bf16  conv2 block-Toeplitz: rows kh*224 + wi*16 + ci, cols dw*224 + wp*32 + c
    b2: (1, 448)    f32   conv2 bias tiled over (dw, wp)
    w3: (1568, 128) bf16  linear weight, rows (ho*7 + wp)*32 + c, cols padded 10 -> 128
    b3: (1, 128)    f32
    o : (1, Bt, 128) f32  logits (lane-padded to 128)
    """
    Bt = x_ref.shape[0]
    x = x_ref[...]
    w1 = w1_ref[...]
    w2 = w2_ref[...]
    w3 = w3_ref[...]
    b1 = b1_ref[...]
    b2 = b2_ref[...]
    b3 = b3_ref[...]

    feats = []
    for b in range(Bt):
        # ---------------- layer 1: conv5x5 (1->16) + bias + ReLU + 2x2 maxpool ----------------
        # A1 row (p*7 + m) = conv output row h = 4m + p; lane = kh*32 + padded column.
        blocks = []
        for p in range(4):
            taps = []
            for kh in range(5):
                q, s = (p + kh) % 4, (p + kh) // 4
                taps.append(x[b, q, s:s + 7, :])                   # rows 4(m+s)+q = 4m+p+kh
            blocks.append(jnp.concatenate(taps, axis=-1))          # (7, 160)
        a1 = jnp.concatenate(blocks, axis=0)                       # (28, 160)
        y1 = jnp.dot(a1, w1, preferred_element_type=jnp.float32)   # (28, 448) lane = dw*224+wp*16+c
        y1 = jnp.maximum(y1 + b1, 0.0)
        ye = jnp.maximum(y1[0:7], y1[7:14])                        # dh-pool, pooled rows 0,2,..,12
        yo = jnp.maximum(y1[14:21], y1[21:28])                     # dh-pool, pooled rows 1,3,..,13
        h1e = jnp.maximum(ye[:, :224], ye[:, 224:]).astype(jnp.bfloat16)   # (7, 224) lane = wp*16+c
        h1o = jnp.maximum(yo[:, :224], yo[:, 224:]).astype(jnp.bfloat16)

        # ---------------- layer 2: conv5x5 (16->32) + bias + ReLU + 2x2 maxpool ----------------
        z = jnp.zeros((1, 224), jnp.bfloat16)                      # explicit h padding rows
        pe = jnp.concatenate([z, h1e, z], axis=0)                  # (9, 224) = even rows of padded h1
        po = jnp.concatenate([z, h1o, z], axis=0)                  # (9, 224) = odd rows of padded h1
        a2e = jnp.concatenate([pe[0:7], po[0:7], pe[1:8], po[1:8], pe[2:9]], axis=-1)  # even out rows
        a2o = jnp.concatenate([po[0:7], pe[1:8], po[1:8], pe[2:9], po[2:9]], axis=-1)  # odd  out rows
        a2 = jnp.concatenate([a2e, a2o], axis=0)                   # (14, 1120)
        y2 = jnp.dot(a2, w2, preferred_element_type=jnp.float32)   # (14, 448) lane = dw*224+wp*32+c
        y2 = jnp.maximum(y2 + b2, 0.0)
        ph = jnp.maximum(y2[0:7], y2[7:14])                        # dh-pool -> (7, 448)
        h2 = jnp.maximum(ph[:, :224], ph[:, 224:]).astype(jnp.bfloat16)    # (7, 224) lane = wp*32+c

        # flatten in (ho, wp, c) order (matches the repacked linear weight) via lane concat
        feats.append(jnp.concatenate([h2[r:r + 1, :] for r in range(7)], axis=-1))  # (1, 1568)

    # ---------------- linear 1568 -> 10 (lane-padded to 128), fused epilogue ----------------
    feat = jnp.concatenate(feats, axis=0)                          # (Bt, 1568) bf16
    logits = jnp.dot(feat, w3, preferred_element_type=jnp.float32) + b3
    o_ref[0] = logits                                              # lane-dense f32 store


# ------------------------------- forward wrapper ------------------------------

def cnn_forward(x, kp, block_b=4):
    """x: (B, 1, 28, 28) f32 NCHW, kp: prepare_params(...) output -> (B, 10) f32."""
    B = x.shape[0]
    Bt = max(1, min(block_b, B))
    Bp = _round_up(B, Bt)
    G = Bp // Bt

    xi = x[:, 0].astype(jnp.bfloat16)                              # cast early (halve HBM bytes)
    xi = jnp.pad(xi, ((0, Bp - B), (2, 2), (2, 2)))                # (Bp, 32, 32) zero-padded
    x4 = xi.reshape(Bp, 8, 4, 32).transpose(0, 2, 1, 3)            # (Bp, 4, 8, 32): [b,p,m,:] = row 4m+p

    out = pl.pallas_call(
        _cnn_fused_kernel,
        out_shape=jax.ShapeDtypeStruct((G, Bt, 128), jnp.float32),
        grid=(G,),
        in_specs=[
            pl.BlockSpec((Bt, 4, 8, 32), lambda i: (i, 0, 0, 0)),
            pl.BlockSpec((160, 448), lambda i: (0, 0)),
            pl.BlockSpec((1, 448), lambda i: (0, 0)),
            pl.BlockSpec((1120, 448), lambda i: (0, 0)),
            pl.BlockSpec((1, 448), lambda i: (0, 0)),
            pl.BlockSpec((1568, 128), lambda i: (0, 0)),
            pl.BlockSpec((1, 128), lambda i: (0, 0)),
        ],
        out_specs=pl.BlockSpec((1, Bt, 128), lambda i: (i, 0, 0)),
        compiler_params=pltpu.CompilerParams(
            dimension_semantics=("parallel",),
            vmem_limit_bytes=_VMEM_LIMIT),
    )(x4, kp["w1"], kp["b1"], kp["w2"], kp["b2"], kp["w3"], kp["b3"])
    return out.reshape(Bp, 128)[:B, :10]


# ------------------------ deterministic parameter init ------------------------

def init_params(key):
    ks = jax.random.split(key, 6)

    def u(k, shape, fan_in):
        bound = float(fan_in) ** -0.5
        return jax.random.uniform(k, shape, jnp.float32, -bound, bound)

    return {
        "w1": u(ks[0], (16, 1, 5, 5), 1 * 25),
        "b1": u(ks[1], (16,), 1 * 25),
        "w2": u(ks[2], (32, 16, 5, 5), 16 * 25),
        "b2": u(ks[3], (32,), 16 * 25),
        "w_out": u(ks[4], (10, 32 * 7 * 7), 32 * 7 * 7),   # torch Linear convention
        "b_out": u(ks[5], (10,), 32 * 7 * 7),
    }


def prepare_params(p):
    """One-time (outside jit) repack of PyTorch-convention params into the bf16
    block-Toeplitz layouts consumed by the fused kernel."""
    f32, bf16 = jnp.float32, jnp.bfloat16

    # conv1 -> (160, 448): rows kh*32 + j (padded input col), cols dw*224 + wp*16 + cout
    w1 = jnp.transpose(p["w1"][:, 0], (1, 2, 0))                       # (kh, kw, co)
    j = jnp.arange(32)[:, None]
    wo = jnp.arange(28)[None, :]
    kwi = j - wo
    v1 = ((kwi >= 0) & (kwi < 5)).astype(f32)
    t1 = w1[:, jnp.clip(kwi, 0, 4), :] * v1[None, :, :, None]          # (kh, j, wo, co)
    t1 = t1.reshape(5, 32, 14, 2, 16)                                  # wo -> (wp, dw)
    t1 = jnp.transpose(t1, (0, 1, 3, 2, 4)).reshape(160, 448)          # (kh, j, dw, wp, co)

    # conv2 -> (1120, 448): rows kh*224 + wi*16 + cin, cols dw*224 + wp*32 + cout
    w2 = jnp.transpose(p["w2"], (2, 3, 1, 0))                          # (kh, kw, ci, co)
    wi = jnp.arange(14)[:, None]
    wo = jnp.arange(14)[None, :]
    kwi = wi - wo + 2
    v2 = ((kwi >= 0) & (kwi < 5)).astype(f32)
    t2 = w2[:, jnp.clip(kwi, 0, 4)] * v2[None, :, :, None, None]       # (kh, wi, wo, ci, co)
    t2 = jnp.transpose(t2, (0, 1, 3, 2, 4))                            # (kh, wi, ci, wo, co)
    t2 = t2.reshape(5, 14, 16, 7, 2, 32)                               # wo -> (wp, dw)
    t2 = jnp.transpose(t2, (0, 1, 2, 4, 3, 5)).reshape(1120, 448)      # (kh, wi, ci, dw, wp, co)

    # linear: torch (c, h, w)-flatten -> our (ho, wp, c)-flatten; N zero-padded 10 -> 128
    w3 = jnp.transpose(p["w_out"].reshape(10, 32, 7, 7), (2, 3, 1, 0)).reshape(1568, 10)
    w3 = jnp.pad(w3, ((0, 0), (0, 118)))
    b3 = jnp.pad(p["b_out"], (0, 118)).reshape(1, 128)

    return {
        "w1": t1.astype(bf16), "b1": jnp.tile(p["b1"], 28).reshape(1, 448).astype(f32),
        "w2": t2.astype(bf16), "b2": jnp.tile(p["b2"], 14).reshape(1, 448).astype(f32),
        "w3": w3.astype(bf16), "b3": b3.astype(f32),
    }


# -------------------------- pure-JAX reference check ---------------------------

def cnn_reference(x, p):
    def conv(xx, w, b):
        y = jax.lax.conv_general_dilated(
            xx, w, window_strides=(1, 1), padding=((2, 2), (2, 2)),
            dimension_numbers=("NCHW", "OIHW", "NCHW"))
        return jax.nn.relu(y + b[None, :, None, None])

    def pool(xx):  # NCHW
        B, C, H, W = xx.shape
        return jnp.max(xx.reshape(B, C, H // 2, 2, W // 2, 2), axis=(3, 5))

    h = pool(conv(x, p["w1"], p["b1"]))
    h = pool(conv(h, p["w2"], p["b2"]))
    feat = h.reshape(x.shape[0], -1)
    return feat @ p["w_out"].T + p["b_out"]


if __name__ == "__main__":
    x = jax.random.normal(jax.random.PRNGKey(0), (8, 1, 28, 28), dtype=jnp.float32)
    params = init_params(jax.random.PRNGKey(1))
    kparams = prepare_params(params)          # one-time weight repack, outside jit

    fwd = jax.jit(cnn_forward)
    out = jax.block_until_ready(fwd(x, kparams))

    ref = cnn_reference(x, params)
    assert out.shape == (8, 10), out.shape
    err = float(jnp.max(jnp.abs(out - ref)))
    assert jnp.allclose(out, ref, atol=3e-2, rtol=3e-2), err

    print("KERNEL_OK")
</pallas_src>

<mosaic_0001>
module attributes {stable_mosaic.version = 11 : i64} {
  func.func @_cnn_fused_kernel(%arg0: i32, %arg1: memref<4x4x8x32xbf16, #tpu.memory_space<vmem>>, %arg2: memref<160x448xbf16, #tpu.memory_space<vmem>>, %arg3: memref<1x448xf32, #tpu.memory_space<vmem>>, %arg4: memref<1120x448xbf16, #tpu.memory_space<vmem>>, %arg5: memref<1x448xf32, #tpu.memory_space<vmem>>, %arg6: memref<1568x128xbf16, #tpu.memory_space<vmem>>, %arg7: memref<1x128xf32, #tpu.memory_space<vmem>>, %arg8: memref<1x4x128xf32, #tpu.memory_space<vmem>>) attributes {dimension_semantics = [#tpu.dimension_semantics<parallel>], iteration_bounds = array<i64: 2>, scalar_prefetch = 0 : i64, scratch_operands = 0 : i64, tpu.core_type = #tpu.core_type<tc>, window_params = [{transform_indices = @transform_0, window_bounds = array<i64: 4, 4, 8, 32>}, {pipeline_mode = #tpu.pipeline_mode<synchronous>, transform_indices = @transform_1, window_bounds = array<i64: 160, 448>}, {pipeline_mode = #tpu.pipeline_mode<synchronous>, transform_indices = @transform_2, window_bounds = array<i64: 1, 448>}, {pipeline_mode = #tpu.pipeline_mode<synchronous>, transform_indices = @transform_3, window_bounds = array<i64: 1120, 448>}, {pipeline_mode = #tpu.pipeline_mode<synchronous>, transform_indices = @transform_4, window_bounds = array<i64: 1, 448>}, {pipeline_mode = #tpu.pipeline_mode<synchronous>, transform_indices = @transform_5, window_bounds = array<i64: 1568, 128>}, {pipeline_mode = #tpu.pipeline_mode<synchronous>, transform_indices = @transform_6, window_bounds = array<i64: 1, 128>}, {transform_indices = @transform_7, window_bounds = array<i64: 1, 4, 128>}]} {
    %c0 = arith.constant 0 : index
    %c0_0 = arith.constant 0 : index
    %c0_1 = arith.constant 0 : index
    %c0_2 = arith.constant 0 : index
    %0 = vector.load %arg1[%c0, %c0_0, %c0_1, %c0_2] : memref<4x4x8x32xbf16, #tpu.memory_space<vmem>>, vector<4x4x8x32xbf16>
    %c0_3 = arith.constant 0 : index
    %c0_4 = arith.constant 0 : index
    %1 = vector.load %arg2[%c0_3, %c0_4] : memref<160x448xbf16, #tpu.memory_space<vmem>>, vector<160x448xbf16>
    %c0_5 = arith.constant 0 : index
    %c0_6 = arith.constant 0 : index
    %2 = vector.load %arg4[%c0_5, %c0_6] : memref<1120x448xbf16, #tpu.memory_space<vmem>>, vector<1120x448xbf16>
    %c0_7 = arith.constant 0 : index
    %c0_8 = arith.constant 0 : index
    %3 = vector.load %arg6[%c0_7, %c0_8] : memref<1568x128xbf16, #tpu.memory_space<vmem>>, vector<1568x128xbf16>
    %c0_9 = arith.constant 0 : index
    %c0_10 = arith.constant 0 : index
    %4 = vector.load %arg3[%c0_9, %c0_10] : memref<1x448xf32, #tpu.memory_space<vmem>>, vector<1x448xf32>
    %c0_11 = arith.constant 0 : index
    %c0_12 = arith.constant 0 : index
    %5 = vector.load %arg5[%c0_11, %c0_12] : memref<1x448xf32, #tpu.memory_space<vmem>>, vector<1x448xf32>
    %c0_13 = arith.constant 0 : index
    %c0_14 = arith.constant 0 : index
    %6 = vector.load %arg7[%c0_13, %c0_14] : memref<1x128xf32, #tpu.memory_space<vmem>>, vector<1x128xf32>
    %7 = vector.extract_strided_slice %0 {offsets = [0, 0, 0, 0], sizes = [1, 1, 7, 32], strides = [1, 1, 1, 1]} : vector<4x4x8x32xbf16> to vector<1x1x7x32xbf16>
    %8 = vector.shape_cast %7 : vector<1x1x7x32xbf16> to vector<7x32xbf16>
    %9 = vector.extract_strided_slice %0 {offsets = [0, 1, 0, 0], sizes = [1, 1, 7, 32], strides = [1, 1, 1, 1]} : vector<4x4x8x32xbf16> to vector<1x1x7x32xbf16>
    %10 = vector.shape_cast %9 : vector<1x1x7x32xbf16> to vector<7x32xbf16>
    %11 = vector.extract_strided_slice %0 {offsets = [0, 2, 0, 0], sizes = [1, 1, 7, 32], strides = [1, 1, 1, 1]} : vector<4x4x8x32xbf16> to vector<1x1x7x32xbf16>
    %12 = vector.shape_cast %11 : vector<1x1x7x32xbf16> to vector<7x32xbf16>
    %13 = vector.extract_strided_slice %0 {offsets = [0, 3, 0, 0], sizes = [1, 1, 7, 32], strides = [1, 1, 1, 1]} : vector<4x4x8x32xbf16> to vector<1x1x7x32xbf16>
    %14 = vector.shape_cast %13 : vector<1x1x7x32xbf16> to vector<7x32xbf16>
    %15 = vector.extract_strided_slice %0 {offsets = [0, 0, 1, 0], sizes = [1, 1, 7, 32], strides = [1, 1, 1, 1]} : vector<4x4x8x32xbf16> to vector<1x1x7x32xbf16>
    %16 = vector.shape_cast %15 : vector<1x1x7x32xbf16> to vector<7x32xbf16>
    %17 = tpu.concatenate %8, %10, %12, %14, %16 in 1 : vector<7x32xbf16>, vector<7x32xbf16>, vector<7x32xbf16>, vector<7x32xbf16>, vector<7x32xbf16> -> vector<7x160xbf16>
    %18 = vector.extract_strided_slice %0 {offsets = [0, 1, 0, 0], sizes = [1, 1, 7, 32], strides = [1, 1, 1, 1]} : vector<4x4x8x32xbf16> to vector<1x1x7x32xbf16>
    %19 = vector.shape_cast %18 : vector<1x1x7x32xbf16> to vector<7x32xbf16>
    %20 = vector.extract_strided_slice %0 {offsets = [0, 2, 0, 0], sizes = [1, 1, 7, 32], strides = [1, 1, 1, 1]} : vector<4x4x8x32xbf16> to vector<1x1x7x32xbf16>
    %21 = vector.shape_cast %20 : vector<1x1x7x32xbf16> to vector<7x32xbf16>
    %22 = vector.extract_strided_slice %0 {offsets = [0, 3, 0, 0], sizes = [1, 1, 7, 32], strides = [1, 1, 1, 1]} : vector<4x4x8x32xbf16> to vector<1x1x7x32xbf16>
    %23 = vector.shape_cast %22 : vector<1x1x7x32xbf16> to vector<7x32xbf16>
    %24 = vector.extract_strided_slice %0 {offsets = [0, 0, 1, 0], sizes = [1, 1, 7, 32], strides = [1, 1, 1, 1]} : vector<4x4x8x32xbf16> to vector<1x1x7x32xbf16>
    %25 = vector.shape_cast %24 : vector<1x1x7x32xbf16> to vector<7x32xbf16>
    %26 = vector.extract_strided_slice %0 {offsets = [0, 1, 1, 0], sizes = [1, 1, 7, 32], strides = [1, 1, 1, 1]} : vector<4x4x8x32xbf16> to vector<1x1x7x32xbf16>
    %27 = vector.shape_cast %26 : vector<1x1x7x32xbf16> to vector<7x32xbf16>
    %28 = tpu.concatenate %19, %21, %23, %25, %27 in 1 : vector<7x32xbf16>, vector<7x32xbf16>, vector<7x32xbf16>, vector<7x32xbf16>, vector<7x32xbf16> -> vector<7x160xbf16>
    %29 = vector.extract_strided_slice %0 {offsets = [0, 2, 0, 0], sizes = [1, 1, 7, 32], strides = [1, 1, 1, 1]} : vector<4x4x8x32xbf16> to vector<1x1x7x32xbf16>
    %30 = vector.shape_cast %29 : vector<1x1x7x32xbf16> to vector<7x32xbf16>
    %31 = vector.extract_strided_slice %0 {offsets = [0, 3, 0, 0], sizes = [1, 1, 7, 32], strides = [1, 1, 1, 1]} : vector<4x4x8x32xbf16> to vector<1x1x7x32xbf16>
    %32 = vector.shape_cast %31 : vector<1x1x7x32xbf16> to vector<7x32xbf16>
    %33 = vector.extract_strided_slice %0 {offsets = [0, 0, 1, 0], sizes = [1, 1, 7, 32], strides = [1, 1, 1, 1]} : vector<4x4x8x32xbf16> to vector<1x1x7x32xbf16>
    %34 = vector.shape_cast %33 : vector<1x1x7x32xbf16> to vector<7x32xbf16>
    %35 = vector.extract_strided_slice %0 {offsets = [0, 1, 1, 0], sizes = [1, 1, 7, 32], strides = [1, 1, 1, 1]} : vector<4x4x8x32xbf16> to vector<1x1x7x32xbf16>
    %36 = vector.shape_cast %35 : vector<1x1x7x32xbf16> to vector<7x32xbf16>
    %37 = vector.extract_strided_slice %0 {offsets = [0, 2, 1, 0], sizes = [1, 1, 7, 32], strides = [1, 1, 1, 1]} : vector<4x4x8x32xbf16> to vector<1x1x7x32xbf16>
    %38 = vector.shape_cast %37 : vector<1x1x7x32xbf16> to vector<7x32xbf16>
    %39 = tpu.concatenate %30, %32, %34, %36, %38 in 1 : vector<7x32xbf16>, vector<7x32xbf16>, vector<7x32xbf16>, vector<7x32xbf16>, vector<7x32xbf16> -> vector<7x160xbf16>
    %40 = vector.extract_strided_slice %0 {offsets = [0, 3, 0, 0], sizes = [1, 1, 7, 32], strides = [1, 1, 1, 1]} : vector<4x4x8x32xbf16> to vector<1x1x7x32xbf16>
    %41 = vector.shape_cast %40 : vector<1x1x7x32xbf16> to vector<7x32xbf16>
    %42 = vector.extract_strided_slice %0 {offsets = [0, 0, 1, 0], sizes = [1, 1, 7, 32], strides = [1, 1, 1, 1]} : vector<4x4x8x32xbf16> to vector<1x1x7x32xbf16>
    %43 = vector.shape_cast %42 : vector<1x1x7x32xbf16> to vector<7x32xbf16>
    %44 = vector.extract_strided_slice %0 {offsets = [0, 1, 1, 0], sizes = [1, 1, 7, 32], strides = [1, 1, 1, 1]} : vector<4x4x8x32xbf16> to vector<1x1x7x32xbf16>
    %45 = vector.shape_cast %44 : vector<1x1x7x32xbf16> to vector<7x32xbf16>
    %46 = vector.extract_strided_slice %0 {offsets = [0, 2, 1, 0], sizes = [1, 1, 7, 32], strides = [1, 1, 1, 1]} : vector<4x4x8x32xbf16> to vector<1x1x7x32xbf16>
    %47 = vector.shape_cast %46 : vector<1x1x7x32xbf16> to vector<7x32xbf16>
    %48 = vector.extract_strided_slice %0 {offsets = [0, 3, 1, 0], sizes = [1, 1, 7, 32], strides = [1, 1, 1, 1]} : vector<4x4x8x32xbf16> to vector<1x1x7x32xbf16>
    %49 = vector.shape_cast %48 : vector<1x1x7x32xbf16> to vector<7x32xbf16>
    %50 = tpu.concatenate %41, %43, %45, %47, %49 in 1 : vector<7x32xbf16>, vector<7x32xbf16>, vector<7x32xbf16>, vector<7x32xbf16>, vector<7x32xbf16> -> vector<7x160xbf16>
    %51 = tpu.concatenate %17, %28, %39, %50 in 0 : vector<7x160xbf16>, vector<7x160xbf16>, vector<7x160xbf16>, vector<7x160xbf16> -> vector<28x160xbf16>
    %cst = arith.constant dense<0.000000e+00> : vector<28x448xf32>
    %52 = tpu.matmul %51, %1, %cst {dimension_numbers = #tpu.dot_dimension_numbers<[1], [0], [0], [1], [0, 0, 1, 1], [], []>} : vector<28x160xbf16>, vector<160x448xbf16>, vector<28x448xf32> -> vector<28x448xf32>
    %53 = vector.broadcast %4 : vector<1x448xf32> to vector<28x448xf32>
    %54 = arith.addf %52, %53 : vector<28x448xf32>
    %cst_15 = arith.constant 0.000000e+00 : f32
    %55 = vector.broadcast %cst_15 : f32 to vector<28x448xf32>
    %56 = arith.maximumf %54, %55 : vector<28x448xf32>
    %57 = vector.extract_strided_slice %56 {offsets = [0, 0], sizes = [7, 448], strides = [1, 1]} : vector<28x448xf32> to vector<7x448xf32>
    %58 = vector.extract_strided_slice %56 {offsets = [7, 0], sizes = [7, 448], strides = [1, 1]} : vector<28x448xf32> to vector<7x448xf32>
    %59 = arith.maximumf %57, %58 : vector<7x448xf32>
    %60 = vector.extract_strided_slice %56 {offsets = [14, 0], sizes = [7, 448], strides = [1, 1]} : vector<28x448xf32> to vector<7x448xf32>
    %61 = vector.extract_strided_slice %56 {offsets = [21, 0], sizes = [7, 448], strides = [1, 1]} : vector<28x448xf32> to vector<7x448xf32>
    %62 = arith.maximumf %60, %61 : vector<7x448xf32>
    %63 = vector.extract_strided_slice %59 {offsets = [0, 0], sizes = [7, 224], strides = [1, 1]} : vector<7x448xf32> to vector<7x224xf32>
    %64 = vector.extract_strided_slice %59 {offsets = [0, 224], sizes = [7, 224], strides = [1, 1]} : vector<7x448xf32> to vector<7x224xf32>
    %65 = arith.maximumf %63, %64 : vector<7x224xf32>
    %66 = arith.truncf %65 : vector<7x224xf32> to vector<7x224xbf16>
    %67 = vector.extract_strided_slice %62 {offsets = [0, 0], sizes = [7, 224], strides = [1, 1]} : vector<7x448xf32> to vector<7x224xf32>
    %68 = vector.extract_strided_slice %62 {offsets = [0, 224], sizes = [7, 224], strides = [1, 1]} : vector<7x448xf32> to vector<7x224xf32>
    %69 = arith.maximumf %67, %68 : vector<7x224xf32>
    %70 = arith.truncf %69 : vector<7x224xf32> to vector<7x224xbf16>
    %cst_16 = arith.constant 0.000000e+00 : bf16
    %71 = vector.broadcast %cst_16 : bf16 to vector<1x224xbf16>
    %72 = tpu.concatenate %71, %66, %71 in 0 : vector<1x224xbf16>, vector<7x224xbf16>, vector<1x224xbf16> -> vector<9x224xbf16>
    %73 = tpu.concatenate %71, %70, %71 in 0 : vector<1x224xbf16>, vector<7x224xbf16>, vector<1x224xbf16> -> vector<9x224xbf16>
    %74 = vector.extract_strided_slice %72 {offsets = [0, 0], sizes = [7, 224], strides = [1, 1]} : vector<9x224xbf16> to vector<7x224xbf16>
    %75 = vector.extract_strided_slice %73 {offsets = [0, 0], sizes = [7, 224], strides = [1, 1]} : vector<9x224xbf16> to vector<7x224xbf16>
    %76 = vector.extract_strided_slice %72 {offsets = [1, 0], sizes = [7, 224], strides = [1, 1]} : vector<9x224xbf16> to vector<7x224xbf16>
    %77 = vector.extract_strided_slice %73 {offsets = [1, 0], sizes = [7, 224], strides = [1, 1]} : vector<9x224xbf16> to vector<7x224xbf16>
    %78 = vector.extract_strided_slice %72 {offsets = [2, 0], sizes = [7, 224], strides = [1, 1]} : vector<9x224xbf16> to vector<7x224xbf16>
    %79 = tpu.concatenate %74, %75, %76, %77, %78 in 1 : vector<7x224xbf16>, vector<7x224xbf16>, vector<7x224xbf16>, vector<7x224xbf16>, vector<7x224xbf16> -> vector<7x1120xbf16>
    %80 = vector.extract_strided_slice %73 {offsets = [0, 0], sizes = [7, 224], strides = [1, 1]} : vector<9x224xbf16> to vector<7x224xbf16>
    %81 = vector.extract_strided_slice %72 {offsets = [1, 0], sizes = [7, 224], strides = [1, 1]} : vector<9x224xbf16> to vector<7x224xbf16>
    %82 = vector.extract_strided_slice %73 {offsets = [1, 0], sizes = [7, 224], strides = [1, 1]} : vector<9x224xbf16> to vector<7x224xbf16>
    %83 = vector.extract_strided_slice %72 {offsets = [2, 0], sizes = [7, 224], strides = [1, 1]} : vector<9x224xbf16> to vector<7x224xbf16>
    %84 = vector.extract_strided_slice %73 {offsets = [2, 0], sizes = [7, 224], strides = [1, 1]} : vector<9x224xbf16> to vector<7x224xbf16>
    %85 = tpu.concatenate %80, %81, %82, %83, %84 in 1 : vector<7x224xbf16>, vector<7x224xbf16>, vector<7x224xbf16>, vector<7x224xbf16>, vector<7x224xbf16> -> vector<7x1120xbf16>
    %86 = tpu.concatenate %79, %85 in 0 : vector<7x1120xbf16>, vector<7x1120xbf16> -> vector<14x1120xbf16>
    %cst_17 = arith.constant dense<0.000000e+00> : vector<14x448xf32>
    %87 = tpu.matmul %86, %2, %cst_17 {dimension_numbers = #tpu.dot_dimension_numbers<[1], [0], [0], [1], [0, 0, 1, 1], [], []>} : vector<14x1120xbf16>, vector<1120x448xbf16>, vector<14x448xf32> -> vector<14x448xf32>
    %88 = vector.broadcast %5 : vector<1x448xf32> to vector<14x448xf32>
    %89 = arith.addf %87, %88 : vector<14x448xf32>
    %cst_18 = arith.constant 0.000000e+00 : f32
    %90 = vector.broadcast %cst_18 : f32 to vector<14x448xf32>
    %91 = arith.maximumf %89, %90 : vector<14x448xf32>
    %92 = vector.extract_strided_slice %91 {offsets = [0, 0], sizes = [7, 448], strides = [1, 1]} : vector<14x448xf32> to vector<7x448xf32>
    %93 = vector.extract_strided_slice %91 {offsets = [7, 0], sizes = [7, 448], strides = [1, 1]} : vector<14x448xf32> to vector<7x448xf32>
    %94 = arith.maximumf %92, %93 : vector<7x448xf32>
    %95 = vector.extract_strided_slice %94 {offsets = [0, 0], sizes = [7, 224], strides = [1, 1]} : vector<7x448xf32> to vector<7x224xf32>
    %96 = vector.extract_strided_slice %94 {offsets = [0, 224], sizes = [7, 224], strides = [1, 1]} : vector<7x448xf32> to vector<7x224xf32>
    %97 = arith.maximumf %95, %96 : vector<7x224xf32>
    %98 = arith.truncf %97 : vector<7x224xf32> to vector<7x224xbf16>
    %99 = vector.extract_strided_slice %98 {offsets = [0, 0], sizes = [1, 224], strides = [1, 1]} : vector<7x224xbf16> to vector<1x224xbf16>
    %100 = vector.extract_strided_slice %98 {offsets = [1, 0], sizes = [1, 224], strides = [1, 1]} : vector<7x224xbf16> to vector<1x224xbf16>
    %101 = vector.extract_strided_slice %98 {offsets = [2, 0], sizes = [1, 224], strides = [1, 1]} : vector<7x224xbf16> to vector<1x224xbf16>
    %102 = vector.extract_strided_slice %98 {offsets = [3, 0], sizes = [1, 224], strides = [1, 1]} : vector<7x224xbf16> to vector<1x224xbf16>
    %103 = vector.extract_strided_slice %98 {offsets = [4, 0], sizes = [1, 224], strides = [1, 1]} : vector<7x224xbf16> to vector<1x224xbf16>
    %104 = vector.extract_strided_slice %98 {offsets = [5, 0], sizes = [1, 224], strides = [1, 1]} : vector<7x224xbf16> to vector<1x224xbf16>
    %105 = vector.extract_strided_slice %98 {offsets = [6, 0], sizes = [1, 224], strides = [1, 1]} : vector<7x224xbf16> to vector<1x224xbf16>
    %106 = tpu.concatenate %99, %100, %101, %102, %103, %104, %105 in 1 : vector<1x224xbf16>, vector<1x224xbf16>, vector<1x224xbf16>, vector<1x224xbf16>, vector<1x224xbf16>, vector<1x224xbf16>, vector<1x224xbf16> -> vector<1x1568xbf16>
    %107 = vector.extract_strided_slice %0 {offsets = [1, 0, 0, 0], sizes = [1, 1, 7, 32], strides = [1, 1, 1, 1]} : vector<4x4x8x32xbf16> to vector<1x1x7x32xbf16>
    %108 = vector.shape_cast %107 : vector<1x1x7x32xbf16> to vector<7x32xbf16>
    %109 = vector.extract_strided_slice %0 {offsets = [1, 1, 0, 0], sizes = [1, 1, 7, 32], strides = [1, 1, 1, 1]} : vector<4x4x8x32xbf16> to vector<1x1x7x32xbf16>
    %110 = vector.shape_cast %109 : vector<1x1x7x32xbf16> to vector<7x32xbf16>
    %111 = vector.extract_strided_slice %0 {offsets = [1, 2, 0, 0], sizes = [1, 1, 7, 32], strides = [1, 1, 1, 1]} : vector<4x4x8x32xbf16> to vector<1x1x7x32xbf16>
    %112 = vector.shape_cast %111 : vector<1x1x7x32xbf16> to vector<7x32xbf16>
    %113 = vector.extract_strided_slice %0 {offsets = [1, 3, 0, 0], sizes = [1, 1, 7, 32], strides = [1, 1, 1, 1]} : vector<4x4x8x32xbf16> to vector<1x1x7x32xbf16>
    %114 = vector.shape_cast %113 : vector<1x1x7x32xbf16> to vector<7x32xbf16>
    %115 = vector.extract_strided_slice %0 {offsets = [1, 0, 1, 0], sizes = [1, 1, 7, 32], strides = [1, 1, 1, 1]} : vector<4x4x8x32xbf16> to vector<1x1x7x32xbf16>
    %116 = vector.shape_cast %115 : vector<1x1x7x32xbf16> to vector<7x32xbf16>
    %117 = tpu.concatenate %108, %110, %112, %114, %116 in 1 : vector<7x32xbf16>, vector<7x32xbf16>, vector<7x32xbf16>, vector<7x32xbf16>, vector<7x32xbf16> -> vector<7x160xbf16>
    %118 = vector.extract_strided_slice %0 {offsets = [1, 1, 0, 0], sizes = [1, 1, 7, 32], strides = [1, 1, 1, 1]} : vector<4x4x8x32xbf16> to vector<1x1x7x32xbf16>
    %119 = vector.shape_cast %118 : vector<1x1x7x32xbf16> to vector<7x32xbf16>
    %120 = vector.extract_strided_slice %0 {offsets = [1, 2, 0, 0], sizes = [1, 1, 7, 32], strides = [1, 1, 1, 1]} : vector<4x4x8x32xbf16> to vector<1x1x7x32xbf16>
    %121 = vector.shape_cast %120 : vector<1x1x7x32xbf16> to vector<7x32xbf16>
    %122 = vector.extract_strided_slice %0 {offsets = [1, 3, 0, 0], sizes = [1, 1, 7, 32], strides = [1, 1, 1, 1]} : vector<4x4x8x32xbf16> to vector<1x1x7x32xbf16>
    %123 = vector.shape_cast %122 : vector<1x1x7x32xbf16> to vector<7x32xbf16>
    %124 = vector.extract_strided_slice %0 {offsets = [1, 0, 1, 0], sizes = [1, 1, 7, 32], strides = [1, 1, 1, 1]} : vector<4x4x8x32xbf16> to vector<1x1x7x32xbf16>
    %125 = vector.shape_cast %124 : vector<1x1x7x32xbf16> to vector<7x32xbf16>
    %126 = vector.extract_strided_slice %0 {offsets = [1, 1, 1, 0], sizes = [1, 1, 7, 32], strides = [1, 1, 1, 1]} : vector<4x4x8x32xbf16> to vector<1x1x7x32xbf16>
    %127 = vector.shape_cast %126 : vector<1x1x7x32xbf16> to vector<7x32xbf16>
    %128 = tpu.concatenate %119, %121, %123, %125, %127 in 1 : vector<7x32xbf16>, vector<7x32xbf16>, vector<7x32xbf16>, vector<7x32xbf16>, vector<7x32xbf16> -> vector<7x160xbf16>
    %129 = vector.extract_strided_slice %0 {offsets = [1, 2, 0, 0], sizes = [1, 1, 7, 32], strides = [1, 1, 1, 1]} : vector<4x4x8x32xbf16> to vector<1x1x7x32xbf16>
    %130 = vector.shape_cast %129 : vector<1x1x7x32xbf16> to vector<7x32xbf16>
    %131 = vector.extract_strided_slice %0 {offsets = [1, 3, 0, 0], sizes = [1, 1, 7, 32], strides = [1, 1, 1, 1]} : vector<4x4x8x32xbf16> to vector<1x1x7x32xbf16>
    %132 = vector.shape_cast %131 : vector<1x1x7x32xbf16> to vector<7x32xbf16>
    %133 = vector.extract_strided_slice %0 {offsets = [1, 0, 1, 0], sizes = [1, 1, 7, 32], strides = [1, 1, 1, 1]} : vector<4x4x8x32xbf16> to vector<1x1x7x32xbf16>
    %134 = vector.shape_cast %133 : vector<1x1x7x32xbf16> to vector<7x32xbf16>
    %135 = vector.extract_strided_slice %0 {offsets = [1, 1, 1, 0], sizes = [1, 1, 7, 32], strides = [1, 1, 1, 1]} : vector<4x4x8x32xbf16> to vector<1x1x7x32xbf16>
    %136 = vector.shape_cast %135 : vector<1x1x7x32xbf16> to vector<7x32xbf16>
    %137 = vector.extract_strided_slice %0 {offsets = [1, 2, 1, 0], sizes = [1, 1, 7, 32], strides = [1, 1, 1, 1]} : vector<4x4x8x32xbf16> to vector<1x1x7x32xbf16>
    %138 = vector.shape_cast %137 : vector<1x1x7x32xbf16> to vector<7x32xbf16>
    %139 = tpu.concatenate %130, %132, %134, %136, %138 in 1 : vector<7x32xbf16>, vector<7x32xbf16>, vector<7x32xbf16>, vector<7x32xbf16>, vector<7x32xbf16> -> vector<7x160xbf16>
    %140 = vector.extract_strided_slice %0 {offsets = [1, 3, 0, 0], sizes = [1, 1, 7, 32], strides = [1, 1, 1, 1]} : vector<4x4x8x32xbf16> to vector<1x1x7x32xbf16>
    %141 = vector.shape_cast %140 : vector<1x1x7x32xbf16> to vector<7x32xbf16>
    %142 = vector.extract_strided_slice %0 {offsets = [1, 0, 1, 0], sizes = [1, 1, 7, 32], strides = [1, 1, 1, 1]} : vector<4x4x8x32xbf16> to vector<1x1x7x32xbf16>
    %143 = vector.shape_cast %142 : vector<1x1x7x32xbf16> to vector<7x32xbf16>
    %144 = vector.extract_strided_slice %0 {offsets = [1, 1, 1, 0], sizes = [1, 1, 7, 32], strides = [1, 1, 1, 1]} : vector<4x4x8x32xbf16> to vector<1x1x7x32xbf16>
    %145 = vector.shape_cast %144 : vector<1x1x7x32xbf16> to vector<7x32xbf16>
    %146 = vector.extract_strided_slice %0 {offsets = [1, 2, 1, 0], sizes = [1, 1, 7, 32], strides = [1, 1, 1, 1]} : vector<4x4x8x32xbf16> to vector<1x1x7x32xbf16>
    %147 = vector.shape_cast %146 : vector<1x1x7x32xbf16> to vector<7x32xbf16>
    %148 = vector.extract_strided_slice %0 {offsets = [1, 3, 1, 0], sizes = [1, 1, 7, 32], strides = [1, 1, 1, 1]} : vector<4x4x8x32xbf16> to vector<1x1x7x32xbf16>
    %149 = vector.shape_cast %148 : vector<1x1x7x32xbf16> to vector<7x32xbf16>
    %150 = tpu.concatenate %141, %143, %145, %147, %149 in 1 : vector<7x32xbf16>, vector<7x32xbf16>, vector<7x32xbf16>, vector<7x32xbf16>, vector<7x32xbf16> -> vector<7x160xbf16>
    %151 = tpu.concatenate %117, %128, %139, %150 in 0 : vector<7x160xbf16>, vector<7x160xbf16>, vector<7x160xbf16>, vector<7x160xbf16> -> vector<28x160xbf16>
    %cst_19 = arith.constant dense<0.000000e+00> : vector<28x448xf32>
    %152 = tpu.matmul %151, %1, %cst_19 {dimension_numbers = #tpu.dot_dimension_numbers<[1], [0], [0], [1], [0, 0, 1, 1], [], []>} : vector<28x160xbf16>, vector<160x448xbf16>, vector<28x448xf32> -> vector<28x448xf32>
    %153 = vector.broadcast %4 : vector<1x448xf32> to vector<28x448xf32>
    %154 = arith.addf %152, %153 : vector<28x448xf32>
    %cst_20 = arith.constant 0.000000e+00 : f32
    %155 = vector.broadcast %cst_20 : f32 to vector<28x448xf32>
    %156 = arith.maximumf %154, %155 : vector<28x448xf32>
    %157 = vector.extract_strided_slice %156 {offsets = [0, 0], sizes = [7, 448], strides = [1, 1]} : vector<28x448xf32> to vector<7x448xf32>
    %158 = vector.extract_strided_slice %156 {offsets = [7, 0], sizes = [7, 448], strides = [1, 1]} : vector<28x448xf32> to vector<7x448xf32>
    %159 = arith.maximumf %157, %158 : vector<7x448xf32>
    %160 = vector.extract_strided_slice %156 {offsets = [14, 0], sizes = [7, 448], strides = [1, 1]} : vector<28x448xf32> to vector<7x448xf32>
    %161 = vector.extract_strided_slice %156 {offsets = [21, 0], sizes = [7, 448], strides = [1, 1]} : vector<28x448xf32> to vector<7x448xf32>
    %162 = arith.maximumf %160, %161 : vector<7x448xf32>
    %163 = vector.extract_strided_slice %159 {offsets = [0, 0], sizes = [7, 224], strides = [1, 1]} : vector<7x448xf32> to vector<7x224xf32>
    %164 = vector.extract_strided_slice %159 {offsets = [0, 224], sizes = [7, 224], strides = [1, 1]} : vector<7x448xf32> to vector<7x224xf32>
    %165 = arith.maximumf %163, %164 : vector<7x224xf32>
    %166 = arith.truncf %165 : vector<7x224xf32> to vector<7x224xbf16>
    %167 = vector.extract_strided_slice %162 {offsets = [0, 0], sizes = [7, 224], strides = [1, 1]} : vector<7x448xf32> to vector<7x224xf32>
    %168 = vector.extract_strided_slice %162 {offsets = [0, 224], sizes = [7, 224], strides = [1, 1]} : vector<7x448xf32> to vector<7x224xf32>
    %169 = arith.maximumf %167, %168 : vector<7x224xf32>
    %170 = arith.truncf %169 : vector<7x224xf32> to vector<7x224xbf16>
    %cst_21 = arith.constant 0.000000e+00 : bf16
    %171 = vector.broadcast %cst_21 : bf16 to vector<1x224xbf16>
    %172 = tpu.concatenate %171, %166, %171 in 0 : vector<1x224xbf16>, vector<7x224xbf16>, vector<1x224xbf16> -> vector<9x224xbf16>
    %173 = tpu.concatenate %171, %170, %171 in 0 : vector<1x224xbf16>, vector<7x224xbf16>, vector<1x224xbf16> -> vector<9x224xbf16>
    %174 = vector.extract_strided_slice %172 {offsets = [0, 0], sizes = [7, 224], strides = [1, 1]} : vector<9x224xbf16> to vector<7x224xbf16>
    %175 = vector.extract_strided_slice %173 {offsets = [0, 0], sizes = [7, 224], strides = [1, 1]} : vector<9x224xbf16> to vector<7x224xbf16>
    %176 = vector.extract_strided_slice %172 {offsets = [1, 0], sizes = [7, 224], strides = [1, 1]} : vector<9x224xbf16> to vector<7x224xbf16>
    %177 = vector.extract_strided_slice %173 {offsets = [1, 0], sizes = [7, 224], strides = [1, 1]} : vector<9x224xbf16> to vector<7x224xbf16>
    %178 = vector.extract_strided_slice %172 {offsets = [2, 0], sizes = [7, 224], strides = [1, 1]} : vector<9x224xbf16> to vector<7x224xbf16>
    %179 = tpu.concatenate %174, %175, %176, %177, %178 in 1 : vector<7x224xbf16>, vector<7x224xbf16>, vector<7x224xbf16>, vector<7x224xbf16>, vector<7x224xbf16> -> vector<7x1120xbf16>
    %180 = vector.extract_strided_slice %173 {offsets = [0, 0], sizes = [7, 224], strides = [1, 1]} : vector<9x224xbf16> to vector<7x224xbf16>
    %181 = vector.extract_strided_slice %172 {offsets = [1, 0], sizes = [7, 224], strides = [1, 1]} : vector<9x224xbf16> to vector<7x224xbf16>
    %182 = vector.extract_strided_slice %173 {offsets = [1, 0], sizes = [7, 224], strides = [1, 1]} : vector<9x224xbf16> to vector<7x224xbf16>
    %183 = vector.extract_strided_slice %172 {offsets = [2, 0], sizes = [7, 224], strides = [1, 1]} : vector<9x224xbf16> to vector<7x224xbf16>
    %184 = vector.extract_strided_slice %173 {offsets = [2, 0], sizes = [7, 224], strides = [1, 1]} : vector<9x224xbf16> to vector<7x224xbf16>
    %185 = tpu.concatenate %180, %181, %182, %183, %184 in 1 : vector<7x224xbf16>, vector<7x224xbf16>, vector<7x224xbf16>, vector<7x224xbf16>, vector<7x224xbf16> -> vector<7x1120xbf16>
    %186 = tpu.concatenate %179, %185 in 0 : vector<7x1120xbf16>, vector<7x1120xbf16> -> vector<14x1120xbf16>
    %cst_22 = arith.constant dense<0.000000e+00> : vector<14x448xf32>
    %187 = tpu.matmul %186, %2, %cst_22 {dimension_numbers = #tpu.dot_dimension_numbers<[1], [0], [0], [1], [0, 0, 1, 1], [], []>} : vector<14x1120xbf16>, vector<1120x448xbf16>, vector<14x448xf32> -> vector<14x448xf32>
    %188 = vector.broadcast %5 : vector<1x448xf32> to vector<14x448xf32>
    %189 = arith.addf %187, %188 : vector<14x448xf32>
    %cst_23 = arith.constant 0.000000e+00 : f32
    %190 = vector.broadcast %cst_23 : f32 to vector<14x448xf32>
    %191 = arith.maximumf %189, %190 : vector<14x448xf32>
    %192 = vector.extract_strided_slice %191 {offsets = [0, 0], sizes = [7, 448], strides = [1, 1]} : vector<14x448xf32> to vector<7x448xf32>
    %193 = vector.extract_strided_slice %191 {offsets = [7, 0], sizes = [7, 448], strides = [1, 1]} : vector<14x448xf32> to vector<7x448xf32>
    %194 = arith.maximumf %192, %193 : vector<7x448xf32>
    %195 = vector.extract_strided_slice %194 {offsets = [0, 0], sizes = [7, 224], strides = [1, 1]} : vector<7x448xf32> to vector<7x224xf32>
    %196 = vector.extract_strided_slice %194 {offsets = [0, 224], sizes = [7, 224], strides = [1, 1]} : vector<7x448xf32> to vector<7x224xf32>
    %197 = arith.maximumf %195, %196 : vector<7x224xf32>
    %198 = arith.truncf %197 : vector<7x224xf32> to vector<7x224xbf16>
    %199 = vector.extract_strided_slice %198 {offsets = [0, 0], sizes = [1, 224], strides = [1, 1]} : vector<7x224xbf16> to vector<1x224xbf16>
    %200 = vector.extract_strided_slice %198 {offsets = [1, 0], sizes = [1, 224], strides = [1, 1]} : vector<7x224xbf16> to vector<1x224xbf16>
    %201 = vector.extract_strided_slice %198 {offsets = [2, 0], sizes = [1, 224], strides = [1, 1]} : vector<7x224xbf16> to vector<1x224xbf16>
    %202 = vector.extract_strided_slice %198 {offsets = [3, 0], sizes = [1, 224], strides = [1, 1]} : vector<7x224xbf16> to vector<1x224xbf16>
    %203 = vector.extract_strided_slice %198 {offsets = [4, 0], sizes = [1, 224], strides = [1, 1]} : vector<7x224xbf16> to vector<1x224xbf16>
    %204 = vector.extract_strided_slice %198 {offsets = [5, 0], sizes = [1, 224], strides = [1, 1]} : vector<7x224xbf16> to vector<1x224xbf16>
    %205 = vector.extract_strided_slice %198 {offsets = [6, 0], sizes = [1, 224], strides = [1, 1]} : vector<7x224xbf16> to vector<1x224xbf16>
    %206 = tpu.concatenate %199, %200, %201, %202, %203, %204, %205 in 1 : vector<1x224xbf16>, vector<1x224xbf16>, vector<1x224xbf16>, vector<1x224xbf16>, vector<1x224xbf16>, vector<1x224xbf16>, vector<1x224xbf16> -> vector<1x1568xbf16>
    %207 = vector.extract_strided_slice %0 {offsets = [2, 0, 0, 0], sizes = [1, 1, 7, 32], strides = [1, 1, 1, 1]} : vector<4x4x8x32xbf16> to vector<1x1x7x32xbf16>
    %208 = vector.shape_cast %207 : vector<1x1x7x32xbf16> to vector<7x32xbf16>
    %209 = vector.extract_strided_slice %0 {offsets = [2, 1, 0, 0], sizes = [1, 1, 7, 32], strides = [1, 1, 1, 1]} : vector<4x4x8x32xbf16> to vector<1x1x7x32xbf16>
    %210 = vector.shape_cast %209 : vector<1x1x7x32xbf16> to vector<7x32xbf16>
    %211 = vector.extract_strided_slice %0 {offsets = [2, 2, 0, 0], sizes = [1, 1, 7, 32], strides = [1, 1, 1, 1]} : vector<4x4x8x32xbf16> to vector<1x1x7x32xbf16>
    %212 = vector.shape_cast %211 : vector<1x1x7x32xbf16> to vector<7x32xbf16>
    %213 = vector.extract_strided_slice %0 {offsets = [2, 3, 0, 0], sizes = [1, 1, 7, 32], strides = [1, 1, 1, 1]} : vector<4x4x8x32xbf16> to vector<1x1x7x32xbf16>
    %214 = vector.shape_cast %213 : vector<1x1x7x32xbf16> to vector<7x32xbf16>
    %215 = vector.extract_strided_slice %0 {offsets = [2, 0, 1, 0], sizes = [1, 1, 7, 32], strides = [1, 1, 1, 1]} : vector<4x4x8x32xbf16> to vector<1x1x7x32xbf16>
    %216 = vector.shape_cast %215 : vector<1x1x7x32xbf16> to vector<7x32xbf16>
    %217 = tpu.concatenate %208, %210, %212, %214, %216 in 1 : vector<7x32xbf16>, vector<7x32xbf16>, vector<7x32xbf16>, vector<7x32xbf16>, vector<7x32xbf16> -> vector<7x160xbf16>
    %218 = vector.extract_strided_slice %0 {offsets = [2, 1, 0, 0], sizes = [1, 1, 7, 32], strides = [1, 1, 1, 1]} : vector<4x4x8x32xbf16> to vector<1x1x7x32xbf16>
    %219 = vector.shape_cast %218 : vector<1x1x7x32xbf16> to vector<7x32xbf16>
    %220 = vector.extract_strided_slice %0 {offsets = [2, 2, 0, 0], sizes = [1, 1, 7, 32], strides = [1, 1, 1, 1]} : vector<4x4x8x32xbf16> to vector<1x1x7x32xbf16>
    %221 = vector.shape_cast %220 : vector<1x1x7x32xbf16> to vector<7x32xbf16>
    %222 = vector.extract_strided_slice %0 {offsets = [2, 3, 0, 0], sizes = [1, 1, 7, 32], strides = [1, 1, 1, 1]} : vector<4x4x8x32xbf16> to vector<1x1x7x32xbf16>
    %223 = vector.shape_cast %222 : vector<1x1x7x32xbf16> to vector<7x32xbf16>
    %224 = vector.extract_strided_slice %0 {offsets = [2, 0, 1, 0], sizes = [1, 1, 7, 32], strides = [1, 1, 1, 1]} : vector<4x4x8x32xbf16> to vector<1x1x7x32xbf16>
    %225 = vector.shape_cast %224 : vector<1x1x7x32xbf16> to vector<7x32xbf16>
    %226 = vector.extract_strided_slice %0 {offsets = [2, 1, 1, 0], sizes = [1, 1, 7, 32], strides = [1, 1, 1, 1]} : vector<4x4x8x32xbf16> to vector<1x1x7x32xbf16>
    %227 = vector.shape_cast %226 : vector<1x1x7x32xbf16> to vector<7x32xbf16>
    %228 = tpu.concatenate %219, %221, %223, %225, %227 in 1 : vector<7x32xbf16>, vector<7x32xbf16>, vector<7x32xbf16>, vector<7x32xbf16>, vector<7x32xbf16> -> vector<7x160xbf16>
    %229 = vector.extract_strided_slice %0 {offsets = [2, 2, 0, 0], sizes = [1, 1, 7, 32], strides = [1, 1, 1, 1]} : vector<4x4x8x32xbf16> to vector<1x1x7x32xbf16>
    %230 = vector.shape_cast %229 : vector<1x1x7x32xbf16> to vector<7x32xbf16>
    %231 = vector.extract_strided_slice %0 {offsets = [2, 3, 0, 0], sizes = [1, 1, 7, 32], strides = [1, 1, 1, 1]} : vector<4x4x8x32xbf16> to vector<1x1x7x32xbf16>
    %232 = vector.shape_cast %231 : vector<1x1x7x32xbf16> to vector<7x32xbf16>
    %233 = vector.extract_strided_slice %0 {offsets = [2, 0, 1, 0], sizes = [1, 1, 7, 32], strides = [1, 1, 1, 1]} : vector<4x4x8x32xbf16> to vector<1x1x7x32xbf16>
    %234 = vector.shape_cast %233 : vector<1x1x7x32xbf16> to vector<7x32xbf16>
    %235 = vector.extract_strided_slice %0 {offsets = [2, 1, 1, 0], sizes = [1, 1, 7, 32], strides = [1, 1, 1, 1]} : vector<4x4x8x32xbf16> to vector<1x1x7x32xbf16>
    %236 = vector.shape_cast %235 : vector<1x1x7x32xbf16> to vector<7x32xbf16>
    %237 = vector.extract_strided_slice %0 {offsets = [2, 2, 1, 0], sizes = [1, 1, 7, 32], strides = [1, 1, 1, 1]} : vector<4x4x8x32xbf16> to vector<1x1x7x32xbf16>
    %238 = vector.shape_cast %237 : vector<1x1x7x32xbf16> to vector<7x32xbf16>
    %239 = tpu.concatenate %230, %232, %234, %236, %238 in 1 : vector<7x32xbf16>, vector<7x32xbf16>, vector<7x32xbf16>, vector<7x32xbf16>, vector<7x32xbf16> -> vector<7x160xbf16>
    %240 = vector.extract_strided_slice %0 {offsets = [2, 3, 0, 0], sizes = [1, 1, 7, 32], strides = [1, 1, 1, 1]} : vector<4x4x8x32xbf16> to vector<1x1x7x32xbf16>
    %241 = vector.shape_cast %240 : vector<1x1x7x32xbf16> to vector<7x32xbf16>
    %242 = vector.extract_strided_slice %0 {offsets = [2, 0, 1, 0], sizes = [1, 1, 7, 32], strides = [1, 1, 1, 1]} : vector<4x4x8x32xbf16> to vector<1x1x7x32xbf16>
    %243 = vector.shape_cast %242 : vector<1x1x7x32xbf16> to vector<7x32xbf16>
    %244 = vector.extract_strided_slice %0 {offsets = [2, 1, 1, 0], sizes = [1, 1, 7, 32], strides = [1, 1, 1, 1]} : vector<4x4x8x32xbf16> to vector<1x1x7x32xbf16>
    %245 = vector.shape_cast %244 : vector<1x1x7x32xbf16> to vector<7x32xbf16>
    %246 = vector.extract_strided_slice %0 {offsets = [2, 2, 1, 0], sizes = [1, 1, 7, 32], strides = [1, 1, 1, 1]} : vector<4x4x8x32xbf16> to vector<1x1x7x32xbf16>
    %247 = vector.shape_cast %246 : vector<1x1x7x32xbf16> to vector<7x32xbf16>
    %248 = vector.extract_strided_slice %0 {offsets = [2, 3, 1, 0], sizes = [1, 1, 7, 32], strides = [1, 1, 1, 1]} : vector<4x4x8x32xbf16> to vector<1x1x7x32xbf16>
    %249 = vector.shape_cast %248 : vector<1x1x7x32xbf16> to vector<7x32xbf16>
    %250 = tpu.concatenate %241, %243, %245, %247, %249 in 1 : vector<7x32xbf16>, vector<7x32xbf16>, vector<7x32xbf16>, vector<7x32xbf16>, vector<7x32xbf16> -> vector<7x160xbf16>
    %251 = tpu.concatenate %217, %228, %239, %250 in 0 : vector<7x160xbf16>, vector<7x160xbf16>, vector<7x160xbf16>, vector<7x160xbf16> -> vector<28x160xbf16>
    %cst_24 = arith.constant dense<0.000000e+00> : vector<28x448xf32>
    %252 = tpu.matmul %251, %1, %cst_24 {dimension_numbers = #tpu.dot_dimension_numbers<[1], [0], [0], [1], [0, 0, 1, 1], [], []>} : vector<28x160xbf16>, vector<160x448xbf16>, vector<28x448xf32> -> vector<28x448xf32>
    %253 = vector.broadcast %4 : vector<1x448xf32> to vector<28x448xf32>
    %254 = arith.addf %252, %253 : vector<28x448xf32>
    %cst_25 = arith.constant 0.000000e+00 : f32
    %255 = vector.broadcast %cst_25 : f32 to vector<28x448xf32>
    %256 = arith.maximumf %254, %255 : vector<28x448xf32>
    %257 = vector.extract_strided_slice %256 {offsets = [0, 0], sizes = [7, 448], strides = [1, 1]} : vector<28x448xf32> to vector<7x448xf32>
    %258 = vector.extract_strided_slice %256 {offsets = [7, 0], sizes = [7, 448], strides = [1, 1]} : vector<28x448xf32> to vector<7x448xf32>
    %259 = arith.maximumf %257, %258 : vector<7x448xf32>
    %260 = vector.extract_strided_slice %256 {offsets = [14, 0], sizes = [7, 448], strides = [1, 1]} : vector<28x448xf32> to vector<7x448xf32>
    %261 = vector.extract_strided_slice %256 {offsets = [21, 0], sizes = [7, 448], strides = [1, 1]} : vector<28x448xf32> to vector<7x448xf32>
    %262 = arith.maximumf %260, %261 : vector<7x448xf32>
    %263 = vector.extract_strided_slice %259 {offsets = [0, 0], sizes = [7, 224], strides = [1, 1]} : vector<7x448xf32> to vector<7x224xf32>
    %264 = vector.extract_strided_slice %259 {offsets = [0, 224], sizes = [7, 224], strides = [1, 1]} : vector<7x448xf32> to vector<7x224xf32>
    %265 = arith.maximumf %263, %264 : vector<7x224xf32>
    %266 = arith.truncf %265 : vector<7x224xf32> to vector<7x224xbf16>
    %267 = vector.extract_strided_slice %262 {offsets = [0, 0], sizes = [7, 224], strides = [1, 1]} : vector<7x448xf32> to vector<7x224xf32>
    %268 = vector.extract_strided_slice %262 {offsets = [0, 224], sizes = [7, 224], strides = [1, 1]} : vector<7x448xf32> to vector<7x224xf32>
    %269 = arith.maximumf %267, %268 : vector<7x224xf32>
    %270 = arith.truncf %269 : vector<7x224xf32> to vector<7x224xbf16>
    %cst_26 = arith.constant 0.000000e+00 : bf16
    %271 = vector.broadcast %cst_26 : bf16 to vector<1x224xbf16>
    %272 = tpu.concatenate %271, %266, %271 in 0 : vector<1x224xbf16>, vector<7x224xbf16>, vector<1x224xbf16> -> vector<9x224xbf16>
    %273 = tpu.concatenate %271, %270, %271 in 0 : vector<1x224xbf16>, vector<7x224xbf16>, vector<1x224xbf16> -> vector<9x224xbf16>
    %274 = vector.extract_strided_slice %272 {offsets = [0, 0], sizes = [7, 224], strides = [1, 1]} : vector<9x224xbf16> to vector<7x224xbf16>
    %275 = vector.extract_strided_slice %273 {offsets = [0, 0], sizes = [7, 224], strides = [1, 1]} : vector<9x224xbf16> to vector<7x224xbf16>
    %276 = vector.extract_strided_slice %272 {offsets = [1, 0], sizes = [7, 224], strides = [1, 1]} : vector<9x224xbf16> to vector<7x224xbf16>
    %277 = vector.extract_strided_slice %273 {offsets = [1, 0], sizes = [7, 224], strides = [1, 1]} : vector<9x224xbf16> to vector<7x224xbf16>
    %278 = vector.extract_strided_slice %272 {offsets = [2, 0], sizes = [7, 224], strides = [1, 1]} : vector<9x224xbf16> to vector<7x224xbf16>
    %279 = tpu.concatenate %274, %275, %276, %277, %278 in 1 : vector<7x224xbf16>, vector<7x224xbf16>, vector<7x224xbf16>, vector<7x224xbf16>, vector<7x224xbf16> -> vector<7x1120xbf16>
    %280 = vector.extract_strided_slice %273 {offsets = [0, 0], sizes = [7, 224], strides = [1, 1]} : vector<9x224xbf16> to vector<7x224xbf16>
    %281 = vector.extract_strided_slice %272 {offsets = [1, 0], sizes = [7, 224], strides = [1, 1]} : vector<9x224xbf16> to vector<7x224xbf16>
    %282 = vector.extract_strided_slice %273 {offsets = [1, 0], sizes = [7, 224], strides = [1, 1]} : vector<9x224xbf16> to vector<7x224xbf16>
    %283 = vector.extract_strided_slice %272 {offsets = [2, 0], sizes = [7, 224], strides = [1, 1]} : vector<9x224xbf16> to vector<7x224xbf16>
    %284 = vector.extract_strided_slice %273 {offsets = [2, 0], sizes = [7, 224], strides = [1, 1]} : vector<9x224xbf16> to vector<7x224xbf16>
    %285 = tpu.concatenate %280, %281, %282, %283, %284 in 1 : vector<7x224xbf16>, vector<7x224xbf16>, vector<7x224xbf16>, vector<7x224xbf16>, vector<7x224xbf16> -> vector<7x1120xbf16>
    %286 = tpu.concatenate %279, %285 in 0 : vector<7x1120xbf16>, vector<7x1120xbf16> -> vector<14x1120xbf16>
    %cst_27 = arith.constant dense<0.000000e+00> : vector<14x448xf32>
    %287 = tpu.matmul %286, %2, %cst_27 {dimension_numbers = #tpu.dot_dimension_numbers<[1], [0], [0], [1], [0, 0, 1, 1], [], []>} : vector<14x1120xbf16>, vector<1120x448xbf16>, vector<14x448xf32> -> vector<14x448xf32>
    %288 = vector.broadcast %5 : vector<1x448xf32> to vector<14x448xf32>
    %289 = arith.addf %287, %288 : vector<14x448xf32>
    %cst_28 = arith.constant 0.000000e+00 : f32
    %290 = vector.broadcast %cst_28 : f32 to vector<14x448xf32>
    %291 = arith.maximumf %289, %290 : vector<14x448xf32>
    %292 = vector.extract_strided_slice %291 {offsets = [0, 0], sizes = [7, 448], strides = [1, 1]} : vector<14x448xf32> to vector<7x448xf32>
    %293 = vector.extract_strided_slice %291 {offsets = [7, 0], sizes = [7, 448], strides = [1, 1]} : vector<14x448xf32> to vector<7x448xf32>
    %294 = arith.maximumf %292, %293 : vector<7x448xf32>
    %295 = vector.extract_strided_slice %294 {offsets = [0, 0], sizes = [7, 224], strides = [1, 1]} : vector<7x448xf32> to vector<7x224xf32>
    %296 = vector.extract_strided_slice %294 {offsets = [0, 224], sizes = [7, 224], strides = [1, 1]} : vector<7x448xf32> to vector<7x224xf32>
    %297 = arith.maximumf %295, %296 : vector<7x224xf32>
    %298 = arith.truncf %297 : vector<7x224xf32> to vector<7x224xbf16>
    %299 = vector.extract_strided_slice %298 {offsets = [0, 0], sizes = [1, 224], strides = [1, 1]} : vector<7x224xbf16> to vector<1x224xbf16>
    %300 = vector.extract_strided_slice %298 {offsets = [1, 0], sizes = [1, 224], strides = [1, 1]} : vector<7x224xbf16> to vector<1x224xbf16>
    %301 = vector.extract_strided_slice %298 {offsets = [2, 0], sizes = [1, 224], strides = [1, 1]} : vector<7x224xbf16> to vector<1x224xbf16>
    %302 = vector.extract_strided_slice %298 {offsets = [3, 0], sizes = [1, 224], strides = [1, 1]} : vector<7x224xbf16> to vector<1x224xbf16>
    %303 = vector.extract_strided_slice %298 {offsets = [4, 0], sizes = [1, 224], strides = [1, 1]} : vector<7x224xbf16> to vector<1x224xbf16>
    %304 = vector.extract_strided_slice %298 {offsets = [5, 0], sizes = [1, 224], strides = [1, 1]} : vector<7x224xbf16> to vector<1x224xbf16>
    %305 = vector.extract_strided_slice %298 {offsets = [6, 0], sizes = [1, 224], strides = [1, 1]} : vector<7x224xbf16> to vector<1x224xbf16>
    %306 = tpu.concatenate %299, %300, %301, %302, %303, %304, %305 in 1 : vector<1x224xbf16>, vector<1x224xbf16>, vector<1x224xbf16>, vector<1x224xbf16>, vector<1x224xbf16>, vector<1x224xbf16>, vector<1x224xbf16> -> vector<1x1568xbf16>
    %307 = vector.extract_strided_slice %0 {offsets = [3, 0, 0, 0], sizes = [1, 1, 7, 32], strides = [1, 1, 1, 1]} : vector<4x4x8x32xbf16> to vector<1x1x7x32xbf16>
    %308 = vector.shape_cast %307 : vector<1x1x7x32xbf16> to vector<7x32xbf16>
    %309 = vector.extract_strided_slice %0 {offsets = [3, 1, 0, 0], sizes = [1, 1, 7, 32], strides = [1, 1, 1, 1]} : vector<4x4x8x32xbf16> to vector<1x1x7x32xbf16>
    %310 = vector.shape_cast %309 : vector<1x1x7x32xbf16> to vector<7x32xbf16>
    %311 = vector.extract_strided_slice %0 {offsets = [3, 2, 0, 0], sizes = [1, 1, 7, 32], strides = [1, 1, 1, 1]} : vector<4x4x8x32xbf16> to vector<1x1x7x32xbf16>
    %312 = vector.shape_cast %311 : vector<1x1x7x32xbf16> to vector<7x32xbf16>
    %313 = vector.extract_strided_slice %0 {offsets = [3, 3, 0, 0], sizes = [1, 1, 7, 32], strides = [1, 1, 1, 1]} : vector<4x4x8x32xbf16> to vector<1x1x7x32xbf16>
    %314 = vector.shape_cast %313 : vector<1x1x7x32xbf16> to vector<7x32xbf16>
    %315 = vector.extract_strided_slice %0 {offsets = [3, 0, 1, 0], sizes = [1, 1, 7, 32], strides = [1, 1, 1, 1]} : vector<4x4x8x32xbf16> to vector<1x1x7x32xbf16>
    %316 = vector.shape_cast %315 : vector<1x1x7x32xbf16> to vector<7x32xbf16>
    %317 = tpu.concatenate %308, %310, %312, %314, %316 in 1 : vector<7x32xbf16>, vector<7x32xbf16>, vector<7x32xbf16>, vector<7x32xbf16>, vector<7x32xbf16> -> vector<7x160xbf16>
    %318 = vector.extract_strided_slice %0 {offsets = [3, 1, 0, 0], sizes = [1, 1, 7, 32], strides = [1, 1, 1, 1]} : vector<4x4x8x32xbf16> to vector<1x1x7x32xbf16>
    %319 = vector.shape_cast %318 : vector<1x1x7x32xbf16> to vector<7x32xbf16>
    %320 = vector.extract_strided_slice %0 {offsets = [3, 2, 0, 0], sizes = [1, 1, 7, 32], strides = [1, 1, 1, 1]} : vector<4x4x8x32xbf16> to vector<1x1x7x32xbf16>
    %321 = vector.shape_cast %320 : vector<1x1x7x32xbf16> to vector<7x32xbf16>
    %322 = vector.extract_strided_slice %0 {offsets = [3, 3, 0, 0], sizes = [1, 1, 7, 32], strides = [1, 1, 1, 1]} : vector<4x4x8x32xbf16> to vector<1x1x7x32xbf16>
    %323 = vector.shape_cast %322 : vector<1x1x7x32xbf16> to vector<7x32xbf16>
    %324 = vector.extract_strided_slice %0 {offsets = [3, 0, 1, 0], sizes = [1, 1, 7, 32], strides = [1, 1, 1, 1]} : vector<4x4x8x32xbf16> to vector<1x1x7x32xbf16>
    %325 = vector.shape_cast %324 : vector<1x1x7x32xbf16> to vector<7x32xbf16>
    %326 = vector.extract_strided_slice %0 {offsets = [3, 1, 1, 0], sizes = [1, 1, 7, 32], strides = [1, 1, 1, 1]} : vector<4x4x8x32xbf16> to vector<1x1x7x32xbf16>
    %327 = vector.shape_cast %326 : vector<1x1x7x32xbf16> to vector<7x32xbf16>
    %328 = tpu.concatenate %319, %321, %323, %325, %327 in 1 : vector<7x32xbf16>, vector<7x32xbf16>, vector<7x32xbf16>, vector<7x32xbf16>, vector<7x32xbf16> -> vector<7x160xbf16>
    %329 = vector.extract_strided_slice %0 {offsets = [3, 2, 0, 0], sizes = [1, 1, 7, 32], strides = [1, 1, 1, 1]} : vector<4x4x8x32xbf16> to vector<1x1x7x32xbf16>
    %330 = vector.shape_cast %329 : vector<1x1x7x32xbf16> to vector<7x32xbf16>
    %331 = vector.extract_strided_slice %0 {offsets = [3, 3, 0, 0], sizes = [1, 1, 7, 32], strides = [1, 1, 1, 1]} : vector<4x4x8x32xbf16> to vector<1x1x7x32xbf16>
    %332 = vector.shape_cast %331 : vector<1x1x7x32xbf16> to vector<7x32xbf16>
    %333 = vector.extract_strided_slice %0 {offsets = [3, 0, 1, 0], sizes = [1, 1, 7, 32], strides = [1, 1, 1, 1]} : vector<4x4x8x32xbf16> to vector<1x1x7x32xbf16>
    %334 = vector.shape_cast %333 : vector<1x1x7x32xbf16> to vector<7x32xbf16>
    %335 = vector.extract_strided_slice %0 {offsets = [3, 1, 1, 0], sizes = [1, 1, 7, 32], strides = [1, 1, 1, 1]} : vector<4x4x8x32xbf16> to vector<1x1x7x32xbf16>
    %336 = vector.shape_cast %335 : vector<1x1x7x32xbf16> to vector<7x32xbf16>
    %337 = vector.extract_strided_slice %0 {offsets = [3, 2, 1, 0], sizes = [1, 1, 7, 32], strides = [1, 1, 1, 1]} : vector<4x4x8x32xbf16> to vector<1x1x7x32xbf16>
    %338 = vector.shape_cast %337 : vector<1x1x7x32xbf16> to vector<7x32xbf16>
    %339 = tpu.concatenate %330, %332, %334, %336, %338 in 1 : vector<7x32xbf16>, vector<7x32xbf16>, vector<7x32xbf16>, vector<7x32xbf16>, vector<7x32xbf16> -> vector<7x160xbf16>
    %340 = vector.extract_strided_slice %0 {offsets = [3, 3, 0, 0], sizes = [1, 1, 7, 32], strides = [1, 1, 1, 1]} : vector<4x4x8x32xbf16> to vector<1x1x7x32xbf16>
    %341 = vector.shape_cast %340 : vector<1x1x7x32xbf16> to vector<7x32xbf16>
    %342 = vector.extract_strided_slice %0 {offsets = [3, 0, 1, 0], sizes = [1, 1, 7, 32], strides = [1, 1, 1, 1]} : vector<4x4x8x32xbf16> to vector<1x1x7x32xbf16>
    %343 = vector.shape_cast %342 : vector<1x1x7x32xbf16> to vector<7x32xbf16>
    %344 = vector.extract_strided_slice %0 {offsets = [3, 1, 1, 0], sizes = [1, 1, 7, 32], strides = [1, 1, 1, 1]} : vector<4x4x8x32xbf16> to vector<1x1x7x32xbf16>
    %345 = vector.shape_cast %344 : vector<1x1x7x32xbf16> to vector<7x32xbf16>
    %346 = vector.extract_strided_slice %0 {offsets = [3, 2, 1, 0], sizes = [1, 1, 7, 32], strides = [1, 1, 1, 1]} : vector<4x4x8x32xbf16> to vector<1x1x7x32xbf16>
    %347 = vector.shape_cast %346 : vector<1x1x7x32xbf16> to vector<7x32xbf16>
    %348 = vector.extract_strided_slice %0 {offsets = [3, 3, 1, 0], sizes = [1, 1, 7, 32], strides = [1, 1, 1, 1]} : vector<4x4x8x32xbf16> to vector<1x1x7x32xbf16>
    %349 = vector.shape_cast %348 : vector<1x1x7x32xbf16> to vector<7x32xbf16>
    %350 = tpu.concatenate %341, %343, %345, %347, %349 in 1 : vector<7x32xbf16>, vector<7x32xbf16>, vector<7x32xbf16>, vector<7x32xbf16>, vector<7x32xbf16> -> vector<7x160xbf16>
    %351 = tpu.concatenate %317, %328, %339, %350 in 0 : vector<7x160xbf16>, vector<7x160xbf16>, vector<7x160xbf16>, vector<7x160xbf16> -> vector<28x160xbf16>
    %cst_29 = arith.constant dense<0.000000e+00> : vector<28x448xf32>
    %352 = tpu.matmul %351, %1, %cst_29 {dimension_numbers = #tpu.dot_dimension_numbers<[1], [0], [0], [1], [0, 0, 1, 1], [], []>} : vector<28x160xbf16>, vector<160x448xbf16>, vector<28x448xf32> -> vector<28x448xf32>
    %353 = vector.broadcast %4 : vector<1x448xf32> to vector<28x448xf32>
    %354 = arith.addf %352, %353 : vector<28x448xf32>
    %cst_30 = arith.constant 0.000000e+00 : f32
    %355 = vector.broadcast %cst_30 : f32 to vector<28x448xf32>
    %356 = arith.maximumf %354, %355 : vector<28x448xf32>
    %357 = vector.extract_strided_slice %356 {offsets = [0, 0], sizes = [7, 448], strides = [1, 1]} : vector<28x448xf32> to vector<7x448xf32>
    %358 = vector.extract_strided_slice %356 {offsets = [7, 0], sizes = [7, 448], strides = [1, 1]} : vector<28x448xf32> to vector<7x448xf32>
    %359 = arith.maximumf %357, %358 : vector<7x448xf32>
    %360 = vector.extract_strided_slice %356 {offsets = [14, 0], sizes = [7, 448], strides = [1, 1]} : vector<28x448xf32> to vector<7x448xf32>
    %361 = vector.extract_strided_slice %356 {offsets = [21, 0], sizes = [7, 448], strides = [1, 1]} : vector<28x448xf32> to vector<7x448xf32>
    %362 = arith.maximumf %360, %361 : vector<7x448xf32>
    %363 = vector.extract_strided_slice %359 {offsets = [0, 0], sizes = [7, 224], strides = [1, 1]} : vector<7x448xf32> to vector<7x224xf32>
    %364 = vector.extract_strided_slice %359 {offsets = [0, 224], sizes = [7, 224], strides = [1, 1]} : vector<7x448xf32> to vector<7x224xf32>
    %365 = arith.maximumf %363, %364 : vector<7x224xf32>
    %366 = arith.truncf %365 : vector<7x224xf32> to vector<7x224xbf16>
    %367 = vector.extract_strided_slice %362 {offsets = [0, 0], sizes = [7, 224], strides = [1, 1]} : vector<7x448xf32> to vector<7x224xf32>
    %368 = vector.extract_strided_slice %362 {offsets = [0, 224], sizes = [7, 224], strides = [1, 1]} : vector<7x448xf32> to vector<7x224xf32>
    %369 = arith.maximumf %367, %368 : vector<7x224xf32>
    %370 = arith.truncf %369 : vector<7x224xf32> to vector<7x224xbf16>
    %cst_31 = arith.constant 0.000000e+00 : bf16
    %371 = vector.broadcast %cst_31 : bf16 to vector<1x224xbf16>
    %372 = tpu.concatenate %371, %366, %371 in 0 : vector<1x224xbf16>, vector<7x224xbf16>, vector<1x224xbf16> -> vector<9x224xbf16>
    %373 = tpu.concatenate %371, %370, %371 in 0 : vector<1x224xbf16>, vector<7x224xbf16>, vector<1x224xbf16> -> vector<9x224xbf16>
    %374 = vector.extract_strided_slice %372 {offsets = [0, 0], sizes = [7, 224], strides = [1, 1]} : vector<9x224xbf16> to vector<7x224xbf16>
    %375 = vector.extract_strided_slice %373 {offsets = [0, 0], sizes = [7, 224], strides = [1, 1]} : vector<9x224xbf16> to vector<7x224xbf16>
    %376 = vector.extract_strided_slice %372 {offsets = [1, 0], sizes = [7, 224], strides = [1, 1]} : vector<9x224xbf16> to vector<7x224xbf16>
    %377 = vector.extract_strided_slice %373 {offsets = [1, 0], sizes = [7, 224], strides = [1, 1]} : vector<9x224xbf16> to vector<7x224xbf16>
    %378 = vector.extract_strided_slice %372 {offsets = [2, 0], sizes = [7, 224], strides = [1, 1]} : vector<9x224xbf16> to vector<7x224xbf16>
    %379 = tpu.concatenate %374, %375, %376, %377, %378 in 1 : vector<7x224xbf16>, vector<7x224xbf16>, vector<7x224xbf16>, vector<7x224xbf16>, vector<7x224xbf16> -> vector<7x1120xbf16>
    %380 = vector.extract_strided_slice %373 {offsets = [0, 0], sizes = [7, 224], strides = [1, 1]} : vector<9x224xbf16> to vector<7x224xbf16>
    %381 = vector.extract_strided_slice %372 {offsets = [1, 0], sizes = [7, 224], strides = [1, 1]} : vector<9x224xbf16> to vector<7x224xbf16>
    %382 = vector.extract_strided_slice %373 {offsets = [1, 0], sizes = [7, 224], strides = [1, 1]} : vector<9x224xbf16> to vector<7x224xbf16>
    %383 = vector.extract_strided_slice %372 {offsets = [2, 0], sizes = [7, 224], strides = [1, 1]} : vector<9x224xbf16> to vector<7x224xbf16>
    %384 = vector.extract_strided_slice %373 {offsets = [2, 0], sizes = [7, 224], strides = [1, 1]} : vector<9x224xbf16> to vector<7x224xbf16>
    %385 = tpu.concatenate %380, %381, %382, %383, %384 in 1 : vector<7x224xbf16>, vector<7x224xbf16>, vector<7x224xbf16>, vector<7x224xbf16>, vector<7x224xbf16> -> vector<7x1120xbf16>
    %386 = tpu.concatenate %379, %385 in 0 : vector<7x1120xbf16>, vector<7x1120xbf16> -> vector<14x1120xbf16>
    %cst_32 = arith.constant dense<0.000000e+00> : vector<14x448xf32>
    %387 = tpu.matmul %386, %2, %cst_32 {dimension_numbers = #tpu.dot_dimension_numbers<[1], [0], [0], [1], [0, 0, 1, 1], [], []>} : vector<14x1120xbf16>, vector<1120x448xbf16>, vector<14x448xf32> -> vector<14x448xf32>
    %388 = vector.broadcast %5 : vector<1x448xf32> to vector<14x448xf32>
    %389 = arith.addf %387, %388 : vector<14x448xf32>
    %cst_33 = arith.constant 0.000000e+00 : f32
    %390 = vector.broadcast %cst_33 : f32 to vector<14x448xf32>
    %391 = arith.maximumf %389, %390 : vector<14x448xf32>
    %392 = vector.extract_strided_slice %391 {offsets = [0, 0], sizes = [7, 448], strides = [1, 1]} : vector<14x448xf32> to vector<7x448xf32>
    %393 = vector.extract_strided_slice %391 {offsets = [7, 0], sizes = [7, 448], strides = [1, 1]} : vector<14x448xf32> to vector<7x448xf32>
    %394 = arith.maximumf %392, %393 : vector<7x448xf32>
    %395 = vector.extract_strided_slice %394 {offsets = [0, 0], sizes = [7, 224], strides = [1, 1]} : vector<7x448xf32> to vector<7x224xf32>
    %396 = vector.extract_strided_slice %394 {offsets = [0, 224], sizes = [7, 224], strides = [1, 1]} : vector<7x448xf32> to vector<7x224xf32>
    %397 = arith.maximumf %395, %396 : vector<7x224xf32>
    %398 = arith.truncf %397 : vector<7x224xf32> to vector<7x224xbf16>
    %399 = vector.extract_strided_slice %398 {offsets = [0, 0], sizes = [1, 224], strides = [1, 1]} : vector<7x224xbf16> to vector<1x224xbf16>
    %400 = vector.extract_strided_slice %398 {offsets = [1, 0], sizes = [1, 224], strides = [1, 1]} : vector<7x224xbf16> to vector<1x224xbf16>
    %401 = vector.extract_strided_slice %398 {offsets = [2, 0], sizes = [1, 224], strides = [1, 1]} : vector<7x224xbf16> to vector<1x224xbf16>
    %402 = vector.extract_strided_slice %398 {offsets = [3, 0], sizes = [1, 224], strides = [1, 1]} : vector<7x224xbf16> to vector<1x224xbf16>
    %403 = vector.extract_strided_slice %398 {offsets = [4, 0], sizes = [1, 224], strides = [1, 1]} : vector<7x224xbf16> to vector<1x224xbf16>
    %404 = vector.extract_strided_slice %398 {offsets = [5, 0], sizes = [1, 224], strides = [1, 1]} : vector<7x224xbf16> to vector<1x224xbf16>
    %405 = vector.extract_strided_slice %398 {offsets = [6, 0], sizes = [1, 224], strides = [1, 1]} : vector<7x224xbf16> to vector<1x224xbf16>
    %406 = tpu.concatenate %399, %400, %401, %402, %403, %404, %405 in 1 : vector<1x224xbf16>, vector<1x224xbf16>, vector<1x224xbf16>, vector<1x224xbf16>, vector<1x224xbf16>, vector<1x224xbf16>, vector<1x224xbf16> -> vector<1x1568xbf16>
    %407 = tpu.concatenate %106, %206, %306, %406 in 0 : vector<1x1568xbf16>, vector<1x1568xbf16>, vector<1x1568xbf16>, vector<1x1568xbf16> -> vector<4x1568xbf16>
    %cst_34 = arith.constant dense<0.000000e+00> : vector<4x128xf32>
    %408 = tpu.matmul %407, %3, %cst_34 {dimension_numbers = #tpu.dot_dimension_numbers<[1], [0], [0], [1], [0, 0, 1, 1], [], []>} : vector<4x1568xbf16>, vector<1568x128xbf16>, vector<4x128xf32> -> vector<4x128xf32>
    %409 = vector.broadcast %6 : vector<1x128xf32> to vector<4x128xf32>
    %410 = arith.addf %408, %409 : vector<4x128xf32>
    %c0_35 = arith.constant 0 : index
    %c0_36 = arith.constant 0 : index
    %c0_37 = arith.constant 0 : index
    %411 = vector.load %arg8[%c0_35, %c0_36, %c0_37] : memref<1x4x128xf32, #tpu.memory_space<vmem>>, vector<1x4x128xf32>
    %412 = vector.shape_cast %411 : vector<1x4x128xf32> to vector<4x128xf32>
    %413 = vector.shape_cast %410 : vector<4x128xf32> to vector<1x4x128xf32>
    tpu.vector_store %arg8[%c0_35, %c0_36, %c0_37], %413 {strides = array<i32>} : memref<1x4x128xf32, #tpu.memory_space<vmem>>, vector<1x4x128xf32>,
    return
  }
  func.func @transform_0(%arg0: i32) -> (i32, i32, i32, i32) {
    %c0_i32 = arith.constant 0 : i32
    %c0_i32_0 = arith.constant 0 : i32
    %c0_i32_1 = arith.constant 0 : i32
    %c0_i32_2 = arith.constant 0 : i32
    return %arg0, %c0_i32, %c0_i32_0, %c0_i32_1 : i32, i32, i32, i32
  }
  func.func @transform_1(%arg0: i32) -> (i32, i32) {
    %c0_i32 = arith.constant 0 : i32
    %c0_i32_0 = arith.constant 0 : i32
    %c0_i32_1 = arith.constant 0 : i32
    return %c0_i32, %c0_i32_0 : i32, i32
  }
  func.func @transform_2(%arg0: i32) -> (i32, i32) {
    %c0_i32 = arith.constant 0 : i32
    %c0_i32_0 = arith.constant 0 : i32
    %c0_i32_1 = arith.constant 0 : i32
    return %c0_i32, %c0_i32_0 : i32, i32
  }
  func.func @transform_3(%arg0: i32) -> (i32, i32) {
    %c0_i32 = arith.constant 0 : i32
    %c0_i32_0 = arith.constant 0 : i32
    %c0_i32_1 = arith.constant 0 : i32
    return %c0_i32, %c0_i32_0 : i32, i32
  }
  func.func @transform_4(%arg0: i32) -> (i32, i32) {
    %c0_i32 = arith.constant 0 : i32
    %c0_i32_0 = arith.constant 0 : i32
    %c0_i32_1 = arith.constant 0 : i32
    return %c0_i32, %c0_i32_0 : i32, i32
  }
  func.func @transform_5(%arg0: i32) -> (i32, i32) {
    %c0_i32 = arith.constant 0 : i32
    %c0_i32_0 = arith.constant 0 : i32
    %c0_i32_1 = arith.constant 0 : i32
    return %c0_i32, %c0_i32_0 : i32, i32
  }
  func.func @transform_6(%arg0: i32) -> (i32, i32) {
    %c0_i32 = arith.constant 0 : i32
    %c0_i32_0 = arith.constant 0 : i32
    %c0_i32_1 = arith.constant 0 : i32
    return %c0_i32, %c0_i32_0 : i32, i32
  }
  func.func @transform_7(%arg0: i32) -> (i32, i32, i32) {
    %c0_i32 = arith.constant 0 : i32
    %c0_i32_0 = arith.constant 0 : i32
    %c0_i32_1 = arith.constant 0 : i32
    return %arg0, %c0_i32, %c0_i32_0 : i32, i32, i32
  }
}

</mosaic_0001>

<bundles_post_ra>
// kernel: cnn_forward.1
= control target key start
LH: loop header
LB: loop body
LE: loop exit
PB: predicated region body
PF: predicated region fallthrough
CT: control target
= control target key end

     0   :  { %12 = vsyncpa [#allocation3], 0  ;;  %s16566_s0 = inlined_call_operand.vmem [shape: bf16[8,4,8,32], index: 0, kind: input, shape index: {}]   ;;  %s16567_s1 = inlined_call_operand.vmem [shape: bf16[160,448], index: 1, kind: input, shape index: {}]   ;;  %s16568_s2 = inlined_call_operand.vmem [shape: f32[1,448], index: 2, kind: input, shape index: {}]   ;;  %s16569_s3 = inlined_call_operand.vmem [shape: bf16[1120,448], index: 3, kind: input, shape index: {}]   ;;  %s16570_s4 = inlined_call_operand.vmem [shape: f32[1,448], index: 4, kind: input, shape index: {}]   ;;  %s16571_s5 = inlined_call_operand.vmem [shape: bf16[1568,128], index: 5, kind: input, shape index: {}]   ;;  %s16572_s6 = inlined_call_operand.vmem [shape: f32[1,128], index: 6, kind: input, shape index: {}]   ;;  %s16573_s7 = inlined_call_operand.hbm [shape: f32[2,4,128], index: 7, kind: output, shape index: {}]  }
   0x1   :  { %14 = vsyncpa [#allocation3 + $0x1], 0  ;;  %s10654_s24 = smov 0   ;;  %s10656_s25 = smov 0  }
   0x2   :  { %s10658_s26 = smov 0   ;;  %s10660_s27 = smov 0  }
   0x3 LB: > { %s10675_s28 = sadd.s32 4294967295, %s10605_s27   ;;  %s8214_s29 = sadd.s32 4294967294, %s10605_s27   ;;  %s10605_s27 = sphi %s10660_s27, %s16590_s27   ;;  %s10601_s26 = sphi %s10658_s26, %s16589_s26   ;;  %s10597_s25 = sphi %s10656_s25, %s16588_s25   ;;  %s10593_s24 = sphi %s10654_s24, %s16587_s24  }
   0x4   : > { %s10679_s30 = sadd.s32 1, %s10605_s27   ;;  %s179_s8 = sadd.s32 1, %s10601_s26 }
   0x5   : > { %s176_s9 = ssub.s32 %s10605_s27, %s10679_s30  ;;  %p189_p0 = scmp.ne.s32.totalorder %s10601_s26, %s10597_s25 }
   0x6   : > { %p177_p1 = scmp.eq.s32.totalorder %s176_s9, 0  ;;  %p190_p2 = scmp.eq.s32.totalorder %s10675_s28, 1 }
   0x7   : > { %p195_p3 = scmp.ne.s32.totalorder %s10597_s25, %s10593_s24  ;;  %p196_p4 = scmp.eq.s32.totalorder %s8214_s29, 1 }
   0x8   : > { %s10690_s10 = scalar_select %p177_p1, %s10601_s26, %s179_s8  }
   0x9   : > { %p10692_p5 = por %p190_p2, %p189_p0  ;;  %p10696_p6 = por %p196_p4, %p195_p3 }
   0xa   : > { %p8217_p7 = scmp.ge.s32.totalorder %s10605_s27, 1  ;;  %p242_p8 = scmp.lt.s32.totalorder %s10605_s27, 3 }
   0xc   : > { %p243_p9 = pnand %p8217_p7, %p242_p8 }
   0xd   : > { %s8219_s13 = sshll.u32 (!%p243_p9), %s10675_s28, 2  ;;  %s10608_s9 = smov (!%p243_p9), 64  }
   0xe   : > { %246 = sbr.rel (%p243_p9) target bundleno = 3801 (0xed9), region = 48  ;;  %p276_p10 = scmp.lt.s32.totalorder (!%p243_p9), %s8219_s13, 7 }
   0xf   : > { %s10609_s19 = smov (!%p243_p9), 96   ;;  %s16584_s29 = smov (!%p243_p9), 32  }
  0x10   : > { %s272_s21 = sand.u32 (!%p243_p9), 1, %s10597_s25  }
  0x11   : > { %s8218_s22 = sshll.u32 (!%p243_p9), %s272_s21, 2  ;;  %s8142_s16 = scalar_lea.sflag (!%p243_p9), [#allocation3], %s272_s21 }
  0x13   : > { %v8990_v0 = vld [vmem:[%s16567_s1 + $0xe4] ss:$16 sps:$4 sm:$0xff]   ;;  %v8992_v1 = vld [vmem:[%s16567_s1 + $0xec] ss:$16 sps:$4 sm:$0xff]   ;;  %v8994_v2 = vld [vmem:[%s16567_s1 + $0xe0] ss:$16 sps:$4 sm:$0xff]  }
  0x14   : > { %1198 = vmatprep.subr.bf16.mxu0 %v8990_v0  ;;  %v8995_v3 = vld [vmem:[%s16567_s1 + $0xe8] ss:$16 sps:$4 sm:$0xff]   ;;  %s16592_s13 = smov (!%p276_p10, %s8219_s13), 7  ;;  %1251 = vmatprep.subr.bf16.mxu1 %v8992_v1  ;;  %v8996_v4 = vld [vmem:[%s16567_s1 + $0xc4] ss:$16 sps:$4 sm:$0xff]   ;;  %vm954_vm1 = vcmask 1043456  }
  0x15   : > { %1199 = vmatpush1.bf16.msra.mxu0 %v8994_v2  ;;  %1252 = vmatpush1.bf16.msra.mxu1 %v8995_v3  ;;  %v8998_v5 = vld [vmem:[%s16567_s1 + $0xcc] ss:$16 sps:$4 sm:$0xff]   ;;  %v9000_v6 = vld [vmem:[%s16567_s1 + $0xc0] ss:$16 sps:$4 sm:$0xff]   ;;  %s8687_s15 = sshll.u32 %s16592_s13, 4  ;;  %vm959_vm2 = vcmask 1046528  }
  0x16   : > { %1200 = vmatprep.subr.bf16.mxu0 %v8996_v4  ;;  %v9001_v7 = vld [vmem:[%s16567_s1 + $0xc8] ss:$16 sps:$4 sm:$0xff]   ;;  %s10730_s20 = scalar_lea.vmem %s16566_s0, %s8687_s15  ;;  %1253 = vmatprep.subr.bf16.mxu1 %v8998_v5  ;;  %v9002_v8 = vld [vmem:[%s16567_s1 + $0xa4] ss:$16 sps:$4 sm:$0xff]   ;;  %v9004_v16 = vld [vmem:[%s16567_s1 + $0xac] ss:$16 sps:$4 sm:$0xff]  }
  0x17   : > { %v10736_v9 = vld [vmem:[%s10730_s20 + $0x8] sm:$0xf]  ;;  %v286_v10 = vld [vmem:[%s10730_s20 + $0xc] sm:$0xf]  ;;  %v10740_v11 = vld [vmem:[%s10730_s20] sm:$0xf] }
  0x18   : > { %v10744_v12 = vcombine.low %v10736_v9, %v10736_v9  ;;  %v10746_v13 = vcombine.low %v286_v10, %v286_v10  ;;  %v8225_v14 = vcombine.low %v10740_v11, %v10740_v11  ;;  %v10751_v15 = vld [vmem:[%s10730_s20 + $0x4] sm:$0xf]  ;;  %v9006_v17 = vld [vmem:[%s16567_s1 + $0xa0] ss:$16 sps:$4 sm:$0xff]   ;;  %v9007_v19 = vld [vmem:[%s16567_s1 + $0xa8] ss:$16 sps:$4 sm:$0xff]  }
  0x19   : > { %1201 = vmatpush1.bf16.msra.mxu0 %v9000_v6  ;;  %1254 = vmatpush1.bf16.msra.mxu1 %v9001_v7  ;;  %v8222_v18 = vcombine.low %v10751_v15, %v10751_v15  ;;  %s16574_s15 = smov 32   ;;  %v9008_v22 = vld [vmem:[%s16567_s1 + $0x84] ss:$16 sps:$4 sm:$0xff]   ;;  %v9010_v24 = vld [vmem:[%s16567_s1 + $0x8c] ss:$16 sps:$4 sm:$0xff]   ;;  %vm967_vm3 = vcmask 1042432  }
  0x1a   : > { %1202 = vmatprep.subr.bf16.mxu0 %v9002_v8  ;;  %855 = vrot.lane.b32.xlu0 %v10744_v12, %s16574_s15  ;;  %v837_v20 = vshrl.u32 %v8225_v14, 16  ;;  %v839_v21 = vshll.u32 %v8225_v14, 16  ;;  %v9012_v27 = vld [vmem:[%s16567_s1 + $0x80] ss:$16 sps:$4 sm:$0xff]   ;;  %v9013_v28 = vld [vmem:[%s16567_s1 + $0x88] ss:$16 sps:$4 sm:$0xff]  }
  0x1b   : > { %875 = vrot.lane.b32.xlu1 %v10746_v13, %s16574_s15  ;;  %v864_v23 = vshll.u32 %v8222_v18, 16  ;;  %1255 = vmatprep.subr.bf16.mxu1 %v9004_v16  ;;  %v862_v26 = vshrl.u32 %v8222_v18, 16  ;;  %v9014_v30 = vld [vmem:[%s16567_s1 + $0x64] ss:$16 sps:$4 sm:$0xff]   ;;  %v9016_v32 = vld [vmem:[%s16567_s1 + $0x6c] ss:$16 sps:$4 sm:$0xff]  }
  0x1c   : > { %v841_v25 = vrot.slane %v839_v21, 1  ;;  %v9018_v33 = vld [vmem:[%s16567_s1 + $0x60] ss:$16 sps:$4 sm:$0xff]   ;;  %v884_v35 = vshll.u32 %v10744_v12, 16  ;;  %v9019_v36 = vld [vmem:[%s16567_s1 + $0x68] ss:$16 sps:$4 sm:$0xff]  }
  0x1d   : > { %1203 = vmatpush1.bf16.msra.mxu0 %v9006_v17  ;;  %1256 = vmatpush1.bf16.msra.mxu1 %v9007_v19  ;;  %v866_v29 = vrot.slane %v864_v23, 1  ;;  %v9020_v37 = vld [vmem:[%s16567_s1 + $0x44] ss:$16 sps:$4 sm:$0xff]   ;;  %v9022_v38 = vld [vmem:[%s16567_s1 + $0x4c] ss:$16 sps:$4 sm:$0xff]   ;;  %v904_v41 = vshll.u32 %v10746_v13, 16 }
  0x1e   : > { %1204 = vmatprep.subr.bf16.mxu0 %v9008_v22  ;;  %1257 = vmatprep.subr.bf16.mxu1 %v9010_v24  ;;  %v10785_v31 = vor.u32 %v841_v25, %v837_v20  ;;  %v902_v42 = vshrl.u32 %v10746_v13, 16  ;;  %v882_v43 = vshrl.u32 %v10744_v12, 16  ;;  %v886_v44 = vrot.slane %v884_v35, 1  ;;  %v9024_v45 = vld [vmem:[%s16567_s1 + $0x40] ss:$16 sps:$4 sm:$0xff]   ;;  %s274_s13 = scalar_lea.vmem [#allocation2], %s8218_s22 }
  0x1f   : > { %857 = vrot.lane.b32.xlu0 %v10746_v13, %s10608_s9  ;;  %v867_v34 = vor.u32 %v866_v29, %v862_v26  ;;  %v9025_v46 = vld [vmem:[%s16567_s1 + $0x48] ss:$16 sps:$4 sm:$0xff]   ;;  %v9026_v47 = vld [vmem:[%s16567_s1 + $0x24] ss:$16 sps:$4 sm:$0xff]   ;;  %v906_v48 = vrot.slane %v904_v41, 1  ;;  %vm844_vm7 = vcmask 261120  }
  0x20   : > { %859 = vrot.lane.b32.xlu1 %v10785_v31, %s10609_s19  ;;  %v9028_v49 = vld [vmem:[%s16567_s1 + $0x2c] ss:$16 sps:$4 sm:$0xff]   ;;  %vm955_vm0 = vsmask.f32 3328  ;;  %v887_v53 = vor.u32 %v886_v44, %v882_v43  ;;  %v9030_v54 = vld [vmem:[%s16567_s1 + $0x20] ss:$16 sps:$4 sm:$0xff]  }
  0x21   : > { %1205 = vmatpush1.bf16.msra.mxu0 %v9012_v27  ;;  %1258 = vmatpush1.bf16.msra.mxu1 %v9013_v28  ;;  %v923_v39 = vshrl.u32 %v867_v34, 16  ;;  %v926_v40 = vshll.u32 %v867_v34, 16  ;;  %v907_v52 = vor.u32 %v906_v48, %v902_v42  ;;  %v9031_v55 = vld [vmem:[%s16567_s1 + $0x28] ss:$16 sps:$4 sm:$0xff]   ;;  %v9032_v56 = vld [vmem:[%s16567_s1 + $0x4] ss:$16 sps:$4 sm:$0xff]   ;;  %vm10856_vm5 = vmand %vm954_vm1, %vm955_vm0 }
  0x22   : > { %1206 = vmatprep.subr.bf16.mxu0 %v9014_v30  ;;  %1259 = vmatprep.subr.bf16.mxu1 %v9016_v32  ;;  %v9034_v58 = vld [vmem:[%s16567_s1 + $0xc] ss:$16 sps:$4 sm:$0xff]   ;;  %v934_v60 = vrot.slane %v887_v53, 1  ;;  %vm968_vm4 = vsmask.f32 2304  ;;  %vm848_vm8 = vcmask 523264  }
  0x23   : > { %821 = vrot.lane.b32.xlu0 %v8222_v18, %s16574_s15  ;;  %v925_v50 = vrot.slane %v923_v39, 4  ;;  %v928_v51 = vrot.slane %v926_v40, 5  ;;  %v945_v57 = vshrl.u32 %v907_v52, 16  ;;  %v948_v61 = vshll.u32 %v907_v52, 16  ;;  %v9036_v63 = vld [vmem:[%s16567_s1] ss:$16 sps:$4 sm:$0xff]   ;;  %vm10869_vm6 = vmand %vm967_vm3, %vm968_vm4 }
  0x24   : > { %877 = vrot.lane.b32.xlu1 %v10785_v31, %s10608_s9  ;;  %v9037_v0 = vld [vmem:[%s16567_s1 + $0x8] ss:$16 sps:$4 sm:$0xff]   ;;  %v9038_v1 = vld [vmem:[%s16567_s1 + $0x124] ss:$16 sps:$4 sm:$0xff]   ;;  %v9040_v2 = vld [vmem:[%s16567_s1 + $0x12c] ss:$16 sps:$4 sm:$0xff]  }
  0x25   : > { %1207 = vmatpush1.bf16.msra.mxu0 %v9018_v33  ;;  %1260 = vmatpush1.bf16.msra.mxu1 %v9019_v36  ;;  %v929_v59 = vor.u32 %v928_v51, %v925_v50  ;;  %v947_v62 = vrot.slane %v945_v57, 5  ;;  %v950_v4 = vrot.slane %v948_v61, 6  ;;  %v9042_v5 = vld [vmem:[%s16567_s1 + $0x120] ss:$16 sps:$4 sm:$0xff]   ;;  %v9043_v8 = vld [vmem:[%s16567_s1 + $0x128] ss:$16 sps:$4 sm:$0xff]  }
  0x26   : > { %1208 = vmatprep.subr.bf16.mxu0 %v9020_v37  ;;  %1261 = vmatprep.subr.bf16.mxu1 %v9022_v38  ;;  %v9044_v10 = vld [vmem:[%s16567_s1 + $0x104] ss:$16 sps:$4 sm:$0xff]   ;;  %v9046_v14 = vld [vmem:[%s16567_s1 + $0x10c] ss:$16 sps:$4 sm:$0xff]   ;;  %v9048_v17 = vld [vmem:[%s16567_s1 + $0x100] ss:$16 sps:$4 sm:$0xff]  }
  0x27   : > { %826 = vrot.lane.b32.xlu0 %v10744_v12, %s10608_s9  ;;  %v958_v6 = vsel %vm10856_vm5, %v10785_v31, %v929_v59  ;;  %v9049_v18 = vld [vmem:[%s16567_s1 + $0x108] ss:$16 sps:$4 sm:$0xff]   ;;  %vm851_vm9 = vcmask 785408   ;;  %v815_v59 = vld [vmem:[%s16568_s2] sm:$0xf]  ;;  %vm1328_vm10 = vcmask 1040384  }
  0x28   : > { %879 = vrot.lane.b32.xlu1 %v867_v34, %s10609_s19  ;;  %v966_v12 = vsel %vm959_vm2, %v958_v6, %v934_v60  ;;  %vm1451_vm11 = vsmask.f32 256  ;;  %v10272_v7 = vld [vmem:[%s16569_s3 + $0x2c4] ss:$16 sps:$4 sm:$0xff]   ;;  %v10418_v3 = vld [vmem:[%s16569_s3 + $0x48] ss:$16 sps:$4 sm:$0xff]  }
  0x29   : > { %1209 = vmatpush1.bf16.msra.mxu0 %v9024_v45  ;;  %1262 = vmatpush1.bf16.msra.mxu1 %v9025_v46  ;;  %vm11161_vm12 = vmand %vm1328_vm10, %vm1451_vm11  ;;  %vm7247_vm13 = vcmask 1041408   ;;  %vm7248_vm14 = vsmask.f32 1280  ;;  %vm10612_vm0 = vmmov 0   ;;  %s8155_s23 = sshll.u32 %s274_s13, 4  ;;  %s8156_s23 = int_to_ptr.vmem [resolvable:$true] %s8155_s23 }
  0x2a   : > { %1210 = vmatprep.subr.bf16.mxu0 %v9026_v47  ;;  %1263 = vmatprep.subr.bf16.mxu1 %v9028_v49  ;;  %vm16022_vm15 = vmand %vm7247_vm13, %vm7248_vm14  ;;  %s10545_s17 = scalar_lea.vmem %s8156_s23, 64 }
  0x2b   : > { %831 = vrot.lane.b32.xlu0 %v10746_v13, %s10609_s19  ;;  %v951_v13 = vor.u32 %v950_v4, %v947_v62  ;;  %8266 = vmatprep.mubr.msk.bf16.mxu0 %vm844_vm7, %v966_v12  ;;  %p10546_p11 = scmp.ne.s32.totalorder %s8156_s23, %s10545_s17 }
  0x2c   : > { %895 = vrot.lane.b32.xlu1 %v10785_v31, %s16574_s15  ;;  %8268 = vmatprep.mubr.msk.bf16.mxu1 %vm844_vm7, %v966_v12 }
  0x2d   : > { %1211 = vmatpush1.bf16.msra.mxu0 %v9030_v54  ;;  %1264 = vmatpush1.bf16.msra.mxu1 %v9031_v55  ;;  %v971_v16 = vsel %vm10869_vm6, %v934_v60, %v951_v13  ;;  %v973_v55 = vlaneseq  ;;  %p10547_p12 = pnand %p10546_p11, %p10692_p5 }
  0x2e   : > { %1212 = vmatprep.subr.bf16.mxu0 %v9032_v56  ;;  %1265 = vmatprep.subr.bf16.mxu1 %v9034_v58 }
  0x2f   : > { %897 = vrot.lane.b32.xlu0 %v867_v34, %s10608_s9  ;;  %v10917_v56 = vshrl.u32 %v973_v55, 7  ;;  %p10548_p13 = pneg %p10547_p12 }
  0x30   : > { %899 = vrot.lane.b32.xlu1 %v887_v53, %s10609_s19 }
  0x31   : > { %1213 = vmatpush1.bf16.msra.mxu0 %v9036_v63  ;;  %1266 = vmatpush1.bf16.msra.mxu1 %v9037_v0  ;;  %v975_v57 = vsub.s32 0, %v10917_v56  ;;  %v983_v58 = vsub.s32 2, %v10917_v56  ;;  %v979_v60 = vsub.s32 1, %v10917_v56  ;;  %v987_v0 = vsub.s32 3, %v10917_v56 }
  0x32   : > { %1226 = vmatprep.subr.bf16.mxu0 %v9038_v1  ;;  %1279 = vmatprep.subr.bf16.mxu1 %v9040_v2 }
  0x33   : > { %v10927_v61 = vrot.slane %v815_v59, %v975_v57  ;;  %v10931_v62 = vrot.slane %v815_v59, %v983_v58  ;;  %v10935_v63 = vrot.slane %v815_v59, %v979_v60  ;;  %v10943_v12 = vrot.slane %v815_v59, %v987_v0 }
  0x35   : > { %1227 = vmatpush2.bf16.msra.mxu0 %v9042_v5  ;;  %1280 = vmatpush2.bf16.msra.mxu1 %v9043_v8 }
  0x36   : > { %1228 = vmatprep.subr.bf16.mxu0 %v9044_v10  ;;  %1281 = vmatprep.subr.bf16.mxu1 %v9046_v14 }
  0x39   : > { %1229 = vmatpush2.bf16.msra.mxu0 %v9048_v17  ;;  %1282 = vmatpush2.bf16.msra.mxu1 %v9049_v18 }
  0x8c   : > { %v856_v19 = vpop.permute.xlu0 %855 }
  0x8d   : > { %v876_v20 = vpop.permute.xlu1 %875  ;;  %v870_v21 = vsel %vm844_vm7, %v10751_v15, %v856_v19 }
  0x8e   : > { %v890_v33 = vsel %vm844_vm7, %v10736_v9, %v876_v20  ;;  %v9580_v9 = vld [vmem:[%s10730_s20 + $0xc] sm:$0xf] }
  0x91   : > { %v858_v22 = vpop.permute.xlu0 %857 }
  0x92   : > { %v872_v23 = vsel %vm848_vm8, %v870_v21, %v858_v22  ;;  %v860_v24 = vpop.permute.xlu1 %859 }
  0x93   : > { %v874_v25 = vsel %vm851_vm9, %v872_v23, %v860_v24 }
  0x94   : > { %v915_v26 = vshrl.u32 %v874_v25, 16  ;;  %v918_v27 = vshll.u32 %v874_v25, 16 }
  0x95   : > { %v822_v28 = vpop.permute.xlu0 %821 }
  0x96   : > { %v917_v29 = vrot.slane %v915_v26, 4  ;;  %v920_v30 = vrot.slane %v918_v27, 5  ;;  %v878_v31 = vpop.permute.xlu1 %877  ;;  %v847_v35 = vsel %vm844_vm7, %v10740_v11, %v822_v28 }
  0x97   : > { %v892_v34 = vsel %vm848_vm8, %v890_v33, %v878_v31 }
  0x98   : > { %v921_v37 = vor.u32 %v920_v30, %v917_v29 }
  0x99   : > { %v827_v32 = vpop.permute.xlu0 %826 }
  0x9a   : > { %v880_v15 = vpop.permute.xlu1 %879  ;;  %v850_v38 = vsel %vm848_vm8, %v847_v35, %v827_v32 }
  0x9b   : > { %v894_v36 = vsel %vm851_vm9, %v892_v34, %v880_v15 }
  0x9c   : > { %v933_v39 = vrot.slane %v894_v36, 1 }
  0x9d   : > { %v832_v40 = vpop.permute.xlu0 %831 }
  0x9e   : > { %v853_v41 = vsel %vm851_vm9, %v850_v38, %v832_v40  ;;  %v896_v42 = vpop.permute.xlu1 %895 }
  0x9f   : > { %v957_v43 = vsel %vm10856_vm5, %v853_v41, %v921_v37  ;;  %v910_v44 = vsel %vm844_vm7, %v9580_v9, %v896_v42 }
  0xa0   : > { %v962_v45 = vsel %vm959_vm2, %v957_v43, %v933_v39 }
  0xa1   : > { %v898_v46 = vpop.permute.xlu0 %897  ;;  %1231 = vmatmul.mubr.bf16.vlgmr.msra.gmra.mxu0 %v962_v45  ;;  %1284 = vmatmul.mubr.bf16.vlgmr.msra.gmra.mxu1 %v962_v45 }
  0xa2   : > { %v912_v11 = vsel %vm848_vm8, %v910_v44, %v898_v46  ;;  %8267 = vmatprep.mubr.msk.bf16.mxu0 %vm844_vm7, %v971_v16  ;;  %8269 = vmatprep.mubr.msk.bf16.mxu1 %vm844_vm7, %v971_v16  ;;  %v900_v47 = vpop.permute.xlu1 %899 }
  0xa3   : > { %v914_v48 = vsel %vm851_vm9, %v912_v11, %v900_v47 }
  0xa4   : > { %v937_v49 = vshrl.u32 %v914_v48, 16  ;;  %v940_v50 = vshll.u32 %v914_v48, 16 }
  0xa6   : > { %v939_v51 = vrot.slane %v937_v49, 5  ;;  %v942_v52 = vrot.slane %v940_v50, 6 }
  0xa8   : > { %v943_v53 = vor.u32 %v942_v52, %v939_v51 }
  0xaa   : > { %v970_v54 = vsel %vm10869_vm6, %v933_v39, %v943_v53 }
  0xab   : > { %1241 = vmatmul.mubr.bf16.gmra.mxu0 %v970_v54  ;;  %1294 = vmatmul.mubr.bf16.gmra.mxu1 %v970_v54 }
 0x161   : > { %v1232_v1 = vpop.f32.mrf.mxu0  ;;  %v1285_v2 = vpop.f32.mrf.mxu1 }
 0x162   : > { %v1233_v4 = vadd.f32 %v1232_v1, %v10927_v61  ;;  %v1286_v5 = vadd.f32 %v1285_v2, %v10931_v62 }
 0x163   : > { %v1234_v6 = vpop.f32.mrf.mxu0  ;;  %v1287_v8 = vpop.f32.mrf.mxu1 }
 0x164   : > { %v1235_v10 = vadd.f32 %v1234_v6, %v10935_v63  ;;  %v1304_v16 = vmax.f32 %v1233_v4, 0.0  ;;  %v1306_v17 = vmax.f32 %v1286_v5, 0.0  ;;  %v1288_v23 = vadd.f32 %v1287_v8, %v10943_v12 }
 0x165   : > { %v1236_v13 = vpop.f32.mrf.mxu0  ;;  %v1289_v14 = vpop.f32.mrf.mxu1 }
 0x166   : > { %v1237_v18 = vadd.f32 %v1236_v13, %v10927_v61  ;;  %v10947_v19 = vadd.f32 %v1289_v14, %v10931_v62  ;;  %v1305_v22 = vmax.f32 %v1235_v10, 0.0  ;;  %v1329_v30 = vrot.slane %v1304_v16, 7 }
 0x167   : > { %v1238_v20 = vpop.f32.mrf.mxu0  ;;  %v1291_v21 = vpop.f32.mrf.mxu1  ;;  %v1335_v31 = vrot.slane %v1306_v17, 7  ;;  %v1307_v15 = vmax.f32 %v1288_v23, 0.0 }
 0x168   : > { %v1239_v24 = vadd.f32 %v1238_v20, %v10935_v63  ;;  %v10952_v25 = vadd.f32 %v1291_v21, %v10943_v12  ;;  %v1308_v26 = vmax.f32 %v1237_v18, 0.0  ;;  %v1310_v27 = vmax.f32 %v10947_v19, 0.0  ;;  %v9050_v19 = vld [vmem:[%s16569_s3 + $0xe4] ss:$16 sps:$4 sm:$0xff]  }
 0x169   : > { %v1332_v34 = vrot.slane %v1305_v22, 7  ;;  %v1338_v48 = vrot.slane %v1307_v15, 7  ;;  %3081 = vmatprep.subr.bf16.mxu0 %v9050_v19  ;;  %v9118_v19 = vld [vmem:[%s16569_s3 + $0x164] ss:$16 sps:$4 sm:$0xff]  }
 0x16a   : > { %v1309_v28 = vmax.f32 %v1239_v24, 0.0  ;;  %v1311_v29 = vmax.f32 %v10952_v25, 0.0  ;;  %v1330_v32 = vrot.slane %v1308_v26, 7  ;;  %v1336_v33 = vrot.slane %v1310_v27, 7  ;;  %v9056_v25 = vld [vmem:[%s16569_s3 + $0x2e4] ss:$16 sps:$4 sm:$0xff]  }
 0x16b   : > { %v1242_v36 = vpop.f32.mrf.mxu0  ;;  %v1295_v37 = vpop.f32.mrf.mxu1  ;;  %3124 = vmatprep.subr.bf16.mxu1 %v9056_v25 }
 0x16c   : > { %v1333_v35 = vrot.slane %v1309_v28, 7  ;;  %v1331_v38 = vsel %vm1328_vm10, %v1329_v30, %v1330_v32  ;;  %v1243_v39 = vadd.f32 %v1242_v36, %v10927_v61  ;;  %v1296_v40 = vadd.f32 %v1295_v37, %v10931_v62 }
 0x16d   : > { %v1337_v41 = vsel %vm1328_vm10, %v1335_v31, %v1336_v33  ;;  %v10962_v42 = vmax.f32 %v1304_v16, %v1331_v38  ;;  %v1339_v43 = vrot.slane %v1311_v29, 7  ;;  %v1244_v9 = vpop.f32.mrf.mxu0  ;;  %v1297_v44 = vpop.f32.mrf.mxu1 }
 0x16e   : > { %v1334_v45 = vsel %vm1328_vm10, %v1332_v34, %v1333_v35  ;;  %v1312_v46 = vmax.f32 %v1243_v39, 0.0  ;;  %v1245_v11 = vadd.f32 %v1244_v9, %v10935_v63  ;;  %v1298_v47 = vadd.f32 %v1297_v44, %v10943_v12 }
 0x16f   : > { %v1246_v49 = vpop.f32.mrf.mxu0  ;;  %v1299_v50 = vpop.f32.mrf.mxu1  ;;  %v10969_v51 = vmax.f32 %v1305_v22, %v1334_v45  ;;  %v1347_v52 = vmax.f32 %v1306_v17, %v1337_v41  ;;  %v1314_v54 = vmax.f32 %v1296_v40, 0.0  ;;  %v1340_v6 = vsel %vm1328_vm10, %v1338_v48, %v1339_v43  ;;  %v9053_v45 = vld [vmem:[%s16569_s3 + $0xc4] ss:$16 sps:$4 sm:$0xff]   ;;  %v9066_v48 = vld [vmem:[%s16569_s3 + $0x2c0] ss:$16 sps:$4 sm:$0xff]  }
 0x170   : > { %v1357_v53 = vrot.slane %v1312_v46, 7  ;;  %v1313_v55 = vmax.f32 %v1245_v11, 0.0  ;;  %v1247_v59 = vadd.f32 %v1246_v49, %v10927_v61  ;;  %v1300_v1 = vadd.f32 %v1299_v50, %v10931_v62  ;;  %v9055_v11 = vld [vmem:[%s16569_s3 + $0xc0] ss:$16 sps:$4 sm:$0xff]   ;;  %v9068_v49 = vld [vmem:[%s16569_s3 + $0x2a4] ss:$16 sps:$4 sm:$0xff]  }
 0x171   : > { %v1248_v2 = vpop.f32.mrf.mxu0  ;;  %v1301_v4 = vpop.f32.mrf.mxu1  ;;  %v8876_v5 = vpack.i.bf16 %v1347_v52, %v10969_v51  ;;  %v1315_v13 = vmax.f32 %v1298_v47, 0.0  ;;  %v1359_v20 = vrot.slane %v1314_v54, 7  ;;  %v1348_v22 = vmax.f32 %v1307_v15, %v1340_v6  ;;  %v9058_v47 = vld [vmem:[%s16569_s3 + $0xa4] ss:$16 sps:$4 sm:$0xff]   ;;  %v9061_v50 = vld [vmem:[%s16569_s3 + $0xa0] ss:$16 sps:$4 sm:$0xff]  }
 0x172   : > { %v10975_v8 = vmax.f32 %v1308_v26, %v1357_v53  ;;  %v1358_v10 = vrot.slane %v1313_v55, 7  ;;  %v1316_v14 = vmax.f32 %v1247_v59, 0.0  ;;  %v1318_v16 = vmax.f32 %v1300_v1, 0.0  ;;  %v9064_v52 = vld [vmem:[%s16569_s3 + $0x84] ss:$16 sps:$4 sm:$0xff]  }
 0x173   : > { %v1249_v17 = vadd.f32 %v1248_v2, %v10935_v63  ;;  %v1302_v18 = vadd.f32 %v1301_v4, %v10943_v12  ;;  %8877 = vrot.lane.b32.xlu0 %v8876_v5, %s16574_s15  ;;  %v1360_v26 = vrot.slane %v1315_v13, 7  ;;  %v1379_v38 = vmax.f32 %v1310_v27, %v1359_v20  ;;  %v9052_v27 = vld [vmem:[%s16569_s3 + $0xe0] ss:$16 sps:$4 sm:$0xff]   ;;  %v9070_v59 = vld [vmem:[%s16569_s3 + $0x64] ss:$16 sps:$4 sm:$0xff]  }
 0x174   : > { %v10980_v21 = vmax.f32 %v1309_v28, %v1358_v10  ;;  %v1361_v23 = vrot.slane %v1316_v14, 7  ;;  %v1365_v24 = vrot.slane %v1318_v16, 7  ;;  %3082 = vmatpush1.bf16.msra.mxu0 %v9052_v27  ;;  %v9078_v1 = vld [vmem:[%s16569_s3 + $0x280] ss:$16 sps:$4 sm:$0xff]   ;;  %v9080_v2 = vld [vmem:[%s16569_s3 + $0x264] ss:$16 sps:$4 sm:$0xff]  }
 0x175   : > { %v1317_v30 = vmax.f32 %v1249_v17, 0.0  ;;  %v1319_v31 = vmax.f32 %v1302_v18, 0.0  ;;  %v1380_v9 = vmax.f32 %v1311_v29, %v1360_v26  ;;  %v9060_v29 = vld [vmem:[%s16569_s3 + $0x2e0] ss:$16 sps:$4 sm:$0xff]   ;;  %3083 = vmatprep.subr.bf16.mxu0 %v9053_v45  ;;  %v9076_v5 = vld [vmem:[%s16569_s3 + $0x44] ss:$16 sps:$4 sm:$0xff]  }
 0x176   : > { %v8881_v32 = vpack.i.bf16 %v10980_v21, %v1348_v22  ;;  %v1362_v33 = vsel %vm1328_vm10, %v1357_v53, %v1361_v23  ;;  %v1366_v36 = vsel %vm1328_vm10, %v1359_v20, %v1365_v24  ;;  %3125 = vmatpush1.bf16.msra.mxu1 %v9060_v29  ;;  %v9072_v53 = vld [vmem:[%s16569_s3 + $0x2a0] ss:$16 sps:$4 sm:$0xff]   ;;  %v9082_v14 = vld [vmem:[%s16569_s3 + $0x24] ss:$16 sps:$4 sm:$0xff]  }
 0x177   : > { %v1363_v34 = vrot.slane %v1317_v30, 7  ;;  %v1367_v35 = vrot.slane %v1319_v31, 7  ;;  %v10985_v37 = vmax.f32 %v1312_v46, %v1362_v33  ;;  %v1383_v39 = vmax.f32 %v1314_v54, %v1366_v36  ;;  %v9062_v46 = vld [vmem:[%s16569_s3 + $0x2c4] ss:$16 sps:$4 sm:$0xff]   ;;  %v9073_v4 = vld [vmem:[%s16569_s3 + $0x60] ss:$16 sps:$4 sm:$0xff]  }
 0x178   : > { %8882 = vrot.lane.b32.xlu1 %v8881_v32, %s16574_s15  ;;  %3126 = vmatprep.subr.bf16.mxu1 %v9062_v46  ;;  %v9074_v54 = vld [vmem:[%s16569_s3 + $0x284] ss:$16 sps:$4 sm:$0xff]   ;;  %v9084_v6 = vld [vmem:[%s16569_s3 + $0x260] ss:$16 sps:$4 sm:$0xff]  }
 0x179   : > { %v1364_v28 = vsel %vm1328_vm10, %v1358_v10, %v1363_v34  ;;  %v1368_v15 = vsel %vm1328_vm10, %v1360_v26, %v1367_v35  ;;  %3084 = vmatpush1.bf16.msra.mxu0 %v9055_v11  ;;  %v9086_v10 = vld [vmem:[%s16569_s3 + $0x244] ss:$16 sps:$4 sm:$0xff]   ;;  %v9090_v16 = vld [vmem:[%s16569_s3 + $0x240] ss:$16 sps:$4 sm:$0xff]  }
 0x17a   : > { %v10992_v40 = vmax.f32 %v1313_v55, %v1364_v28  ;;  %v1384_v43 = vmax.f32 %v1315_v13, %v1368_v15  ;;  %3085 = vmatprep.subr.bf16.mxu0 %v9058_v47  ;;  %3127 = vmatpush1.bf16.msra.mxu1 %v9066_v48  ;;  %v9067_v55 = vld [vmem:[%s16569_s3 + $0x80] ss:$16 sps:$4 sm:$0xff]   ;;  %v9092_v17 = vld [vmem:[%s16569_s3 + $0x224] ss:$16 sps:$4 sm:$0xff]  }
 0x17b   : > { %3128 = vmatprep.subr.bf16.mxu1 %v9068_v49  ;;  %v9079_v13 = vld [vmem:[%s16569_s3 + $0x40] ss:$16 sps:$4 sm:$0xff]   ;;  %v9088_v20 = vld [vmem:[%s16569_s3 + $0x4] ss:$16 sps:$4 sm:$0xff]  }
 0x17c   : > { %1416 = vrot.lane.b32.xlu1 %v1383_v39, %s16574_s15  ;;  %v8886_v41 = vpack.i.bf16 %v10992_v40, %v1379_v38  ;;  %v8891_v44 = vpack.i.bf16 %v1384_v43, %v1380_v9  ;;  %v9085_v18 = vld [vmem:[%s16569_s3 + $0x20] ss:$16 sps:$4 sm:$0xff]   ;;  %v9098_v23 = vld [vmem:[%s16569_s3 + $0x204] ss:$16 sps:$4 sm:$0xff]  }
 0x17d   : > { %3086 = vmatpush1.bf16.msra.mxu0 %v9061_v50  ;;  %v9096_v22 = vld [vmem:[%s16569_s3 + $0x220] ss:$16 sps:$4 sm:$0xff]   ;;  %v9094_v30 = vld [vmem:[%s16569_s3 + $0x1e4] ss:$16 sps:$4 sm:$0xff]  }
 0x17e   : > { %8887 = vrot.lane.b32.xlu0 %v8886_v41, %s16574_s15  ;;  %3087 = vmatprep.subr.bf16.mxu0 %v9064_v52  ;;  %v9091_v24 = vld [vmem:[%s16569_s3] ss:$16 sps:$4 sm:$0xff]   ;;  %v9104_v26 = vld [vmem:[%s16569_s3 + $0x3e4] ss:$16 sps:$4 sm:$0xff]  }
 0x17f   : > { %3129 = vmatpush1.bf16.msra.mxu1 %v9072_v53  ;;  %v9102_v31 = vld [vmem:[%s16569_s3 + $0x200] ss:$16 sps:$4 sm:$0xff]   ;;  %v9100_v33 = vld [vmem:[%s16569_s3 + $0x1c4] ss:$16 sps:$4 sm:$0xff]  }
 0x180   : > { %3130 = vmatprep.subr.bf16.mxu1 %v9074_v54  ;;  %v9097_v32 = vld [vmem:[%s16569_s3 + $0x1e0] ss:$16 sps:$4 sm:$0xff]   ;;  %v9110_v35 = vld [vmem:[%s16569_s3 + $0x3c4] ss:$16 sps:$4 sm:$0xff]  }
 0x181   : > { %3088 = vmatpush1.bf16.msra.mxu0 %v9067_v55  ;;  %v9108_v34 = vld [vmem:[%s16569_s3 + $0x3e0] ss:$16 sps:$4 sm:$0xff]   ;;  %v9106_v28 = vld [vmem:[%s16569_s3 + $0x1a4] ss:$16 sps:$4 sm:$0xff]  }
 0x182   : > { %8892 = vrot.lane.b32.xlu0 %v8891_v44, %s16574_s15  ;;  %3089 = vmatprep.subr.bf16.mxu0 %v9070_v59  ;;  %v9103_v36 = vld [vmem:[%s16569_s3 + $0x1c0] ss:$16 sps:$4 sm:$0xff]   ;;  %v9116_v38 = vld [vmem:[%s16569_s3 + $0x3a4] ss:$16 sps:$4 sm:$0xff]   ;;  %s8684_s15 = sshll.u32 %s10675_s28, 6  ;;  %s10613_s28 = smov [#allocation2]  }
 0x183   : > { %3131 = vmatpush1.bf16.msra.mxu1 %v9078_v1  ;;  %v9114_v15 = vld [vmem:[%s16569_s3 + $0x3c0] ss:$16 sps:$4 sm:$0xff]   ;;  %v9112_v41 = vld [vmem:[%s16569_s3 + $0x184] ss:$16 sps:$4 sm:$0xff]  }
 0x184   : > { %3132 = vmatprep.subr.bf16.mxu1 %v9080_v2  ;;  %v9109_v39 = vld [vmem:[%s16569_s3 + $0x1a0] ss:$16 sps:$4 sm:$0xff]   ;;  %v9122_v9 = vld [vmem:[%s16569_s3 + $0x384] ss:$16 sps:$4 sm:$0xff]  }
 0x185   : > { %3090 = vmatpush1.bf16.msra.mxu0 %v9073_v4  ;;  %v9120_v43 = vld [vmem:[%s16569_s3 + $0x3a0] ss:$16 sps:$4 sm:$0xff]   ;;  %v9124_v53 = vld [vmem:[%s16569_s3 + $0x144] ss:$16 sps:$4 sm:$0xff]  }
 0x186   : > { %3091 = vmatprep.subr.bf16.mxu0 %v9076_v5  ;;  %v9115_v44 = vld [vmem:[%s16569_s3 + $0x180] ss:$16 sps:$4 sm:$0xff]  }
 0x187   : > { %3133 = vmatpush1.bf16.msra.mxu1 %v9084_v6  ;;  %v9121_v27 = vld [vmem:[%s16569_s3 + $0x160] ss:$16 sps:$4 sm:$0xff]  }
 0x188   : > { %3134 = vmatprep.subr.bf16.mxu1 %v9086_v10  ;;  %v9126_v54 = vld [vmem:[%s16569_s3 + $0x380] ss:$16 sps:$4 sm:$0xff]  }
 0x189   : > { %3092 = vmatpush1.bf16.msra.mxu0 %v9079_v13 }
 0x18a   : > { %3093 = vmatprep.subr.bf16.mxu0 %v9082_v14 }
 0x18b   : > { %3135 = vmatpush1.bf16.msra.mxu1 %v9090_v16  ;;  %v9130_v16 = vld [vmem:[%s16569_s3 + $0x124] ss:$16 sps:$4 sm:$0xff]  }
 0x18c   : > { %3136 = vmatprep.subr.bf16.mxu1 %v9092_v17  ;;  %v9132_v17 = vld [vmem:[%s16569_s3 + $0x360] ss:$16 sps:$4 sm:$0xff]  }
 0x18d   : > { %3094 = vmatpush1.bf16.msra.mxu0 %v9085_v18  ;;  %v9133_v18 = vld [vmem:[%s16569_s3 + $0x120] ss:$16 sps:$4 sm:$0xff]  }
 0x18e   : > { %3095 = vmatprep.subr.bf16.mxu0 %v9088_v20 }
 0x18f   : > { %3137 = vmatpush1.bf16.msra.mxu1 %v9096_v22 }
 0x190   : > { %3138 = vmatprep.subr.bf16.mxu1 %v9098_v23 }
 0x191   : > { %3096 = vmatpush1.bf16.msra.mxu0 %v9091_v24 }
 0x192   : > { %3097 = vmatprep.subr.bf16.mxu0 %v9094_v30 }
 0x193   : > { %3139 = vmatpush1.bf16.msra.mxu1 %v9102_v31 }
 0x194   : > { %3140 = vmatprep.subr.bf16.mxu1 %v9104_v26 }
 0x195   : > { %3098 = vmatpush2.bf16.msra.mxu0 %v9097_v32 }
 0x196   : > { %3099 = vmatprep.subr.bf16.mxu0 %v9100_v33 }
 0x197   : > { %3141 = vmatpush2.bf16.msra.mxu1 %v9108_v34 }
 0x198   : > { %3142 = vmatprep.subr.bf16.mxu1 %v9110_v35 }
 0x199   : > { %3100 = vmatpush2.bf16.msra.mxu0 %v9103_v36  ;;  %v9134_v36 = vld [vmem:[%s16569_s3 + $0x344] ss:$16 sps:$4 sm:$0xff]  }
 0x19a   : > { %3101 = vmatprep.subr.bf16.mxu0 %v9106_v28 }
 0x19b   : > { %3143 = vmatpush2.bf16.msra.mxu1 %v9114_v15 }
 0x19c   : > { %3144 = vmatprep.subr.bf16.mxu1 %v9116_v38 }
 0x19d   : > { %3102 = vmatpush2.bf16.msra.mxu0 %v9109_v39  ;;  %v9136_v39 = vld [vmem:[%s16569_s3 + $0x104] ss:$16 sps:$4 sm:$0xff]  }
 0x19e   : > { %3103 = vmatprep.subr.bf16.mxu0 %v9112_v41 }
 0x19f   : > { %3145 = vmatpush2.bf16.msra.mxu1 %v9120_v43  ;;  %v9139_v43 = vld [vmem:[%s16569_s3 + $0x100] ss:$16 sps:$4 sm:$0xff]  }
 0x1a0   : > { %3146 = vmatprep.subr.bf16.mxu1 %v9122_v9 }
 0x1a1   : > { %3104 = vmatpush2.bf16.msra.mxu0 %v9115_v44 }
 0x1a2   : > { %3105 = vmatprep.subr.bf16.mxu0 %v9118_v19 }
 0x1a3   : > { %3147 = vmatpush2.bf16.msra.mxu1 %v9126_v54 }
 0x1a5   : > { %3106 = vmatpush2.bf16.msra.mxu0 %v9121_v27 }
 0x1a6   : > { %3107 = vmatprep.subr.bf16.mxu0 %v9124_v53 }
 0x1e5   : > { %v8878_v45 = vpop.permute.xlu0 %8877 }
 0x1e6   : > { %v8880_v25 = vunpack.i.h.bf16 %v8878_v45  ;;  %v8879_v29 = vunpack.i.l.bf16 %v8878_v45 }
 0x1e8   : > { %v1394_v46 = vsel %vm844_vm7, %v8879_v29, %v8880_v25 }
 0x1e9   : > { %v1398_v11 = vmax.f32 %v10962_v42, %v1394_v46  ;;  %v9127_v42 = vld [vmem:[%s16569_s3 + $0x140] ss:$16 sps:$4 sm:$0xff]  }
 0x1ea   : > { %v8883_v47 = vpop.permute.xlu1 %8882  ;;  %3108 = vmatpush2.bf16.msra.mxu0 %v9127_v42 }
 0x1eb   : > { %v1400_v48 = vpack.c.bf16 %v1398_v11, %v1398_v11  ;;  %v8884_v49 = vunpack.i.l.bf16 %v8883_v47  ;;  %v8885_v6 = vunpack.i.h.bf16 %v8883_v47  ;;  %3109 = vmatprep.subr.bf16.mxu0 %v9130_v16  ;;  %v9140_v11 = vld [vmem:[%s16569_s3 + $0x324] ss:$16 sps:$4 sm:$0xff]  }
 0x1ed   : > { %v1435_v50 = vshrl.u32 %v1400_v48, 16  ;;  %v1395_v52 = vsel %vm844_vm7, %v8880_v25, %v8884_v49  ;;  %v1438_v1 = vshll.u32 %v1400_v48, 16 }
 0x1ee   : > { %v1399_v55 = vmax.f32 %v10969_v51, %v1395_v52  ;;  %v9128_v51 = vld [vmem:[%s16569_s3 + $0x364] ss:$16 sps:$4 sm:$0xff]   ;;  %v1417_v22 = vpop.permute.xlu1 %1416  ;;  %3110 = vmatpush2.bf16.msra.mxu0 %v9133_v18 }
 0x1ef   : > { %v1437_v59 = vrot.slane %v1435_v50, 7  ;;  %3148 = vmatprep.subr.bf16.mxu1 %v9128_v51  ;;  %3111 = vmatprep.subr.bf16.mxu0 %v9136_v39  ;;  %v9148_v51 = vld [vmem:[%s16569_s3 + $0x300] ss:$16 sps:$4 sm:$0xff]   ;;  %v9152_v18 = vld [vmem:[%s16569_s3 + $0x6e4] ss:$16 sps:$4 sm:$0xff]  }
 0x1f0   : > { %v1401_v2 = vpack.c.bf16 %v1399_v55, %v1399_v55  ;;  %v8888_v4 = vpop.permute.xlu0 %8887  ;;  %3149 = vmatpush2.bf16.msra.mxu1 %v9132_v17 }
 0x1f1   : > { %v8890_v10 = vunpack.i.h.bf16 %v8888_v4  ;;  %v8889_v13 = vunpack.i.l.bf16 %v8888_v4  ;;  %v1440_v14 = vor.u32 %v1438_v1, %v1437_v59  ;;  %3150 = vmatprep.subr.bf16.mxu1 %v9134_v36 }
 0x1f2   : > { %v1442_v20 = vshrl.u32 %v1401_v2, 16  ;;  %v1445_v23 = vshll.u32 %v1401_v2, 16  ;;  %3112 = vmatpush2.bf16.msra.mxu0 %v9139_v43  ;;  %v9146_v2 = vld [vmem:[%s16569_s3 + $0x304] ss:$16 sps:$4 sm:$0xff]  }
 0x1f3   : > { %v1422_v24 = vsel %vm844_vm7, %v8890_v10, %v1417_v22  ;;  %v1420_v30 = vsel %vm844_vm7, %v8885_v6, %v8889_v13  ;;  %v1453_v31 = vsel %vm11161_vm12, 0, %v1440_v14 }
 0x1f4   : > { %v1444_v26 = vrot.slane %v1442_v20, 7  ;;  %v1430_v32 = vmax.f32 %v10985_v37, %v1422_v24  ;;  %v1428_v33 = vmax.f32 %v10975_v8, %v1420_v30  ;;  %v8893_v34 = vpop.permute.xlu0 %8892  ;;  %v11184_v35 = vsel %vm954_vm1, %v1453_v31, 0  ;;  %v9138_v8 = vld [vmem:[%s16569_s3 + $0x340] ss:$16 sps:$4 sm:$0xff]  }
 0x1f5   : > { %v8895_v28 = vunpack.i.h.bf16 %v8893_v34  ;;  %v8894_v15 = vunpack.i.l.bf16 %v8893_v34  ;;  %v1497_v38 = vshll.u32 %v11184_v35, 16  ;;  %v1495_v19 = vshrl.u32 %v11184_v35, 16  ;;  %3151 = vmatpush2.bf16.msra.mxu1 %v9138_v8 }
 0x1f6   : > { %v1447_v37 = vor.u32 %v1445_v23, %v1444_v26  ;;  %v1432_v41 = vpack.c.bf16 %v1430_v32, %v1428_v33  ;;  %3152 = vmatprep.subr.bf16.mxu1 %v9140_v11 }
 0x1f7   : > { %v1423_v9 = vsel %vm844_vm7, %v1417_v22, %v8895_v28  ;;  %v1421_v44 = vsel %vm844_vm7, %v8889_v13, %v8894_v15  ;;  %v1499_v27 = vrot.slane %v1497_v38, 1 }
 0x1f8   : > { %v1431_v45 = vmax.f32 %v10992_v40, %v1423_v9  ;;  %v1429_v25 = vmax.f32 %v10980_v21, %v1421_v44  ;;  %v1454_v29 = vsel %vm11161_vm12, 0, %v1447_v37  ;;  %v1463_v46 = vshrl.u32 %v1432_v41, 16  ;;  %v9142_v40 = vld [vmem:[%s16569_s3 + $0x320] ss:$16 sps:$4 sm:$0xff]   ;;  %v9143_v21 = vld [vmem:[%s16569_s3 + $0x4e4] ss:$16 sps:$4 sm:$0xff]  }
 0x1f9   : > { %v1500_v47 = vor.u32 %v1499_v27, %v1495_v19  ;;  %v11210_v48 = vsel %vm954_vm1, %v1454_v29, 0  ;;  %v1466_v49 = vshll.u32 %v1432_v41, 16  ;;  %3153 = vmatpush2.bf16.msra.mxu1 %v9142_v40  ;;  %3167 = vmatprep.subr.bf16.mxu0 %v9143_v21  ;;  %v1535_v37 = vrot.slane %v11184_v35, 1  ;;  %v287_v27 = vld [vmem:[%s10730_s20 + $0x10] sm:$0xf] }
 0x1fa   : > { %v1433_v50 = vpack.c.bf16 %v1431_v45, %v1429_v25  ;;  %v1503_v52 = vshll.u32 %v11210_v48, 16  ;;  %v1465_v53 = vrot.slane %v1463_v46, 2  ;;  %v1501_v55 = vshrl.u32 %v11210_v48, 16  ;;  %3154 = vmatprep.subr.bf16.mxu1 %v9146_v2  ;;  %v289_v45 = vld [vmem:[%s10730_s20 + $0x18] sm:$0xf] }
 0x1fb   : > { %1550 = vrot.lane.b32.xlu1 %v1500_v47, %s10609_s19  ;;  %v1468_v54 = vrot.slane %v1466_v49, 3  ;;  %v8555_v25 = vcombine.low %v287_v27, %v287_v27  ;;  %v8553_v29 = vcombine.low %v289_v45, %v289_v45  ;;  %v290_v46 = vld [vmem:[%s10730_s20 + $0x1c] sm:$0xf] }
 0x1fc   : > { %v1505_v42 = vrot.slane %v1503_v52, 1  ;;  %v1471_v59 = vshrl.u32 %v1433_v50, 16  ;;  %v1474_v1 = vshll.u32 %v1433_v50, 16  ;;  %v11268_v11 = vcombine.low %v290_v46, %v290_v46  ;;  %v288_v50 = vld [vmem:[%s10730_s20 + $0x14] sm:$0xf] }
 0x1fd   : > { %v1469_v4 = vor.u32 %v1468_v54, %v1465_v53  ;;  %3155 = vmatpush2.bf16.msra.mxu1 %v9148_v51  ;;  %v3652_v49 = vshrl.u32 %v8555_v25, 16  ;;  %v8552_v52 = vcombine.low %v288_v50, %v288_v50  ;;  %v9157_v46 = vld [vmem:[%s16569_s3 + $0x4a0] ss:$16 sps:$4 sm:$0xff]  }
 0x1fe   : > { %v1506_v6 = vor.u32 %v1505_v42, %v1501_v55  ;;  %v1473_v10 = vrot.slane %v1471_v59, 2  ;;  %v1476_v13 = vrot.slane %v1474_v1, 3  ;;  %3210 = vmatprep.subr.bf16.mxu1 %v9152_v18 }
 0x1ff   : > { %v1480_v14 = vsel %vm11161_vm12, 0, %v1469_v4  ;;  %v3674_v53 = vshrl.u32 %v8552_v52, 16  ;;  %v3676_v54 = vshll.u32 %v8552_v52, 16 }
 0x200   : > { %1552 = vrot.lane.b32.xlu0 %v1506_v6, %s10609_s19  ;;  %v1483_v16 = vsel %vm954_vm1, %v1480_v14, 0  ;;  %v1477_v17 = vor.u32 %v1476_v13, %v1473_v10  ;;  %v3696_v13 = vshll.u32 %v8553_v29, 16 }
 0x201   : > { %v1516_v20 = vshll.u32 %v1483_v16, 16  ;;  %v1565_v22 = vrot.slane %v1483_v16, 1  ;;  %v1514_v23 = vshrl.u32 %v1483_v16, 16  ;;  %v3678_v42 = vrot.slane %v3676_v54, 1  ;;  %v9160_v54 = vld [vmem:[%s16569_s3 + $0x484] ss:$16 sps:$4 sm:$0xff]  }
 0x202   : > { %v1481_v24 = vsel %vm11161_vm12, 0, %v1477_v17  ;;  %v3698_v17 = vrot.slane %v3696_v13, 1 }
 0x203   : > { %v1576_v30 = vrot.slane %v1516_v20, 5  ;;  %v1518_v31 = vrot.slane %v1516_v20, 1  ;;  %v1575_v26 = vrot.slane %v1514_v23, 4  ;;  %v11237_v32 = vsel %vm954_vm1, %v1481_v24, 0 }
 0x204   : > { %1488 = vrot.lane.b32.xlu0 %v1483_v16, %s10609_s19  ;;  %v1624_v33 = vshrl.u32 %v1565_v22, 16  ;;  %v1522_v28 = vshll.u32 %v11237_v32, 16  ;;  %v1627_v15 = vshll.u32 %v1565_v22, 16  ;;  %v1520_v9 = vshrl.u32 %v11237_v32, 16 }
 0x205   : > { %v1519_v34 = vor.u32 %v1518_v31, %v1514_v23  ;;  %v1577_v36 = vor.u32 %v1576_v30, %v1575_v26  ;;  %v11285_v4 = vor.u32 %v3678_v42, %v3674_v53  ;;  %v3694_v16 = vshrl.u32 %v8553_v29, 16  ;;  %v9145_v23 = vld [vmem:[%s16569_s3 + $0x4e0] ss:$16 sps:$4 sm:$0xff]   ;;  %v9158_v53 = vld [vmem:[%s16569_s3 + $0x6c4] ss:$16 sps:$4 sm:$0xff]  }
 0x206   : > { %v1626_v38 = vrot.slane %v1624_v33, 4  ;;  %v1629_v8 = vrot.slane %v1627_v15, 5  ;;  %v1524_v41 = vrot.slane %v1522_v28, 1  ;;  %v9149_v33 = vld [vmem:[%s16569_s3 + $0x4c4] ss:$16 sps:$4 sm:$0xff]  }
 0x207   : > { %1555 = vrot.lane.b32.xlu1 %v1519_v34, %s10608_s9  ;;  %v11245_v39 = vsel %vm10856_vm5, %v11184_v35, %v1577_v36  ;;  %v1536_v35 = vrot.slane %v11210_v48, 1  ;;  %v11300_v24 = vor.u32 %v3698_v17, %v3694_v16  ;;  %v9164_v16 = vld [vmem:[%s16569_s3 + $0x6a4] ss:$16 sps:$4 sm:$0xff]   ;;  %v9169_v17 = vld [vmem:[%s16569_s3 + $0x460] ss:$16 sps:$4 sm:$0xff]  }
 0x208   : > { %1507 = vrot.lane.b32.xlu0 %v1500_v47, %s10608_s9  ;;  %v1630_v43 = vor.u32 %v1629_v8, %v1626_v38  ;;  %v1525_v19 = vor.u32 %v1524_v41, %v1520_v9  ;;  %v3654_v47 = vshll.u32 %v8555_v25, 16  ;;  %v9151_v8 = vld [vmem:[%s16569_s3 + $0x4c0] ss:$16 sps:$4 sm:$0xff]  }
 0x20a   : > { %v11254_v44 = vsel %vm10856_vm5, %v1535_v37, %v1630_v43  ;;  %v3656_v40 = vrot.slane %v3654_v47, 1  ;;  %v9154_v43 = vld [vmem:[%s16569_s3 + $0x4a4] ss:$16 sps:$4 sm:$0xff]  }
 0x20b   : > { %1490 = vrot.lane.b32.xlu1 %v11237_v32, %s10609_s19 }
 0x20c   : > { %1560 = vrot.lane.b32.xlu0 %v1535_v37, %s16584_s29  ;;  %v11273_v21 = vor.u32 %v3656_v40, %v3652_v49  ;;  %v9156_v40 = vld [vmem:[%s16569_s3 + $0x6e0] ss:$16 sps:$4 sm:$0xff]  }
 0x20f   : > { %1557 = vrot.lane.b32.xlu1 %v1525_v19, %s10608_s9 }
 0x210   : > { %1509 = vrot.lane.b32.xlu0 %v1506_v6, %s10608_s9 }
 0x213   : > { %1562 = vrot.lane.b32.xlu1 %v1536_v35, %s16584_s29 }
 0x214   : > { %1528 = vrot.lane.b32.xlu0 %v1525_v19, %s16584_s29 }
 0x217   : > { %1526 = vrot.lane.b32.xlu1 %v1519_v34, %s16584_s29 }
 0x218   : > { %3669 = vrot.lane.b32.xlu0 %v11268_v11, %s10608_s9 }
 0x21b   : > { %3667 = vrot.lane.b32.xlu1 %v8553_v29, %s16584_s29 }
 0x21c   : > { %3687 = vrot.lane.b32.xlu0 %v11268_v11, %s16584_s29 }
 0x21f   : > { %3671 = vrot.lane.b32.xlu1 %v11273_v21, %s10609_s19 }
 0x220   : > { %3689 = vrot.lane.b32.xlu0 %v11273_v21, %s10608_s9 }
 0x223   : > { %3636 = vrot.lane.b32.xlu1 %v8552_v52, %s16584_s29 }
 0x224   : > { %3691 = vrot.lane.b32.xlu0 %v11285_v4, %s10609_s19 }
 0x227   : > { %3641 = vrot.lane.b32.xlu1 %v8553_v29, %s10608_s9 }
 0x228   : > { %3707 = vrot.lane.b32.xlu0 %v11273_v21, %s16584_s29 }
 0x22b   : > { %3646 = vrot.lane.b32.xlu1 %v11268_v11, %s10609_s19 }
 0x22c   : > { %3711 = vrot.lane.b32.xlu0 %v11300_v24, %s10609_s19 }
 0x22f   : > { %3709 = vrot.lane.b32.xlu1 %v11285_v4, %s10608_s9 }
 0x26d   : > { %v1551_v55 = vpop.permute.xlu1 %1550 }
 0x26e   : > { %v1568_v59 = vsel %vm851_vm9, %v11237_v32, %v1551_v55 }
 0x26f   : > { %v1578_v1 = vshrl.u32 %v1568_v59, 16  ;;  %v1581_v2 = vshll.u32 %v1568_v59, 16 }
 0x271   : > { %v1580_v51 = vrot.slane %v1578_v1, 4  ;;  %v1583_v6 = vrot.slane %v1581_v2, 5  ;;  %v9163_v2 = vld [vmem:[%s16569_s3 + $0x480] ss:$16 sps:$4 sm:$0xff]  }
 0x272   : > { %v1553_v10 = vpop.permute.xlu0 %1552 }
 0x273   : > { %v1554_v14 = vsel %vm851_vm9, %v1551_v55, %v1553_v10  ;;  %v1584_v20 = vor.u32 %v1583_v6, %v1580_v51  ;;  %v9162_v51 = vld [vmem:[%s16569_s3 + $0x6c0] ss:$16 sps:$4 sm:$0xff]   ;;  %v9166_v6 = vld [vmem:[%s16569_s3 + $0x464] ss:$16 sps:$4 sm:$0xff]  }
 0x274   : > { %v1586_v30 = vshrl.u32 %v1554_v14, 16  ;;  %v1589_v31 = vshll.u32 %v1554_v14, 16 }
 0x276   : > { %v1489_v18 = vpop.permute.xlu0 %1488  ;;  %v1588_v37 = vrot.slane %v1586_v30, 4  ;;  %v1591_v41 = vrot.slane %v1589_v31, 5  ;;  %v9170_v30 = vld [vmem:[%s16569_s3 + $0x684] ss:$16 sps:$4 sm:$0xff]  }
 0x277   : > { %v1540_v22 = vsel %vm851_vm9, %v11210_v48, %v1489_v18  ;;  %v9172_v31 = vld [vmem:[%s16569_s3 + $0x444] ss:$16 sps:$4 sm:$0xff]   ;;  %v9280_v48 = vld [vmem:[%s16569_s3 + $0x48] ss:$16 sps:$4 sm:$0xff]  }
 0x278   : > { %v11304_v26 = vsel %vm10856_vm5, %v1540_v22, %v1584_v20  ;;  %v1592_v47 = vor.u32 %v1591_v41, %v1588_v37  ;;  %v9176_v37 = vld [vmem:[%s16569_s3 + $0x664] ss:$16 sps:$4 sm:$0xff]   ;;  %v9181_v41 = vld [vmem:[%s16569_s3 + $0x420] ss:$16 sps:$4 sm:$0xff]  }
 0x279   : > { %v11311_v34 = vpop.permute.xlu1 %1555  ;;  %3113 = vmatprep.mubr.bf16.mxu0 %v11304_v26 }
 0x27a   : > { %v1571_v36 = vsel %vm848_vm8, %v1553_v10, %v11311_v34  ;;  %v11318_v28 = vpop.permute.xlu0 %1507  ;;  %3114 = vmatmul.mubr.bf16.vlgmr.msra.gmra.mxu0 %v11245_v39 }
 0x27b   : > { %v1593_v15 = vshrl.u32 %v1571_v36, 16  ;;  %v1596_v38 = vshll.u32 %v1571_v36, 16  ;;  %3168 = vmatpush1.bf16.msra.mxu0 %v9145_v23 }
 0x27c   : > { %3169 = vmatprep.subr.bf16.mxu0 %v9149_v33 }
 0x27d   : > { %v1595_v9 = vrot.slane %v1593_v15, 4  ;;  %v1598_v19 = vrot.slane %v1596_v38, 5  ;;  %v1491_v27 = vpop.permute.xlu1 %1490  ;;  %v9175_v15 = vld [vmem:[%s16569_s3 + $0x440] ss:$16 sps:$4 sm:$0xff]  }
 0x27e   : > { %v1493_v45 = vsel %vm851_vm9, %v1489_v18, %v1491_v27  ;;  %v11328_v25 = vpop.permute.xlu0 %1560  ;;  %v1544_v49 = vsel %vm848_vm8, %v1491_v27, %v11318_v28  ;;  %v9168_v18 = vld [vmem:[%s16569_s3 + $0x6a0] ss:$16 sps:$4 sm:$0xff]  }
 0x27f   : > { %3170 = vmatpush1.bf16.msra.mxu0 %v9151_v8  ;;  %v1599_v29 = vor.u32 %v1598_v19, %v1595_v9  ;;  %v11356_v42 = vsel %vm10856_vm5, %v1493_v45, %v1592_v47  ;;  %v9174_v38 = vld [vmem:[%s16569_s3 + $0x680] ss:$16 sps:$4 sm:$0xff]   ;;  %v9178_v8 = vld [vmem:[%s16569_s3 + $0x424] ss:$16 sps:$4 sm:$0xff]  }
 0x280   : > { %3171 = vmatprep.subr.bf16.mxu0 %v9154_v43  ;;  %v9180_v43 = vld [vmem:[%s16569_s3 + $0x660] ss:$16 sps:$4 sm:$0xff]   ;;  %v9184_v9 = vld [vmem:[%s16569_s3 + $0x404] ss:$16 sps:$4 sm:$0xff]  }
 0x281   : > { %v11338_v50 = vpop.permute.xlu1 %1557  ;;  %v11342_v52 = vsel %vm10856_vm5, %v1544_v49, %v1599_v29  ;;  %v9182_v19 = vld [vmem:[%s16569_s3 + $0x644] ss:$16 sps:$4 sm:$0xff]   ;;  %v9187_v27 = vld [vmem:[%s16569_s3 + $0x400] ss:$16 sps:$4 sm:$0xff]  }
 0x282   : > { %v1574_v55 = vsel %vm844_vm7, %v11338_v50, %v11328_v25  ;;  %3156 = vmatprep.mubr.bf16.mxu1 %v11342_v52  ;;  %v11380_v20 = vpop.permute.xlu0 %1509  ;;  %v9186_v45 = vld [vmem:[%s16569_s3 + $0x640] ss:$16 sps:$4 sm:$0xff]   ;;  %v9190_v29 = vld [vmem:[%s16569_s3 + $0x5e4] ss:$16 sps:$4 sm:$0xff]  }
 0x283   : > { %v1608_v59 = vshrl.u32 %v1574_v55, 16  ;;  %v1611_v1 = vshll.u32 %v1574_v55, 16  ;;  %3157 = vmatmul.mubr.bf16.vlgmr.msra.gmra.mxu1 %v11356_v42  ;;  %3172 = vmatpush1.bf16.msra.mxu0 %v9157_v46  ;;  %v9188_v46 = vld [vmem:[%s16569_s3 + $0x624] ss:$16 sps:$4 sm:$0xff]   ;;  %v9193_v47 = vld [vmem:[%s16569_s3 + $0x5e0] ss:$16 sps:$4 sm:$0xff]  }
 0x284   : > { %3211 = vmatpush1.bf16.msra.mxu1 %v9156_v40  ;;  %3242 = vmatprep.mubr.bf16.mxu1 %v11254_v44  ;;  %v9192_v49 = vld [vmem:[%s16569_s3 + $0x620] ss:$16 sps:$4 sm:$0xff]   ;;  %v9196_v40 = vld [vmem:[%s16569_s3 + $0x5c4] ss:$16 sps:$4 sm:$0xff]  }
 0x285   : > { %v1610_v10 = vrot.slane %v1608_v59, 4  ;;  %v1613_v13 = vrot.slane %v1611_v1, 5  ;;  %v11369_v14 = vpop.permute.xlu1 %1562  ;;  %3212 = vmatprep.subr.bf16.mxu1 %v9158_v53  ;;  %3173 = vmatprep.subr.bf16.mxu0 %v9160_v54  ;;  %v9194_v53 = vld [vmem:[%s16569_s3 + $0x604] ss:$16 sps:$4 sm:$0xff]   ;;  %v9199_v54 = vld [vmem:[%s16569_s3 + $0x5c0] ss:$16 sps:$4 sm:$0xff]  }
 0x286   : > { %v9198_v55 = vld [vmem:[%s16569_s3 + $0x600] ss:$16 sps:$4 sm:$0xff]   ;;  %v9202_v59 = vld [vmem:[%s16569_s3 + $0x5a4] ss:$16 sps:$4 sm:$0xff]  }
 0x287   : > { %3174 = vmatpush1.bf16.msra.mxu0 %v9163_v2  ;;  %v1614_v23 = vor.u32 %v1613_v13, %v1610_v10  ;;  %v9200_v1 = vld [vmem:[%s16569_s3 + $0x7e4] ss:$16 sps:$4 sm:$0xff]   ;;  %v9205_v2 = vld [vmem:[%s16569_s3 + $0x5a0] ss:$16 sps:$4 sm:$0xff]  }
 0x288   : > { %3213 = vmatpush1.bf16.msra.mxu1 %v9162_v51  ;;  %3175 = vmatprep.subr.bf16.mxu0 %v9166_v6  ;;  %v9204_v51 = vld [vmem:[%s16569_s3 + $0x7e0] ss:$16 sps:$4 sm:$0xff]   ;;  %v9208_v6 = vld [vmem:[%s16569_s3 + $0x584] ss:$16 sps:$4 sm:$0xff]  }
 0x289   : > { %v11382_v22 = vpop.permute.xlu1 %1526  ;;  %3214 = vmatprep.subr.bf16.mxu1 %v9164_v16  ;;  %v9206_v10 = vld [vmem:[%s16569_s3 + $0x7c4] ss:$16 sps:$4 sm:$0xff]   ;;  %v9211_v13 = vld [vmem:[%s16569_s3 + $0x580] ss:$16 sps:$4 sm:$0xff]  }
 0x28a   : > { %v1548_v33 = vsel %vm844_vm7, %v11380_v20, %v11382_v22  ;;  %v9210_v16 = vld [vmem:[%s16569_s3 + $0x7c0] ss:$16 sps:$4 sm:$0xff]  }
 0x28b   : > { %3176 = vmatpush1.bf16.msra.mxu0 %v9169_v17  ;;  %v11395_v36 = vsel %vm10856_vm5, %v1548_v33, %v1614_v23  ;;  %v9214_v17 = vld [vmem:[%s16569_s3 + $0x564] ss:$16 sps:$4 sm:$0xff]   ;;  %v9217_v23 = vld [vmem:[%s16569_s3 + $0x560] ss:$16 sps:$4 sm:$0xff]  }
 0x28c   : > { %3215 = vmatpush1.bf16.msra.mxu1 %v9168_v18  ;;  %3199 = vmatprep.mubr.bf16.mxu0 %v11395_v36  ;;  %v9212_v18 = vld [vmem:[%s16569_s3 + $0x7a4] ss:$16 sps:$4 sm:$0xff]  }
 0x28d   : > { %3216 = vmatprep.subr.bf16.mxu1 %v9170_v30  ;;  %3177 = vmatprep.subr.bf16.mxu0 %v9172_v31  ;;  %v9216_v30 = vld [vmem:[%s16569_s3 + $0x7a0] ss:$16 sps:$4 sm:$0xff]   ;;  %v9220_v31 = vld [vmem:[%s16569_s3 + $0x544] ss:$16 sps:$4 sm:$0xff]  }
 0x28e   : > { %v9218_v33 = vld [vmem:[%s16569_s3 + $0x784] ss:$16 sps:$4 sm:$0xff]  }
 0x28f   : > { %3178 = vmatpush1.bf16.msra.mxu0 %v9175_v15  ;;  %v1559_v15 = vsel %vm848_vm8, %v11311_v34, %v11338_v50  ;;  %v9224_v34 = vld [vmem:[%s16569_s3 + $0x764] ss:$16 sps:$4 sm:$0xff]   ;;  %v9229_v50 = vld [vmem:[%s16569_s3 + $0x520] ss:$16 sps:$4 sm:$0xff]  }
 0x290   : > { %3217 = vmatpush1.bf16.msra.mxu1 %v9174_v38  ;;  %3179 = vmatprep.subr.bf16.mxu0 %v9178_v8  ;;  %v9223_v38 = vld [vmem:[%s16569_s3 + $0x540] ss:$16 sps:$4 sm:$0xff]  }
 0x291   : > { %3218 = vmatprep.subr.bf16.mxu1 %v9176_v37  ;;  %v9222_v8 = vld [vmem:[%s16569_s3 + $0x780] ss:$16 sps:$4 sm:$0xff]   ;;  %v9226_v37 = vld [vmem:[%s16569_s3 + $0x524] ss:$16 sps:$4 sm:$0xff]  }
 0x293   : > { %3180 = vmatpush1.bf16.msra.mxu0 %v9181_v41  ;;  %v1601_v41 = vshrl.u32 %v1559_v15, 16 }
 0x294   : > { %3219 = vmatpush1.bf16.msra.mxu1 %v9180_v43  ;;  %3181 = vmatprep.subr.bf16.mxu0 %v9184_v9  ;;  %v1604_v43 = vshll.u32 %v1559_v15, 16  ;;  %v9228_v9 = vld [vmem:[%s16569_s3 + $0x760] ss:$16 sps:$4 sm:$0xff]   ;;  %v1566_v15 = vrot.slane %v11237_v32, 1 }
 0x295   : > { %3220 = vmatprep.subr.bf16.mxu1 %v9182_v19  ;;  %v9232_v19 = vld [vmem:[%s16569_s3 + $0x504] ss:$16 sps:$4 sm:$0xff]   ;;  %v9259_v32 = vld [vmem:[%s16569_s3 + $0x840] ss:$16 sps:$4 sm:$0xff]  }
 0x297   : > { %3182 = vmatpush1.bf16.msra.mxu0 %v9187_v27  ;;  %v1603_v27 = vrot.slane %v1601_v41, 4 }
 0x298   : > { %3221 = vmatpush1.bf16.msra.mxu1 %v9186_v45  ;;  %3183 = vmatprep.subr.bf16.mxu0 %v9190_v29  ;;  %v1606_v45 = vrot.slane %v1604_v43, 5  ;;  %v9230_v29 = vld [vmem:[%s16569_s3 + $0x744] ss:$16 sps:$4 sm:$0xff]  }
 0x299   : > { %3222 = vmatprep.subr.bf16.mxu1 %v9188_v46  ;;  %v1564_v46 = vsel %vm844_vm7, %v11328_v25, %v11369_v14  ;;  %v9236_v25 = vld [vmem:[%s16569_s3 + $0x724] ss:$16 sps:$4 sm:$0xff]  }
 0x29a   : > { %v1616_v14 = vshrl.u32 %v1564_v46, 16  ;;  %v9262_v43 = vld [vmem:[%s16569_s3 + $0x824] ss:$16 sps:$4 sm:$0xff]  }
 0x29b   : > { %3184 = vmatpush2.bf16.msra.mxu0 %v9193_v47  ;;  %v9235_v47 = vld [vmem:[%s16569_s3 + $0x500] ss:$16 sps:$4 sm:$0xff]  }
 0x29c   : > { %3223 = vmatpush1.bf16.msra.mxu1 %v9192_v49  ;;  %3185 = vmatprep.subr.bf16.mxu0 %v9196_v40  ;;  %v9234_v49 = vld [vmem:[%s16569_s3 + $0x740] ss:$16 sps:$4 sm:$0xff]   ;;  %v9239_v40 = vld [vmem:[%s16569_s3 + $0x8a4] ss:$16 sps:$4 sm:$0xff]  }
 0x29d   : > { %3224 = vmatprep.subr.bf16.mxu1 %v9194_v53  ;;  %v1607_v53 = vor.u32 %v1606_v45, %v1603_v27  ;;  %v9268_v27 = vld [vmem:[%s16569_s3 + $0x804] ss:$16 sps:$4 sm:$0xff]   ;;  %v9266_v45 = vld [vmem:[%s16569_s3 + $0x8c] ss:$16 sps:$4 sm:$0xff]  }
 0x29f   : > { %3186 = vmatpush2.bf16.msra.mxu0 %v9199_v54  ;;  %v1619_v54 = vshll.u32 %v1564_v46, 16 }
 0x2a0   : > { %3225 = vmatpush1.bf16.msra.mxu1 %v9198_v55  ;;  %3187 = vmatprep.subr.bf16.mxu0 %v9202_v59  ;;  %v9241_v55 = vld [vmem:[%s16569_s3 + $0x8a0] ss:$16 sps:$4 sm:$0xff]   ;;  %v1512_v59 = vsel %vm848_vm8, %v11318_v28, %v11380_v20  ;;  %v1618_v28 = vrot.slane %v1616_v14, 4  ;;  %v9277_v14 = vld [vmem:[%s16569_s3 + $0x2e8] ss:$16 sps:$4 sm:$0xff]  }
 0x2a1   : > { %3226 = vmatprep.subr.bf16.mxu1 %v9200_v1  ;;  %v9238_v1 = vld [vmem:[%s16569_s3 + $0x720] ss:$16 sps:$4 sm:$0xff]   ;;  %v1621_v20 = vrot.slane %v1619_v54, 5  ;;  %v9274_v54 = vld [vmem:[%s16569_s3 + $0x68] ss:$16 sps:$4 sm:$0xff]  }
 0x2a3   : > { %3188 = vmatpush2.bf16.msra.mxu0 %v9205_v2  ;;  %v9245_v2 = vld [vmem:[%s16569_s3 + $0x884] ss:$16 sps:$4 sm:$0xff]  }
 0x2a4   : > { %3227 = vmatpush2.bf16.msra.mxu1 %v9204_v51  ;;  %3189 = vmatprep.subr.bf16.mxu0 %v9208_v6  ;;  %v11550_v51 = vsel %vm10856_vm5, %v1512_v59, %v1607_v53  ;;  %v9242_v6 = vld [vmem:[%s16569_s3 + $0x704] ss:$16 sps:$4 sm:$0xff]   ;;  %v9272_v53 = vld [vmem:[%s16569_s3 + $0x6c] ss:$16 sps:$4 sm:$0xff]  }
 0x2a5   : > { %3228 = vmatprep.subr.bf16.mxu1 %v9206_v10  ;;  %v9247_v10 = vld [vmem:[%s16569_s3 + $0x880] ss:$16 sps:$4 sm:$0xff]  }
 0x2a7   : > { %3190 = vmatpush2.bf16.msra.mxu0 %v9211_v13  ;;  %v10610_v13 = vmov 0  }
 0x2a8   : > { %3229 = vmatpush2.bf16.msra.mxu1 %v9210_v16  ;;  %3191 = vmatprep.subr.bf16.mxu0 %v9214_v17  ;;  %v9244_v16 = vld [vmem:[%s16569_s3 + $0x700] ss:$16 sps:$4 sm:$0xff]   ;;  %v9250_v17 = vld [vmem:[%s16569_s3 + $0x864] ss:$16 sps:$4 sm:$0xff]  }
 0x2a9   : > { %3230 = vmatprep.subr.bf16.mxu1 %v9212_v18  ;;  %v9248_v18 = vld [vmem:[%s16569_s3 + $0xec] ss:$16 sps:$4 sm:$0xff]  }
 0x2ab   : > { %3192 = vmatpush2.bf16.msra.mxu0 %v9217_v23  ;;  %v1622_v23 = vor.u32 %v1621_v20, %v1618_v28  ;;  %v9286_v28 = vld [vmem:[%s16569_s3 + $0x28] ss:$16 sps:$4 sm:$0xff]   ;;  %v9293_v20 = vld [vmem:[%s16569_s3 + $0x28c] ss:$16 sps:$4 sm:$0xff]  }
 0x2ac   : > { %3231 = vmatpush2.bf16.msra.mxu1 %v9216_v30  ;;  %3193 = vmatprep.subr.bf16.mxu0 %v9220_v31  ;;  %v1529_v30 = vpop.permute.xlu0 %1528  ;;  %v9253_v31 = vld [vmem:[%s16569_s3 + $0x860] ss:$16 sps:$4 sm:$0xff]  }
 0x2ad   : > { %3232 = vmatprep.subr.bf16.mxu1 %v9218_v33  ;;  %v9252_v33 = vld [vmem:[%s16569_s3 + $0xe8] ss:$16 sps:$4 sm:$0xff]  }
 0x2af   : > { %3194 = vmatpush2.bf16.msra.mxu0 %v9223_v38  ;;  %v1531_v38 = vsel %vm844_vm7, %v11382_v22, %v1529_v30  ;;  %v9258_v22 = vld [vmem:[%s16569_s3 + $0xc8] ss:$16 sps:$4 sm:$0xff]  }
 0x2b0   : > { %3233 = vmatpush2.bf16.msra.mxu1 %v9222_v8  ;;  %3195 = vmatprep.subr.bf16.mxu0 %v9226_v37  ;;  %v9254_v8 = vld [vmem:[%s16569_s3 + $0xcc] ss:$16 sps:$4 sm:$0xff]   ;;  %v9256_v37 = vld [vmem:[%s16569_s3 + $0x844] ss:$16 sps:$4 sm:$0xff]   ;;  %v11586_v41 = vsel %vm10856_vm5, %v1531_v38, %v1622_v23  ;;  %v9303_v30 = vld [vmem:[%s16569_s3 + $0x268] ss:$16 sps:$4 sm:$0xff]  }
 0x2b1   : > { %3234 = vmatprep.subr.bf16.mxu1 %v9224_v34  ;;  %v9260_v34 = vld [vmem:[%s16569_s3 + $0xac] ss:$16 sps:$4 sm:$0xff]   ;;  %v9310_v38 = vld [vmem:[%s16569_s3 + $0x248] ss:$16 sps:$4 sm:$0xff]  }
 0x2b2   : > { %v9297_v23 = vld [vmem:[%s16569_s3 + $0x1ec] ss:$16 sps:$4 sm:$0xff]  }
 0x2b3   : > { %3196 = vmatpush2.bf16.msra.mxu0 %v9229_v50  ;;  %v1632_v50 = vshrl.u32 %v1566_v15, 16 }
 0x2b4   : > { %3235 = vmatpush2.bf16.msra.mxu1 %v9228_v9  ;;  %3197 = vmatprep.subr.bf16.mxu0 %v9232_v19  ;;  %v1635_v9 = vshll.u32 %v1566_v15, 16  ;;  %v9264_v19 = vld [vmem:[%s16569_s3 + $0xa8] ss:$16 sps:$4 sm:$0xff]   ;;  %v9305_v15 = vld [vmem:[%s16569_s3 + $0x1cc] ss:$16 sps:$4 sm:$0xff]  }
 0x2b5   : > { %3236 = vmatprep.subr.bf16.mxu1 %v9230_v29  ;;  %v1634_v29 = vrot.slane %v1632_v50, 4  ;;  %v9318_v50 = vld [vmem:[%s16569_s3 + $0x18c] ss:$16 sps:$4 sm:$0xff]  }
 0x2b6   : > { %v1637_v46 = vrot.slane %v1635_v9, 5  ;;  %v9323_v9 = vld [vmem:[%s16569_s3 + $0x208] ss:$16 sps:$4 sm:$0xff]  }
 0x2b7   : > { %3198 = vmatpush2.bf16.msra.mxu0 %v9235_v47  ;;  %v9271_v47 = vld [vmem:[%s16569_s3 + $0x800] ss:$16 sps:$4 sm:$0xff]  }
 0x2b8   : > { %3237 = vmatpush2.bf16.msra.mxu1 %v9234_v49  ;;  %3257 = vmatprep.subr.bf16.mxu0 %v9239_v40  ;;  %v9270_v49 = vld [vmem:[%s16569_s3 + $0x88] ss:$16 sps:$4 sm:$0xff]   ;;  %v9275_v40 = vld [vmem:[%s16569_s3 + $0x2ec] ss:$16 sps:$4 sm:$0xff]  }
 0x2b9   : > { %3238 = vmatprep.subr.bf16.mxu1 %v9236_v25  ;;  %v1638_v25 = vor.u32 %v1637_v46, %v1634_v29  ;;  %v9326_v29 = vld [vmem:[%s16569_s3 + $0x168] ss:$16 sps:$4 sm:$0xff]   ;;  %v9333_v46 = vld [vmem:[%s16569_s3 + $0x3cc] ss:$16 sps:$4 sm:$0xff]  }
 0x2ba   : > { %3200 = vmatmul.mubr.bf16.vlgmr.msra.gmra.mxu0 %v11550_v51 }
 0x2bb   : > { %3258 = vmatpush1.bf16.msra.mxu0 %v9241_v55  ;;  %3285 = vmatprep.mubr.bf16.mxu0 %v10610_v13  ;;  %v9281_v55 = vld [vmem:[%s16569_s3 + $0x2cc] ss:$16 sps:$4 sm:$0xff]   ;;  %v11639_v59 = vsel %vm10856_vm5, %v1536_v35, %v1638_v25 }
 0x2bc   : > { %3239 = vmatpush2.bf16.msra.mxu1 %v9238_v1  ;;  %3259 = vmatprep.subr.bf16.mxu0 %v9245_v2  ;;  %v9278_v1 = vld [vmem:[%s16569_s3 + $0x4c] ss:$16 sps:$4 sm:$0xff]   ;;  %v9283_v2 = vld [vmem:[%s16569_s3 + $0x2c8] ss:$16 sps:$4 sm:$0xff]  }
 0x2bd   : > { %3240 = vmatprep.subr.bf16.mxu1 %v9242_v6  ;;  %v9287_v35 = vld [vmem:[%s16569_s3 + $0x2ac] ss:$16 sps:$4 sm:$0xff]  }
 0x2be   : > { %v9284_v6 = vld [vmem:[%s16569_s3 + $0x2c] ss:$16 sps:$4 sm:$0xff]  }
 0x2bf   : > { %3260 = vmatpush1.bf16.msra.mxu0 %v9247_v10  ;;  %v9290_v10 = vld [vmem:[%s16569_s3 + $0xc] ss:$16 sps:$4 sm:$0xff]  }
 0x2c0   : > { %3241 = vmatpush2.bf16.msra.mxu1 %v9244_v16  ;;  %3261 = vmatprep.subr.bf16.mxu0 %v9250_v17  ;;  %v9295_v16 = vld [vmem:[%s16569_s3 + $0x288] ss:$16 sps:$4 sm:$0xff]   ;;  %v9336_v25 = vld [vmem:[%s16569_s3 + $0x12c] ss:$16 sps:$4 sm:$0xff]  }
 0x2c1   : > { %3296 = vmatprep.subr.bf16.mxu1 %v9248_v18  ;;  %v9292_v17 = vld [vmem:[%s16569_s3 + $0x8] ss:$16 sps:$4 sm:$0xff]   ;;  %v9301_v18 = vld [vmem:[%s16569_s3 + $0x26c] ss:$16 sps:$4 sm:$0xff]  }
 0x2c3   : > { %3243 = vmatmul.mubr.bf16.vlgmr.msra.gmra.mxu1 %v11586_v41  ;;  %3262 = vmatpush1.bf16.msra.mxu0 %v9253_v31  ;;  %v9300_v31 = vld [vmem:[%s16569_s3 + $0x1e8] ss:$16 sps:$4 sm:$0xff]  }
 0x2c4   : > { %3297 = vmatpush1.bf16.msra.mxu1 %v9252_v33  ;;  %3328 = vmatprep.mubr.bf16.mxu1 %v11304_v26  ;;  %v9265_v26 = vld [vmem:[%s16569_s3 + $0x820] ss:$16 sps:$4 sm:$0xff]   ;;  %v9308_v33 = vld [vmem:[%s16569_s3 + $0x24c] ss:$16 sps:$4 sm:$0xff]  }
 0x2c5   : > { %3298 = vmatprep.subr.bf16.mxu1 %v9254_v8  ;;  %3263 = vmatprep.subr.bf16.mxu0 %v9256_v37  ;;  %v9307_v8 = vld [vmem:[%s16569_s3 + $0x1c8] ss:$16 sps:$4 sm:$0xff]   ;;  %v9315_v37 = vld [vmem:[%s16569_s3 + $0x22c] ss:$16 sps:$4 sm:$0xff]  }
 0x2c7   : > { %3264 = vmatpush1.bf16.msra.mxu0 %v9259_v32  ;;  %v9312_v32 = vld [vmem:[%s16569_s3 + $0x1ac] ss:$16 sps:$4 sm:$0xff]  }
 0x2c8   : > { %3299 = vmatpush1.bf16.msra.mxu1 %v9258_v22  ;;  %3265 = vmatprep.subr.bf16.mxu0 %v9262_v43  ;;  %v9317_v22 = vld [vmem:[%s16569_s3 + $0x228] ss:$16 sps:$4 sm:$0xff]  }
 0x2c9   : > { %3300 = vmatprep.subr.bf16.mxu1 %v9260_v34  ;;  %v9314_v43 = vld [vmem:[%s16569_s3 + $0x1a8] ss:$16 sps:$4 sm:$0xff]   ;;  %v9321_v34 = vld [vmem:[%s16569_s3 + $0x20c] ss:$16 sps:$4 sm:$0xff]  }
 0x2cb   : > { %3266 = vmatpush1.bf16.msra.mxu0 %v9265_v26  ;;  %v9320_v26 = vld [vmem:[%s16569_s3 + $0x188] ss:$16 sps:$4 sm:$0xff]  }
 0x2cc   : > { %3301 = vmatpush1.bf16.msra.mxu1 %v9264_v19  ;;  %3267 = vmatprep.subr.bf16.mxu0 %v9268_v27  ;;  %v9327_v19 = vld [vmem:[%s16569_s3 + $0x3ec] ss:$16 sps:$4 sm:$0xff]  }
 0x2cd   : > { %3302 = vmatprep.subr.bf16.mxu1 %v9266_v45  ;;  %v9324_v27 = vld [vmem:[%s16569_s3 + $0x16c] ss:$16 sps:$4 sm:$0xff]   ;;  %v9329_v45 = vld [vmem:[%s16569_s3 + $0x3e8] ss:$16 sps:$4 sm:$0xff]  }
 0x2cf   : > { %3268 = vmatpush1.bf16.msra.mxu0 %v9271_v47  ;;  %v9330_v47 = vld [vmem:[%s16569_s3 + $0x14c] ss:$16 sps:$4 sm:$0xff]  }
 0x2d0   : > { %3303 = vmatpush1.bf16.msra.mxu1 %v9270_v49  ;;  %3339 = vmatprep.subr.bf16.mxu0 %v9275_v40  ;;  %v9335_v49 = vld [vmem:[%s16569_s3 + $0x3c8] ss:$16 sps:$4 sm:$0xff]  }
 0x2d1   : > { %3304 = vmatprep.subr.bf16.mxu1 %v9272_v53  ;;  %v9332_v40 = vld [vmem:[%s16569_s3 + $0x148] ss:$16 sps:$4 sm:$0xff]   ;;  %v9339_v53 = vld [vmem:[%s16569_s3 + $0x3ac] ss:$16 sps:$4 sm:$0xff]  }
 0x2d2   : > { %8550 = vmatmul.mubr.msk.bf16.vlgmr.msra.gmra.mxu0 %vm851_vm9, %v11639_v59 }
 0x2d3   : > { %3340 = vmatpush1.bf16.msra.mxu0 %v9277_v14  ;;  %3371 = vmatprep.mubr.bf16.mxu0 %v11342_v52  ;;  %v9289_v52 = vld [vmem:[%s16569_s3 + $0x2a8] ss:$16 sps:$4 sm:$0xff]  }
 0x2d4   : > { %3305 = vmatpush1.bf16.msra.mxu1 %v9274_v54  ;;  %3341 = vmatprep.subr.bf16.mxu0 %v9281_v55  ;;  %v9341_v14 = vld [vmem:[%s16569_s3 + $0x3a8] ss:$16 sps:$4 sm:$0xff]   ;;  %v9345_v55 = vld [vmem:[%s16569_s3 + $0x38c] ss:$16 sps:$4 sm:$0xff]  }
 0x2d5   : > { %3306 = vmatprep.subr.bf16.mxu1 %v9278_v1  ;;  %v9338_v54 = vld [vmem:[%s16569_s3 + $0x128] ss:$16 sps:$4 sm:$0xff]   ;;  %v9342_v1 = vld [vmem:[%s16569_s3 + $0x10c] ss:$16 sps:$4 sm:$0xff]  }
 0x2d7   : > { %3342 = vmatpush1.bf16.msra.mxu0 %v9283_v2  ;;  %v9347_v2 = vld [vmem:[%s16569_s3 + $0x388] ss:$16 sps:$4 sm:$0xff]  }
 0x2d8   : > { %3307 = vmatpush1.bf16.msra.mxu1 %v9280_v48  ;;  %3343 = vmatprep.subr.bf16.mxu0 %v9287_v35  ;;  %v9344_v48 = vld [vmem:[%s16569_s3 + $0x108] ss:$16 sps:$4 sm:$0xff]   ;;  %v9350_v35 = vld [vmem:[%s16569_s3 + $0x36c] ss:$16 sps:$4 sm:$0xff]  }
 0x2d9   : > { %3308 = vmatprep.subr.bf16.mxu1 %v9284_v6  ;;  %v9348_v6 = vld [vmem:[%s16569_s3 + $0x4ec] ss:$16 sps:$4 sm:$0xff]  }
 0x2db   : > { %3344 = vmatpush1.bf16.msra.mxu0 %v9289_v52  ;;  %v9353_v52 = vld [vmem:[%s16569_s3 + $0x368] ss:$16 sps:$4 sm:$0xff]  }
 0x2dc   : > { %3309 = vmatpush1.bf16.msra.mxu1 %v9286_v28  ;;  %3345 = vmatprep.subr.bf16.mxu0 %v9293_v20  ;;  %v9352_v28 = vld [vmem:[%s16569_s3 + $0x4e8] ss:$16 sps:$4 sm:$0xff]   ;;  %v9354_v20 = vld [vmem:[%s16569_s3 + $0x4cc] ss:$16 sps:$4 sm:$0xff]  }
 0x2dd   : > { %3310 = vmatprep.subr.bf16.mxu1 %v9290_v10  ;;  %v9356_v10 = vld [vmem:[%s16569_s3 + $0x34c] ss:$16 sps:$4 sm:$0xff]  }
 0x2df   : > { %3346 = vmatpush1.bf16.msra.mxu0 %v9295_v16  ;;  %v9359_v16 = vld [vmem:[%s16569_s3 + $0x348] ss:$16 sps:$4 sm:$0xff]  }
 0x2e0   : > { %3311 = vmatpush1.bf16.msra.mxu1 %v9292_v17  ;;  %3347 = vmatprep.subr.bf16.mxu0 %v9301_v18  ;;  %v9358_v17 = vld [vmem:[%s16569_s3 + $0x4c8] ss:$16 sps:$4 sm:$0xff]   ;;  %v9362_v18 = vld [vmem:[%s16569_s3 + $0x32c] ss:$16 sps:$4 sm:$0xff]  }
 0x2e1   : > { %3312 = vmatprep.subr.bf16.mxu1 %v9297_v23  ;;  %v9365_v23 = vld [vmem:[%s16569_s3 + $0x328] ss:$16 sps:$4 sm:$0xff]  }
 0x2e3   : > { %3348 = vmatpush1.bf16.msra.mxu0 %v9303_v30  ;;  %v9368_v30 = vld [vmem:[%s16569_s3 + $0x30c] ss:$16 sps:$4 sm:$0xff]  }
 0x2e4   : > { %3313 = vmatpush2.bf16.msra.mxu1 %v9300_v31  ;;  %3349 = vmatprep.subr.bf16.mxu0 %v9308_v33  ;;  %v9366_v31 = vld [vmem:[%s16569_s3 + $0x48c] ss:$16 sps:$4 sm:$0xff]   ;;  %v9371_v33 = vld [vmem:[%s16569_s3 + $0x308] ss:$16 sps:$4 sm:$0xff]  }
 0x2e5   : > { %3314 = vmatprep.subr.bf16.mxu1 %v9305_v15  ;;  %v9370_v15 = vld [vmem:[%s16569_s3 + $0x488] ss:$16 sps:$4 sm:$0xff]  }
 0x2e7   : > { %3350 = vmatpush1.bf16.msra.mxu0 %v9310_v38  ;;  %v9375_v38 = vld [vmem:[%s16569_s3 + $0x6ec] ss:$16 sps:$4 sm:$0xff]  }
 0x2e8   : > { %3315 = vmatpush2.bf16.msra.mxu1 %v9307_v8  ;;  %3351 = vmatprep.subr.bf16.mxu0 %v9315_v37  ;;  %v9372_v8 = vld [vmem:[%s16569_s3 + $0x46c] ss:$16 sps:$4 sm:$0xff]   ;;  %v9377_v37 = vld [vmem:[%s16569_s3 + $0x6e8] ss:$16 sps:$4 sm:$0xff]  }
 0x2e9   : > { %3316 = vmatprep.subr.bf16.mxu1 %v9312_v32  ;;  %v9374_v32 = vld [vmem:[%s16569_s3 + $0x468] ss:$16 sps:$4 sm:$0xff]  }
 0x2eb   : > { %3352 = vmatpush1.bf16.msra.mxu0 %v9317_v22  ;;  %v9381_v22 = vld [vmem:[%s16569_s3 + $0x6cc] ss:$16 sps:$4 sm:$0xff]  }
 0x2ec   : > { %3317 = vmatpush2.bf16.msra.mxu1 %v9314_v43  ;;  %3353 = vmatprep.subr.bf16.mxu0 %v9321_v34  ;;  %v9378_v43 = vld [vmem:[%s16569_s3 + $0x44c] ss:$16 sps:$4 sm:$0xff]   ;;  %v9383_v34 = vld [vmem:[%s16569_s3 + $0x6c8] ss:$16 sps:$4 sm:$0xff]  }
 0x2ed   : > { %3318 = vmatprep.subr.bf16.mxu1 %v9318_v50  ;;  %v9380_v50 = vld [vmem:[%s16569_s3 + $0x448] ss:$16 sps:$4 sm:$0xff]  }
 0x2ef   : > { %3354 = vmatpush1.bf16.msra.mxu0 %v9323_v9  ;;  %v9387_v9 = vld [vmem:[%s16569_s3 + $0x6ac] ss:$16 sps:$4 sm:$0xff]  }
 0x2f0   : > { %3319 = vmatpush2.bf16.msra.mxu1 %v9320_v26  ;;  %3355 = vmatprep.subr.bf16.mxu0 %v9327_v19  ;;  %v9386_v26 = vld [vmem:[%s16569_s3 + $0x428] ss:$16 sps:$4 sm:$0xff]   ;;  %v9393_v19 = vld [vmem:[%s16569_s3 + $0x68c] ss:$16 sps:$4 sm:$0xff]  }
 0x2f1   : > { %3320 = vmatprep.subr.bf16.mxu1 %v9324_v27  ;;  %v9390_v27 = vld [vmem:[%s16569_s3 + $0x40c] ss:$16 sps:$4 sm:$0xff]  }
 0x2f3   : > { %3356 = vmatpush2.bf16.msra.mxu0 %v9329_v45  ;;  %v9395_v45 = vld [vmem:[%s16569_s3 + $0x688] ss:$16 sps:$4 sm:$0xff]  }
 0x2f4   : > { %3321 = vmatpush2.bf16.msra.mxu1 %v9326_v29  ;;  %3357 = vmatprep.subr.bf16.mxu0 %v9333_v46  ;;  %v9392_v29 = vld [vmem:[%s16569_s3 + $0x408] ss:$16 sps:$4 sm:$0xff]   ;;  %v9399_v46 = vld [vmem:[%s16569_s3 + $0x66c] ss:$16 sps:$4 sm:$0xff]  }
 0x2f5   : > { %3322 = vmatprep.subr.bf16.mxu1 %v9330_v47  ;;  %v9396_v47 = vld [vmem:[%s16569_s3 + $0x5ec] ss:$16 sps:$4 sm:$0xff]  }
 0x2f7   : > { %3358 = vmatpush2.bf16.msra.mxu0 %v9335_v49  ;;  %v9401_v49 = vld [vmem:[%s16569_s3 + $0x668] ss:$16 sps:$4 sm:$0xff]  }
 0x2f8   : > { %3323 = vmatpush2.bf16.msra.mxu1 %v9332_v40  ;;  %3359 = vmatprep.subr.bf16.mxu0 %v9339_v53  ;;  %v9398_v40 = vld [vmem:[%s16569_s3 + $0x5e8] ss:$16 sps:$4 sm:$0xff]   ;;  %v9405_v53 = vld [vmem:[%s16569_s3 + $0x64c] ss:$16 sps:$4 sm:$0xff]  }
 0x2f9   : > { %3324 = vmatprep.subr.bf16.mxu1 %v9336_v25  ;;  %v9402_v25 = vld [vmem:[%s16569_s3 + $0x5cc] ss:$16 sps:$4 sm:$0xff]  }
 0x2fb   : > { %3360 = vmatpush2.bf16.msra.mxu0 %v9341_v14  ;;  %v9407_v14 = vld [vmem:[%s16569_s3 + $0x648] ss:$16 sps:$4 sm:$0xff]  }
 0x2fc   : > { %3325 = vmatpush2.bf16.msra.mxu1 %v9338_v54  ;;  %3361 = vmatprep.subr.bf16.mxu0 %v9345_v55  ;;  %v9404_v54 = vld [vmem:[%s16569_s3 + $0x5c8] ss:$16 sps:$4 sm:$0xff]   ;;  %v9411_v55 = vld [vmem:[%s16569_s3 + $0x62c] ss:$16 sps:$4 sm:$0xff]  }
 0x2fd   : > { %3326 = vmatprep.subr.bf16.mxu1 %v9342_v1  ;;  %v9408_v1 = vld [vmem:[%s16569_s3 + $0x5ac] ss:$16 sps:$4 sm:$0xff]  }
 0x2ff   : > { %3362 = vmatpush2.bf16.msra.mxu0 %v9347_v2  ;;  %v9413_v2 = vld [vmem:[%s16569_s3 + $0x628] ss:$16 sps:$4 sm:$0xff]  }
 0x300   : > { %3327 = vmatpush2.bf16.msra.mxu1 %v9344_v48  ;;  %3363 = vmatprep.subr.bf16.mxu0 %v9350_v35  ;;  %v9410_v48 = vld [vmem:[%s16569_s3 + $0x5a8] ss:$16 sps:$4 sm:$0xff]   ;;  %v9417_v35 = vld [vmem:[%s16569_s3 + $0x60c] ss:$16 sps:$4 sm:$0xff]  }
 0x301   : > { %3382 = vmatprep.subr.bf16.mxu1 %v9348_v6  ;;  %v9414_v6 = vld [vmem:[%s16569_s3 + $0x58c] ss:$16 sps:$4 sm:$0xff]  }
 0x303   : > { %3329 = vmatmul.mubr.bf16.vlgmr.msra.gmra.mxu1 %v11245_v39  ;;  %3364 = vmatpush2.bf16.msra.mxu0 %v9353_v52  ;;  %v9360_v39 = vld [vmem:[%s16569_s3 + $0x4ac] ss:$16 sps:$4 sm:$0xff]   ;;  %v9419_v52 = vld [vmem:[%s16569_s3 + $0x608] ss:$16 sps:$4 sm:$0xff]  }
 0x304   : > { %3383 = vmatpush1.bf16.msra.mxu1 %v9352_v28  ;;  %3414 = vmatprep.mubr.bf16.mxu1 %v11395_v36  ;;  %v9364_v36 = vld [vmem:[%s16569_s3 + $0x4a8] ss:$16 sps:$4 sm:$0xff]  }
 0x305   : > { %3384 = vmatprep.subr.bf16.mxu1 %v9354_v20  ;;  %3365 = vmatprep.subr.bf16.mxu0 %v9356_v10  ;;  %v9416_v28 = vld [vmem:[%s16569_s3 + $0x588] ss:$16 sps:$4 sm:$0xff]   ;;  %v9423_v20 = vld [vmem:[%s16569_s3 + $0x7ec] ss:$16 sps:$4 sm:$0xff]  }
 0x306   : > { %v9420_v10 = vld [vmem:[%s16569_s3 + $0x56c] ss:$16 sps:$4 sm:$0xff]  }
 0x307   : > { %3366 = vmatpush2.bf16.msra.mxu0 %v9359_v16  ;;  %v9425_v16 = vld [vmem:[%s16569_s3 + $0x7e8] ss:$16 sps:$4 sm:$0xff]  }
 0x308   : > { %3385 = vmatpush1.bf16.msra.mxu1 %v9358_v17  ;;  %3367 = vmatprep.subr.bf16.mxu0 %v9362_v18  ;;  %v9422_v17 = vld [vmem:[%s16569_s3 + $0x568] ss:$16 sps:$4 sm:$0xff]   ;;  %v9429_v18 = vld [vmem:[%s16569_s3 + $0x7cc] ss:$16 sps:$4 sm:$0xff]  }
 0x309   : > { %3386 = vmatprep.subr.bf16.mxu1 %v9360_v39  ;;  %v9426_v39 = vld [vmem:[%s16569_s3 + $0x54c] ss:$16 sps:$4 sm:$0xff]  }
 0x30b   : > { %3368 = vmatpush2.bf16.msra.mxu0 %v9365_v23  ;;  %v9431_v23 = vld [vmem:[%s16569_s3 + $0x7c8] ss:$16 sps:$4 sm:$0xff]  }
 0x30c   : > { %3387 = vmatpush1.bf16.msra.mxu1 %v9364_v36  ;;  %3369 = vmatprep.subr.bf16.mxu0 %v9368_v30  ;;  %v9428_v36 = vld [vmem:[%s16569_s3 + $0x548] ss:$16 sps:$4 sm:$0xff]   ;;  %v9435_v30 = vld [vmem:[%s16569_s3 + $0x7ac] ss:$16 sps:$4 sm:$0xff]  }
 0x30d   : > { %3388 = vmatprep.subr.bf16.mxu1 %v9366_v31  ;;  %v9432_v31 = vld [vmem:[%s16569_s3 + $0x52c] ss:$16 sps:$4 sm:$0xff]  }
 0x30f   : > { %3370 = vmatpush2.bf16.msra.mxu0 %v9371_v33  ;;  %v9437_v33 = vld [vmem:[%s16569_s3 + $0x7a8] ss:$16 sps:$4 sm:$0xff]  }
 0x310   : > { %3389 = vmatpush1.bf16.msra.mxu1 %v9370_v15  ;;  %3425 = vmatprep.subr.bf16.mxu0 %v9375_v38  ;;  %v9434_v15 = vld [vmem:[%s16569_s3 + $0x528] ss:$16 sps:$4 sm:$0xff]   ;;  %v9441_v38 = vld [vmem:[%s16569_s3 + $0x78c] ss:$16 sps:$4 sm:$0xff]  }
 0x311   : > { %3390 = vmatprep.subr.bf16.mxu1 %v9372_v8  ;;  %v9438_v8 = vld [vmem:[%s16569_s3 + $0x50c] ss:$16 sps:$4 sm:$0xff]  }
 0x312   : > { %3372 = vmatmul.mubr.bf16.vlgmr.msra.gmra.mxu0 %v11356_v42  ;;  %v9384_v42 = vld [vmem:[%s16569_s3 + $0x42c] ss:$16 sps:$4 sm:$0xff]  }
 0x313   : > { %3426 = vmatpush1.bf16.msra.mxu0 %v9377_v37  ;;  %3457 = vmatprep.mubr.bf16.mxu0 %v11254_v44  ;;  %v9389_v44 = vld [vmem:[%s16569_s3 + $0x6a8] ss:$16 sps:$4 sm:$0xff]   ;;  %v11966_v37 = vld [vmem:[%s16570_s4] sm:$0xf] }
 0x314   : > { %3391 = vmatpush1.bf16.msra.mxu1 %v9374_v32  ;;  %3427 = vmatprep.subr.bf16.mxu0 %v9381_v22  ;;  %v9443_v22 = vld [vmem:[%s16569_s3 + $0x788] ss:$16 sps:$4 sm:$0xff]  }
 0x315   : > { %3392 = vmatprep.subr.bf16.mxu1 %v9378_v43  ;;  %v9440_v43 = vld [vmem:[%s16569_s3 + $0x508] ss:$16 sps:$4 sm:$0xff]  }
 0x317   : > { %3428 = vmatpush1.bf16.msra.mxu0 %v9383_v34  ;;  %v9446_v34 = vld [vmem:[%s16569_s3 + $0x76c] ss:$16 sps:$4 sm:$0xff]  }
 0x318   : > { %3393 = vmatpush1.bf16.msra.mxu1 %v9380_v50  ;;  %3429 = vmatprep.subr.bf16.mxu0 %v9387_v9  ;;  %v9444_v50 = vld [vmem:[%s16569_s3 + $0x8ac] ss:$16 sps:$4 sm:$0xff]   ;;  %v11983_v9 = vrot.slane %v11966_v37, %v975_v57 }
 0x319   : > { %3394 = vmatprep.subr.bf16.mxu1 %v9384_v42  ;;  %v9452_v57 = vld [vmem:[%s16569_s3 + $0x74c] ss:$16 sps:$4 sm:$0xff]  }
 0x31b   : > { %3430 = vmatpush1.bf16.msra.mxu0 %v9389_v44  ;;  %v9449_v44 = vld [vmem:[%s16569_s3 + $0x768] ss:$16 sps:$4 sm:$0xff]  }
 0x31c   : > { %3395 = vmatpush1.bf16.msra.mxu1 %v9386_v26  ;;  %3431 = vmatprep.subr.bf16.mxu0 %v9393_v19  ;;  %v11991_v26 = vrot.slane %v11966_v37, %v979_v60  ;;  %v9448_v19 = vld [vmem:[%s16569_s3 + $0x8a8] ss:$16 sps:$4 sm:$0xff]   ;;  %v3738_v60 = vshll.u32 %v11285_v4, 16 }
 0x31d   : > { %3396 = vmatprep.subr.bf16.mxu1 %v9390_v27  ;;  %v9450_v27 = vld [vmem:[%s16569_s3 + $0x88c] ss:$16 sps:$4 sm:$0xff]  }
 0x31f   : > { %3432 = vmatpush1.bf16.msra.mxu0 %v9395_v45  ;;  %v3735_v45 = vshrl.u32 %v11285_v4, 16  ;;  %v9454_v4 = vld [vmem:[%s16569_s3 + $0x888] ss:$16 sps:$4 sm:$0xff]  }
 0x320   : > { %3397 = vmatpush1.bf16.msra.mxu1 %v9392_v29  ;;  %3433 = vmatprep.subr.bf16.mxu0 %v9399_v46 }
 0x321   : > { %3398 = vmatprep.subr.bf16.mxu1 %v9396_v47 }
 0x323   : > { %3434 = vmatpush1.bf16.msra.mxu0 %v9401_v49  ;;  %v9455_v49 = vld [vmem:[%s16569_s3 + $0x748] ss:$16 sps:$4 sm:$0xff]  }
 0x324   : > { %3399 = vmatpush2.bf16.msra.mxu1 %v9398_v40  ;;  %3435 = vmatprep.subr.bf16.mxu0 %v9405_v53 }
 0x325   : > { %3400 = vmatprep.subr.bf16.mxu1 %v9402_v25 }
 0x327   : > { %3436 = vmatpush1.bf16.msra.mxu0 %v9407_v14  ;;  %v9456_v14 = vld [vmem:[%s16569_s3 + $0x86c] ss:$16 sps:$4 sm:$0xff]  }
 0x328   : > { %3401 = vmatpush2.bf16.msra.mxu1 %v9404_v54  ;;  %3437 = vmatprep.subr.bf16.mxu0 %v9411_v55  ;;  %v3737_v54 = vrot.slane %v3735_v45, 4  ;;  %v3740_v55 = vrot.slane %v3738_v60, 5  ;;  %v9591_v45 = vld [vmem:[%s16567_s1 + $0x80] ss:$16 sps:$4 sm:$0xff]   ;;  %v9592_v60 = vld [vmem:[%s16567_s1 + $0xc8] ss:$16 sps:$4 sm:$0xff]  }
 0x329   : > { %3402 = vmatprep.subr.bf16.mxu1 %v9408_v1 }
 0x32b   : > { %3438 = vmatpush1.bf16.msra.mxu0 %v9413_v2 }
 0x32c   : > { %3403 = vmatpush2.bf16.msra.mxu1 %v9410_v48  ;;  %3439 = vmatprep.subr.bf16.mxu0 %v9417_v35  ;;  %v9461_v35 = vld [vmem:[%s16569_s3 + $0x728] ss:$16 sps:$4 sm:$0xff]  }
 0x32d   : > { %3404 = vmatprep.subr.bf16.mxu1 %v9414_v6 }
 0x32f   : > { %3440 = vmatpush1.bf16.msra.mxu0 %v9419_v52  ;;  %v9460_v52 = vld [vmem:[%s16569_s3 + $0x868] ss:$16 sps:$4 sm:$0xff]  }
 0x330   : > { %3405 = vmatpush2.bf16.msra.mxu1 %v9416_v28  ;;  %3441 = vmatprep.subr.bf16.mxu0 %v9423_v20  ;;  %v9464_v28 = vld [vmem:[%s16569_s3 + $0x70c] ss:$16 sps:$4 sm:$0xff]  }
 0x331   : > { %3406 = vmatprep.subr.bf16.mxu1 %v9420_v10  ;;  %v9462_v20 = vld [vmem:[%s16569_s3 + $0x84c] ss:$16 sps:$4 sm:$0xff]   ;;  %v3741_v10 = vor.u32 %v3740_v55, %v3737_v54  ;;  %v9597_v54 = vld [vmem:[%s16567_s1 + $0xa8] ss:$16 sps:$4 sm:$0xff]   ;;  %v9598_v55 = vld [vmem:[%s16567_s1 + $0x44] ss:$16 sps:$4 sm:$0xff]  }
 0x333   : > { %3442 = vmatpush2.bf16.msra.mxu0 %v9425_v16  ;;  %v9467_v16 = vld [vmem:[%s16569_s3 + $0x708] ss:$16 sps:$4 sm:$0xff]  }
 0x334   : > { %3407 = vmatpush2.bf16.msra.mxu1 %v9422_v17  ;;  %3443 = vmatprep.subr.bf16.mxu0 %v9429_v18  ;;  %v3746_v17 = vrot.slane %v11300_v24, 1  ;;  %v9466_v18 = vld [vmem:[%s16569_s3 + $0x848] ss:$16 sps:$4 sm:$0xff]  }
 0x335   : > { %3408 = vmatprep.subr.bf16.mxu1 %v9426_v39  ;;  %v9468_v39 = vld [vmem:[%s16569_s3 + $0x82c] ss:$16 sps:$4 sm:$0xff]  }
 0x337   : > { %3444 = vmatpush2.bf16.msra.mxu0 %v9431_v23  ;;  %v3767_v23 = vsel %vm10856_vm5, %v11273_v21, %v3741_v10  ;;  %v9471_v21 = vld [vmem:[%s16569_s3 + $0x80c] ss:$16 sps:$4 sm:$0xff]   ;;  %v9602_v10 = vld [vmem:[%s16567_s1 + $0x24] ss:$16 sps:$4 sm:$0xff]  }
 0x338   : > { %3409 = vmatpush2.bf16.msra.mxu1 %v9428_v36  ;;  %3445 = vmatprep.subr.bf16.mxu0 %v9435_v30  ;;  %v3668_v36 = vpop.permute.xlu1 %3667  ;;  %v9470_v30 = vld [vmem:[%s16569_s3 + $0x828] ss:$16 sps:$4 sm:$0xff]  }
 0x339   : > { %3410 = vmatprep.subr.bf16.mxu1 %v9432_v31  ;;  %v9581_v31 = vld [vmem:[%s16567_s1 + $0xe4] ss:$16 sps:$4 sm:$0xff]  }
 0x33a   : > { %v3115_v32 = vpop.f32.mrf.mxu0 }
 0x33b   : > { %3446 = vmatpush2.bf16.msra.mxu0 %v9437_v33  ;;  %v3116_v29 = vadd.f32 %v3115_v32, %v11983_v9  ;;  %v3774_v33 = vsel %vm959_vm2, %v3767_v23, %v3746_v17  ;;  %v9583_v32 = vld [vmem:[%s16567_s1 + $0xc4] ss:$16 sps:$4 sm:$0xff]  }
 0x33c   : > { %3411 = vmatpush2.bf16.msra.mxu1 %v9434_v15  ;;  %3447 = vmatprep.subr.bf16.mxu0 %v9441_v38  ;;  %v3117_v42 = vpop.f32.mrf.mxu0  ;;  %v3670_v15 = vpop.permute.xlu0 %3669  ;;  %v9582_v38 = vld [vmem:[%s16567_s1 + $0xe0] ss:$16 sps:$4 sm:$0xff]  }
 0x33d   : > { %3412 = vmatprep.subr.bf16.mxu1 %v9438_v8  ;;  %v3118_v40 = vadd.f32 %v3117_v42, %v11991_v26  ;;  %v9473_v8 = vld [vmem:[%s16569_s3 + $0x808] ss:$16 sps:$4 sm:$0xff]  }
 0x33e   : > { %v3119_v46 = vpop.f32.mrf.mxu0 }
 0x33f   : > { %3448 = vmatpush2.bf16.msra.mxu0 %v9443_v22  ;;  %v3120_v1 = vadd.f32 %v3119_v46, %v11983_v9  ;;  %v3672_v22 = vpop.permute.xlu1 %3671  ;;  %v9593_v46 = vld [vmem:[%s16567_s1 + $0x64] ss:$16 sps:$4 sm:$0xff]  }
 0x340   : > { %3413 = vmatpush2.bf16.msra.mxu1 %v9440_v43  ;;  %3449 = vmatprep.subr.bf16.mxu0 %v9446_v34  ;;  %v3688_v43 = vpop.permute.xlu0 %3687  ;;  %v9585_v34 = vld [vmem:[%s16567_s1 + $0xa4] ss:$16 sps:$4 sm:$0xff]  }
 0x341   : > { %3472 = vmatprep.subr.bf16.mxu1 %v9444_v50  ;;  %v9586_v50 = vld [vmem:[%s16567_s1 + $0xec] ss:$16 sps:$4 sm:$0xff]  }
 0x343   : > { %3415 = vmatmul.mubr.bf16.vlgmr.msra.gmra.mxu1 %v11550_v51  ;;  %v3158_v47 = vpop.f32.mrf.mxu1  ;;  %3450 = vmatpush2.bf16.msra.mxu0 %v9449_v44  ;;  %v9458_v51 = vld [vmem:[%s16569_s3 + $0x72c] ss:$16 sps:$4 sm:$0xff]   ;;  %v12084_v42 = vpop.permute.xlu1 %3636  ;;  %v9587_v44 = vld [vmem:[%s16567_s1 + $0xa0] ss:$16 sps:$4 sm:$0xff]  }
 0x344   : > { %v12010_v53 = vadd.f32 %v3158_v47, %v3116_v29  ;;  %3473 = vmatpush1.bf16.msra.mxu1 %v9448_v19  ;;  %3451 = vmatprep.subr.bf16.mxu0 %v9452_v57  ;;  %v9588_v19 = vld [vmem:[%s16567_s1 + $0xe8] ss:$16 sps:$4 sm:$0xff]   ;;  %v9589_v57 = vld [vmem:[%s16567_s1 + $0x84] ss:$16 sps:$4 sm:$0xff]   ;;  %v3716_v47 = vshll.u32 %v11268_v11, 16 }
 0x345   : > { %v3160_v25 = vpop.f32.mrf.mxu1  ;;  %3474 = vmatprep.subr.bf16.mxu1 %v9450_v27  ;;  %3500 = vmatprep.mubr.bf16.mxu1 %v10610_v13  ;;  %v3690_v27 = vpop.permute.xlu0 %3689 }
 0x346   : > { %v12023_v2 = vadd.f32 %v3160_v25, %v3118_v40  ;;  %v9596_v25 = vld [vmem:[%s16567_s1 + $0x60] ss:$16 sps:$4 sm:$0xff]  }
 0x347   : > { %v3162_v48 = vpop.f32.mrf.mxu1  ;;  %3452 = vmatpush2.bf16.msra.mxu0 %v9455_v49  ;;  %v3642_v29 = vpop.permute.xlu1 %3641  ;;  %v9594_v49 = vld [vmem:[%s10730_s20 + $0x14] sm:$0xf] }
 0x348   : > { %v12028_v6 = vadd.f32 %v3162_v48, %v3120_v1  ;;  %3475 = vmatpush1.bf16.msra.mxu1 %v9454_v4  ;;  %3453 = vmatprep.subr.bf16.mxu0 %v9458_v51  ;;  %v3682_v40 = vsel %vm844_vm7, %v9594_v49, %v3668_v36  ;;  %v9595_v4 = vld [vmem:[%s16567_s1 + $0xac] ss:$16 sps:$4 sm:$0xff]   ;;  %v3714_v1 = vshrl.u32 %v11268_v11, 16  ;;  %v3718_v48 = vrot.slane %v3716_v47, 1  ;;  %v9601_v11 = vld [vmem:[%s16567_s1 + $0x88] ss:$16 sps:$4 sm:$0xff]  }
 0x349   : > { %3476 = vmatprep.subr.bf16.mxu1 %v9456_v14  ;;  %v3692_v51 = vpop.permute.xlu0 %3691  ;;  %v3684_v14 = vsel %vm848_vm8, %v3682_v40, %v3670_v15  ;;  %v9606_v15 = vld [vmem:[%s10730_s20 + $0x1c] sm:$0xf]  ;;  %v9613_v47 = vld [vmem:[%s16567_s1 + $0x124] ss:$16 sps:$4 sm:$0xff]  }
 0x34a   : > { %v9614_v40 = vld [vmem:[%s16567_s1 + $0x2c] ss:$16 sps:$4 sm:$0xff]  }
 0x34b   : > { %3454 = vmatpush2.bf16.msra.mxu0 %v9461_v35  ;;  %v9599_v35 = vld [vmem:[%s16567_s1 + $0x8c] ss:$16 sps:$4 sm:$0xff]  }
 0x34c   : > { %3477 = vmatpush1.bf16.msra.mxu1 %v9460_v52  ;;  %3455 = vmatprep.subr.bf16.mxu0 %v9464_v28  ;;  %v3647_v52 = vpop.permute.xlu1 %3646  ;;  %v3686_v28 = vsel %vm851_vm9, %v3684_v14, %v3672_v22 }
 0x34d   : > { %3478 = vmatprep.subr.bf16.mxu1 %v9462_v20  ;;  %v9600_v20 = vld [vmem:[%s16567_s1 + $0x40] ss:$16 sps:$4 sm:$0xff]   ;;  %v3727_v23 = vshrl.u32 %v3686_v28, 16  ;;  %v3730_v36 = vshll.u32 %v3686_v28, 16 }
 0x34f   : > { %3456 = vmatpush2.bf16.msra.mxu0 %v9467_v16  ;;  %v3719_v16 = vor.u32 %v3718_v48, %v3714_v1  ;;  %v9617_v1 = vld [vmem:[%s16567_s1 + $0x104] ss:$16 sps:$4 sm:$0xff]  }
 0x350   : > { %3479 = vmatpush1.bf16.msra.mxu1 %v9466_v18  ;;  %3782 = vmatprep.subr.bf16.mxu0 %v9581_v31  ;;  %v3708_v18 = vpop.permute.xlu0 %3707  ;;  %v9605_v31 = vld [vmem:[%s10730_s20 + $0x18] sm:$0xf] }
 0x351   : > { %3480 = vmatprep.subr.bf16.mxu1 %v9468_v39  ;;  %v9603_v39 = vld [vmem:[%s16567_s1 + $0x6c] ss:$16 sps:$4 sm:$0xff]   ;;  %v3757_v22 = vshrl.u32 %v3719_v16, 16 }
 0x352   : > { %3458 = vmatmul.mubr.bf16.vlgmr.msra.gmra.mxu0 %v11586_v41  ;;  %v9584_v41 = vld [vmem:[%s16567_s1 + $0xc0] ss:$16 sps:$4 sm:$0xff]  }
 0x353   : > { %3783 = vmatpush1.bf16.msra.mxu0 %v9582_v38  ;;  %8556 = vmatprep.mubr.msk.bf16.mxu0 %vm844_vm7, %v3774_v33  ;;  %v3710_v38 = vpop.permute.xlu1 %3709 }
 0x354   : > { %3481 = vmatpush1.bf16.msra.mxu1 %v9470_v30  ;;  %3784 = vmatprep.subr.bf16.mxu0 %v9583_v32  ;;  %v9604_v30 = vld [vmem:[%s16567_s1 + $0x20] ss:$16 sps:$4 sm:$0xff]   ;;  %v9608_v32 = vld [vmem:[%s16567_s1 + $0x4] ss:$16 sps:$4 sm:$0xff]  }
 0x355   : > { %3482 = vmatprep.subr.bf16.mxu1 %v9471_v21  ;;  %v3722_v21 = vsel %vm844_vm7, %v9606_v15, %v3708_v18  ;;  %v9624_v15 = vld [vmem:[%s16567_s1 + $0x128] ss:$16 sps:$4 sm:$0xff]  }
 0x357   : > { %3785 = vmatpush1.bf16.msra.mxu0 %v9584_v41  ;;  %v3760_v41 = vshll.u32 %v3719_v16, 16  ;;  %v9620_v16 = vld [vmem:[%s16567_s1 + $0x8] ss:$16 sps:$4 sm:$0xff]  }
 0x358   : > { %3483 = vmatpush1.bf16.msra.mxu1 %v9473_v8  ;;  %3786 = vmatprep.subr.bf16.mxu0 %v9585_v34  ;;  %v9607_v8 = vld [vmem:[%s16567_s1 + $0x68] ss:$16 sps:$4 sm:$0xff]   ;;  %v9609_v34 = vld [vmem:[%s10730_s20 + $0x10] sm:$0xf] }
 0x359   : > { %3835 = vmatprep.subr.bf16.mxu1 %v9586_v50  ;;  %v9610_v50 = vld [vmem:[%s16567_s1 + $0x4c] ss:$16 sps:$4 sm:$0xff]   ;;  %v3762_v49 = vrot.slane %v3760_v41, 6 }
 0x35b   : > { %8551 = vmatmul.mubr.msk.bf16.vlgmr.msra.gmra.mxu1 %vm851_vm9, %v11639_v59  ;;  %3787 = vmatpush1.bf16.msra.mxu0 %v9587_v44  ;;  %v9590_v59 = vld [vmem:[%s16567_s1 + $0xcc] ss:$16 sps:$4 sm:$0xff]   ;;  %v3729_v44 = vrot.slane %v3727_v23, 4 }
 0x35c   : > { %3836 = vmatpush1.bf16.msra.mxu1 %v9588_v19  ;;  %3788 = vmatprep.subr.bf16.mxu0 %v9589_v57  ;;  %v3732_v19 = vrot.slane %v3730_v36, 5 }
 0x35d   : > { %3837 = vmatprep.subr.bf16.mxu1 %v9590_v59  ;;  %8558 = vmatprep.mubr.msk.bf16.mxu1 %vm844_vm7, %v3774_v33  ;;  %v3702_v33 = vsel %vm844_vm7, %v9605_v31, %v3688_v43  ;;  %v3661_v43 = vsel %vm844_vm7, %v9609_v34, %v12084_v42  ;;  %v3724_v59 = vsel %vm848_vm8, %v3722_v21, %v3710_v38  ;;  %v9612_v42 = vld [vmem:[%s16567_s1 + $0x48] ss:$16 sps:$4 sm:$0xff]   ;;  %v9625_v38 = vld [vmem:[%s16569_s3 + $0xc4] ss:$16 sps:$4 sm:$0xff]   ;;  %v9627_v34 = vld [vmem:[%s16569_s3 + $0xc0] ss:$16 sps:$4 sm:$0xff]  }
 0x35e   : > { %v3704_v57 = vsel %vm848_vm8, %v3702_v33, %v3690_v27  ;;  %v3759_v27 = vrot.slane %v3757_v22, 5 }
 0x35f   : > { %3789 = vmatpush1.bf16.msra.mxu0 %v9591_v45  ;;  %v3712_v45 = vpop.permute.xlu0 %3711 }
 0x360   : > { %3838 = vmatpush1.bf16.msra.mxu1 %v9592_v60  ;;  %3790 = vmatprep.subr.bf16.mxu0 %v9593_v46  ;;  %v9611_v60 = vld [vmem:[%s16567_s1] ss:$16 sps:$4 sm:$0xff]   ;;  %v3663_v46 = vsel %vm848_vm8, %v3661_v43, %v3642_v29  ;;  %v3706_v29 = vsel %vm851_vm9, %v3704_v57, %v3692_v51  ;;  %v3763_v51 = vor.u32 %v3762_v49, %v3759_v27  ;;  %v9628_v43 = vld [vmem:[%s16567_s1 + $0x108] ss:$16 sps:$4 sm:$0xff]  }
 0x361   : > { %3839 = vmatprep.subr.bf16.mxu1 %v9595_v4  ;;  %v3733_v4 = vor.u32 %v3732_v19, %v3729_v44  ;;  %v3665_v14 = vsel %vm851_vm9, %v3663_v46, %v3647_v52  ;;  %v3745_v48 = vrot.slane %v3706_v29, 1  ;;  %v9618_v52 = vld [vmem:[%s16567_s1 + $0xc] ss:$16 sps:$4 sm:$0xff]   ;;  %v9631_v57 = vld [vmem:[%s16569_s3 + $0xa0] ss:$16 sps:$4 sm:$0xff]  }
 0x362   : > { %v3776_v18 = vsel %vm10869_vm6, %v3746_v17, %v3763_v51  ;;  %v9623_v17 = vld [vmem:[%s16569_s3 + $0xe0] ss:$16 sps:$4 sm:$0xff]   ;;  %v9633_v46 = vld [vmem:[%s16569_s3 + $0x2c4] ss:$16 sps:$4 sm:$0xff]  }
 0x363   : > { %3791 = vmatpush1.bf16.msra.mxu0 %v9596_v25  ;;  %v3726_v25 = vsel %vm851_vm9, %v3724_v59, %v3712_v45  ;;  %v9632_v45 = vld [vmem:[%s16569_s3 + $0x2e0] ss:$16 sps:$4 sm:$0xff]   ;;  %v9637_v29 = vld [vmem:[%s16569_s3 + $0x64] ss:$16 sps:$4 sm:$0xff]  }
 0x364   : > { %3840 = vmatpush1.bf16.msra.mxu1 %v9597_v54  ;;  %3792 = vmatprep.subr.bf16.mxu0 %v9598_v55  ;;  %v9615_v54 = vld [vmem:[%s16567_s1 + $0x120] ss:$16 sps:$4 sm:$0xff]   ;;  %v9616_v55 = vld [vmem:[%s16567_s1 + $0x28] ss:$16 sps:$4 sm:$0xff]   ;;  %v3752_v28 = vshll.u32 %v3726_v25, 16 }
 0x365   : > { %3841 = vmatprep.subr.bf16.mxu1 %v9599_v35  ;;  %v3749_v35 = vshrl.u32 %v3726_v25, 16  ;;  %v9635_v49 = vld [vmem:[%s16569_s3 + $0x80] ss:$16 sps:$4 sm:$0xff]   ;;  %v9638_v25 = vld [vmem:[%s16569_s3 + $0x2a4] ss:$16 sps:$4 sm:$0xff]  }
 0x366   : > { %v3754_v36 = vrot.slane %v3752_v28, 6  ;;  %v9643_v51 = vld [vmem:[%s16569_s3 + $0x40] ss:$16 sps:$4 sm:$0xff]   ;;  %v9645_v28 = vld [vmem:[%s16569_s3 + $0x24] ss:$16 sps:$4 sm:$0xff]  }
 0x367   : > { %3793 = vmatpush1.bf16.msra.mxu0 %v9600_v20  ;;  %v3766_v20 = vsel %vm10856_vm5, %v3665_v14, %v3733_v4  ;;  %v3751_v23 = vrot.slane %v3749_v35, 5  ;;  %v9636_v4 = vld [vmem:[%s16569_s3 + $0x2c0] ss:$16 sps:$4 sm:$0xff]  }
 0x368   : > { %3842 = vmatpush1.bf16.msra.mxu1 %v9601_v11  ;;  %3794 = vmatprep.subr.bf16.mxu0 %v9602_v10  ;;  %v9619_v11 = vld [vmem:[%s16567_s1 + $0x100] ss:$16 sps:$4 sm:$0xff]   ;;  %v12197_v10 = vpop.f32.mrf.mxu0  ;;  %v3770_v31 = vsel %vm959_vm2, %v3766_v20, %v3745_v48  ;;  %v9646_v20 = vld [vmem:[%s16569_s3 + $0x264] ss:$16 sps:$4 sm:$0xff]  }
 0x369   : > { %3843 = vmatprep.subr.bf16.mxu1 %v9603_v39  ;;  %v9621_v39 = vld [vmem:[%s16569_s3 + $0xe4] ss:$16 sps:$4 sm:$0xff]   ;;  %v9639_v14 = vld [vmem:[%s16569_s3 + $0x60] ss:$16 sps:$4 sm:$0xff]  }
 0x36a   : > { %v9644_v35 = vld [vmem:[%s16569_s3 + $0x280] ss:$16 sps:$4 sm:$0xff]  }
 0x36b   : > { %3795 = vmatpush1.bf16.msra.mxu0 %v9604_v30  ;;  %v9622_v30 = vld [vmem:[%s16567_s1 + $0x12c] ss:$16 sps:$4 sm:$0xff]  }
 0x36c   : > { %3844 = vmatpush1.bf16.msra.mxu1 %v9607_v8  ;;  %3796 = vmatprep.subr.bf16.mxu0 %v9608_v32  ;;  %v3755_v8 = vor.u32 %v3754_v36, %v3751_v23  ;;  %v9626_v32 = vld [vmem:[%s16567_s1 + $0x10c] ss:$16 sps:$4 sm:$0xff]  }
 0x36d   : > { %3845 = vmatprep.subr.bf16.mxu1 %v9610_v50  ;;  %v3164_v50 = vpop.f32.mrf.mxu1 }
 0x36e   : > { %v3775_v44 = vsel %vm10869_vm6, %v3745_v48, %v3755_v8  ;;  %v9651_v8 = vld [vmem:[%s16569_s3] ss:$16 sps:$4 sm:$0xff]  }
 0x36f   : > { %3797 = vmatpush1.bf16.msra.mxu0 %v9611_v60 }
 0x370   : > { %3846 = vmatpush1.bf16.msra.mxu1 %v9612_v42  ;;  %3810 = vmatprep.subr.bf16.mxu0 %v9613_v47  ;;  %v9634_v42 = vld [vmem:[%s16569_s3 + $0x84] ss:$16 sps:$4 sm:$0xff]  }
 0x371   : > { %3847 = vmatprep.subr.bf16.mxu1 %v9614_v40 }
 0x373   : > { %3811 = vmatpush2.bf16.msra.mxu0 %v9615_v54  ;;  %v9640_v54 = vld [vmem:[%s16569_s3 + $0x2a0] ss:$16 sps:$4 sm:$0xff]  }
 0x374   : > { %3848 = vmatpush1.bf16.msra.mxu1 %v9616_v55  ;;  %3812 = vmatprep.subr.bf16.mxu0 %v9617_v1  ;;  %v9641_v55 = vld [vmem:[%s16569_s3 + $0x44] ss:$16 sps:$4 sm:$0xff]  }
 0x375   : > { %3849 = vmatprep.subr.bf16.mxu1 %v9618_v52  ;;  %v9642_v1 = vld [vmem:[%s16569_s3 + $0x284] ss:$16 sps:$4 sm:$0xff]   ;;  %v3122_v52 = vadd.f32 %v12197_v10, %v11991_v26 }
 0x376   : > { %v9649_v10 = vld [vmem:[%s16569_s3 + $0x4] ss:$16 sps:$4 sm:$0xff]  }
 0x377   : > { %3813 = vmatpush2.bf16.msra.mxu0 %v9619_v11 }
 0x378   : > { %3850 = vmatpush1.bf16.msra.mxu1 %v9620_v16  ;;  %4235 = vmatprep.subr.bf16.mxu0 %v9621_v39  ;;  %v3165_v16 = vadd.f32 %v3164_v50, %v3122_v52  ;;  %v9647_v39 = vld [vmem:[%s16569_s3 + $0x20] ss:$16 sps:$4 sm:$0xff]  }
 0x379   : > { %3863 = vmatprep.subr.bf16.mxu1 %v9622_v30  ;;  %v9648_v30 = vld [vmem:[%s16569_s3 + $0x260] ss:$16 sps:$4 sm:$0xff]  }
 0x37a   : > { %v3201_v33 = vpop.f32.mrf.mxu0  ;;  %3815 = vmatmul.mubr.bf16.vlgmr.msra.gmra.mxu0 %v3770_v31  ;;  %v9671_v52 = vld [vmem:[%s16569_s3 + $0x160] ss:$16 sps:$4 sm:$0xff]  }
 0x37b   : > { %v3202_v24 = vadd.f32 %v3201_v33, %v12010_v53  ;;  %8557 = vmatprep.mubr.msk.bf16.mxu0 %vm844_vm7, %v3776_v18  ;;  %4236 = vmatpush1.bf16.msra.mxu0 %v9623_v17 }
 0x37c   : > { %3864 = vmatpush2.bf16.msra.mxu1 %v9624_v15  ;;  %v3203_v21 = vpop.f32.mrf.mxu0  ;;  %4237 = vmatprep.subr.bf16.mxu0 %v9625_v38 }
 0x37d   : > { %v3204_v53 = vadd.f32 %v3203_v21, %v12023_v2  ;;  %3865 = vmatprep.subr.bf16.mxu1 %v9626_v32  ;;  %v9629_v2 = vld [vmem:[%s16569_s3 + $0xa4] ss:$16 sps:$4 sm:$0xff]   ;;  %v9652_v32 = vld [vmem:[%s16569_s3 + $0x240] ss:$16 sps:$4 sm:$0xff]  }
 0x37e   : > { %v3205_v22 = vpop.f32.mrf.mxu0 }
 0x37f   : > { %v3206_v41 = vadd.f32 %v3205_v22, %v12028_v6  ;;  %4238 = vmatpush1.bf16.msra.mxu0 %v9627_v34  ;;  %v9630_v6 = vld [vmem:[%s16569_s3 + $0x2e4] ss:$16 sps:$4 sm:$0xff]  }
 0x380   : > { %3866 = vmatpush2.bf16.msra.mxu1 %v9628_v43  ;;  %4239 = vmatprep.subr.bf16.mxu0 %v9629_v2  ;;  %v3207_v48 = vpop.f32.mrf.mxu0  ;;  %v9653_v22 = vld [vmem:[%s16569_s3 + $0x1e4] ss:$16 sps:$4 sm:$0xff]  }
 0x381   : > { %4278 = vmatprep.subr.bf16.mxu1 %v9630_v6  ;;  %v9654_v2 = vld [vmem:[%s16569_s3 + $0x224] ss:$16 sps:$4 sm:$0xff]  }
 0x382   : > { %3825 = vmatmul.mubr.bf16.gmra.mxu0 %v3775_v44 }
 0x383   : > { %v3244_v19 = vpop.f32.mrf.mxu1  ;;  %3868 = vmatmul.mubr.bf16.vlgmr.msra.gmra.mxu1 %v3770_v31  ;;  %4240 = vmatpush1.bf16.msra.mxu0 %v9631_v57  ;;  %v3208_v31 = vadd.f32 %v3207_v48, %v3165_v16  ;;  %v9656_v57 = vld [vmem:[%s16569_s3 + $0x220] ss:$16 sps:$4 sm:$0xff]   ;;  %v9674_v16 = vld [vmem:[%s16569_s3 + $0x384] ss:$16 sps:$4 sm:$0xff]  }
 0x384   : > { %v3245_v59 = vadd.f32 %v3244_v19, %v3202_v24  ;;  %8559 = vmatprep.mubr.msk.bf16.mxu1 %vm844_vm7, %v3776_v18  ;;  %4279 = vmatpush1.bf16.msra.mxu1 %v9632_v45  ;;  %v9650_v24 = vld [vmem:[%s16569_s3 + $0x244] ss:$16 sps:$4 sm:$0xff]   ;;  %v9655_v19 = vld [vmem:[%s16569_s3 + $0x1e0] ss:$16 sps:$4 sm:$0xff]  }
 0x385   : > { %v3246_v60 = vpop.f32.mrf.mxu1  ;;  %4280 = vmatprep.subr.bf16.mxu1 %v9633_v46  ;;  %4241 = vmatprep.subr.bf16.mxu0 %v9634_v42  ;;  %v9658_v42 = vld [vmem:[%s16569_s3 + $0x204] ss:$16 sps:$4 sm:$0xff]   ;;  %v9668_v48 = vld [vmem:[%s16569_s3 + $0x3c0] ss:$16 sps:$4 sm:$0xff]  }
 0x386   : > { %v3247_v47 = vadd.f32 %v3246_v60, %v3204_v53 }
 0x387   : > { %v3248_v27 = vpop.f32.mrf.mxu1  ;;  %4242 = vmatpush1.bf16.msra.mxu0 %v9635_v49  ;;  %v9659_v49 = vld [vmem:[%s16569_s3 + $0x1c0] ss:$16 sps:$4 sm:$0xff]  }
 0x388   : > { %v3249_v40 = vadd.f32 %v3248_v27, %v3206_v41  ;;  %4281 = vmatpush1.bf16.msra.mxu1 %v9636_v4  ;;  %4243 = vmatprep.subr.bf16.mxu0 %v9637_v29  ;;  %v9660_v4 = vld [vmem:[%s16569_s3 + $0x200] ss:$16 sps:$4 sm:$0xff]   ;;  %v9661_v29 = vld [vmem:[%s16569_s3 + $0x1a4] ss:$16 sps:$4 sm:$0xff]  }
 0x389   : > { %4282 = vmatprep.subr.bf16.mxu1 %v9638_v25  ;;  %v3250_v23 = vpop.f32.mrf.mxu1  ;;  %v9662_v25 = vld [vmem:[%s16569_s3 + $0x3e4] ss:$16 sps:$4 sm:$0xff]  }
 0x38a   : > { %v3251_v15 = vadd.f32 %v3250_v23, %v3208_v31  ;;  %v9677_v23 = vld [vmem:[%s16569_s3 + $0x124] ss:$16 sps:$4 sm:$0xff]  }
 0x38b   : > { %3878 = vmatmul.mubr.bf16.gmra.mxu1 %v3775_v44  ;;  %4244 = vmatpush1.bf16.msra.mxu0 %v9639_v14  ;;  %v9663_v14 = vld [vmem:[%s16569_s3 + $0x1a0] ss:$16 sps:$4 sm:$0xff]   ;;  %v9681_v31 = vld [vmem:[%s16569_s3 + $0x104] ss:$16 sps:$4 sm:$0xff]  }
 0x38c   : > { %4283 = vmatpush1.bf16.msra.mxu1 %v9640_v54  ;;  %4245 = vmatprep.subr.bf16.mxu0 %v9641_v55  ;;  %v9664_v54 = vld [vmem:[%s16569_s3 + $0x3e0] ss:$16 sps:$4 sm:$0xff]   ;;  %v9665_v55 = vld [vmem:[%s16569_s3 + $0x184] ss:$16 sps:$4 sm:$0xff]  }
 0x38d   : > { %4284 = vmatprep.subr.bf16.mxu1 %v9642_v1  ;;  %v9666_v1 = vld [vmem:[%s16569_s3 + $0x3c4] ss:$16 sps:$4 sm:$0xff]  }
 0x38f   : > { %4246 = vmatpush1.bf16.msra.mxu0 %v9643_v51  ;;  %v9667_v51 = vld [vmem:[%s16569_s3 + $0x180] ss:$16 sps:$4 sm:$0xff]  }
 0x390   : > { %4285 = vmatpush1.bf16.msra.mxu1 %v9644_v35  ;;  %4247 = vmatprep.subr.bf16.mxu0 %v9645_v28  ;;  %v9669_v35 = vld [vmem:[%s16569_s3 + $0x164] ss:$16 sps:$4 sm:$0xff]  }
 0x391   : > { %4286 = vmatprep.subr.bf16.mxu1 %v9646_v20  ;;  %v9670_v28 = vld [vmem:[%s16569_s3 + $0x3a4] ss:$16 sps:$4 sm:$0xff]   ;;  %v9672_v20 = vld [vmem:[%s16569_s3 + $0x3a0] ss:$16 sps:$4 sm:$0xff]  }
 0x392   : > { %v3287_v11 = vpop.f32.mrf.mxu0 }
 0x393   : > { %v3288_v18 = vadd.f32 %v3287_v11, %v3245_v59  ;;  %4248 = vmatpush1.bf16.msra.mxu0 %v9647_v39  ;;  %v9657_v59 = vld [vmem:[%s16569_s3 + $0x1c4] ss:$16 sps:$4 sm:$0xff]   ;;  %v9676_v39 = vld [vmem:[%s16569_s3 + $0x380] ss:$16 sps:$4 sm:$0xff]  }
 0x394   : > { %v3289_v36 = vpop.f32.mrf.mxu0  ;;  %4287 = vmatpush1.bf16.msra.mxu1 %v9648_v30  ;;  %4249 = vmatprep.subr.bf16.mxu0 %v9649_v10  ;;  %v9673_v11 = vld [vmem:[%s16569_s3 + $0x144] ss:$16 sps:$4 sm:$0xff]   ;;  %v9679_v30 = vld [vmem:[%s16569_s3 + $0x120] ss:$16 sps:$4 sm:$0xff]  }
 0x395   : > { %v3290_v33 = vadd.f32 %v3289_v36, %v3247_v47  ;;  %4288 = vmatprep.subr.bf16.mxu1 %v9650_v24  ;;  %v3511_v21 = vmax.f32 %v3288_v18, 0.0  ;;  %v9675_v18 = vld [vmem:[%s16569_s3 + $0x140] ss:$16 sps:$4 sm:$0xff]   ;;  %v9678_v36 = vld [vmem:[%s16569_s3 + $0x364] ss:$16 sps:$4 sm:$0xff]  }
 0x396   : > { %v3291_v17 = vpop.f32.mrf.mxu0  ;;  %v9680_v10 = vld [vmem:[%s16569_s3 + $0x360] ss:$16 sps:$4 sm:$0xff]  }
 0x397   : > { %v3292_v38 = vadd.f32 %v3291_v17, %v3249_v40  ;;  %4250 = vmatpush1.bf16.msra.mxu0 %v9651_v8  ;;  %v3512_v41 = vmax.f32 %v3290_v33, 0.0  ;;  %v3527_v50 = vrot.slane %v3511_v21, 7  ;;  %v9682_v33 = vld [vmem:[%s16569_s3 + $0x344] ss:$16 sps:$4 sm:$0xff]   ;;  %v9683_v24 = vld [vmem:[%s16569_s3 + $0x100] ss:$16 sps:$4 sm:$0xff]  }
 0x398   : > { %v3293_v53 = vpop.f32.mrf.mxu0  ;;  %4289 = vmatpush1.bf16.msra.mxu1 %v9652_v32  ;;  %4251 = vmatprep.subr.bf16.mxu0 %v9653_v22  ;;  %v9684_v17 = vld [vmem:[%s16569_s3 + $0x340] ss:$16 sps:$4 sm:$0xff]   ;;  %v9688_v8 = vld [vmem:[%s16569_s3 + $0x304] ss:$16 sps:$4 sm:$0xff]  }
 0x399   : > { %v3515_v34 = vmax.f32 %v3292_v38, 0.0  ;;  %v3294_v43 = vadd.f32 %v3293_v53, %v3251_v15  ;;  %4290 = vmatprep.subr.bf16.mxu1 %v9654_v2  ;;  %v3530_v45 = vrot.slane %v3512_v41, 7  ;;  %v9685_v15 = vld [vmem:[%s16569_s3 + $0x4e4] ss:$16 sps:$4 sm:$0xff]   ;;  %v9687_v38 = vld [vmem:[%s16569_s3 + $0x320] ss:$16 sps:$4 sm:$0xff]  }
 0x39a   : > { %v9689_v53 = vld [vmem:[%s16569_s3 + $0x300] ss:$16 sps:$4 sm:$0xff]   ;;  %v9690_v32 = vld [vmem:[%s16569_s3 + $0x6e4] ss:$16 sps:$4 sm:$0xff]  }
 0x39b   : > { %v3528_v44 = vrot.slane %v3515_v34, 7  ;;  %v3516_v6 = vmax.f32 %v3294_v43, 0.0  ;;  %4252 = vmatpush2.bf16.msra.mxu0 %v9655_v19  ;;  %v12435_v34 = vrot.slane %v11966_v37, %v983_v58  ;;  %v12440_v43 = vrot.slane %v11966_v37, %v987_v0 }
 0x39c   : > { %4291 = vmatpush1.bf16.msra.mxu1 %v9656_v57  ;;  %4253 = vmatprep.subr.bf16.mxu0 %v9657_v59 }
 0x39d   : > { %v3529_v60 = vsel %vm1328_vm10, %v3527_v50, %v3528_v44  ;;  %v3531_v46 = vrot.slane %v3516_v6, 7  ;;  %4292 = vmatprep.subr.bf16.mxu1 %v9658_v42 }
 0x39e   : > { %v12331_v47 = vmax.f32 %v3511_v21, %v3529_v60  ;;  %v9686_v21 = vld [vmem:[%s16569_s3 + $0x324] ss:$16 sps:$4 sm:$0xff]  }
 0x39f   : > { %v3532_v27 = vsel %vm1328_vm10, %v3530_v45, %v3531_v46  ;;  %4254 = vmatpush2.bf16.msra.mxu0 %v9659_v49 }
 0x3a0   : > { %v12337_v40 = vmax.f32 %v3512_v41, %v3532_v27  ;;  %4293 = vmatpush1.bf16.msra.mxu1 %v9660_v4  ;;  %4255 = vmatprep.subr.bf16.mxu0 %v9661_v29 }
 0x3a1   : > { %4294 = vmatprep.subr.bf16.mxu1 %v9662_v25 }
 0x3a3   : > { %4256 = vmatpush2.bf16.msra.mxu0 %v9663_v14 }
 0x3a4   : > { %4295 = vmatpush2.bf16.msra.mxu1 %v9664_v54  ;;  %4257 = vmatprep.subr.bf16.mxu0 %v9665_v55 }
 0x3a5   : > { %4296 = vmatprep.subr.bf16.mxu1 %v9666_v1 }
 0x3a7   : > { %4258 = vmatpush2.bf16.msra.mxu0 %v9667_v51 }
 0x3a8   : > { %4297 = vmatpush2.bf16.msra.mxu1 %v9668_v48  ;;  %4259 = vmatprep.subr.bf16.mxu0 %v9669_v35 }
 0x3a9   : > { %4298 = vmatprep.subr.bf16.mxu1 %v9670_v28 }
 0x3ab   : > { %4260 = vmatpush2.bf16.msra.mxu0 %v9671_v52 }
 0x3ac   : > { %4299 = vmatpush2.bf16.msra.mxu1 %v9672_v20  ;;  %4261 = vmatprep.subr.bf16.mxu0 %v9673_v11 }
 0x3ad   : > { %4300 = vmatprep.subr.bf16.mxu1 %v9674_v16 }
 0x3af   : > { %4262 = vmatpush2.bf16.msra.mxu0 %v9675_v18 }
 0x3b0   : > { %4301 = vmatpush2.bf16.msra.mxu1 %v9676_v39  ;;  %4263 = vmatprep.subr.bf16.mxu0 %v9677_v23 }
 0x3b1   : > { %4302 = vmatprep.subr.bf16.mxu1 %v9678_v36 }
 0x3b3   : > { %4264 = vmatpush2.bf16.msra.mxu0 %v9679_v30 }
 0x3b4   : > { %4303 = vmatpush2.bf16.msra.mxu1 %v9680_v10  ;;  %4265 = vmatprep.subr.bf16.mxu0 %v9681_v31 }
 0x3b5   : > { %4304 = vmatprep.subr.bf16.mxu1 %v9682_v33 }
 0x3b7   : > { %4266 = vmatpush2.bf16.msra.mxu0 %v9683_v24 }
 0x3b8   : > { %4305 = vmatpush2.bf16.msra.mxu1 %v9684_v17  ;;  %4321 = vmatprep.subr.bf16.mxu0 %v9685_v15 }
 0x3b9   : > { %4306 = vmatprep.subr.bf16.mxu1 %v9686_v21 }
 0x3bc   : > { %4307 = vmatpush2.bf16.msra.mxu1 %v9687_v38 }
 0x3bd   : > { %4308 = vmatprep.subr.bf16.mxu1 %v9688_v8 }
 0x3c0   : > { %4309 = vmatpush2.bf16.msra.mxu1 %v9689_v53 }
 0x3c1   : > { %4364 = vmatprep.subr.bf16.mxu1 %v9690_v32 }
 0x3c3   : > { %v3330_v22 = vpop.f32.mrf.mxu1 }
 0x3c4   : > { %v3331_v50 = vadd.f32 %v3330_v22, %v12435_v34 }
 0x3c5   : > { %v3332_v41 = vpop.f32.mrf.mxu1 }
 0x3c6   : > { %v3333_v6 = vadd.f32 %v3332_v41, %v12440_v43 }
 0x3c7   : > { %v3334_v2 = vpop.f32.mrf.mxu1 }
 0x3c8   : > { %v3335_v45 = vadd.f32 %v3334_v2, %v12435_v34 }
 0x3c9   : > { %v3336_v57 = vpop.f32.mrf.mxu1 }
 0x3ca   : > { %v3337_v58 = vadd.f32 %v3336_v57, %v12440_v43 }
 0x3d2   : > { %v3373_v44 = vpop.f32.mrf.mxu0 }
 0x3d3   : > { %v3374_v19 = vadd.f32 %v3373_v44, %v3331_v50 }
 0x3d4   : > { %v3375_v59 = vpop.f32.mrf.mxu0 }
 0x3d5   : > { %v3376_v60 = vadd.f32 %v3375_v59, %v3333_v6 }
 0x3d6   : > { %v3377_v46 = vpop.f32.mrf.mxu0 }
 0x3d7   : > { %v3378_v42 = vadd.f32 %v3377_v46, %v3335_v45 }
 0x3d8   : > { %v3379_v56 = vpop.f32.mrf.mxu0 }
 0x3d9   : > { %v3380_v27 = vadd.f32 %v3379_v56, %v3337_v58 }
 0x403   : > { %v3416_v0 = vpop.f32.mrf.mxu1 }
 0x404   : > { %v3417_v37 = vadd.f32 %v3416_v0, %v3374_v19 }
 0x405   : > { %v3418_v49 = vpop.f32.mrf.mxu1 }
 0x406   : > { %v3419_v4 = vadd.f32 %v3418_v49, %v3376_v60 }
 0x407   : > { %v3420_v29 = vpop.f32.mrf.mxu1 }
 0x408   : > { %v3421_v25 = vadd.f32 %v3420_v29, %v3378_v42 }
 0x409   : > { %v3422_v14 = vpop.f32.mrf.mxu1 }
 0x40a   : > { %v3423_v54 = vadd.f32 %v3422_v14, %v3380_v27 }
 0x412   : > { %v3459_v55 = vpop.f32.mrf.mxu0 }
 0x413   : > { %v3460_v1 = vadd.f32 %v3459_v55, %v3417_v37 }
 0x414   : > { %v3461_v51 = vpop.f32.mrf.mxu0 }
 0x415   : > { %v3462_v48 = vadd.f32 %v3461_v51, %v3419_v4 }
 0x416   : > { %v3463_v35 = vpop.f32.mrf.mxu0 }
 0x417   : > { %v3464_v28 = vadd.f32 %v3463_v35, %v3421_v25 }
 0x418   : > { %v3465_v52 = vpop.f32.mrf.mxu0 }
 0x419   : > { %v3466_v20 = vadd.f32 %v3465_v52, %v3423_v54 }
 0x41b   : > { %v3502_v11 = vpop.f32.mrf.mxu1 }
 0x41c   : > { %v3503_v16 = vadd.f32 %v3502_v11, %v3460_v1 }
 0x41d   : > { %v3504_v18 = vpop.f32.mrf.mxu1 }
 0x41e   : > { %v3505_v39 = vadd.f32 %v3504_v18, %v3462_v48  ;;  %v3513_v36 = vmax.f32 %v3503_v16, 0.0 }
 0x41f   : > { %v3506_v23 = vpop.f32.mrf.mxu1 }
 0x420   : > { %v3507_v30 = vadd.f32 %v3506_v23, %v3464_v28  ;;  %v3514_v31 = vmax.f32 %v3505_v39, 0.0  ;;  %v3533_v17 = vrot.slane %v3513_v36, 7 }
 0x421   : > { %v3508_v10 = vpop.f32.mrf.mxu1 }
 0x422   : > { %v3517_v33 = vmax.f32 %v3507_v30, 0.0  ;;  %v3509_v24 = vadd.f32 %v3508_v10, %v3466_v20  ;;  %v3536_v38 = vrot.slane %v3514_v31, 7 }
 0x424   : > { %v3534_v15 = vrot.slane %v3517_v33, 7  ;;  %v3518_v21 = vmax.f32 %v3509_v24, 0.0 }
 0x426   : > { %v3535_v8 = vsel %vm1328_vm10, %v3533_v17, %v3534_v15  ;;  %v3537_v53 = vrot.slane %v3518_v21, 7 }
 0x427   : > { %v12447_v32 = vmax.f32 %v3513_v36, %v3535_v8 }
 0x428   : > { %v3538_v22 = vsel %vm1328_vm10, %v3536_v38, %v3537_v53 }
 0x429   : > { %v12450_v41 = vmax.f32 %v3514_v31, %v3538_v22 }
 0x43a   : > { %v3816_v2 = vpop.f32.mrf.mxu0 }
 0x43b   : > { %v3817_v50 = vadd.f32 %v3816_v2, %v10927_v61 }
 0x43c   : > { %v3818_v44 = vpop.f32.mrf.mxu0 }
 0x43d   : > { %v3888_v19 = vmax.f32 %v3817_v50, 0.0  ;;  %v3819_v59 = vadd.f32 %v3818_v44, %v10935_v63 }
 0x43e   : > { %v3820_v6 = vpop.f32.mrf.mxu0 }
 0x43f   : > { %v3821_v57 = vadd.f32 %v3820_v6, %v10927_v61  ;;  %v3912_v42 = vrot.slane %v3888_v19, 7  ;;  %v3889_v49 = vmax.f32 %v3819_v59, 0.0 }
 0x440   : > { %v3822_v45 = vpop.f32.mrf.mxu0 }
 0x441   : > { %v3892_v60 = vmax.f32 %v3821_v57, 0.0  ;;  %v3823_v46 = vadd.f32 %v3822_v45, %v10935_v63  ;;  %v3915_v16 = vrot.slane %v3889_v49, 7 }
 0x442   : > { %v3826_v58 = vpop.f32.mrf.mxu0 }
 0x443   : > { %v3913_v56 = vrot.slane %v3892_v60, 7  ;;  %v3893_v27 = vmax.f32 %v3823_v46, 0.0  ;;  %v3869_v0 = vpop.f32.mrf.mxu1  ;;  %v3827_v37 = vadd.f32 %v3826_v58, %v10927_v61 }
 0x444   : > { %v3870_v4 = vadd.f32 %v3869_v0, %v10931_v62  ;;  %v3828_v29 = vpop.f32.mrf.mxu0 }
 0x445   : > { %v3914_v25 = vsel %vm1328_vm10, %v3912_v42, %v3913_v56  ;;  %v3896_v14 = vmax.f32 %v3827_v37, 0.0  ;;  %v3871_v54 = vpop.f32.mrf.mxu1  ;;  %v3829_v55 = vadd.f32 %v3828_v29, %v10935_v63  ;;  %v3916_v35 = vrot.slane %v3893_v27, 7 }
 0x446   : > { %v12460_v1 = vmax.f32 %v3888_v19, %v3914_v25  ;;  %v3872_v51 = vadd.f32 %v3871_v54, %v10943_v12  ;;  %v3830_v48 = vpop.f32.mrf.mxu0  ;;  %v3890_v28 = vmax.f32 %v3870_v4, 0.0 }
 0x447   : > { %v3940_v52 = vrot.slane %v3896_v14, 7  ;;  %v3873_v20 = vpop.f32.mrf.mxu1  ;;  %v3831_v11 = vadd.f32 %v3830_v48, %v10927_v61  ;;  %v3897_v18 = vmax.f32 %v3829_v55, 0.0  ;;  %v3917_v53 = vsel %vm1328_vm10, %v3915_v16, %v3916_v35 }
 0x448   : > { %v3874_v39 = vadd.f32 %v3873_v20, %v10931_v62  ;;  %v3832_v23 = vpop.f32.mrf.mxu0  ;;  %v3891_v30 = vmax.f32 %v3872_v51, 0.0  ;;  %v3918_v15 = vrot.slane %v3890_v28, 7  ;;  %v3929_v0 = vmax.f32 %v3889_v49, %v3917_v53 }
 0x449   : > { %v12465_v36 = vmax.f32 %v3892_v60, %v3940_v52  ;;  %v3900_v10 = vmax.f32 %v3831_v11, 0.0  ;;  %v3875_v31 = vpop.f32.mrf.mxu1  ;;  %v3833_v33 = vadd.f32 %v3832_v23, %v10935_v63  ;;  %v3941_v22 = vrot.slane %v3897_v18, 7 }
 0x44a   : > { %v3894_v24 = vmax.f32 %v3874_v39, 0.0  ;;  %v3876_v17 = vadd.f32 %v3875_v31, %v10943_v12  ;;  %v3921_v6 = vrot.slane %v3891_v30, 7 }
 0x44b   : > { %v3944_v21 = vrot.slane %v3900_v10, 7  ;;  %v3901_v38 = vmax.f32 %v3833_v33, 0.0  ;;  %v3879_v8 = vpop.f32.mrf.mxu1  ;;  %v12475_v29 = vmax.f32 %v3893_v27, %v3941_v22 }
 0x44c   : > { %v3919_v2 = vrot.slane %v3894_v24, 7  ;;  %v3895_v50 = vmax.f32 %v3876_v17, 0.0  ;;  %v3880_v44 = vadd.f32 %v3879_v8, %v10931_v62 }
 0x44d   : > { %v3945_v19 = vsel %vm1328_vm10, %v3940_v52, %v3944_v21  ;;  %v3946_v57 = vrot.slane %v3901_v38, 7  ;;  %v3881_v59 = vpop.f32.mrf.mxu1 }
 0x44e   : > { %v3922_v45 = vrot.slane %v3895_v50, 7  ;;  %v3898_v60 = vmax.f32 %v3880_v44, 0.0  ;;  %v3882_v46 = vadd.f32 %v3881_v59, %v10943_v12  ;;  %v3920_v58 = vsel %vm1328_vm10, %v3918_v15, %v3919_v2 }
 0x44f   : > { %v3947_v42 = vsel %vm1328_vm10, %v3941_v22, %v3946_v57  ;;  %v3883_v56 = vpop.f32.mrf.mxu1  ;;  %v3930_v37 = vmax.f32 %v3890_v28, %v3920_v58  ;;  %v3964_v4 = vmax.f32 %v3896_v14, %v3945_v19 }
 0x450   : > { %v3942_v25 = vrot.slane %v3898_v60, 7  ;;  %v3884_v54 = vadd.f32 %v3883_v56, %v10931_v62  ;;  %v3923_v55 = vsel %vm1328_vm10, %v3921_v6, %v3922_v45  ;;  %v3899_v51 = vmax.f32 %v3882_v46, 0.0 }
 0x451   : > { %v3885_v48 = vpop.f32.mrf.mxu1  ;;  %v8896_v35 = vpack.i.bf16 %v3930_v37, %v3929_v0  ;;  %v3931_v52 = vmax.f32 %v3891_v30, %v3923_v55  ;;  %v12479_v20 = vmax.f32 %v3897_v18, %v3947_v42 }
 0x452   : > { %v3962_v11 = vmax.f32 %v3894_v24, %v3942_v25  ;;  %v3902_v16 = vmax.f32 %v3884_v54, 0.0  ;;  %v3886_v39 = vadd.f32 %v3885_v48, %v10943_v12  ;;  %v3943_v23 = vrot.slane %v3899_v51, 7 }
 0x453   : > { %8897 = vrot.lane.b32.xlu1 %v8896_v35, %s16584_s29  ;;  %v8901_v27 = vpack.i.bf16 %v12475_v29, %v3931_v52 }
 0x454   : > { %v3948_v49 = vrot.slane %v3902_v16, 7  ;;  %v3903_v14 = vmax.f32 %v3886_v39, 0.0  ;;  %v8906_v28 = vpack.i.bf16 %v12479_v20, %v3962_v11  ;;  %v3963_v33 = vmax.f32 %v3895_v50, %v3943_v23 }
 0x455   : > { %8902 = vrot.lane.b32.xlu0 %v8901_v27, %s16584_s29 }
 0x456   : > { %v3950_v10 = vrot.slane %v3903_v14, 7  ;;  %v3949_v30 = vsel %vm1328_vm10, %v3942_v25, %v3948_v49 }
 0x457   : > { %8907 = vrot.lane.b32.xlu1 %v8906_v28, %s16584_s29  ;;  %v3966_v18 = vmax.f32 %v3898_v60, %v3949_v30 }
 0x458   : > { %v3951_v31 = vsel %vm1328_vm10, %v3943_v23, %v3950_v10 }
 0x459   : > { %3999 = vrot.lane.b32.xlu0 %v3966_v18, %s16584_s29  ;;  %v3967_v24 = vmax.f32 %v3899_v51, %v3951_v31 }
 0x45b   : > { %v8911_v17 = vpack.i.bf16 %v3967_v24, %v3963_v33 }
 0x45d   : > { %8912 = vrot.lane.b32.xlu1 %v8911_v17, %s16584_s29 }
 0x4c5   : > { %v8898_v15 = vpop.permute.xlu1 %8897 }
 0x4c6   : > { %v8900_v21 = vunpack.i.h.bf16 %v8898_v15  ;;  %v8899_v38 = vunpack.i.l.bf16 %v8898_v15 }
 0x4c7   : > { %v8903_v8 = vpop.permute.xlu0 %8902 }
 0x4c8   : > { %v3977_v53 = vsel %vm844_vm7, %v8899_v38, %v8900_v21  ;;  %v8904_v22 = vunpack.i.l.bf16 %v8903_v8  ;;  %v8905_v6 = vunpack.i.h.bf16 %v8903_v8 }
 0x4c9   : > { %v3981_v2 = vmax.f32 %v12460_v1, %v3977_v53  ;;  %v8908_v44 = vpop.permute.xlu1 %8907 }
 0x4ca   : > { %v3978_v19 = vsel %vm844_vm7, %v8900_v21, %v8904_v22  ;;  %v8910_v50 = vunpack.i.h.bf16 %v8908_v44  ;;  %v8909_v57 = vunpack.i.l.bf16 %v8908_v44 }
 0x4cb   : > { %v3983_v59 = vpack.c.bf16 %v3981_v2, %v3981_v2  ;;  %v3982_v45 = vmax.f32 %v3929_v0, %v3978_v19  ;;  %v4000_v60 = vpop.permute.xlu0 %3999 }
 0x4cc   : > { %v4003_v46 = vsel %vm844_vm7, %v8905_v6, %v8909_v57  ;;  %v4005_v58 = vsel %vm844_vm7, %v8910_v50, %v4000_v60 }
 0x4cd   : > { %v4018_v42 = vshrl.u32 %v3983_v59, 16  ;;  %v3984_v56 = vpack.c.bf16 %v3982_v45, %v3982_v45  ;;  %v4011_v37 = vmax.f32 %v12465_v36, %v4003_v46  ;;  %v4013_v25 = vmax.f32 %v3964_v4, %v4005_v58 }
 0x4ce   : > { %v4021_v1 = vshll.u32 %v3983_v59, 16 }
 0x4cf   : > { %v4020_v54 = vrot.slane %v4018_v42, 7  ;;  %v4025_v55 = vshrl.u32 %v3984_v56, 16  ;;  %v8913_v51 = vpop.permute.xlu1 %8912  ;;  %v4015_v48 = vpack.c.bf16 %v4013_v25, %v4011_v37  ;;  %v4028_v16 = vshll.u32 %v3984_v56, 16 }
 0x4d0   : > { %v8915_v35 = vunpack.i.h.bf16 %v8913_v51  ;;  %v8914_v52 = vunpack.i.l.bf16 %v8913_v51 }
 0x4d1   : > { %v4027_v11 = vrot.slane %v4025_v55, 7  ;;  %v4023_v0 = vor.u32 %v4021_v1, %v4020_v54  ;;  %v4041_v39 = vshrl.u32 %v4015_v48, 16  ;;  %v4044_v27 = vshll.u32 %v4015_v48, 16 }
 0x4d2   : > { %v4006_v49 = vsel %vm844_vm7, %v4000_v60, %v8915_v35  ;;  %v4004_v14 = vsel %vm844_vm7, %v8909_v57, %v8914_v52 }
 0x4d3   : > { %v4014_v28 = vmax.f32 %v12479_v20, %v4006_v49  ;;  %v4012_v36 = vmax.f32 %v12475_v29, %v4004_v14  ;;  %v4033_v4 = vsel %vm11161_vm12, 0, %v4023_v0  ;;  %v4030_v23 = vor.u32 %v4028_v16, %v4027_v11 }
 0x4d4   : > { %v4043_v10 = vrot.slane %v4041_v39, 2  ;;  %v4046_v30 = vrot.slane %v4044_v27, 3  ;;  %v4036_v18 = vsel %vm954_vm1, %v4033_v4, 0 }
 0x4d5   : > { %v4016_v31 = vpack.c.bf16 %v4014_v28, %v4012_v36  ;;  %v4074_v33 = vshll.u32 %v4036_v18, 16  ;;  %v4034_v24 = vsel %vm11161_vm12, 0, %v4030_v23  ;;  %v4072_v20 = vshrl.u32 %v4036_v18, 16  ;;  %v12546_v36 = vld [vmem:[%s10730_s20 + $0x20] sm:$0xf] }
 0x4d6   : > { %v4047_v17 = vor.u32 %v4046_v30, %v4043_v10  ;;  %v12507_v15 = vsel %vm954_vm1, %v4034_v24, 0  ;;  %v4110_v16 = vrot.slane %v4036_v18, 1  ;;  %v8565_v4 = vcombine.low %v12546_v36, %v12546_v36  ;;  %v12551_v23 = vld [vmem:[%s10730_s20 + $0x28] sm:$0xf]  ;;  %v12556_v30 = vld [vmem:[%s10730_s20 + $0x2c] sm:$0xf] }
 0x4d7   : > { %v4076_v21 = vrot.slane %v4074_v33, 1  ;;  %v4080_v29 = vshll.u32 %v12507_v15, 16  ;;  %v4049_v38 = vshrl.u32 %v4016_v31, 16  ;;  %v4078_v8 = vshrl.u32 %v12507_v15, 16 }
 0x4d8   : > { %v4058_v53 = vsel %vm11161_vm12, 0, %v4047_v17  ;;  %v4052_v22 = vshll.u32 %v4016_v31, 16  ;;  %v4111_v28 = vrot.slane %v12507_v15, 1  ;;  %v8563_v10 = vcombine.low %v12551_v23, %v12551_v23 }
 0x4d9   : > { %v4077_v2 = vor.u32 %v4076_v21, %v4072_v20  ;;  %v4082_v44 = vrot.slane %v4080_v29, 1  ;;  %v4061_v6 = vsel %vm954_vm1, %v4058_v53, 0  ;;  %v4051_v19 = vrot.slane %v4049_v38, 2  ;;  %v12570_v20 = vld [vmem:[%s10730_s20 + $0x24] sm:$0xf] }
 0x4da   : > { %v4090_v50 = vshrl.u32 %v4061_v6, 16  ;;  %v4092_v57 = vshll.u32 %v4061_v6, 16  ;;  %v4054_v59 = vrot.slane %v4052_v22, 3  ;;  %v4140_v45 = vrot.slane %v4061_v6, 1 }
 0x4db   : > { %4125 = vrot.lane.b32.xlu0 %v4077_v2, %s10609_s19  ;;  %v4083_v60 = vor.u32 %v4082_v44, %v4078_v8  ;;  %v12560_v31 = vcombine.low %v12556_v30, %v12556_v30  ;;  %v4794_v33 = vshrl.u32 %v8565_v4, 16  ;;  %v8562_v21 = vcombine.low %v12570_v20, %v12570_v20 }
 0x4dc   : > { %v4094_v46 = vrot.slane %v4092_v57, 1  ;;  %v4150_v58 = vrot.slane %v4090_v50, 4  ;;  %v4151_v42 = vrot.slane %v4092_v57, 5  ;;  %v4055_v56 = vor.u32 %v4054_v59, %v4051_v19 }
 0x4dd   : > { %4127 = vrot.lane.b32.xlu1 %v4083_v60, %s10609_s19  ;;  %v4199_v37 = vshrl.u32 %v4140_v45, 16  ;;  %v4202_v25 = vshll.u32 %v4140_v45, 16  ;;  %v4816_v29 = vshrl.u32 %v8562_v21, 16  ;;  %v4818_v38 = vshll.u32 %v8562_v21, 16 }
 0x4de   : > { %v4095_v54 = vor.u32 %v4094_v46, %v4090_v50  ;;  %v4152_v1 = vor.u32 %v4151_v42, %v4150_v58  ;;  %v4059_v55 = vsel %vm11161_vm12, 0, %v4055_v56  ;;  %v4836_v57 = vshrl.u32 %v8563_v10, 16 }
 0x4df   : > { %v12519_v51 = vsel %vm954_vm1, %v4059_v55, 0  ;;  %v4201_v48 = vrot.slane %v4199_v37, 4  ;;  %v4204_v35 = vrot.slane %v4202_v25, 5  ;;  %v4820_v8 = vrot.slane %v4818_v38, 1 }
 0x4e0   : > { %4130 = vrot.lane.b32.xlu0 %v4095_v54, %s10608_s9  ;;  %v4098_v52 = vshll.u32 %v12519_v51, 16  ;;  %v12525_v11 = vsel %vm10856_vm5, %v4036_v18, %v4152_v1  ;;  %v4096_v49 = vshrl.u32 %v12519_v51, 16  ;;  %v4796_v18 = vshll.u32 %v8565_v4, 16 }
 0x4e1   : > { %4066 = vrot.lane.b32.xlu1 %v4061_v6, %s10609_s19  ;;  %v4205_v0 = vor.u32 %v4204_v35, %v4201_v48  ;;  %v12579_v53 = vor.u32 %v4820_v8, %v4816_v29  ;;  %v9692_v29 = vld [vmem:[%s16569_s3 + $0x4c4] ss:$16 sps:$4 sm:$0xff]  }
 0x4e2   : > { %v4100_v39 = vrot.slane %v4098_v52, 1  ;;  %v4798_v24 = vrot.slane %v4796_v18, 1 }
 0x4e3   : > { %v12530_v27 = vsel %vm10856_vm5, %v4110_v16, %v4205_v0 }
 0x4e4   : > { %4068 = vrot.lane.b32.xlu0 %v12519_v51, %s10609_s19  ;;  %v4101_v14 = vor.u32 %v4100_v39, %v4096_v49  ;;  %v12565_v17 = vor.u32 %v4798_v24, %v4794_v33  ;;  %v9691_v24 = vld [vmem:[%s16569_s3 + $0x4e0] ss:$16 sps:$4 sm:$0xff]  }
 0x4e5   : > { %4084 = vrot.lane.b32.xlu1 %v4077_v2, %s10608_s9  ;;  %v4838_v2 = vshll.u32 %v8563_v10, 16 }
 0x4e7   : > { %v4840_v59 = vrot.slane %v4838_v2, 1 }
 0x4e8   : > { %4132 = vrot.lane.b32.xlu0 %v4101_v14, %s10608_s9 }
 0x4e9   : > { %4135 = vrot.lane.b32.xlu1 %v4110_v16, %s16584_s29  ;;  %v12595_v37 = vor.u32 %v4840_v59, %v4836_v57  ;;  %v9694_v57 = vld [vmem:[%s16569_s3 + $0x6e0] ss:$16 sps:$4 sm:$0xff]  }
 0x4ec   : > { %4137 = vrot.lane.b32.xlu0 %v4111_v28, %s16584_s29 }
 0x4ed   : > { %4086 = vrot.lane.b32.xlu1 %v4083_v60, %s10608_s9 }
 0x4f0   : > { %4102 = vrot.lane.b32.xlu0 %v4095_v54, %s16584_s29 }
 0x4f1   : > { %4104 = vrot.lane.b32.xlu1 %v4101_v14, %s16584_s29 }
 0x4f4   : > { %4809 = vrot.lane.b32.xlu0 %v8563_v10, %s16584_s29 }
 0x4f5   : > { %4811 = vrot.lane.b32.xlu1 %v12560_v31, %s10608_s9 }
 0x4f8   : > { %4813 = vrot.lane.b32.xlu0 %v12565_v17, %s10609_s19 }
 0x4f9   : > { %4829 = vrot.lane.b32.xlu1 %v12560_v31, %s16584_s29 }
 0x4fc   : > { %4778 = vrot.lane.b32.xlu0 %v8562_v21, %s16584_s29 }
 0x4fd   : > { %4831 = vrot.lane.b32.xlu1 %v12565_v17, %s10608_s9 }
 0x500   : > { %4783 = vrot.lane.b32.xlu0 %v8563_v10, %s10608_s9 }
 0x501   : > { %4833 = vrot.lane.b32.xlu1 %v12579_v53, %s10609_s19 }
 0x504   : > { %4788 = vrot.lane.b32.xlu0 %v12560_v31, %s10609_s19 }
 0x505   : > { %4849 = vrot.lane.b32.xlu1 %v12565_v17, %s16584_s29 }
 0x508   : > { %4851 = vrot.lane.b32.xlu0 %v12579_v53, %s10608_s9 }
 0x509   : > { %4853 = vrot.lane.b32.xlu1 %v12595_v37, %s10609_s19 }
 0x54d   : > { %v4126_v22 = vpop.permute.xlu0 %4125 }
 0x54e   : > { %v4143_v44 = vsel %vm851_vm9, %v12519_v51, %v4126_v22 }
 0x54f   : > { %v4153_v6 = vshrl.u32 %v4143_v44, 16  ;;  %v4156_v19 = vshll.u32 %v4143_v44, 16  ;;  %v4128_v50 = vpop.permute.xlu1 %4127 }
 0x550   : > { %v4129_v45 = vsel %vm851_vm9, %v4126_v22, %v4128_v50 }
 0x551   : > { %v4155_v60 = vrot.slane %v4153_v6, 4  ;;  %v4158_v46 = vrot.slane %v4156_v19, 5  ;;  %v4161_v58 = vshrl.u32 %v4129_v45, 16  ;;  %v4164_v42 = vshll.u32 %v4129_v45, 16  ;;  %v9693_v6 = vld [vmem:[%s16569_s3 + $0x4c0] ss:$16 sps:$4 sm:$0xff]  }
 0x552   : > { %v12591_v56 = vpop.permute.xlu0 %4130  ;;  %v9695_v45 = vld [vmem:[%s16569_s3 + $0x4a4] ss:$16 sps:$4 sm:$0xff]  }
 0x553   : > { %v4163_v25 = vrot.slane %v4161_v58, 4  ;;  %v4166_v54 = vrot.slane %v4164_v42, 5  ;;  %v4146_v1 = vsel %vm848_vm8, %v4128_v50, %v12591_v56  ;;  %v4067_v55 = vpop.permute.xlu1 %4066  ;;  %v4159_v48 = vor.u32 %v4158_v46, %v4155_v60  ;;  %v9696_v60 = vld [vmem:[%s16569_s3 + $0x6c4] ss:$16 sps:$4 sm:$0xff]   ;;  %v9697_v42 = vld [vmem:[%s16569_s3 + $0x4a0] ss:$16 sps:$4 sm:$0xff]  }
 0x554   : > { %v4168_v35 = vshrl.u32 %v4146_v1, 16  ;;  %v4171_v52 = vshll.u32 %v4146_v1, 16  ;;  %v4115_v16 = vsel %vm851_vm9, %v12507_v15, %v4067_v55  ;;  %v9778_v15 = vld [vmem:[%s16569_s3 + $0x48] ss:$16 sps:$4 sm:$0xff]  }
 0x555   : > { %v12605_v0 = vsel %vm10856_vm5, %v4115_v16, %v4159_v48  ;;  %v4167_v4 = vor.u32 %v4166_v54, %v4163_v25  ;;  %v9698_v25 = vld [vmem:[%s16569_s3 + $0x6c0] ss:$16 sps:$4 sm:$0xff]   ;;  %v9699_v54 = vld [vmem:[%s16569_s3 + $0x484] ss:$16 sps:$4 sm:$0xff]  }
 0x556   : > { %v4170_v39 = vrot.slane %v4168_v35, 4  ;;  %v4173_v49 = vrot.slane %v4171_v52, 5  ;;  %v4069_v14 = vpop.permute.xlu0 %4068  ;;  %4267 = vmatprep.mubr.bf16.mxu0 %v12605_v0  ;;  %v9700_v35 = vld [vmem:[%s16569_s3 + $0x6a4] ss:$16 sps:$4 sm:$0xff]   ;;  %v9701_v16 = vld [vmem:[%s16569_s3 + $0x480] ss:$16 sps:$4 sm:$0xff]  }
 0x557   : > { %v12608_v10 = vpop.permute.xlu1 %4084  ;;  %4268 = vmatmul.mubr.bf16.vlgmr.msra.gmra.mxu0 %v12525_v11  ;;  %v4070_v18 = vsel %vm851_vm9, %v4067_v55, %v4069_v14 }
 0x558   : > { %v4119_v33 = vsel %vm848_vm8, %v4069_v14, %v12608_v10  ;;  %4322 = vmatpush1.bf16.msra.mxu0 %v9691_v24  ;;  %v4174_v21 = vor.u32 %v4173_v49, %v4170_v39  ;;  %v12631_v2 = vsel %vm10856_vm5, %v4070_v18, %v4167_v4  ;;  %v9702_v49 = vld [vmem:[%s16569_s3 + $0x6a0] ss:$16 sps:$4 sm:$0xff]   ;;  %v9703_v14 = vld [vmem:[%s16569_s3 + $0x464] ss:$16 sps:$4 sm:$0xff]  }
 0x559   : > { %4323 = vmatprep.subr.bf16.mxu0 %v9692_v29  ;;  %v9704_v4 = vld [vmem:[%s16569_s3 + $0x684] ss:$16 sps:$4 sm:$0xff]   ;;  %v9705_v18 = vld [vmem:[%s16569_s3 + $0x460] ss:$16 sps:$4 sm:$0xff]  }
 0x55a   : > { %v12620_v38 = vpop.permute.xlu0 %4132  ;;  %v12624_v8 = vsel %vm10856_vm5, %v4119_v33, %v4174_v21  ;;  %v9706_v33 = vld [vmem:[%s16569_s3 + $0x680] ss:$16 sps:$4 sm:$0xff]   ;;  %v9707_v24 = vld [vmem:[%s16569_s3 + $0x444] ss:$16 sps:$4 sm:$0xff]  }
 0x55b   : > { %4310 = vmatprep.mubr.bf16.mxu1 %v12624_v8  ;;  %v12627_v22 = vpop.permute.xlu1 %4135  ;;  %v9708_v21 = vld [vmem:[%s16569_s3 + $0x664] ss:$16 sps:$4 sm:$0xff]   ;;  %v9709_v29 = vld [vmem:[%s16569_s3 + $0x440] ss:$16 sps:$4 sm:$0xff]  }
 0x55c   : > { %v4149_v44 = vsel %vm844_vm7, %v12620_v38, %v12627_v22  ;;  %4311 = vmatmul.mubr.bf16.vlgmr.msra.gmra.mxu1 %v12631_v2  ;;  %4324 = vmatpush1.bf16.msra.mxu0 %v9693_v6  ;;  %v9711_v6 = vld [vmem:[%s16569_s3 + $0x424] ss:$16 sps:$4 sm:$0xff]  }
 0x55d   : > { %v4183_v19 = vshrl.u32 %v4149_v44, 16  ;;  %v4186_v50 = vshll.u32 %v4149_v44, 16  ;;  %4365 = vmatpush1.bf16.msra.mxu1 %v9694_v57  ;;  %4396 = vmatprep.mubr.bf16.mxu1 %v12530_v27  ;;  %v9710_v44 = vld [vmem:[%s16569_s3 + $0x660] ss:$16 sps:$4 sm:$0xff]  }
 0x55e   : > { %v12644_v59 = vpop.permute.xlu0 %4137  ;;  %4325 = vmatprep.subr.bf16.mxu0 %v9695_v45  ;;  %4366 = vmatprep.subr.bf16.mxu1 %v9696_v60  ;;  %v9714_v57 = vld [vmem:[%s16569_s3 + $0x640] ss:$16 sps:$4 sm:$0xff]   ;;  %v9715_v45 = vld [vmem:[%s16569_s3 + $0x404] ss:$16 sps:$4 sm:$0xff]  }
 0x55f   : > { %v4185_v46 = vrot.slane %v4183_v19, 4  ;;  %v4188_v58 = vrot.slane %v4186_v50, 5  ;;  %v12661_v55 = vpop.permute.xlu1 %4086  ;;  %v9712_v19 = vld [vmem:[%s16569_s3 + $0x644] ss:$16 sps:$4 sm:$0xff]   ;;  %v9713_v50 = vld [vmem:[%s16569_s3 + $0x420] ss:$16 sps:$4 sm:$0xff]  }
 0x560   : > { %4326 = vmatpush1.bf16.msra.mxu0 %v9697_v42  ;;  %v9716_v60 = vld [vmem:[%s16569_s3 + $0x624] ss:$16 sps:$4 sm:$0xff]  }
 0x561   : > { %4367 = vmatpush1.bf16.msra.mxu1 %v9698_v25  ;;  %4327 = vmatprep.subr.bf16.mxu0 %v9699_v54  ;;  %v4189_v1 = vor.u32 %v4188_v58, %v4185_v46  ;;  %v9717_v46 = vld [vmem:[%s16569_s3 + $0x400] ss:$16 sps:$4 sm:$0xff]   ;;  %v9719_v42 = vld [vmem:[%s16569_s3 + $0x5e4] ss:$16 sps:$4 sm:$0xff]  }
 0x562   : > { %v12663_v48 = vpop.permute.xlu0 %4102  ;;  %4368 = vmatprep.subr.bf16.mxu1 %v9700_v35  ;;  %v9718_v58 = vld [vmem:[%s16569_s3 + $0x620] ss:$16 sps:$4 sm:$0xff]   ;;  %v9720_v25 = vld [vmem:[%s16569_s3 + $0x604] ss:$16 sps:$4 sm:$0xff]  }
 0x563   : > { %v4123_v52 = vsel %vm844_vm7, %v12661_v55, %v12663_v48  ;;  %v9721_v54 = vld [vmem:[%s16569_s3 + $0x5e0] ss:$16 sps:$4 sm:$0xff]   ;;  %v9723_v35 = vld [vmem:[%s16569_s3 + $0x5c4] ss:$16 sps:$4 sm:$0xff]  }
 0x564   : > { %4328 = vmatpush1.bf16.msra.mxu0 %v9701_v16  ;;  %v12676_v39 = vsel %vm10856_vm5, %v4123_v52, %v4189_v1  ;;  %v9722_v1 = vld [vmem:[%s16569_s3 + $0x600] ss:$16 sps:$4 sm:$0xff]   ;;  %v9724_v52 = vld [vmem:[%s16569_s3 + $0x7e4] ss:$16 sps:$4 sm:$0xff]  }
 0x565   : > { %4369 = vmatpush1.bf16.msra.mxu1 %v9702_v49  ;;  %4353 = vmatprep.mubr.bf16.mxu0 %v12676_v39  ;;  %v9725_v16 = vld [vmem:[%s16569_s3 + $0x5c0] ss:$16 sps:$4 sm:$0xff]  }
 0x566   : > { %4329 = vmatprep.subr.bf16.mxu0 %v9703_v14  ;;  %4370 = vmatprep.subr.bf16.mxu1 %v9704_v4  ;;  %v9726_v49 = vld [vmem:[%s16569_s3 + $0x7e0] ss:$16 sps:$4 sm:$0xff]   ;;  %v9727_v14 = vld [vmem:[%s16569_s3 + $0x5a4] ss:$16 sps:$4 sm:$0xff]  }
 0x567   : > { %v9728_v4 = vld [vmem:[%s16569_s3 + $0x7c4] ss:$16 sps:$4 sm:$0xff]  }
 0x568   : > { %4330 = vmatpush1.bf16.msra.mxu0 %v9705_v18  ;;  %v9729_v18 = vld [vmem:[%s16569_s3 + $0x5a0] ss:$16 sps:$4 sm:$0xff]  }
 0x569   : > { %4371 = vmatpush1.bf16.msra.mxu1 %v9706_v33  ;;  %4331 = vmatprep.subr.bf16.mxu0 %v9707_v24  ;;  %v9730_v33 = vld [vmem:[%s16569_s3 + $0x7c0] ss:$16 sps:$4 sm:$0xff]   ;;  %v9731_v24 = vld [vmem:[%s16569_s3 + $0x584] ss:$16 sps:$4 sm:$0xff]  }
 0x56a   : > { %4372 = vmatprep.subr.bf16.mxu1 %v9708_v21  ;;  %v9732_v21 = vld [vmem:[%s16569_s3 + $0x7a4] ss:$16 sps:$4 sm:$0xff]  }
 0x56c   : > { %4332 = vmatpush1.bf16.msra.mxu0 %v9709_v29  ;;  %v9733_v29 = vld [vmem:[%s16569_s3 + $0x580] ss:$16 sps:$4 sm:$0xff]  }
 0x56d   : > { %4373 = vmatpush1.bf16.msra.mxu1 %v9710_v44  ;;  %4333 = vmatprep.subr.bf16.mxu0 %v9711_v6  ;;  %v9734_v44 = vld [vmem:[%s16569_s3 + $0x7a0] ss:$16 sps:$4 sm:$0xff]   ;;  %v9735_v6 = vld [vmem:[%s16569_s3 + $0x564] ss:$16 sps:$4 sm:$0xff]  }
 0x56e   : > { %4374 = vmatprep.subr.bf16.mxu1 %v9712_v19  ;;  %v9736_v19 = vld [vmem:[%s16569_s3 + $0x784] ss:$16 sps:$4 sm:$0xff]  }
 0x570   : > { %4334 = vmatpush1.bf16.msra.mxu0 %v9713_v50  ;;  %v4134_v50 = vsel %vm848_vm8, %v12591_v56, %v12620_v38  ;;  %v9740_v56 = vld [vmem:[%s16569_s3 + $0x764] ss:$16 sps:$4 sm:$0xff]   ;;  %v4139_v38 = vsel %vm844_vm7, %v12627_v22, %v12644_v59 }
 0x571   : > { %4375 = vmatpush1.bf16.msra.mxu1 %v9714_v57  ;;  %4335 = vmatprep.subr.bf16.mxu0 %v9715_v45  ;;  %v9737_v57 = vld [vmem:[%s16569_s3 + $0x560] ss:$16 sps:$4 sm:$0xff]   ;;  %v9744_v22 = vld [vmem:[%s16569_s3 + $0x744] ss:$16 sps:$4 sm:$0xff]   ;;  %v4191_v59 = vshrl.u32 %v4139_v38, 16 }
 0x572   : > { %4376 = vmatprep.subr.bf16.mxu1 %v9716_v60  ;;  %v9738_v45 = vld [vmem:[%s16569_s3 + $0x780] ss:$16 sps:$4 sm:$0xff]   ;;  %v9739_v60 = vld [vmem:[%s16569_s3 + $0x544] ss:$16 sps:$4 sm:$0xff]  }
 0x574   : > { %4336 = vmatpush1.bf16.msra.mxu0 %v9717_v46  ;;  %v4176_v46 = vshrl.u32 %v4134_v50, 16 }
 0x575   : > { %4377 = vmatpush1.bf16.msra.mxu1 %v9718_v58  ;;  %4337 = vmatprep.subr.bf16.mxu0 %v9719_v42  ;;  %v4179_v58 = vshll.u32 %v4134_v50, 16  ;;  %v9741_v42 = vld [vmem:[%s16569_s3 + $0x540] ss:$16 sps:$4 sm:$0xff]  }
 0x576   : > { %4378 = vmatprep.subr.bf16.mxu1 %v9720_v25  ;;  %v9742_v25 = vld [vmem:[%s16569_s3 + $0x760] ss:$16 sps:$4 sm:$0xff]  }
 0x578   : > { %4338 = vmatpush2.bf16.msra.mxu0 %v9721_v54  ;;  %v9743_v54 = vld [vmem:[%s16569_s3 + $0x524] ss:$16 sps:$4 sm:$0xff]  }
 0x579   : > { %4379 = vmatpush1.bf16.msra.mxu1 %v9722_v1  ;;  %4339 = vmatprep.subr.bf16.mxu0 %v9723_v35  ;;  %v4178_v1 = vrot.slane %v4176_v46, 4  ;;  %v4181_v35 = vrot.slane %v4179_v58, 5  ;;  %v9755_v46 = vld [vmem:[%s16569_s3 + $0x884] ss:$16 sps:$4 sm:$0xff]  }
 0x57a   : > { %4380 = vmatprep.subr.bf16.mxu1 %v9724_v52  ;;  %v4194_v52 = vshll.u32 %v4139_v38, 16  ;;  %v9758_v38 = vld [vmem:[%s16569_s3 + $0xe8] ss:$16 sps:$4 sm:$0xff]  }
 0x57c   : > { %4340 = vmatpush2.bf16.msra.mxu0 %v9725_v16  ;;  %v9745_v16 = vld [vmem:[%s16569_s3 + $0x520] ss:$16 sps:$4 sm:$0xff]  }
 0x57d   : > { %4381 = vmatpush2.bf16.msra.mxu1 %v9726_v49  ;;  %4341 = vmatprep.subr.bf16.mxu0 %v9727_v14  ;;  %v9746_v49 = vld [vmem:[%s16569_s3 + $0x740] ss:$16 sps:$4 sm:$0xff]   ;;  %v9747_v14 = vld [vmem:[%s16569_s3 + $0x504] ss:$16 sps:$4 sm:$0xff]  }
 0x57e   : > { %4382 = vmatprep.subr.bf16.mxu1 %v9728_v4  ;;  %v4182_v4 = vor.u32 %v4181_v35, %v4178_v1  ;;  %v9761_v1 = vld [vmem:[%s16569_s3 + $0x860] ss:$16 sps:$4 sm:$0xff]   ;;  %v9764_v35 = vld [vmem:[%s16569_s3 + $0xac] ss:$16 sps:$4 sm:$0xff]  }
 0x580   : > { %4342 = vmatpush2.bf16.msra.mxu0 %v9729_v18  ;;  %v9748_v18 = vld [vmem:[%s16569_s3 + $0x724] ss:$16 sps:$4 sm:$0xff]  }
 0x581   : > { %4383 = vmatpush2.bf16.msra.mxu1 %v9730_v33  ;;  %4343 = vmatprep.subr.bf16.mxu0 %v9731_v24  ;;  %v4193_v33 = vrot.slane %v4191_v59, 4  ;;  %v4196_v24 = vrot.slane %v4194_v52, 5  ;;  %v9765_v52 = vld [vmem:[%s16569_s3 + $0x840] ss:$16 sps:$4 sm:$0xff]  }
 0x582   : > { %4384 = vmatprep.subr.bf16.mxu1 %v9732_v21  ;;  %v4088_v21 = vsel %vm848_vm8, %v12608_v10, %v12661_v55  ;;  %v9752_v10 = vld [vmem:[%s16569_s3 + $0x704] ss:$16 sps:$4 sm:$0xff]  }
 0x583   : > { %v12840_v50 = vsel %vm10856_vm5, %v4088_v21, %v4182_v4  ;;  %v4197_v55 = vor.u32 %v4196_v24, %v4193_v33  ;;  %v9769_v33 = vld [vmem:[%s16569_s3 + $0x820] ss:$16 sps:$4 sm:$0xff]   ;;  %v9770_v24 = vld [vmem:[%s16569_s3 + $0x88] ss:$16 sps:$4 sm:$0xff]   ;;  %v9771_v21 = vld [vmem:[%s16569_s3 + $0x804] ss:$16 sps:$4 sm:$0xff]  }
 0x584   : > { %4344 = vmatpush2.bf16.msra.mxu0 %v9733_v29  ;;  %v9749_v29 = vld [vmem:[%s16569_s3 + $0x500] ss:$16 sps:$4 sm:$0xff]  }
 0x585   : > { %4385 = vmatpush2.bf16.msra.mxu1 %v9734_v44  ;;  %4345 = vmatprep.subr.bf16.mxu0 %v9735_v6  ;;  %v4105_v44 = vpop.permute.xlu1 %4104  ;;  %v9750_v6 = vld [vmem:[%s16569_s3 + $0x720] ss:$16 sps:$4 sm:$0xff]  }
 0x586   : > { %4386 = vmatprep.subr.bf16.mxu1 %v9736_v19  ;;  %v9751_v19 = vld [vmem:[%s16569_s3 + $0x8a4] ss:$16 sps:$4 sm:$0xff]  }
 0x588   : > { %4346 = vmatpush2.bf16.msra.mxu0 %v9737_v57  ;;  %v4106_v57 = vsel %vm844_vm7, %v12663_v48, %v4105_v44  ;;  %v9756_v48 = vld [vmem:[%s16569_s3 + $0xec] ss:$16 sps:$4 sm:$0xff]  }
 0x589   : > { %4387 = vmatpush2.bf16.msra.mxu1 %v9738_v45  ;;  %4347 = vmatprep.subr.bf16.mxu0 %v9739_v60  ;;  %v9753_v45 = vld [vmem:[%s16569_s3 + $0x8a0] ss:$16 sps:$4 sm:$0xff]   ;;  %v12863_v58 = vsel %vm10856_vm5, %v4106_v57, %v4197_v55  ;;  %v9776_v57 = vld [vmem:[%s16569_s3 + $0x4c] ss:$16 sps:$4 sm:$0xff]  }
 0x58a   : > { %4388 = vmatprep.subr.bf16.mxu1 %v9740_v56  ;;  %v9754_v60 = vld [vmem:[%s16569_s3 + $0x700] ss:$16 sps:$4 sm:$0xff]  }
 0x58b   : > { %v9757_v56 = vld [vmem:[%s16569_s3 + $0x880] ss:$16 sps:$4 sm:$0xff]  }
 0x58c   : > { %4348 = vmatpush2.bf16.msra.mxu0 %v9741_v42  ;;  %v4141_v42 = vrot.slane %v12519_v51, 1  ;;  %v9763_v51 = vld [vmem:[%s16569_s3 + $0x844] ss:$16 sps:$4 sm:$0xff]  }
 0x58d   : > { %4389 = vmatpush2.bf16.msra.mxu1 %v9742_v25  ;;  %4349 = vmatprep.subr.bf16.mxu0 %v9743_v54  ;;  %v9759_v25 = vld [vmem:[%s16569_s3 + $0x864] ss:$16 sps:$4 sm:$0xff]   ;;  %v9760_v54 = vld [vmem:[%s16569_s3 + $0xcc] ss:$16 sps:$4 sm:$0xff]  }
 0x58e   : > { %4390 = vmatprep.subr.bf16.mxu1 %v9744_v22  ;;  %v4207_v22 = vshrl.u32 %v4141_v42, 16  ;;  %v4210_v59 = vshll.u32 %v4141_v42, 16  ;;  %v9786_v42 = vld [vmem:[%s16569_s3 + $0x8] ss:$16 sps:$4 sm:$0xff]  }
 0x590   : > { %4350 = vmatpush2.bf16.msra.mxu0 %v9745_v16  ;;  %v9766_v16 = vld [vmem:[%s16569_s3 + $0xa8] ss:$16 sps:$4 sm:$0xff]   ;;  %v4209_v4 = vrot.slane %v4207_v22, 4 }
 0x591   : > { %4391 = vmatpush2.bf16.msra.mxu1 %v9746_v49  ;;  %4351 = vmatprep.subr.bf16.mxu0 %v9747_v14  ;;  %v9767_v49 = vld [vmem:[%s16569_s3 + $0x824] ss:$16 sps:$4 sm:$0xff]   ;;  %v9768_v14 = vld [vmem:[%s16569_s3 + $0x8c] ss:$16 sps:$4 sm:$0xff]   ;;  %v9793_v22 = vld [vmem:[%s16569_s3 + $0x268] ss:$16 sps:$4 sm:$0xff]  }
 0x592   : > { %4392 = vmatprep.subr.bf16.mxu1 %v9748_v18  ;;  %v4212_v18 = vrot.slane %v4210_v59, 5  ;;  %v9794_v59 = vld [vmem:[%s16569_s3 + $0x1c8] ss:$16 sps:$4 sm:$0xff]  }
 0x594   : > { %4352 = vmatpush2.bf16.msra.mxu0 %v9749_v29  ;;  %v9772_v29 = vld [vmem:[%s16569_s3 + $0x6c] ss:$16 sps:$4 sm:$0xff]   ;;  %v4213_v44 = vor.u32 %v4212_v18, %v4209_v4 }
 0x595   : > { %4393 = vmatpush2.bf16.msra.mxu1 %v9750_v6  ;;  %4411 = vmatprep.subr.bf16.mxu0 %v9751_v19  ;;  %v9773_v6 = vld [vmem:[%s16569_s3 + $0x800] ss:$16 sps:$4 sm:$0xff]   ;;  %v9774_v19 = vld [vmem:[%s16569_s3 + $0x68] ss:$16 sps:$4 sm:$0xff]   ;;  %v9799_v4 = vld [vmem:[%s16569_s3 + $0x22c] ss:$16 sps:$4 sm:$0xff]  }
 0x596   : > { %4394 = vmatprep.subr.bf16.mxu1 %v9752_v10  ;;  %v9775_v10 = vld [vmem:[%s16569_s3 + $0x2ec] ss:$16 sps:$4 sm:$0xff]   ;;  %v12929_v55 = vsel %vm10856_vm5, %v4111_v28, %v4213_v44  ;;  %v9805_v44 = vld [vmem:[%s16569_s3 + $0x208] ss:$16 sps:$4 sm:$0xff]  }
 0x597   : > { %4354 = vmatmul.mubr.bf16.vlgmr.msra.gmra.mxu0 %v12840_v50  ;;  %v9779_v28 = vld [vmem:[%s16569_s3 + $0x2cc] ss:$16 sps:$4 sm:$0xff]  }
 0x598   : > { %4412 = vmatpush1.bf16.msra.mxu0 %v9753_v45  ;;  %4439 = vmatprep.mubr.bf16.mxu0 %v10610_v13  ;;  %v9777_v45 = vld [vmem:[%s16569_s3 + $0x2e8] ss:$16 sps:$4 sm:$0xff]   ;;  %v9800_v18 = vld [vmem:[%s16569_s3 + $0x18c] ss:$16 sps:$4 sm:$0xff]  }
 0x599   : > { %4395 = vmatpush2.bf16.msra.mxu1 %v9754_v60  ;;  %4413 = vmatprep.subr.bf16.mxu0 %v9755_v46  ;;  %v9780_v60 = vld [vmem:[%s16569_s3 + $0x2c] ss:$16 sps:$4 sm:$0xff]   ;;  %v9781_v46 = vld [vmem:[%s16569_s3 + $0x2c8] ss:$16 sps:$4 sm:$0xff]  }
 0x59a   : > { %4450 = vmatprep.subr.bf16.mxu1 %v9756_v48  ;;  %v9783_v48 = vld [vmem:[%s16569_s3 + $0x2ac] ss:$16 sps:$4 sm:$0xff]  }
 0x59c   : > { %4397 = vmatmul.mubr.bf16.vlgmr.msra.gmra.mxu1 %v12863_v58  ;;  %4414 = vmatpush1.bf16.msra.mxu0 %v9757_v56  ;;  %v9784_v56 = vld [vmem:[%s16569_s3 + $0xc] ss:$16 sps:$4 sm:$0xff]  }
 0x59d   : > { %4451 = vmatpush1.bf16.msra.mxu1 %v9758_v38  ;;  %4482 = vmatprep.mubr.bf16.mxu1 %v12605_v0  ;;  %v9762_v0 = vld [vmem:[%s16569_s3 + $0xc8] ss:$16 sps:$4 sm:$0xff]  }
 0x59e   : > { %4415 = vmatprep.subr.bf16.mxu0 %v9759_v25  ;;  %4452 = vmatprep.subr.bf16.mxu1 %v9760_v54  ;;  %v9785_v38 = vld [vmem:[%s16569_s3 + $0x2a8] ss:$16 sps:$4 sm:$0xff]   ;;  %v9787_v25 = vld [vmem:[%s16569_s3 + $0x28c] ss:$16 sps:$4 sm:$0xff]  }
 0x59f   : > { %v9788_v54 = vld [vmem:[%s16569_s3 + $0x1ec] ss:$16 sps:$4 sm:$0xff]  }
 0x5a0   : > { %4416 = vmatpush1.bf16.msra.mxu0 %v9761_v1  ;;  %v9789_v1 = vld [vmem:[%s16569_s3 + $0x288] ss:$16 sps:$4 sm:$0xff]  }
 0x5a1   : > { %4453 = vmatpush1.bf16.msra.mxu1 %v9762_v0  ;;  %4417 = vmatprep.subr.bf16.mxu0 %v9763_v51  ;;  %v9790_v0 = vld [vmem:[%s16569_s3 + $0x1e8] ss:$16 sps:$4 sm:$0xff]   ;;  %v9791_v51 = vld [vmem:[%s16569_s3 + $0x26c] ss:$16 sps:$4 sm:$0xff]  }
 0x5a2   : > { %4454 = vmatprep.subr.bf16.mxu1 %v9764_v35  ;;  %v9792_v35 = vld [vmem:[%s16569_s3 + $0x1cc] ss:$16 sps:$4 sm:$0xff]  }
 0x5a4   : > { %4418 = vmatpush1.bf16.msra.mxu0 %v9765_v52  ;;  %v9795_v52 = vld [vmem:[%s16569_s3 + $0x24c] ss:$16 sps:$4 sm:$0xff]  }
 0x5a5   : > { %4455 = vmatpush1.bf16.msra.mxu1 %v9766_v16  ;;  %4419 = vmatprep.subr.bf16.mxu0 %v9767_v49  ;;  %v9796_v16 = vld [vmem:[%s16569_s3 + $0x1ac] ss:$16 sps:$4 sm:$0xff]   ;;  %v9797_v49 = vld [vmem:[%s16569_s3 + $0x248] ss:$16 sps:$4 sm:$0xff]  }
 0x5a6   : > { %4456 = vmatprep.subr.bf16.mxu1 %v9768_v14  ;;  %v9798_v14 = vld [vmem:[%s16569_s3 + $0x1a8] ss:$16 sps:$4 sm:$0xff]  }
 0x5a8   : > { %4420 = vmatpush1.bf16.msra.mxu0 %v9769_v33  ;;  %v9801_v33 = vld [vmem:[%s16569_s3 + $0x228] ss:$16 sps:$4 sm:$0xff]  }
 0x5a9   : > { %4457 = vmatpush1.bf16.msra.mxu1 %v9770_v24  ;;  %4421 = vmatprep.subr.bf16.mxu0 %v9771_v21  ;;  %v9802_v24 = vld [vmem:[%s16569_s3 + $0x188] ss:$16 sps:$4 sm:$0xff]   ;;  %v9803_v21 = vld [vmem:[%s16569_s3 + $0x20c] ss:$16 sps:$4 sm:$0xff]  }
 0x5aa   : > { %4458 = vmatprep.subr.bf16.mxu1 %v9772_v29  ;;  %v9804_v29 = vld [vmem:[%s16569_s3 + $0x16c] ss:$16 sps:$4 sm:$0xff]  }
 0x5ac   : > { %4422 = vmatpush1.bf16.msra.mxu0 %v9773_v6  ;;  %v9806_v6 = vld [vmem:[%s16569_s3 + $0x168] ss:$16 sps:$4 sm:$0xff]  }
 0x5ad   : > { %4459 = vmatpush1.bf16.msra.mxu1 %v9774_v19  ;;  %4493 = vmatprep.subr.bf16.mxu0 %v9775_v10  ;;  %v9807_v19 = vld [vmem:[%s16569_s3 + $0x3ec] ss:$16 sps:$4 sm:$0xff]  }
 0x5ae   : > { %4460 = vmatprep.subr.bf16.mxu1 %v9776_v57  ;;  %v9808_v10 = vld [vmem:[%s16569_s3 + $0x14c] ss:$16 sps:$4 sm:$0xff]   ;;  %v9809_v57 = vld [vmem:[%s16569_s3 + $0x3e8] ss:$16 sps:$4 sm:$0xff]  }
 0x5af   : > { %8560 = vmatmul.mubr.msk.bf16.vlgmr.msra.gmra.mxu0 %vm851_vm9, %v12929_v55 }
 0x5b0   : > { %4494 = vmatpush1.bf16.msra.mxu0 %v9777_v45  ;;  %4525 = vmatprep.mubr.bf16.mxu0 %v12624_v8  ;;  %v9782_v8 = vld [vmem:[%s16569_s3 + $0x28] ss:$16 sps:$4 sm:$0xff]  }
 0x5b1   : > { %4461 = vmatpush1.bf16.msra.mxu1 %v9778_v15  ;;  %4495 = vmatprep.subr.bf16.mxu0 %v9779_v28  ;;  %v9810_v45 = vld [vmem:[%s16569_s3 + $0x148] ss:$16 sps:$4 sm:$0xff]   ;;  %v9811_v15 = vld [vmem:[%s16569_s3 + $0x3cc] ss:$16 sps:$4 sm:$0xff]  }
 0x5b2   : > { %4462 = vmatprep.subr.bf16.mxu1 %v9780_v60  ;;  %v9812_v28 = vld [vmem:[%s16569_s3 + $0x12c] ss:$16 sps:$4 sm:$0xff]   ;;  %v9813_v60 = vld [vmem:[%s16569_s3 + $0x3c8] ss:$16 sps:$4 sm:$0xff]  }
 0x5b4   : > { %4496 = vmatpush1.bf16.msra.mxu0 %v9781_v46  ;;  %v9814_v46 = vld [vmem:[%s16569_s3 + $0x128] ss:$16 sps:$4 sm:$0xff]  }
 0x5b5   : > { %4463 = vmatpush1.bf16.msra.mxu1 %v9782_v8  ;;  %4497 = vmatprep.subr.bf16.mxu0 %v9783_v48  ;;  %v9815_v8 = vld [vmem:[%s16569_s3 + $0x3ac] ss:$16 sps:$4 sm:$0xff]  }
 0x5b6   : > { %4464 = vmatprep.subr.bf16.mxu1 %v9784_v56  ;;  %v9816_v48 = vld [vmem:[%s16569_s3 + $0x10c] ss:$16 sps:$4 sm:$0xff]   ;;  %v9817_v56 = vld [vmem:[%s16569_s3 + $0x3a8] ss:$16 sps:$4 sm:$0xff]  }
 0x5b8   : > { %4498 = vmatpush1.bf16.msra.mxu0 %v9785_v38  ;;  %v9818_v38 = vld [vmem:[%s16569_s3 + $0x108] ss:$16 sps:$4 sm:$0xff]  }
 0x5b9   : > { %4465 = vmatpush1.bf16.msra.mxu1 %v9786_v42  ;;  %4499 = vmatprep.subr.bf16.mxu0 %v9787_v25  ;;  %v9819_v42 = vld [vmem:[%s16569_s3 + $0x38c] ss:$16 sps:$4 sm:$0xff]  }
 0x5ba   : > { %4466 = vmatprep.subr.bf16.mxu1 %v9788_v54  ;;  %v9820_v25 = vld [vmem:[%s16569_s3 + $0x4ec] ss:$16 sps:$4 sm:$0xff]   ;;  %v9821_v54 = vld [vmem:[%s16569_s3 + $0x388] ss:$16 sps:$4 sm:$0xff]  }
 0x5bc   : > { %4500 = vmatpush1.bf16.msra.mxu0 %v9789_v1  ;;  %v9822_v1 = vld [vmem:[%s16569_s3 + $0x4e8] ss:$16 sps:$4 sm:$0xff]  }
 0x5bd   : > { %4467 = vmatpush2.bf16.msra.mxu1 %v9790_v0  ;;  %4501 = vmatprep.subr.bf16.mxu0 %v9791_v51  ;;  %v9823_v0 = vld [vmem:[%s16569_s3 + $0x36c] ss:$16 sps:$4 sm:$0xff]   ;;  %v9825_v51 = vld [vmem:[%s16569_s3 + $0x368] ss:$16 sps:$4 sm:$0xff]  }
 0x5be   : > { %4468 = vmatprep.subr.bf16.mxu1 %v9792_v35  ;;  %v9826_v35 = vld [vmem:[%s16569_s3 + $0x4c8] ss:$16 sps:$4 sm:$0xff]  }
 0x5c0   : > { %4502 = vmatpush1.bf16.msra.mxu0 %v9793_v22  ;;  %v9828_v22 = vld [vmem:[%s16569_s3 + $0x4ac] ss:$16 sps:$4 sm:$0xff]  }
 0x5c1   : > { %4469 = vmatpush2.bf16.msra.mxu1 %v9794_v59  ;;  %4503 = vmatprep.subr.bf16.mxu0 %v9795_v52  ;;  %v9829_v59 = vld [vmem:[%s16569_s3 + $0x348] ss:$16 sps:$4 sm:$0xff]  }
 0x5c2   : > { %4470 = vmatprep.subr.bf16.mxu1 %v9796_v16  ;;  %v9830_v52 = vld [vmem:[%s16569_s3 + $0x4a8] ss:$16 sps:$4 sm:$0xff]   ;;  %v9831_v16 = vld [vmem:[%s16569_s3 + $0x32c] ss:$16 sps:$4 sm:$0xff]  }
 0x5c4   : > { %4504 = vmatpush1.bf16.msra.mxu0 %v9797_v49  ;;  %v9832_v49 = vld [vmem:[%s16569_s3 + $0x48c] ss:$16 sps:$4 sm:$0xff]  }
 0x5c5   : > { %4471 = vmatpush2.bf16.msra.mxu1 %v9798_v14  ;;  %4505 = vmatprep.subr.bf16.mxu0 %v9799_v4  ;;  %v9833_v14 = vld [vmem:[%s16569_s3 + $0x328] ss:$16 sps:$4 sm:$0xff]  }
 0x5c6   : > { %4472 = vmatprep.subr.bf16.mxu1 %v9800_v18  ;;  %v9834_v4 = vld [vmem:[%s16569_s3 + $0x488] ss:$16 sps:$4 sm:$0xff]   ;;  %v9835_v18 = vld [vmem:[%s16569_s3 + $0x30c] ss:$16 sps:$4 sm:$0xff]  }
 0x5c8   : > { %4506 = vmatpush1.bf16.msra.mxu0 %v9801_v33  ;;  %v9836_v33 = vld [vmem:[%s16569_s3 + $0x46c] ss:$16 sps:$4 sm:$0xff]  }
 0x5c9   : > { %4473 = vmatpush2.bf16.msra.mxu1 %v9802_v24  ;;  %4507 = vmatprep.subr.bf16.mxu0 %v9803_v21  ;;  %v9837_v24 = vld [vmem:[%s16569_s3 + $0x308] ss:$16 sps:$4 sm:$0xff]  }
 0x5ca   : > { %4474 = vmatprep.subr.bf16.mxu1 %v9804_v29  ;;  %v9838_v21 = vld [vmem:[%s16569_s3 + $0x468] ss:$16 sps:$4 sm:$0xff]   ;;  %v9839_v29 = vld [vmem:[%s16569_s3 + $0x6ec] ss:$16 sps:$4 sm:$0xff]  }
 0x5cc   : > { %4508 = vmatpush1.bf16.msra.mxu0 %v9805_v44  ;;  %v9840_v44 = vld [vmem:[%s16569_s3 + $0x44c] ss:$16 sps:$4 sm:$0xff]  }
 0x5cd   : > { %4475 = vmatpush2.bf16.msra.mxu1 %v9806_v6  ;;  %4509 = vmatprep.subr.bf16.mxu0 %v9807_v19  ;;  %v9841_v6 = vld [vmem:[%s16569_s3 + $0x6e8] ss:$16 sps:$4 sm:$0xff]  }
 0x5ce   : > { %4476 = vmatprep.subr.bf16.mxu1 %v9808_v10  ;;  %v9842_v19 = vld [vmem:[%s16569_s3 + $0x448] ss:$16 sps:$4 sm:$0xff]   ;;  %v9843_v10 = vld [vmem:[%s16569_s3 + $0x6cc] ss:$16 sps:$4 sm:$0xff]  }
 0x5d0   : > { %4510 = vmatpush2.bf16.msra.mxu0 %v9809_v57  ;;  %v9845_v57 = vld [vmem:[%s16569_s3 + $0x6c8] ss:$16 sps:$4 sm:$0xff]  }
 0x5d1   : > { %4477 = vmatpush2.bf16.msra.mxu1 %v9810_v45  ;;  %4511 = vmatprep.subr.bf16.mxu0 %v9811_v15  ;;  %v9847_v45 = vld [vmem:[%s16569_s3 + $0x6ac] ss:$16 sps:$4 sm:$0xff]  }
 0x5d2   : > { %4478 = vmatprep.subr.bf16.mxu1 %v9812_v28  ;;  %v9848_v15 = vld [vmem:[%s16569_s3 + $0x40c] ss:$16 sps:$4 sm:$0xff]   ;;  %v9849_v28 = vld [vmem:[%s16569_s3 + $0x6a8] ss:$16 sps:$4 sm:$0xff]  }
 0x5d4   : > { %4512 = vmatpush2.bf16.msra.mxu0 %v9813_v60  ;;  %v9850_v60 = vld [vmem:[%s16569_s3 + $0x408] ss:$16 sps:$4 sm:$0xff]  }
 0x5d5   : > { %4479 = vmatpush2.bf16.msra.mxu1 %v9814_v46  ;;  %4513 = vmatprep.subr.bf16.mxu0 %v9815_v8  ;;  %v9851_v46 = vld [vmem:[%s16569_s3 + $0x68c] ss:$16 sps:$4 sm:$0xff]  }
 0x5d6   : > { %4480 = vmatprep.subr.bf16.mxu1 %v9816_v48  ;;  %v9852_v8 = vld [vmem:[%s16569_s3 + $0x5ec] ss:$16 sps:$4 sm:$0xff]   ;;  %v9853_v48 = vld [vmem:[%s16569_s3 + $0x688] ss:$16 sps:$4 sm:$0xff]  }
 0x5d8   : > { %4514 = vmatpush2.bf16.msra.mxu0 %v9817_v56  ;;  %v9854_v56 = vld [vmem:[%s16569_s3 + $0x5e8] ss:$16 sps:$4 sm:$0xff]  }
 0x5d9   : > { %4481 = vmatpush2.bf16.msra.mxu1 %v9818_v38  ;;  %4515 = vmatprep.subr.bf16.mxu0 %v9819_v42  ;;  %v9855_v38 = vld [vmem:[%s16569_s3 + $0x66c] ss:$16 sps:$4 sm:$0xff]  }
 0x5da   : > { %4536 = vmatprep.subr.bf16.mxu1 %v9820_v25  ;;  %v9856_v42 = vld [vmem:[%s16569_s3 + $0x5cc] ss:$16 sps:$4 sm:$0xff]   ;;  %v9857_v25 = vld [vmem:[%s16569_s3 + $0x668] ss:$16 sps:$4 sm:$0xff]  }
 0x5dc   : > { %4483 = vmatmul.mubr.bf16.vlgmr.msra.gmra.mxu1 %v12525_v11  ;;  %4516 = vmatpush2.bf16.msra.mxu0 %v9821_v54  ;;  %v9824_v11 = vld [vmem:[%s16569_s3 + $0x4cc] ss:$16 sps:$4 sm:$0xff]   ;;  %v9858_v54 = vld [vmem:[%s16569_s3 + $0x5c8] ss:$16 sps:$4 sm:$0xff]  }
 0x5dd   : > { %4537 = vmatpush1.bf16.msra.mxu1 %v9822_v1  ;;  %4568 = vmatprep.mubr.bf16.mxu1 %v12676_v39  ;;  %v9827_v39 = vld [vmem:[%s16569_s3 + $0x34c] ss:$16 sps:$4 sm:$0xff]  }
 0x5de   : > { %4517 = vmatprep.subr.bf16.mxu0 %v9823_v0  ;;  %4538 = vmatprep.subr.bf16.mxu1 %v9824_v11  ;;  %v9859_v1 = vld [vmem:[%s16569_s3 + $0x64c] ss:$16 sps:$4 sm:$0xff]   ;;  %v9861_v11 = vld [vmem:[%s16569_s3 + $0x648] ss:$16 sps:$4 sm:$0xff]  }
 0x5df   : > { %v9860_v0 = vld [vmem:[%s16569_s3 + $0x5ac] ss:$16 sps:$4 sm:$0xff]  }
 0x5e0   : > { %4518 = vmatpush2.bf16.msra.mxu0 %v9825_v51  ;;  %v9862_v51 = vld [vmem:[%s16569_s3 + $0x5a8] ss:$16 sps:$4 sm:$0xff]  }
 0x5e1   : > { %4539 = vmatpush1.bf16.msra.mxu1 %v9826_v35  ;;  %4519 = vmatprep.subr.bf16.mxu0 %v9827_v39  ;;  %v9863_v35 = vld [vmem:[%s16569_s3 + $0x62c] ss:$16 sps:$4 sm:$0xff]  }
 0x5e2   : > { %4540 = vmatprep.subr.bf16.mxu1 %v9828_v22  ;;  %v9864_v39 = vld [vmem:[%s16569_s3 + $0x58c] ss:$16 sps:$4 sm:$0xff]   ;;  %v9865_v22 = vld [vmem:[%s16569_s3 + $0x628] ss:$16 sps:$4 sm:$0xff]  }
 0x5e4   : > { %4520 = vmatpush2.bf16.msra.mxu0 %v9829_v59  ;;  %v9866_v59 = vld [vmem:[%s16569_s3 + $0x588] ss:$16 sps:$4 sm:$0xff]  }
 0x5e5   : > { %4541 = vmatpush1.bf16.msra.mxu1 %v9830_v52  ;;  %4521 = vmatprep.subr.bf16.mxu0 %v9831_v16  ;;  %v9867_v52 = vld [vmem:[%s16569_s3 + $0x60c] ss:$16 sps:$4 sm:$0xff]  }
 0x5e6   : > { %4542 = vmatprep.subr.bf16.mxu1 %v9832_v49  ;;  %v9868_v16 = vld [vmem:[%s16569_s3 + $0x56c] ss:$16 sps:$4 sm:$0xff]   ;;  %v9869_v49 = vld [vmem:[%s16569_s3 + $0x608] ss:$16 sps:$4 sm:$0xff]  }
 0x5e8   : > { %4522 = vmatpush2.bf16.msra.mxu0 %v9833_v14  ;;  %v9870_v14 = vld [vmem:[%s16569_s3 + $0x568] ss:$16 sps:$4 sm:$0xff]  }
 0x5e9   : > { %4543 = vmatpush1.bf16.msra.mxu1 %v9834_v4  ;;  %4523 = vmatprep.subr.bf16.mxu0 %v9835_v18  ;;  %v9871_v4 = vld [vmem:[%s16569_s3 + $0x7ec] ss:$16 sps:$4 sm:$0xff]  }
 0x5ea   : > { %4544 = vmatprep.subr.bf16.mxu1 %v9836_v33  ;;  %v9872_v18 = vld [vmem:[%s16569_s3 + $0x54c] ss:$16 sps:$4 sm:$0xff]   ;;  %v9873_v33 = vld [vmem:[%s16569_s3 + $0x7e8] ss:$16 sps:$4 sm:$0xff]  }
 0x5ec   : > { %4524 = vmatpush2.bf16.msra.mxu0 %v9837_v24  ;;  %v9874_v24 = vld [vmem:[%s16569_s3 + $0x548] ss:$16 sps:$4 sm:$0xff]  }
 0x5ed   : > { %4545 = vmatpush1.bf16.msra.mxu1 %v9838_v21  ;;  %4579 = vmatprep.subr.bf16.mxu0 %v9839_v29  ;;  %v9875_v21 = vld [vmem:[%s16569_s3 + $0x7cc] ss:$16 sps:$4 sm:$0xff]  }
 0x5ee   : > { %4546 = vmatprep.subr.bf16.mxu1 %v9840_v44  ;;  %v9876_v29 = vld [vmem:[%s16569_s3 + $0x52c] ss:$16 sps:$4 sm:$0xff]   ;;  %v9877_v44 = vld [vmem:[%s16569_s3 + $0x7c8] ss:$16 sps:$4 sm:$0xff]  }
 0x5ef   : > { %4526 = vmatmul.mubr.bf16.vlgmr.msra.gmra.mxu0 %v12631_v2  ;;  %v9844_v2 = vld [vmem:[%s16569_s3 + $0x42c] ss:$16 sps:$4 sm:$0xff]  }
 0x5f0   : > { %4580 = vmatpush1.bf16.msra.mxu0 %v9841_v6  ;;  %4611 = vmatprep.mubr.bf16.mxu0 %v12530_v27  ;;  %v9846_v27 = vld [vmem:[%s16569_s3 + $0x428] ss:$16 sps:$4 sm:$0xff]  }
 0x5f1   : > { %4547 = vmatpush1.bf16.msra.mxu1 %v9842_v19  ;;  %4581 = vmatprep.subr.bf16.mxu0 %v9843_v10  ;;  %v9878_v6 = vld [vmem:[%s16569_s3 + $0x528] ss:$16 sps:$4 sm:$0xff]   ;;  %v9879_v19 = vld [vmem:[%s16569_s3 + $0x7ac] ss:$16 sps:$4 sm:$0xff]  }
 0x5f2   : > { %4548 = vmatprep.subr.bf16.mxu1 %v9844_v2  ;;  %v9880_v10 = vld [vmem:[%s16569_s3 + $0x50c] ss:$16 sps:$4 sm:$0xff]  }
 0x5f4   : > { %4582 = vmatpush1.bf16.msra.mxu0 %v9845_v57  ;;  %v9881_v57 = vld [vmem:[%s16569_s3 + $0x7a8] ss:$16 sps:$4 sm:$0xff]  }
 0x5f5   : > { %4549 = vmatpush1.bf16.msra.mxu1 %v9846_v27  ;;  %4583 = vmatprep.subr.bf16.mxu0 %v9847_v45  ;;  %v9882_v27 = vld [vmem:[%s16569_s3 + $0x508] ss:$16 sps:$4 sm:$0xff]  }
 0x5f6   : > { %4550 = vmatprep.subr.bf16.mxu1 %v9848_v15  ;;  %v9883_v15 = vld [vmem:[%s16569_s3 + $0x78c] ss:$16 sps:$4 sm:$0xff]  }
 0x5f8   : > { %4584 = vmatpush1.bf16.msra.mxu0 %v9849_v28  ;;  %v9884_v28 = vld [vmem:[%s16569_s3 + $0x8ac] ss:$16 sps:$4 sm:$0xff]  }
 0x5f9   : > { %4551 = vmatpush1.bf16.msra.mxu1 %v9850_v60  ;;  %4585 = vmatprep.subr.bf16.mxu0 %v9851_v46 }
 0x5fa   : > { %4552 = vmatprep.subr.bf16.mxu1 %v9852_v8 }
 0x5fc   : > { %4586 = vmatpush1.bf16.msra.mxu0 %v9853_v48  ;;  %v9885_v48 = vld [vmem:[%s16569_s3 + $0x788] ss:$16 sps:$4 sm:$0xff]  }
 0x5fd   : > { %4553 = vmatpush2.bf16.msra.mxu1 %v9854_v56  ;;  %4587 = vmatprep.subr.bf16.mxu0 %v9855_v38 }
 0x5fe   : > { %4554 = vmatprep.subr.bf16.mxu1 %v9856_v42  ;;  %v9886_v42 = vld [vmem:[%s16569_s3 + $0x8a8] ss:$16 sps:$4 sm:$0xff]  }
 0x600   : > { %4588 = vmatpush1.bf16.msra.mxu0 %v9857_v25  ;;  %v9887_v25 = vld [vmem:[%s16569_s3 + $0x76c] ss:$16 sps:$4 sm:$0xff]  }
 0x601   : > { %4555 = vmatpush2.bf16.msra.mxu1 %v9858_v54  ;;  %4589 = vmatprep.subr.bf16.mxu0 %v9859_v1  ;;  %v9888_v1 = vld [vmem:[%s16569_s3 + $0x88c] ss:$16 sps:$4 sm:$0xff]  }
 0x602   : > { %4556 = vmatprep.subr.bf16.mxu1 %v9860_v0  ;;  %v4877_v0 = vshrl.u32 %v12579_v53, 16 }
 0x604   : > { %4590 = vmatpush1.bf16.msra.mxu0 %v9861_v11  ;;  %v4880_v11 = vshll.u32 %v12579_v53, 16  ;;  %v9891_v53 = vld [vmem:[%s16569_s3 + $0x74c] ss:$16 sps:$4 sm:$0xff]  }
 0x605   : > { %4557 = vmatpush2.bf16.msra.mxu1 %v9862_v51  ;;  %4591 = vmatprep.subr.bf16.mxu0 %v9863_v35 }
 0x606   : > { %4558 = vmatprep.subr.bf16.mxu1 %v9864_v39 }
 0x608   : > { %4592 = vmatpush1.bf16.msra.mxu0 %v9865_v22  ;;  %v9889_v22 = vld [vmem:[%s16569_s3 + $0x768] ss:$16 sps:$4 sm:$0xff]  }
 0x609   : > { %4559 = vmatpush2.bf16.msra.mxu1 %v9866_v59  ;;  %4593 = vmatprep.subr.bf16.mxu0 %v9867_v52 }
 0x60a   : > { %4560 = vmatprep.subr.bf16.mxu1 %v9868_v16  ;;  %v9890_v16 = vld [vmem:[%s16569_s3 + $0x888] ss:$16 sps:$4 sm:$0xff]  }
 0x60c   : > { %4594 = vmatpush1.bf16.msra.mxu0 %v9869_v49 }
 0x60d   : > { %4561 = vmatpush2.bf16.msra.mxu1 %v9870_v14  ;;  %4595 = vmatprep.subr.bf16.mxu0 %v9871_v4  ;;  %v9892_v14 = vld [vmem:[%s16569_s3 + $0x86c] ss:$16 sps:$4 sm:$0xff]   ;;  %v4879_v4 = vrot.slane %v4877_v0, 4  ;;  %v9910_v0 = vld [vmem:[%s16567_s1 + $0xe8] ss:$16 sps:$4 sm:$0xff]  }
 0x60e   : > { %4562 = vmatprep.subr.bf16.mxu1 %v9872_v18  ;;  %v4882_v18 = vrot.slane %v4880_v11, 5  ;;  %v9911_v11 = vld [vmem:[%s16567_s1 + $0xa4] ss:$16 sps:$4 sm:$0xff]  }
 0x610   : > { %4596 = vmatpush2.bf16.msra.mxu0 %v9873_v33 }
 0x611   : > { %4563 = vmatpush2.bf16.msra.mxu1 %v9874_v24  ;;  %4597 = vmatprep.subr.bf16.mxu0 %v9875_v21  ;;  %v9893_v24 = vld [vmem:[%s16569_s3 + $0x748] ss:$16 sps:$4 sm:$0xff]  }
 0x612   : > { %4564 = vmatprep.subr.bf16.mxu1 %v9876_v29  ;;  %v9894_v21 = vld [vmem:[%s16569_s3 + $0x868] ss:$16 sps:$4 sm:$0xff]   ;;  %v9895_v29 = vld [vmem:[%s16569_s3 + $0x72c] ss:$16 sps:$4 sm:$0xff]  }
 0x614   : > { %4598 = vmatpush2.bf16.msra.mxu0 %v9877_v44  ;;  %v9896_v44 = vld [vmem:[%s16569_s3 + $0x84c] ss:$16 sps:$4 sm:$0xff]  }
 0x615   : > { %4565 = vmatpush2.bf16.msra.mxu1 %v9878_v6  ;;  %4599 = vmatprep.subr.bf16.mxu0 %v9879_v19  ;;  %v4883_v6 = vor.u32 %v4882_v18, %v4879_v4  ;;  %v9897_v19 = vld [vmem:[%s16569_s3 + $0x728] ss:$16 sps:$4 sm:$0xff]   ;;  %v9919_v18 = vld [vmem:[%s16567_s1 + $0x64] ss:$16 sps:$4 sm:$0xff]  }
 0x616   : > { %4566 = vmatprep.subr.bf16.mxu1 %v9880_v10  ;;  %v4888_v10 = vrot.slane %v12595_v37, 1  ;;  %v9918_v4 = vld [vmem:[%s16567_s1 + $0xa8] ss:$16 sps:$4 sm:$0xff]  }
 0x617   : > { %v4269_v2 = vpop.f32.mrf.mxu0 }
 0x618   : > { %4600 = vmatpush2.bf16.msra.mxu0 %v9881_v57  ;;  %v4270_v60 = vadd.f32 %v4269_v2, %v11983_v9  ;;  %v9898_v2 = vld [vmem:[%s16569_s3 + $0x848] ss:$16 sps:$4 sm:$0xff]   ;;  %v9899_v57 = vld [vmem:[%s16569_s3 + $0x70c] ss:$16 sps:$4 sm:$0xff]  }
 0x619   : > { %4567 = vmatpush2.bf16.msra.mxu1 %v9882_v27  ;;  %v4271_v45 = vpop.f32.mrf.mxu0  ;;  %4601 = vmatprep.subr.bf16.mxu0 %v9883_v15  ;;  %v9900_v27 = vld [vmem:[%s16569_s3 + $0x82c] ss:$16 sps:$4 sm:$0xff]   ;;  %v4810_v15 = vpop.permute.xlu0 %4809 }
 0x61a   : > { %4626 = vmatprep.subr.bf16.mxu1 %v9884_v28  ;;  %v4272_v56 = vadd.f32 %v4271_v45, %v11991_v26  ;;  %v4909_v45 = vsel %vm10856_vm5, %v12565_v17, %v4883_v6  ;;  %v9901_v28 = vld [vmem:[%s16569_s3 + $0x708] ss:$16 sps:$4 sm:$0xff]   ;;  %v9921_v6 = vld [vmem:[%s16567_s1 + $0x60] ss:$16 sps:$4 sm:$0xff]  }
 0x61b   : > { %v4273_v46 = vpop.f32.mrf.mxu0  ;;  %v4916_v17 = vsel %vm959_vm2, %v4909_v45, %v4888_v10  ;;  %v9924_v45 = vld [vmem:[%s16567_s1 + $0x6c] ss:$16 sps:$4 sm:$0xff]  }
 0x61c   : > { %4569 = vmatmul.mubr.bf16.vlgmr.msra.gmra.mxu1 %v12840_v50  ;;  %v4312_v8 = vpop.f32.mrf.mxu1  ;;  %4602 = vmatpush2.bf16.msra.mxu0 %v9885_v48  ;;  %v4274_v51 = vadd.f32 %v4273_v46, %v11983_v9  ;;  %v9903_v46 = vld [vmem:[%s16567_s1 + $0xe4] ss:$16 sps:$4 sm:$0xff]   ;;  %v4812_v48 = vpop.permute.xlu1 %4811 }
 0x61d   : > { %v13271_v38 = vadd.f32 %v4312_v8, %v4270_v60  ;;  %4627 = vmatpush1.bf16.msra.mxu1 %v9886_v42  ;;  %4603 = vmatprep.subr.bf16.mxu0 %v9887_v25  ;;  %v4275_v50 = vpop.f32.mrf.mxu0  ;;  %v9902_v60 = vld [vmem:[%s16569_s3 + $0x828] ss:$16 sps:$4 sm:$0xff]   ;;  %v9904_v8 = vld [vmem:[%s16569_s3 + $0x80c] ss:$16 sps:$4 sm:$0xff]   ;;  %v9907_v25 = vld [vmem:[%s16567_s1 + $0xc4] ss:$16 sps:$4 sm:$0xff]  }
 0x61e   : > { %v4314_v54 = vpop.f32.mrf.mxu1  ;;  %4628 = vmatprep.subr.bf16.mxu1 %v9888_v1  ;;  %4654 = vmatprep.mubr.bf16.mxu1 %v10610_v13  ;;  %v4276_v59 = vadd.f32 %v4275_v50, %v11991_v26  ;;  %v9906_v42 = vld [vmem:[%s16569_s3 + $0x808] ss:$16 sps:$4 sm:$0xff]   ;;  %v4814_v50 = vpop.permute.xlu0 %4813  ;;  %v9909_v1 = vld [vmem:[%s16567_s1 + $0xc0] ss:$16 sps:$4 sm:$0xff]  }
 0x61f   : > { %v13286_v35 = vadd.f32 %v4314_v54, %v4272_v56  ;;  %v9905_v56 = vld [vmem:[%s16567_s1 + $0xe0] ss:$16 sps:$4 sm:$0xff]  }
 0x620   : > { %v4316_v39 = vpop.f32.mrf.mxu1  ;;  %4604 = vmatpush2.bf16.msra.mxu0 %v9889_v22  ;;  %v4830_v54 = vpop.permute.xlu1 %4829  ;;  %v9914_v22 = vld [vmem:[%s16567_s1 + $0xc8] ss:$16 sps:$4 sm:$0xff]  }
 0x621   : > { %v13292_v52 = vadd.f32 %v4316_v39, %v4274_v51  ;;  %4629 = vmatpush1.bf16.msra.mxu1 %v9890_v16  ;;  %4605 = vmatprep.subr.bf16.mxu0 %v9891_v53  ;;  %v9913_v39 = vld [vmem:[%s16567_s1 + $0xa0] ss:$16 sps:$4 sm:$0xff]   ;;  %v9916_v53 = vld [vmem:[%s16567_s1 + $0xac] ss:$16 sps:$4 sm:$0xff]  }
 0x622   : > { %v4318_v49 = vpop.f32.mrf.mxu1  ;;  %4630 = vmatprep.subr.bf16.mxu1 %v9892_v14  ;;  %v4779_v51 = vpop.permute.xlu0 %4778 }
 0x623   : > { %v13303_v33 = vadd.f32 %v4318_v49, %v4276_v59  ;;  %v9915_v59 = vld [vmem:[%s16567_s1 + $0x84] ss:$16 sps:$4 sm:$0xff]   ;;  %v9917_v49 = vld [vmem:[%s16567_s1 + $0x80] ss:$16 sps:$4 sm:$0xff]  }
 0x624   : > { %4606 = vmatpush2.bf16.msra.mxu0 %v9893_v24  ;;  %v4832_v16 = vpop.permute.xlu1 %4831  ;;  %v4858_v24 = vshll.u32 %v12560_v31, 16 }
 0x625   : > { %4631 = vmatpush1.bf16.msra.mxu1 %v9894_v21  ;;  %4607 = vmatprep.subr.bf16.mxu0 %v9895_v29  ;;  %v4824_v21 = vsel %vm844_vm7, %v12570_v20, %v4810_v15  ;;  %v9920_v29 = vld [vmem:[%s16567_s1 + $0x8c] ss:$16 sps:$4 sm:$0xff]   ;;  %v9923_v20 = vld [vmem:[%s16567_s1 + $0x44] ss:$16 sps:$4 sm:$0xff]  }
 0x626   : > { %4632 = vmatprep.subr.bf16.mxu1 %v9896_v44  ;;  %v4784_v14 = vpop.permute.xlu0 %4783 }
 0x628   : > { %4608 = vmatpush2.bf16.msra.mxu0 %v9897_v19  ;;  %v4834_v44 = vpop.permute.xlu1 %4833  ;;  %v4826_v19 = vsel %vm848_vm8, %v4824_v21, %v4812_v48  ;;  %v9928_v48 = vld [vmem:[%s16567_s1 + $0x4c] ss:$16 sps:$4 sm:$0xff]  }
 0x629   : > { %4633 = vmatpush1.bf16.msra.mxu1 %v9898_v2  ;;  %4609 = vmatprep.subr.bf16.mxu0 %v9899_v57  ;;  %v9922_v2 = vld [vmem:[%s16567_s1 + $0x88] ss:$16 sps:$4 sm:$0xff]   ;;  %v4856_v57 = vshrl.u32 %v12560_v31, 16  ;;  %v9927_v31 = vld [vmem:[%s16567_s1 + $0x24] ss:$16 sps:$4 sm:$0xff]  }
 0x62a   : > { %4634 = vmatprep.subr.bf16.mxu1 %v9900_v27  ;;  %v4860_v27 = vrot.slane %v4858_v24, 1  ;;  %v4789_v15 = vpop.permute.xlu0 %4788  ;;  %v9936_v21 = vld [vmem:[%s16567_s1 + $0xc] ss:$16 sps:$4 sm:$0xff]  }
 0x62c   : > { %4610 = vmatpush2.bf16.msra.mxu0 %v9901_v28  ;;  %v4828_v28 = vsel %vm851_vm9, %v4826_v19, %v4814_v50  ;;  %v4844_v50 = vsel %vm844_vm7, %v12551_v23, %v4830_v54  ;;  %v9932_v23 = vld [vmem:[%s16567_s1 + $0x2c] ss:$16 sps:$4 sm:$0xff]  }
 0x62d   : > { %4635 = vmatpush1.bf16.msra.mxu1 %v9902_v60  ;;  %4924 = vmatprep.subr.bf16.mxu0 %v9903_v46  ;;  %v9925_v60 = vld [vmem:[%s16567_s1 + $0x40] ss:$16 sps:$4 sm:$0xff]   ;;  %v9926_v46 = vld [vmem:[%s16567_s1 + $0x68] ss:$16 sps:$4 sm:$0xff]  }
 0x62e   : > { %4636 = vmatprep.subr.bf16.mxu1 %v9904_v8  ;;  %v4850_v8 = vpop.permute.xlu1 %4849 }
 0x62f   : > { %4612 = vmatmul.mubr.bf16.vlgmr.msra.gmra.mxu0 %v12863_v58  ;;  %v9908_v58 = vld [vmem:[%s16567_s1 + $0xec] ss:$16 sps:$4 sm:$0xff]  }
 0x630   : > { %4925 = vmatpush1.bf16.msra.mxu0 %v9905_v56  ;;  %8566 = vmatprep.mubr.msk.bf16.mxu0 %vm844_vm7, %v4916_v17  ;;  %v4869_v56 = vshrl.u32 %v4828_v28, 16 }
 0x631   : > { %4637 = vmatpush1.bf16.msra.mxu1 %v9906_v42  ;;  %4926 = vmatprep.subr.bf16.mxu0 %v9907_v25  ;;  %v4872_v42 = vshll.u32 %v4828_v28, 16  ;;  %v9929_v25 = vld [vmem:[%s16567_s1 + $0x20] ss:$16 sps:$4 sm:$0xff]  }
 0x632   : > { %4977 = vmatprep.subr.bf16.mxu1 %v9908_v58  ;;  %v4864_v58 = vsel %vm844_vm7, %v12556_v30, %v4850_v8  ;;  %v4871_v30 = vrot.slane %v4869_v56, 4  ;;  %v9943_v8 = vld [vmem:[%s16569_s3 + $0xe4] ss:$16 sps:$4 sm:$0xff]  }
 0x633   : > { %v4874_v54 = vrot.slane %v4872_v42, 5 }
 0x634   : > { %8561 = vmatmul.mubr.msk.bf16.vlgmr.msra.gmra.mxu1 %vm851_vm9, %v12929_v55  ;;  %4927 = vmatpush1.bf16.msra.mxu0 %v9909_v1  ;;  %v9912_v55 = vld [vmem:[%s16567_s1 + $0xcc] ss:$16 sps:$4 sm:$0xff]   ;;  %v4852_v1 = vpop.permute.xlu0 %4851 }
 0x635   : > { %4978 = vmatpush1.bf16.msra.mxu1 %v9910_v0  ;;  %4928 = vmatprep.subr.bf16.mxu0 %v9911_v11  ;;  %v9930_v0 = vld [vmem:[%s16567_s1 + $0x48] ss:$16 sps:$4 sm:$0xff]   ;;  %v9931_v11 = vld [vmem:[%s16567_s1 + $0x4] ss:$16 sps:$4 sm:$0xff]  }
 0x636   : > { %4979 = vmatprep.subr.bf16.mxu1 %v9912_v55  ;;  %8568 = vmatprep.mubr.msk.bf16.mxu1 %vm844_vm7, %v4916_v17  ;;  %v4861_v17 = vor.u32 %v4860_v27, %v4856_v57  ;;  %v9939_v57 = vld [vmem:[%s16567_s1 + $0x104] ss:$16 sps:$4 sm:$0xff]  }
 0x638   : > { %4929 = vmatpush1.bf16.msra.mxu0 %v9913_v39  ;;  %v4899_v55 = vshrl.u32 %v4861_v17, 16  ;;  %v4902_v39 = vshll.u32 %v4861_v17, 16 }
 0x639   : > { %4980 = vmatpush1.bf16.msra.mxu1 %v9914_v22  ;;  %4930 = vmatprep.subr.bf16.mxu0 %v9915_v59  ;;  %v4803_v22 = vsel %vm844_vm7, %v12546_v36, %v4779_v51  ;;  %v4846_v59 = vsel %vm848_vm8, %v4844_v50, %v4832_v16  ;;  %v9934_v36 = vld [vmem:[%s16567_s1 + $0x28] ss:$16 sps:$4 sm:$0xff]   ;;  %v9935_v51 = vld [vmem:[%s16567_s1 + $0x124] ss:$16 sps:$4 sm:$0xff]  }
 0x63a   : > { %4981 = vmatprep.subr.bf16.mxu1 %v9916_v53  ;;  %v4866_v53 = vsel %vm848_vm8, %v4864_v58, %v4852_v1  ;;  %v4901_v16 = vrot.slane %v4899_v55, 5  ;;  %v4904_v24 = vrot.slane %v4902_v39, 6  ;;  %v9946_v58 = vld [vmem:[%s16567_s1 + $0x108] ss:$16 sps:$4 sm:$0xff]   ;;  %v9948_v55 = vld [vmem:[%s16569_s3 + $0x2e4] ss:$16 sps:$4 sm:$0xff]  }
 0x63c   : > { %4931 = vmatpush1.bf16.msra.mxu0 %v9917_v49  ;;  %v4854_v49 = vpop.permute.xlu1 %4853 }
 0x63d   : > { %4982 = vmatpush1.bf16.msra.mxu1 %v9918_v4  ;;  %4932 = vmatprep.subr.bf16.mxu0 %v9919_v18  ;;  %v9933_v4 = vld [vmem:[%s16567_s1] ss:$16 sps:$4 sm:$0xff]   ;;  %v4805_v18 = vsel %vm848_vm8, %v4803_v22, %v4784_v14  ;;  %v4848_v14 = vsel %vm851_vm9, %v4846_v59, %v4834_v44  ;;  %v4905_v44 = vor.u32 %v4904_v24, %v4901_v16 }
 0x63e   : > { %4983 = vmatprep.subr.bf16.mxu1 %v9920_v29  ;;  %v4875_v29 = vor.u32 %v4874_v54, %v4871_v30  ;;  %v4807_v19 = vsel %vm851_vm9, %v4805_v18, %v4789_v15  ;;  %v4887_v27 = vrot.slane %v4848_v14, 1  ;;  %v9940_v15 = vld [vmem:[%s16567_s1 + $0x12c] ss:$16 sps:$4 sm:$0xff]   ;;  %v9949_v30 = vld [vmem:[%s16569_s3 + $0xc0] ss:$16 sps:$4 sm:$0xff]  }
 0x63f   : > { %v4918_v17 = vsel %vm10869_vm6, %v4888_v10, %v4905_v44  ;;  %v9945_v10 = vld [vmem:[%s16569_s3 + $0xe0] ss:$16 sps:$4 sm:$0xff]   ;;  %v9952_v18 = vld [vmem:[%s16569_s3 + $0x2c4] ss:$16 sps:$4 sm:$0xff]  }
 0x640   : > { %4933 = vmatpush1.bf16.msra.mxu0 %v9921_v6  ;;  %v4868_v6 = vsel %vm851_vm9, %v4866_v53, %v4854_v49  ;;  %v9954_v24 = vld [vmem:[%s16569_s3 + $0x2c0] ss:$16 sps:$4 sm:$0xff]   ;;  %v9956_v14 = vld [vmem:[%s16569_s3 + $0x2a4] ss:$16 sps:$4 sm:$0xff]  }
 0x641   : > { %4984 = vmatpush1.bf16.msra.mxu1 %v9922_v2  ;;  %4934 = vmatprep.subr.bf16.mxu0 %v9923_v20  ;;  %v9937_v2 = vld [vmem:[%s16567_s1 + $0x120] ss:$16 sps:$4 sm:$0xff]   ;;  %v9938_v20 = vld [vmem:[%s16567_s1 + $0x8] ss:$16 sps:$4 sm:$0xff]   ;;  %v4894_v28 = vshll.u32 %v4868_v6, 16 }
 0x642   : > { %4985 = vmatprep.subr.bf16.mxu1 %v9924_v45  ;;  %v4891_v45 = vshrl.u32 %v4868_v6, 16  ;;  %v9961_v44 = vld [vmem:[%s16569_s3 + $0x60] ss:$16 sps:$4 sm:$0xff]  }
 0x643   : > { %v4896_v56 = vrot.slane %v4894_v28, 6  ;;  %v9964_v28 = vld [vmem:[%s16569_s3 + $0x264] ss:$16 sps:$4 sm:$0xff]  }
 0x644   : > { %4935 = vmatpush1.bf16.msra.mxu0 %v9925_v60  ;;  %v4908_v60 = vsel %vm10856_vm5, %v4807_v19, %v4875_v29  ;;  %v9957_v19 = vld [vmem:[%s16569_s3 + $0x80] ss:$16 sps:$4 sm:$0xff]  }
 0x645   : > { %4986 = vmatpush1.bf16.msra.mxu1 %v9926_v46  ;;  %4936 = vmatprep.subr.bf16.mxu0 %v9927_v31  ;;  %v9941_v46 = vld [vmem:[%s16567_s1 + $0x100] ss:$16 sps:$4 sm:$0xff]   ;;  %v9942_v31 = vld [vmem:[%s16567_s1 + $0x128] ss:$16 sps:$4 sm:$0xff]   ;;  %v4912_v42 = vsel %vm959_vm2, %v4908_v60, %v4887_v27 }
 0x646   : > { %4987 = vmatprep.subr.bf16.mxu1 %v9928_v48  ;;  %v4893_v48 = vrot.slane %v4891_v45, 5  ;;  %v9963_v45 = vld [vmem:[%s16569_s3 + $0x44] ss:$16 sps:$4 sm:$0xff]   ;;  %v9966_v60 = vld [vmem:[%s16569_s3 + $0x260] ss:$16 sps:$4 sm:$0xff]  }
 0x648   : > { %4937 = vmatpush1.bf16.msra.mxu0 %v9929_v25  ;;  %v9944_v25 = vld [vmem:[%s16567_s1 + $0x10c] ss:$16 sps:$4 sm:$0xff]  }
 0x649   : > { %4988 = vmatpush1.bf16.msra.mxu1 %v9930_v0  ;;  %4938 = vmatprep.subr.bf16.mxu0 %v9931_v11  ;;  %v9947_v0 = vld [vmem:[%s16569_s3 + $0xc4] ss:$16 sps:$4 sm:$0xff]   ;;  %v4897_v11 = vor.u32 %v4896_v56, %v4893_v48  ;;  %v9969_v48 = vld [vmem:[%s16569_s3 + $0x20] ss:$16 sps:$4 sm:$0xff]  }
 0x64a   : > { %4989 = vmatprep.subr.bf16.mxu1 %v9932_v23 }
 0x64c   : > { %4939 = vmatpush1.bf16.msra.mxu0 %v9933_v4  ;;  %v9951_v4 = vld [vmem:[%s16569_s3 + $0xa4] ss:$16 sps:$4 sm:$0xff]  }
 0x64d   : > { %4990 = vmatpush1.bf16.msra.mxu1 %v9934_v36  ;;  %4952 = vmatprep.subr.bf16.mxu0 %v9935_v51 }
 0x64e   : > { %4991 = vmatprep.subr.bf16.mxu1 %v9936_v21  ;;  %v9955_v21 = vld [vmem:[%s16569_s3 + $0x84] ss:$16 sps:$4 sm:$0xff]  }
 0x650   : > { %4953 = vmatpush2.bf16.msra.mxu0 %v9937_v2  ;;  %v9958_v2 = vld [vmem:[%s16569_s3 + $0x2a0] ss:$16 sps:$4 sm:$0xff]  }
 0x651   : > { %4992 = vmatpush1.bf16.msra.mxu1 %v9938_v20  ;;  %4954 = vmatprep.subr.bf16.mxu0 %v9939_v57  ;;  %v9959_v20 = vld [vmem:[%s16569_s3 + $0x64] ss:$16 sps:$4 sm:$0xff]  }
 0x652   : > { %5005 = vmatprep.subr.bf16.mxu1 %v9940_v15  ;;  %v9960_v57 = vld [vmem:[%s16569_s3 + $0x284] ss:$16 sps:$4 sm:$0xff]   ;;  %v9965_v15 = vld [vmem:[%s16569_s3 + $0x40] ss:$16 sps:$4 sm:$0xff]  }
 0x654   : > { %4955 = vmatpush2.bf16.msra.mxu0 %v9941_v46  ;;  %v9967_v46 = vld [vmem:[%s16569_s3 + $0x24] ss:$16 sps:$4 sm:$0xff]  }
 0x655   : > { %5006 = vmatpush2.bf16.msra.mxu1 %v9942_v31  ;;  %5377 = vmatprep.subr.bf16.mxu0 %v9943_v8  ;;  %v9968_v31 = vld [vmem:[%s16569_s3 + $0x244] ss:$16 sps:$4 sm:$0xff]  }
 0x656   : > { %5007 = vmatprep.subr.bf16.mxu1 %v9944_v25  ;;  %v9971_v25 = vld [vmem:[%s16569_s3 + $0x4] ss:$16 sps:$4 sm:$0xff]  }
 0x657   : > { %v4355_v50 = vpop.f32.mrf.mxu0  ;;  %4957 = vmatmul.mubr.bf16.vlgmr.msra.gmra.mxu0 %v4912_v42 }
 0x658   : > { %v4356_v37 = vadd.f32 %v4355_v50, %v13271_v38  ;;  %8567 = vmatprep.mubr.msk.bf16.mxu0 %vm844_vm7, %v4918_v17  ;;  %5378 = vmatpush1.bf16.msra.mxu0 %v9945_v10 }
 0x659   : > { %5008 = vmatpush2.bf16.msra.mxu1 %v9946_v58  ;;  %v4357_v1 = vpop.f32.mrf.mxu0  ;;  %5379 = vmatprep.subr.bf16.mxu0 %v9947_v0  ;;  %v9973_v0 = vld [vmem:[%s16569_s3] ss:$16 sps:$4 sm:$0xff]  }
 0x65a   : > { %v4358_v38 = vadd.f32 %v4357_v1, %v13286_v35  ;;  %5420 = vmatprep.subr.bf16.mxu1 %v9948_v55  ;;  %v9950_v35 = vld [vmem:[%s16569_s3 + $0x2e0] ss:$16 sps:$4 sm:$0xff]   ;;  %v9975_v55 = vld [vmem:[%s16569_s3 + $0x1e4] ss:$16 sps:$4 sm:$0xff]  }
 0x65b   : > { %v4359_v39 = vpop.f32.mrf.mxu0 }
 0x65c   : > { %v4360_v22 = vadd.f32 %v4359_v39, %v13292_v52  ;;  %v4398_v23 = vpop.f32.mrf.mxu1  ;;  %5010 = vmatmul.mubr.bf16.vlgmr.msra.gmra.mxu1 %v4912_v42  ;;  %5380 = vmatpush1.bf16.msra.mxu0 %v9949_v30  ;;  %v4917_v52 = vsel %vm10869_vm6, %v4887_v27, %v4897_v11  ;;  %v9962_v27 = vld [vmem:[%s16569_s3 + $0x280] ss:$16 sps:$4 sm:$0xff]   ;;  %v9976_v30 = vld [vmem:[%s16569_s3 + $0x204] ss:$16 sps:$4 sm:$0xff]  }
 0x65d   : > { %v4399_v54 = vadd.f32 %v4398_v23, %v4356_v37  ;;  %v4361_v59 = vpop.f32.mrf.mxu0  ;;  %8569 = vmatprep.mubr.msk.bf16.mxu1 %vm844_vm7, %v4918_v17  ;;  %5421 = vmatpush1.bf16.msra.mxu1 %v9950_v35  ;;  %v9970_v42 = vld [vmem:[%s16569_s3 + $0x240] ss:$16 sps:$4 sm:$0xff]   ;;  %v9972_v37 = vld [vmem:[%s16569_s3 + $0x224] ss:$16 sps:$4 sm:$0xff]  }
 0x65e   : > { %v4362_v53 = vadd.f32 %v4361_v59, %v13303_v33  ;;  %v4400_v49 = vpop.f32.mrf.mxu1  ;;  %5381 = vmatprep.subr.bf16.mxu0 %v9951_v4  ;;  %5422 = vmatprep.subr.bf16.mxu1 %v9952_v18  ;;  %v9953_v33 = vld [vmem:[%s16569_s3 + $0xa0] ss:$16 sps:$4 sm:$0xff]  }
 0x65f   : > { %v4401_v36 = vadd.f32 %v4400_v49, %v4358_v38  ;;  %4967 = vmatmul.mubr.bf16.gmra.mxu0 %v4917_v52  ;;  %v9974_v38 = vld [vmem:[%s16569_s3 + $0x220] ss:$16 sps:$4 sm:$0xff]  }
 0x660   : > { %v4402_v51 = vpop.f32.mrf.mxu1  ;;  %5382 = vmatpush1.bf16.msra.mxu0 %v9953_v33  ;;  %v9978_v49 = vld [vmem:[%s16569_s3 + $0x200] ss:$16 sps:$4 sm:$0xff]  }
 0x661   : > { %v4403_v16 = vadd.f32 %v4402_v51, %v4360_v22  ;;  %5423 = vmatpush1.bf16.msra.mxu1 %v9954_v24  ;;  %5383 = vmatprep.subr.bf16.mxu0 %v9955_v21  ;;  %v9980_v51 = vld [vmem:[%s16569_s3 + $0x3e4] ss:$16 sps:$4 sm:$0xff]   ;;  %v9981_v24 = vld [vmem:[%s16569_s3 + $0x1c0] ss:$16 sps:$4 sm:$0xff]  }
 0x662   : > { %v4404_v29 = vpop.f32.mrf.mxu1  ;;  %5424 = vmatprep.subr.bf16.mxu1 %v9956_v14  ;;  %v9983_v14 = vld [vmem:[%s16569_s3 + $0x1a4] ss:$16 sps:$4 sm:$0xff]  }
 0x663   : > { %v4405_v6 = vadd.f32 %v4404_v29, %v4362_v53  ;;  %v9977_v53 = vld [vmem:[%s16569_s3 + $0x1e0] ss:$16 sps:$4 sm:$0xff]  }
 0x664   : > { %5020 = vmatmul.mubr.bf16.gmra.mxu1 %v4917_v52  ;;  %5384 = vmatpush1.bf16.msra.mxu0 %v9957_v19  ;;  %v9979_v52 = vld [vmem:[%s16569_s3 + $0x1c4] ss:$16 sps:$4 sm:$0xff]   ;;  %v9982_v29 = vld [vmem:[%s16569_s3 + $0x3e0] ss:$16 sps:$4 sm:$0xff]  }
 0x665   : > { %5425 = vmatpush1.bf16.msra.mxu1 %v9958_v2  ;;  %5385 = vmatprep.subr.bf16.mxu0 %v9959_v20  ;;  %v9985_v19 = vld [vmem:[%s16569_s3 + $0x1a0] ss:$16 sps:$4 sm:$0xff]   ;;  %v9987_v20 = vld [vmem:[%s16569_s3 + $0x184] ss:$16 sps:$4 sm:$0xff]  }
 0x666   : > { %5426 = vmatprep.subr.bf16.mxu1 %v9960_v57  ;;  %v9986_v2 = vld [vmem:[%s16569_s3 + $0x3c0] ss:$16 sps:$4 sm:$0xff]   ;;  %v9988_v57 = vld [vmem:[%s16569_s3 + $0x3a4] ss:$16 sps:$4 sm:$0xff]  }
 0x668   : > { %5386 = vmatpush1.bf16.msra.mxu0 %v9961_v44  ;;  %v9989_v44 = vld [vmem:[%s16569_s3 + $0x180] ss:$16 sps:$4 sm:$0xff]  }
 0x669   : > { %5427 = vmatpush1.bf16.msra.mxu1 %v9962_v27  ;;  %5387 = vmatprep.subr.bf16.mxu0 %v9963_v45  ;;  %v9990_v27 = vld [vmem:[%s16569_s3 + $0x3a0] ss:$16 sps:$4 sm:$0xff]   ;;  %v9991_v45 = vld [vmem:[%s16569_s3 + $0x164] ss:$16 sps:$4 sm:$0xff]  }
 0x66a   : > { %5428 = vmatprep.subr.bf16.mxu1 %v9964_v28  ;;  %v9992_v28 = vld [vmem:[%s16569_s3 + $0x384] ss:$16 sps:$4 sm:$0xff]  }
 0x66c   : > { %5388 = vmatpush1.bf16.msra.mxu0 %v9965_v15  ;;  %v9993_v15 = vld [vmem:[%s16569_s3 + $0x160] ss:$16 sps:$4 sm:$0xff]  }
 0x66d   : > { %5429 = vmatpush1.bf16.msra.mxu1 %v9966_v60  ;;  %5389 = vmatprep.subr.bf16.mxu0 %v9967_v46  ;;  %v9994_v60 = vld [vmem:[%s16569_s3 + $0x380] ss:$16 sps:$4 sm:$0xff]   ;;  %v9995_v46 = vld [vmem:[%s16569_s3 + $0x144] ss:$16 sps:$4 sm:$0xff]  }
 0x66e   : > { %5430 = vmatprep.subr.bf16.mxu1 %v9968_v31  ;;  %v9996_v31 = vld [vmem:[%s16569_s3 + $0x364] ss:$16 sps:$4 sm:$0xff]  }
 0x66f   : > { %v4441_v17 = vpop.f32.mrf.mxu0 }
 0x670   : > { %v4442_v8 = vadd.f32 %v4441_v17, %v4399_v54  ;;  %5390 = vmatpush1.bf16.msra.mxu0 %v9969_v48  ;;  %v9997_v17 = vld [vmem:[%s16569_s3 + $0x140] ss:$16 sps:$4 sm:$0xff]   ;;  %v9999_v48 = vld [vmem:[%s16569_s3 + $0x124] ss:$16 sps:$4 sm:$0xff]  }
 0x671   : > { %v4443_v56 = vpop.f32.mrf.mxu0  ;;  %5431 = vmatpush1.bf16.msra.mxu1 %v9970_v42  ;;  %5391 = vmatprep.subr.bf16.mxu0 %v9971_v25  ;;  %v10001_v42 = vld [vmem:[%s16569_s3 + $0x120] ss:$16 sps:$4 sm:$0xff]  }
 0x672   : > { %v4444_v50 = vadd.f32 %v4443_v56, %v4401_v36  ;;  %5432 = vmatprep.subr.bf16.mxu1 %v9972_v37  ;;  %v4665_v58 = vmax.f32 %v4442_v8, 0.0  ;;  %v9998_v8 = vld [vmem:[%s16569_s3 + $0x360] ss:$16 sps:$4 sm:$0xff]   ;;  %v10000_v56 = vld [vmem:[%s16569_s3 + $0x344] ss:$16 sps:$4 sm:$0xff]  }
 0x673   : > { %v4445_v10 = vpop.f32.mrf.mxu0  ;;  %v10002_v25 = vld [vmem:[%s16569_s3 + $0x340] ss:$16 sps:$4 sm:$0xff]   ;;  %v10004_v37 = vld [vmem:[%s16569_s3 + $0x324] ss:$16 sps:$4 sm:$0xff]  }
 0x674   : > { %v4446_v1 = vadd.f32 %v4445_v10, %v4403_v16  ;;  %5392 = vmatpush1.bf16.msra.mxu0 %v9973_v0  ;;  %v4666_v39 = vmax.f32 %v4444_v50, 0.0  ;;  %v4681_v54 = vrot.slane %v4665_v58, 7  ;;  %v10003_v50 = vld [vmem:[%s16569_s3 + $0x104] ss:$16 sps:$4 sm:$0xff]   ;;  %v10005_v10 = vld [vmem:[%s16569_s3 + $0x100] ss:$16 sps:$4 sm:$0xff]  }
 0x675   : > { %v4447_v11 = vpop.f32.mrf.mxu0  ;;  %5433 = vmatpush1.bf16.msra.mxu1 %v9974_v38  ;;  %5393 = vmatprep.subr.bf16.mxu0 %v9975_v55  ;;  %v10008_v0 = vld [vmem:[%s16569_s3 + $0x304] ss:$16 sps:$4 sm:$0xff]  }
 0x676   : > { %v4669_v22 = vmax.f32 %v4446_v1, 0.0  ;;  %v4448_v23 = vadd.f32 %v4447_v11, %v4405_v6  ;;  %5434 = vmatprep.subr.bf16.mxu1 %v9976_v30  ;;  %v4684_v4 = vrot.slane %v4666_v39, 7  ;;  %v9984_v6 = vld [vmem:[%s16569_s3 + $0x3c4] ss:$16 sps:$4 sm:$0xff]   ;;  %v10009_v11 = vld [vmem:[%s16569_s3 + $0x300] ss:$16 sps:$4 sm:$0xff]  }
 0x677   : > { %v10007_v1 = vld [vmem:[%s16569_s3 + $0x4e4] ss:$16 sps:$4 sm:$0xff]  }
 0x678   : > { %v4682_v59 = vrot.slane %v4669_v22, 7  ;;  %v4670_v35 = vmax.f32 %v4448_v23, 0.0  ;;  %5394 = vmatpush2.bf16.msra.mxu0 %v9977_v53  ;;  %v10010_v38 = vld [vmem:[%s16569_s3 + $0x6e4] ss:$16 sps:$4 sm:$0xff]  }
 0x679   : > { %5435 = vmatpush1.bf16.msra.mxu1 %v9978_v49  ;;  %5395 = vmatprep.subr.bf16.mxu0 %v9979_v52 }
 0x67a   : > { %v4683_v18 = vsel %vm1328_vm10, %v4681_v54, %v4682_v59  ;;  %v4685_v36 = vrot.slane %v4670_v35, 7  ;;  %5436 = vmatprep.subr.bf16.mxu1 %v9980_v51 }
 0x67b   : > { %v13615_v33 = vmax.f32 %v4665_v58, %v4683_v18  ;;  %v10006_v58 = vld [vmem:[%s16569_s3 + $0x320] ss:$16 sps:$4 sm:$0xff]  }
 0x67c   : > { %v4686_v16 = vsel %vm1328_vm10, %v4684_v4, %v4685_v36  ;;  %5396 = vmatpush2.bf16.msra.mxu0 %v9981_v24 }
 0x67d   : > { %v13621_v21 = vmax.f32 %v4666_v39, %v4686_v16  ;;  %5437 = vmatpush2.bf16.msra.mxu1 %v9982_v29  ;;  %5397 = vmatprep.subr.bf16.mxu0 %v9983_v14 }
 0x67e   : > { %5438 = vmatprep.subr.bf16.mxu1 %v9984_v6 }
 0x680   : > { %5398 = vmatpush2.bf16.msra.mxu0 %v9985_v19 }
 0x681   : > { %5439 = vmatpush2.bf16.msra.mxu1 %v9986_v2  ;;  %5399 = vmatprep.subr.bf16.mxu0 %v9987_v20 }
 0x682   : > { %5440 = vmatprep.subr.bf16.mxu1 %v9988_v57 }
 0x684   : > { %5400 = vmatpush2.bf16.msra.mxu0 %v9989_v44 }
 0x685   : > { %5441 = vmatpush2.bf16.msra.mxu1 %v9990_v27  ;;  %5401 = vmatprep.subr.bf16.mxu0 %v9991_v45 }
 0x686   : > { %5442 = vmatprep.subr.bf16.mxu1 %v9992_v28 }
 0x688   : > { %5402 = vmatpush2.bf16.msra.mxu0 %v9993_v15 }
 0x689   : > { %5443 = vmatpush2.bf16.msra.mxu1 %v9994_v60  ;;  %5403 = vmatprep.subr.bf16.mxu0 %v9995_v46 }
 0x68a   : > { %5444 = vmatprep.subr.bf16.mxu1 %v9996_v31 }
 0x68c   : > { %5404 = vmatpush2.bf16.msra.mxu0 %v9997_v17 }
 0x68d   : > { %5445 = vmatpush2.bf16.msra.mxu1 %v9998_v8  ;;  %5405 = vmatprep.subr.bf16.mxu0 %v9999_v48 }
 0x68e   : > { %5446 = vmatprep.subr.bf16.mxu1 %v10000_v56 }
 0x690   : > { %5406 = vmatpush2.bf16.msra.mxu0 %v10001_v42 }
 0x691   : > { %5447 = vmatpush2.bf16.msra.mxu1 %v10002_v25  ;;  %5407 = vmatprep.subr.bf16.mxu0 %v10003_v50 }
 0x692   : > { %5448 = vmatprep.subr.bf16.mxu1 %v10004_v37 }
 0x694   : > { %5408 = vmatpush2.bf16.msra.mxu0 %v10005_v10 }
 0x695   : > { %5449 = vmatpush2.bf16.msra.mxu1 %v10006_v58  ;;  %5463 = vmatprep.subr.bf16.mxu0 %v10007_v1 }
 0x696   : > { %5450 = vmatprep.subr.bf16.mxu1 %v10008_v0 }
 0x699   : > { %5451 = vmatpush2.bf16.msra.mxu1 %v10009_v11 }
 0x69a   : > { %5506 = vmatprep.subr.bf16.mxu1 %v10010_v38 }
 0x69c   : > { %v4484_v55 = vpop.f32.mrf.mxu1 }
 0x69d   : > { %v4485_v23 = vadd.f32 %v4484_v55, %v12435_v34 }
 0x69e   : > { %v4486_v39 = vpop.f32.mrf.mxu1 }
 0x69f   : > { %v4487_v54 = vadd.f32 %v4486_v39, %v12440_v43 }
 0x6a0   : > { %v4488_v22 = vpop.f32.mrf.mxu1 }
 0x6a1   : > { %v4489_v49 = vadd.f32 %v4488_v22, %v12435_v34 }
 0x6a2   : > { %v4490_v35 = vpop.f32.mrf.mxu1 }
 0x6a3   : > { %v4491_v18 = vadd.f32 %v4490_v35, %v12440_v43 }
 0x6af   : > { %v4527_v30 = vpop.f32.mrf.mxu0 }
 0x6b0   : > { %v4528_v59 = vadd.f32 %v4527_v30, %v4485_v23 }
 0x6b1   : > { %v4529_v53 = vpop.f32.mrf.mxu0 }
 0x6b2   : > { %v4530_v52 = vadd.f32 %v4529_v53, %v4487_v54 }
 0x6b3   : > { %v4531_v4 = vpop.f32.mrf.mxu0 }
 0x6b4   : > { %v4532_v36 = vadd.f32 %v4531_v4, %v4489_v49 }
 0x6b5   : > { %v4533_v51 = vpop.f32.mrf.mxu0 }
 0x6b6   : > { %v4534_v16 = vadd.f32 %v4533_v51, %v4491_v18 }
 0x6dc   : > { %v4570_v24 = vpop.f32.mrf.mxu1 }
 0x6dd   : > { %v4571_v29 = vadd.f32 %v4570_v24, %v4528_v59 }
 0x6de   : > { %v4572_v14 = vpop.f32.mrf.mxu1 }
 0x6df   : > { %v4573_v6 = vadd.f32 %v4572_v14, %v4530_v52 }
 0x6e0   : > { %v4574_v19 = vpop.f32.mrf.mxu1 }
 0x6e1   : > { %v4575_v2 = vadd.f32 %v4574_v19, %v4532_v36 }
 0x6e2   : > { %v4576_v20 = vpop.f32.mrf.mxu1 }
 0x6e3   : > { %v4577_v57 = vadd.f32 %v4576_v20, %v4534_v16 }
 0x6ef   : > { %v4613_v44 = vpop.f32.mrf.mxu0 }
 0x6f0   : > { %v4614_v27 = vadd.f32 %v4613_v44, %v4571_v29 }
 0x6f1   : > { %v4615_v45 = vpop.f32.mrf.mxu0 }
 0x6f2   : > { %v4616_v28 = vadd.f32 %v4615_v45, %v4573_v6 }
 0x6f3   : > { %v4617_v15 = vpop.f32.mrf.mxu0 }
 0x6f4   : > { %v4618_v60 = vadd.f32 %v4617_v15, %v4575_v2  ;;  %v4656_v46 = vpop.f32.mrf.mxu1 }
 0x6f5   : > { %v4657_v31 = vadd.f32 %v4656_v46, %v4614_v27  ;;  %v4619_v17 = vpop.f32.mrf.mxu0 }
 0x6f6   : > { %v4620_v8 = vadd.f32 %v4619_v17, %v4577_v57  ;;  %v4658_v48 = vpop.f32.mrf.mxu1 }
 0x6f7   : > { %v4659_v56 = vadd.f32 %v4658_v48, %v4616_v28  ;;  %v4667_v25 = vmax.f32 %v4657_v31, 0.0 }
 0x6f8   : > { %v4660_v42 = vpop.f32.mrf.mxu1 }
 0x6f9   : > { %v4661_v50 = vadd.f32 %v4660_v42, %v4618_v60  ;;  %v4668_v10 = vmax.f32 %v4659_v56, 0.0  ;;  %v4687_v0 = vrot.slane %v4667_v25, 7 }
 0x6fa   : > { %v4662_v37 = vpop.f32.mrf.mxu1 }
 0x6fb   : > { %v4671_v58 = vmax.f32 %v4661_v50, 0.0  ;;  %v4663_v1 = vadd.f32 %v4662_v37, %v4620_v8  ;;  %v4690_v55 = vrot.slane %v4668_v10, 7 }
 0x6fd   : > { %v4688_v11 = vrot.slane %v4671_v58, 7  ;;  %v4672_v38 = vmax.f32 %v4663_v1, 0.0 }
 0x6ff   : > { %v4689_v39 = vsel %vm1328_vm10, %v4687_v0, %v4688_v11  ;;  %v4691_v22 = vrot.slane %v4672_v38, 7 }
 0x700   : > { %v13715_v23 = vmax.f32 %v4667_v25, %v4689_v39 }
 0x701   : > { %v4692_v30 = vsel %vm1328_vm10, %v4690_v55, %v4691_v22 }
 0x702   : > { %v13718_v54 = vmax.f32 %v4668_v10, %v4692_v30 }
 0x717   : > { %v4958_v59 = vpop.f32.mrf.mxu0 }
 0x718   : > { %v4959_v35 = vadd.f32 %v4958_v59, %v10927_v61 }
 0x719   : > { %v4960_v53 = vpop.f32.mrf.mxu0 }
 0x71a   : > { %v4961_v49 = vadd.f32 %v4960_v53, %v10935_v63  ;;  %v5030_v4 = vmax.f32 %v4959_v35, 0.0 }
 0x71b   : > { %v4962_v52 = vpop.f32.mrf.mxu0 }
 0x71c   : > { %v4963_v18 = vadd.f32 %v4962_v52, %v10927_v61  ;;  %v5011_v36 = vpop.f32.mrf.mxu1  ;;  %v5031_v51 = vmax.f32 %v4961_v49, 0.0  ;;  %v5054_v57 = vrot.slane %v5030_v4, 7 }
 0x71d   : > { %v5012_v16 = vadd.f32 %v5011_v36, %v10931_v62  ;;  %v4964_v24 = vpop.f32.mrf.mxu0 }
 0x71e   : > { %v5034_v29 = vmax.f32 %v4963_v18, 0.0  ;;  %v4965_v14 = vadd.f32 %v4964_v24, %v10935_v63  ;;  %v5013_v6 = vpop.f32.mrf.mxu1  ;;  %v5057_v15 = vrot.slane %v5031_v51, 7 }
 0x71f   : > { %v5032_v19 = vmax.f32 %v5012_v16, 0.0  ;;  %v5014_v2 = vadd.f32 %v5013_v6, %v10943_v12  ;;  %v4968_v20 = vpop.f32.mrf.mxu0 }
 0x720   : > { %v5055_v44 = vrot.slane %v5034_v29, 7  ;;  %v5035_v27 = vmax.f32 %v4965_v14, 0.0  ;;  %v4969_v45 = vadd.f32 %v4968_v20, %v10927_v61  ;;  %v5015_v28 = vpop.f32.mrf.mxu1 }
 0x721   : > { %v5060_v60 = vrot.slane %v5032_v19, 7  ;;  %v5033_v46 = vmax.f32 %v5014_v2, 0.0  ;;  %v5016_v31 = vadd.f32 %v5015_v28, %v10931_v62  ;;  %v4970_v17 = vpop.f32.mrf.mxu0 }
 0x722   : > { %v5056_v8 = vsel %vm1328_vm10, %v5054_v57, %v5055_v44  ;;  %v5058_v48 = vrot.slane %v5035_v27, 7  ;;  %v5038_v56 = vmax.f32 %v4969_v45, 0.0  ;;  %v4971_v42 = vadd.f32 %v4970_v17, %v10935_v63  ;;  %v5017_v25 = vpop.f32.mrf.mxu1 }
 0x723   : > { %v13730_v50 = vmax.f32 %v5030_v4, %v5056_v8  ;;  %v5063_v37 = vrot.slane %v5033_v46, 7  ;;  %v5036_v10 = vmax.f32 %v5016_v31, 0.0  ;;  %v5018_v58 = vadd.f32 %v5017_v25, %v10943_v12  ;;  %v4972_v1 = vpop.f32.mrf.mxu0 }
 0x724   : > { %v5082_v0 = vrot.slane %v5038_v56, 7  ;;  %v5039_v11 = vmax.f32 %v4971_v42, 0.0  ;;  %v4973_v38 = vadd.f32 %v4972_v1, %v10927_v61  ;;  %v5021_v55 = vpop.f32.mrf.mxu1  ;;  %v5059_v39 = vsel %vm1328_vm10, %v5057_v15, %v5058_v48 }
 0x725   : > { %v5061_v22 = vrot.slane %v5036_v10, 7  ;;  %v5037_v30 = vmax.f32 %v5018_v58, 0.0  ;;  %v5022_v59 = vadd.f32 %v5021_v55, %v10931_v62  ;;  %v4974_v35 = vpop.f32.mrf.mxu0  ;;  %v5071_v53 = vmax.f32 %v5031_v51, %v5059_v39 }
 0x726   : > { %v13736_v49 = vmax.f32 %v5034_v29, %v5082_v0  ;;  %v5083_v52 = vrot.slane %v5039_v11, 7  ;;  %v5042_v4 = vmax.f32 %v4973_v38, 0.0  ;;  %v4975_v18 = vadd.f32 %v4974_v35, %v10935_v63  ;;  %v5023_v36 = vpop.f32.mrf.mxu1 }
 0x727   : > { %v5064_v16 = vrot.slane %v5037_v30, 7  ;;  %v5040_v24 = vmax.f32 %v5022_v59, 0.0  ;;  %v5024_v14 = vadd.f32 %v5023_v36, %v10943_v12  ;;  %v5062_v6 = vsel %vm1328_vm10, %v5060_v60, %v5061_v22 }
 0x728   : > { %v13741_v2 = vmax.f32 %v5035_v27, %v5083_v52  ;;  %v5086_v20 = vrot.slane %v5042_v4, 7  ;;  %v5043_v57 = vmax.f32 %v4975_v18, 0.0  ;;  %v5025_v44 = vpop.f32.mrf.mxu1  ;;  %v5072_v45 = vmax.f32 %v5032_v19, %v5062_v6 }
 0x729   : > { %v5084_v51 = vrot.slane %v5040_v24, 7  ;;  %v5026_v29 = vadd.f32 %v5025_v44, %v10931_v62  ;;  %v5065_v28 = vsel %vm1328_vm10, %v5063_v37, %v5064_v16  ;;  %v5041_v25 = vmax.f32 %v5024_v14, 0.0 }
 0x72a   : > { %v5087_v15 = vsel %vm1328_vm10, %v5082_v0, %v5086_v20  ;;  %v5088_v31 = vrot.slane %v5043_v57, 7  ;;  %v5027_v17 = vpop.f32.mrf.mxu1  ;;  %v8916_v8 = vpack.i.bf16 %v5072_v45, %v5071_v53  ;;  %v5073_v48 = vmax.f32 %v5033_v46, %v5065_v28 }
 0x72b   : > { %v5106_v42 = vmax.f32 %v5038_v56, %v5087_v15  ;;  %v5044_v60 = vmax.f32 %v5026_v29, 0.0  ;;  %v5028_v58 = vadd.f32 %v5027_v17, %v10943_v12  ;;  %v5104_v1 = vmax.f32 %v5036_v10, %v5084_v51 }
 0x72c   : > { %v5089_v27 = vsel %vm1328_vm10, %v5083_v52, %v5088_v31  ;;  %8917 = vrot.lane.b32.xlu0 %v8916_v8, %s16584_s29  ;;  %v8921_v19 = vpack.i.bf16 %v13741_v2, %v5073_v48  ;;  %v5085_v0 = vrot.slane %v5041_v25, 7 }
 0x72d   : > { %v5090_v38 = vrot.slane %v5044_v60, 7  ;;  %v5107_v37 = vmax.f32 %v5039_v11, %v5089_v27  ;;  %v5045_v55 = vmax.f32 %v5028_v58, 0.0 }
 0x72e   : > { %8922 = vrot.lane.b32.xlu1 %v8921_v19, %s16584_s29  ;;  %v5105_v35 = vmax.f32 %v5037_v30, %v5085_v0 }
 0x72f   : > { %v5091_v46 = vsel %vm1328_vm10, %v5084_v51, %v5090_v38  ;;  %v8926_v56 = vpack.i.bf16 %v5107_v37, %v5104_v1  ;;  %v5092_v39 = vrot.slane %v5045_v55, 7 }
 0x730   : > { %v5108_v22 = vmax.f32 %v5040_v24, %v5091_v46 }
 0x731   : > { %8927 = vrot.lane.b32.xlu0 %v8926_v56, %s16584_s29  ;;  %v5093_v59 = vsel %vm1328_vm10, %v5085_v0, %v5092_v39 }
 0x732   : > { %5141 = vrot.lane.b32.xlu1 %v5108_v22, %s16584_s29  ;;  %v5109_v52 = vmax.f32 %v5041_v25, %v5093_v59 }
 0x734   : > { %v8931_v10 = vpack.i.bf16 %v5109_v52, %v5105_v35 }
 0x736   : > { %8932 = vrot.lane.b32.xlu0 %v8931_v10, %s16584_s29 }
 0x79e   : > { %v8918_v11 = vpop.permute.xlu0 %8917 }
 0x79f   : > { %v8920_v4 = vunpack.i.h.bf16 %v8918_v11  ;;  %v8919_v18 = vunpack.i.l.bf16 %v8918_v11 }
 0x7a0   : > { %v8923_v36 = vpop.permute.xlu1 %8922 }
 0x7a1   : > { %v5119_v16 = vsel %vm844_vm7, %v8919_v18, %v8920_v4  ;;  %v8924_v14 = vunpack.i.l.bf16 %v8923_v36  ;;  %v8925_v51 = vunpack.i.h.bf16 %v8923_v36 }
 0x7a2   : > { %v5123_v24 = vmax.f32 %v13730_v50, %v5119_v16 }
 0x7a3   : > { %v5120_v6 = vsel %vm844_vm7, %v8920_v4, %v8924_v14  ;;  %v8928_v20 = vpop.permute.xlu0 %8927 }
 0x7a4   : > { %v5125_v57 = vpack.c.bf16 %v5123_v24, %v5123_v24  ;;  %v5124_v44 = vmax.f32 %v5071_v53, %v5120_v6  ;;  %v8930_v45 = vunpack.i.h.bf16 %v8928_v20  ;;  %v8929_v30 = vunpack.i.l.bf16 %v8928_v20  ;;  %v5142_v29 = vpop.permute.xlu1 %5141 }
 0x7a6   : > { %v5160_v28 = vshrl.u32 %v5125_v57, 16  ;;  %v5126_v15 = vpack.c.bf16 %v5124_v44, %v5124_v44  ;;  %v5147_v31 = vsel %vm844_vm7, %v8930_v45, %v5142_v29  ;;  %v5145_v8 = vsel %vm844_vm7, %v8925_v51, %v8929_v30 }
 0x7a7   : > { %v5155_v17 = vmax.f32 %v5106_v42, %v5147_v31  ;;  %v5163_v25 = vshll.u32 %v5125_v57, 16  ;;  %v5153_v50 = vmax.f32 %v13736_v49, %v5145_v8 }
 0x7a8   : > { %v5162_v48 = vrot.slane %v5160_v28, 7  ;;  %v5167_v60 = vshrl.u32 %v5126_v15, 16  ;;  %v5170_v27 = vshll.u32 %v5126_v15, 16  ;;  %v8933_v58 = vpop.permute.xlu0 %8932 }
 0x7a9   : > { %v5157_v1 = vpack.c.bf16 %v5155_v17, %v5153_v50  ;;  %v8935_v38 = vunpack.i.h.bf16 %v8933_v58  ;;  %v8934_v55 = vunpack.i.l.bf16 %v8933_v58 }
 0x7aa   : > { %v5165_v19 = vor.u32 %v5163_v25, %v5162_v48  ;;  %v5169_v53 = vrot.slane %v5167_v60, 7 }
 0x7ab   : > { %v5148_v46 = vsel %vm844_vm7, %v5142_v29, %v8935_v38  ;;  %v5183_v56 = vshrl.u32 %v5157_v1, 16  ;;  %v5146_v22 = vsel %vm844_vm7, %v8929_v30, %v8934_v55  ;;  %v5186_v49 = vshll.u32 %v5157_v1, 16 }
 0x7ac   : > { %v5172_v0 = vor.u32 %v5170_v27, %v5169_v53  ;;  %v5175_v42 = vsel %vm11161_vm12, 0, %v5165_v19  ;;  %v5156_v39 = vmax.f32 %v5107_v37, %v5148_v46  ;;  %v5154_v35 = vmax.f32 %v13741_v2, %v5146_v22 }
 0x7ad   : > { %v5178_v59 = vsel %vm954_vm1, %v5175_v42, 0  ;;  %v5185_v4 = vrot.slane %v5183_v56, 2  ;;  %v5188_v18 = vrot.slane %v5186_v49, 3 }
 0x7ae   : > { %v5216_v52 = vshll.u32 %v5178_v59, 16  ;;  %v5176_v10 = vsel %vm11161_vm12, 0, %v5172_v0  ;;  %v5158_v36 = vpack.c.bf16 %v5156_v39, %v5154_v35  ;;  %v5214_v16 = vshrl.u32 %v5178_v59, 16 }
 0x7af   : > { %v13771_v11 = vsel %vm954_vm1, %v5176_v10, 0  ;;  %v5189_v6 = vor.u32 %v5188_v18, %v5185_v4  ;;  %v5252_v42 = vrot.slane %v5178_v59, 1  ;;  %v13815_v4 = vld [vmem:[%s10730_s20 + $0x38] sm:$0xf] }
 0x7b0   : > { %v5218_v14 = vrot.slane %v5216_v52, 1  ;;  %v5222_v37 = vshll.u32 %v13771_v11, 16  ;;  %v5220_v24 = vshrl.u32 %v13771_v11, 16  ;;  %v5191_v2 = vshrl.u32 %v5158_v36, 16  ;;  %v13810_v52 = vld [vmem:[%s10730_s20 + $0x30] sm:$0xf] }
 0x7b1   : > { %v5194_v44 = vshll.u32 %v5158_v36, 16  ;;  %v5200_v45 = vsel %vm11161_vm12, 0, %v5189_v6  ;;  %v8575_v10 = vcombine.low %v13810_v52, %v13810_v52  ;;  %v8573_v18 = vcombine.low %v13815_v4, %v13815_v4  ;;  %v13820_v36 = vld [vmem:[%s10730_s20 + $0x3c] sm:$0xf] }
 0x7b2   : > { %v5219_v20 = vor.u32 %v5218_v14, %v5214_v16  ;;  %v5224_v57 = vrot.slane %v5222_v37, 1  ;;  %v5203_v51 = vsel %vm954_vm1, %v5200_v45, 0  ;;  %v5193_v29 = vrot.slane %v5191_v2, 2 }
 0x7b3   : > { %v5196_v28 = vrot.slane %v5194_v44, 3  ;;  %v5234_v15 = vshll.u32 %v5203_v51, 16  ;;  %v5282_v31 = vrot.slane %v5203_v51, 1  ;;  %v5232_v17 = vshrl.u32 %v5203_v51, 16 }
 0x7b4   : > { %5267 = vrot.lane.b32.xlu1 %v5219_v20, %s10609_s19  ;;  %v5225_v30 = vor.u32 %v5224_v57, %v5220_v24  ;;  %v5938_v16 = vshll.u32 %v8575_v10, 16  ;;  %v13824_v14 = vcombine.low %v13820_v36, %v13820_v36  ;;  %v5936_v37 = vshrl.u32 %v8575_v10, 16 }
 0x7b5   : > { %v5197_v8 = vor.u32 %v5196_v28, %v5193_v29  ;;  %v5293_v48 = vrot.slane %v5234_v15, 5  ;;  %v5236_v25 = vrot.slane %v5234_v15, 1  ;;  %v5292_v60 = vrot.slane %v5232_v17, 4 }
 0x7b6   : > { %5269 = vrot.lane.b32.xlu0 %v5225_v30, %s10609_s19  ;;  %v5341_v50 = vshrl.u32 %v5282_v31, 16  ;;  %v5344_v58 = vshll.u32 %v5282_v31, 16  ;;  %v5940_v24 = vrot.slane %v5938_v16, 1  ;;  %v5980_v29 = vshll.u32 %v8573_v18, 16 }
 0x7b7   : > { %v5201_v27 = vsel %vm11161_vm12, 0, %v5197_v8  ;;  %v5237_v19 = vor.u32 %v5236_v25, %v5232_v17  ;;  %v5294_v53 = vor.u32 %v5293_v48, %v5292_v60  ;;  %v5978_v8 = vshrl.u32 %v8573_v18, 16 }
 0x7b8   : > { %v13783_v1 = vsel %vm954_vm1, %v5201_v27, 0  ;;  %v5343_v38 = vrot.slane %v5341_v50, 4  ;;  %v5346_v0 = vrot.slane %v5344_v58, 5  ;;  %v13829_v6 = vor.u32 %v5940_v24, %v5936_v37  ;;  %v10011_v24 = vld [vmem:[%s16569_s3 + $0x4e0] ss:$16 sps:$4 sm:$0xff]  }
 0x7b9   : > { %v5240_v55 = vshll.u32 %v13783_v1, 16  ;;  %5272 = vrot.lane.b32.xlu1 %v5237_v19, %s10608_s9  ;;  %v13790_v46 = vsel %vm10856_vm5, %v5178_v59, %v5294_v53  ;;  %v5238_v49 = vshrl.u32 %v13783_v1, 16  ;;  %v5253_v59 = vrot.slane %v13771_v11, 1 }
 0x7ba   : > { %5208 = vrot.lane.b32.xlu0 %v5203_v51, %s10609_s19  ;;  %v5347_v56 = vor.u32 %v5346_v0, %v5343_v38  ;;  %v5982_v48 = vrot.slane %v5980_v29, 1 }
 0x7bb   : > { %v5242_v39 = vrot.slane %v5240_v55, 1 }
 0x7bc   : > { %v13795_v22 = vsel %vm10856_vm5, %v5252_v42, %v5347_v56  ;;  %v13857_v27 = vor.u32 %v5982_v48, %v5978_v8 }
 0x7bd   : > { %5210 = vrot.lane.b32.xlu1 %v13783_v1, %s10609_s19  ;;  %v5243_v35 = vor.u32 %v5242_v39, %v5238_v49 }
 0x7be   : > { %5226 = vrot.lane.b32.xlu0 %v5219_v20, %s10608_s9  ;;  %v13834_v20 = vld [vmem:[%s10730_s20 + $0x34] sm:$0xf]  ;;  %s16531_s20 = scalar_lea.hbm %s16573_s7, %s8684_s15 }
 0x7bf   : > { %v8572_v57 = vcombine.low %v13834_v20, %v13834_v20 }
 0x7c1   : > { %5274 = vrot.lane.b32.xlu1 %v5243_v35, %s10608_s9  ;;  %v5958_v2 = vshrl.u32 %v8572_v57, 16  ;;  %v5960_v44 = vshll.u32 %v8572_v57, 16 }
 0x7c2   : > { %5277 = vrot.lane.b32.xlu0 %v5252_v42, %s16584_s29 }
 0x7c3   : > { %v5962_v45 = vrot.slane %v5960_v44, 1 }
 0x7c5   : > { %5279 = vrot.lane.b32.xlu1 %v5253_v59, %s16584_s29 }
 0x7c6   : > { %5228 = vrot.lane.b32.xlu0 %v5225_v30, %s10608_s9  ;;  %v13843_v30 = vor.u32 %v5962_v45, %v5958_v2  ;;  %v10012_v2 = vld [vmem:[%s16569_s3 + $0x4c4] ss:$16 sps:$4 sm:$0xff]  }
 0x7c9   : > { %5244 = vrot.lane.b32.xlu1 %v5237_v19, %s16584_s29 }
 0x7ca   : > { %5246 = vrot.lane.b32.xlu0 %v5243_v35, %s16584_s29 }
 0x7cd   : > { %5951 = vrot.lane.b32.xlu1 %v8573_v18, %s16584_s29 }
 0x7ce   : > { %5953 = vrot.lane.b32.xlu0 %v13824_v14, %s10608_s9 }
 0x7d1   : > { %5955 = vrot.lane.b32.xlu1 %v13829_v6, %s10609_s19 }
 0x7d2   : > { %5971 = vrot.lane.b32.xlu0 %v13824_v14, %s16584_s29 }
 0x7d5   : > { %5920 = vrot.lane.b32.xlu1 %v8572_v57, %s16584_s29 }
 0x7d6   : > { %5973 = vrot.lane.b32.xlu0 %v13829_v6, %s10608_s9 }
 0x7d9   : > { %5925 = vrot.lane.b32.xlu1 %v8573_v18, %s10608_s9 }
 0x7da   : > { %5975 = vrot.lane.b32.xlu0 %v13843_v30, %s10609_s19 }
 0x7dd   : > { %5930 = vrot.lane.b32.xlu1 %v13824_v14, %s10609_s19 }
 0x7de   : > { %5991 = vrot.lane.b32.xlu0 %v13829_v6, %s16584_s29 }
 0x7e1   : > { %5993 = vrot.lane.b32.xlu1 %v13843_v30, %s10608_s9 }
 0x7e2   : > { %5995 = vrot.lane.b32.xlu0 %v13857_v27, %s10609_s19 }
 0x826   : > { %v5268_v51 = vpop.permute.xlu1 %5267 }
 0x827   : > { %v5285_v28 = vsel %vm851_vm9, %v13783_v1, %v5268_v51 }
 0x828   : > { %v5295_v15 = vshrl.u32 %v5285_v28, 16  ;;  %v5298_v31 = vshll.u32 %v5285_v28, 16  ;;  %v5270_v17 = vpop.permute.xlu0 %5269 }
 0x829   : > { %v5271_v25 = vsel %vm851_vm9, %v5268_v51, %v5270_v17 }
 0x82a   : > { %v5297_v60 = vrot.slane %v5295_v15, 4  ;;  %v5300_v50 = vrot.slane %v5298_v31, 5  ;;  %v5303_v19 = vshrl.u32 %v5271_v25, 16  ;;  %v5306_v53 = vshll.u32 %v5271_v25, 16  ;;  %v10013_v15 = vld [vmem:[%s16569_s3 + $0x4c0] ss:$16 sps:$4 sm:$0xff]  }
 0x82b   : > { %v13861_v0 = vpop.permute.xlu1 %5272  ;;  %v10014_v25 = vld [vmem:[%s16569_s3 + $0x4a4] ss:$16 sps:$4 sm:$0xff]  }
 0x82c   : > { %v5301_v58 = vor.u32 %v5300_v50, %v5297_v60  ;;  %v5209_v38 = vpop.permute.xlu0 %5208  ;;  %v5288_v42 = vsel %vm848_vm8, %v5270_v17, %v13861_v0  ;;  %v5305_v35 = vrot.slane %v5303_v19, 4  ;;  %v5308_v10 = vrot.slane %v5306_v53, 5 }
 0x82d   : > { %v5257_v55 = vsel %vm851_vm9, %v13771_v11, %v5209_v38  ;;  %v5310_v39 = vshrl.u32 %v5288_v42, 16  ;;  %v5313_v49 = vshll.u32 %v5288_v42, 16  ;;  %v10017_v42 = vld [vmem:[%s16569_s3 + $0x6c4] ss:$16 sps:$4 sm:$0xff]   ;;  %v10097_v11 = vld [vmem:[%s16569_s3 + $0x4c] ss:$16 sps:$4 sm:$0xff]  }
 0x82e   : > { %v13869_v56 = vsel %vm10856_vm5, %v5257_v55, %v5301_v58  ;;  %v5309_v51 = vor.u32 %v5308_v10, %v5305_v35  ;;  %v10015_v58 = vld [vmem:[%s16569_s3 + $0x6e0] ss:$16 sps:$4 sm:$0xff]  }
 0x82f   : > { %5409 = vmatprep.mubr.bf16.mxu0 %v13869_v56  ;;  %v5312_v16 = vrot.slane %v5310_v39, 4  ;;  %v5315_v37 = vrot.slane %v5313_v49, 5  ;;  %v5211_v57 = vpop.permute.xlu1 %5210  ;;  %v10018_v39 = vld [vmem:[%s16569_s3 + $0x484] ss:$16 sps:$4 sm:$0xff]   ;;  %v10019_v49 = vld [vmem:[%s16569_s3 + $0x6c0] ss:$16 sps:$4 sm:$0xff]  }
 0x830   : > { %v13872_v18 = vpop.permute.xlu0 %5226  ;;  %5410 = vmatmul.mubr.bf16.vlgmr.msra.gmra.mxu0 %v13790_v46  ;;  %v5212_v45 = vsel %vm851_vm9, %v5209_v38, %v5211_v57  ;;  %v10016_v38 = vld [vmem:[%s16569_s3 + $0x4a0] ss:$16 sps:$4 sm:$0xff]  }
 0x831   : > { %5464 = vmatpush1.bf16.msra.mxu0 %v10011_v24  ;;  %v5316_v44 = vor.u32 %v5315_v37, %v5312_v16  ;;  %v5261_v29 = vsel %vm848_vm8, %v5211_v57, %v13872_v18  ;;  %v13897_v8 = vsel %vm10856_vm5, %v5212_v45, %v5309_v51  ;;  %v10020_v16 = vld [vmem:[%s16569_s3 + $0x480] ss:$16 sps:$4 sm:$0xff]   ;;  %v10021_v24 = vld [vmem:[%s16569_s3 + $0x6a4] ss:$16 sps:$4 sm:$0xff]  }
 0x832   : > { %5465 = vmatprep.subr.bf16.mxu0 %v10012_v2  ;;  %v10022_v2 = vld [vmem:[%s16569_s3 + $0x464] ss:$16 sps:$4 sm:$0xff]   ;;  %v10023_v45 = vld [vmem:[%s16569_s3 + $0x6a0] ss:$16 sps:$4 sm:$0xff]  }
 0x833   : > { %v13889_v31 = vpop.permute.xlu1 %5274  ;;  %v13893_v17 = vsel %vm10856_vm5, %v5261_v29, %v5316_v44  ;;  %v10024_v51 = vld [vmem:[%s16569_s3 + $0x460] ss:$16 sps:$4 sm:$0xff]   ;;  %v10025_v29 = vld [vmem:[%s16569_s3 + $0x684] ss:$16 sps:$4 sm:$0xff]  }
 0x834   : > { %v13884_v28 = vpop.permute.xlu0 %5277  ;;  %5452 = vmatprep.mubr.bf16.mxu1 %v13893_v17 }
 0x835   : > { %5466 = vmatpush1.bf16.msra.mxu0 %v10013_v15  ;;  %v5291_v48 = vsel %vm844_vm7, %v13889_v31, %v13884_v28  ;;  %5453 = vmatmul.mubr.bf16.vlgmr.msra.gmra.mxu1 %v13897_v8  ;;  %v10026_v15 = vld [vmem:[%s16569_s3 + $0x444] ss:$16 sps:$4 sm:$0xff]  }
 0x836   : > { %5467 = vmatprep.subr.bf16.mxu0 %v10014_v25  ;;  %v5325_v60 = vshrl.u32 %v5291_v48, 16  ;;  %v5328_v50 = vshll.u32 %v5291_v48, 16  ;;  %5507 = vmatpush1.bf16.msra.mxu1 %v10015_v58  ;;  %v10027_v48 = vld [vmem:[%s16569_s3 + $0x680] ss:$16 sps:$4 sm:$0xff]  }
 0x837   : > { %5538 = vmatprep.mubr.bf16.mxu1 %v13795_v22  ;;  %v13914_v55 = vpop.permute.xlu1 %5279  ;;  %5508 = vmatprep.subr.bf16.mxu1 %v10017_v42  ;;  %v10028_v25 = vld [vmem:[%s16569_s3 + $0x440] ss:$16 sps:$4 sm:$0xff]  }
 0x838   : > { %v5327_v19 = vrot.slane %v5325_v60, 4  ;;  %v5330_v53 = vrot.slane %v5328_v50, 5  ;;  %v13925_v10 = vpop.permute.xlu0 %5228  ;;  %v10029_v60 = vld [vmem:[%s16569_s3 + $0x664] ss:$16 sps:$4 sm:$0xff]   ;;  %v10031_v58 = vld [vmem:[%s16569_s3 + $0x660] ss:$16 sps:$4 sm:$0xff]  }
 0x839   : > { %5468 = vmatpush1.bf16.msra.mxu0 %v10016_v38  ;;  %v10030_v50 = vld [vmem:[%s16569_s3 + $0x424] ss:$16 sps:$4 sm:$0xff]   ;;  %v10035_v42 = vld [vmem:[%s16569_s3 + $0x640] ss:$16 sps:$4 sm:$0xff]  }
 0x83a   : > { %5469 = vmatprep.subr.bf16.mxu0 %v10018_v39  ;;  %5509 = vmatpush1.bf16.msra.mxu1 %v10019_v49  ;;  %v5331_v35 = vor.u32 %v5330_v53, %v5327_v19  ;;  %v10032_v19 = vld [vmem:[%s16569_s3 + $0x420] ss:$16 sps:$4 sm:$0xff]   ;;  %v10033_v53 = vld [vmem:[%s16569_s3 + $0x644] ss:$16 sps:$4 sm:$0xff]  }
 0x83b   : > { %v13930_v37 = vpop.permute.xlu1 %5244  ;;  %5510 = vmatprep.subr.bf16.mxu1 %v10021_v24  ;;  %v10034_v38 = vld [vmem:[%s16569_s3 + $0x404] ss:$16 sps:$4 sm:$0xff]   ;;  %v10036_v39 = vld [vmem:[%s16569_s3 + $0x400] ss:$16 sps:$4 sm:$0xff]  }
 0x83c   : > { %v5265_v57 = vsel %vm844_vm7, %v13925_v10, %v13930_v37  ;;  %v10037_v49 = vld [vmem:[%s16569_s3 + $0x624] ss:$16 sps:$4 sm:$0xff]   ;;  %v10040_v24 = vld [vmem:[%s16569_s3 + $0x5e0] ss:$16 sps:$4 sm:$0xff]  }
 0x83d   : > { %5470 = vmatpush1.bf16.msra.mxu0 %v10020_v16  ;;  %v13943_v44 = vsel %vm10856_vm5, %v5265_v57, %v5331_v35  ;;  %v10038_v35 = vld [vmem:[%s16569_s3 + $0x5e4] ss:$16 sps:$4 sm:$0xff]   ;;  %v10039_v16 = vld [vmem:[%s16569_s3 + $0x620] ss:$16 sps:$4 sm:$0xff]  }
 0x83e   : > { %5471 = vmatprep.subr.bf16.mxu0 %v10022_v2  ;;  %5511 = vmatpush1.bf16.msra.mxu1 %v10023_v45  ;;  %v10041_v57 = vld [vmem:[%s16569_s3 + $0x604] ss:$16 sps:$4 sm:$0xff]   ;;  %v10043_v45 = vld [vmem:[%s16569_s3 + $0x600] ss:$16 sps:$4 sm:$0xff]  }
 0x83f   : > { %5495 = vmatprep.mubr.bf16.mxu0 %v13943_v44  ;;  %5512 = vmatprep.subr.bf16.mxu1 %v10025_v29  ;;  %v10042_v2 = vld [vmem:[%s16569_s3 + $0x5c4] ss:$16 sps:$4 sm:$0xff]  }
 0x840   : > { %v10045_v29 = vld [vmem:[%s16569_s3 + $0x7e4] ss:$16 sps:$4 sm:$0xff]  }
 0x841   : > { %5472 = vmatpush1.bf16.msra.mxu0 %v10024_v51  ;;  %v10044_v51 = vld [vmem:[%s16569_s3 + $0x5c0] ss:$16 sps:$4 sm:$0xff]  }
 0x842   : > { %5473 = vmatprep.subr.bf16.mxu0 %v10026_v15  ;;  %5513 = vmatpush1.bf16.msra.mxu1 %v10027_v48  ;;  %v10046_v15 = vld [vmem:[%s16569_s3 + $0x5a4] ss:$16 sps:$4 sm:$0xff]   ;;  %v10047_v48 = vld [vmem:[%s16569_s3 + $0x7e0] ss:$16 sps:$4 sm:$0xff]  }
 0x843   : > { %5514 = vmatprep.subr.bf16.mxu1 %v10029_v60  ;;  %v10049_v60 = vld [vmem:[%s16569_s3 + $0x7c4] ss:$16 sps:$4 sm:$0xff]  }
 0x845   : > { %5474 = vmatpush1.bf16.msra.mxu0 %v10028_v25  ;;  %v10048_v25 = vld [vmem:[%s16569_s3 + $0x5a0] ss:$16 sps:$4 sm:$0xff]  }
 0x846   : > { %5475 = vmatprep.subr.bf16.mxu0 %v10030_v50  ;;  %5515 = vmatpush1.bf16.msra.mxu1 %v10031_v58  ;;  %v10050_v50 = vld [vmem:[%s16569_s3 + $0x584] ss:$16 sps:$4 sm:$0xff]   ;;  %v10051_v58 = vld [vmem:[%s16569_s3 + $0x7c0] ss:$16 sps:$4 sm:$0xff]  }
 0x847   : > { %5516 = vmatprep.subr.bf16.mxu1 %v10033_v53  ;;  %v10053_v53 = vld [vmem:[%s16569_s3 + $0x7a4] ss:$16 sps:$4 sm:$0xff]  }
 0x849   : > { %5476 = vmatpush1.bf16.msra.mxu0 %v10032_v19  ;;  %v10052_v19 = vld [vmem:[%s16569_s3 + $0x580] ss:$16 sps:$4 sm:$0xff]  }
 0x84a   : > { %5477 = vmatprep.subr.bf16.mxu0 %v10034_v38  ;;  %5517 = vmatpush1.bf16.msra.mxu1 %v10035_v42  ;;  %v10054_v38 = vld [vmem:[%s16569_s3 + $0x564] ss:$16 sps:$4 sm:$0xff]   ;;  %v5276_v42 = vsel %vm848_vm8, %v13861_v0, %v13889_v31 }
 0x84b   : > { %5518 = vmatprep.subr.bf16.mxu1 %v10037_v49  ;;  %v10056_v49 = vld [vmem:[%s16569_s3 + $0x560] ss:$16 sps:$4 sm:$0xff]   ;;  %v5318_v0 = vshrl.u32 %v5276_v42, 16  ;;  %v5321_v31 = vshll.u32 %v5276_v42, 16  ;;  %v5230_v42 = vsel %vm848_vm8, %v13872_v18, %v13925_v10  ;;  %v10073_v10 = vld [vmem:[%s16569_s3 + $0x704] ss:$16 sps:$4 sm:$0xff]  }
 0x84c   : > { %v10072_v18 = vld [vmem:[%s16569_s3 + $0x8a0] ss:$16 sps:$4 sm:$0xff]  }
 0x84d   : > { %5478 = vmatpush1.bf16.msra.mxu0 %v10036_v39  ;;  %v10055_v39 = vld [vmem:[%s16569_s3 + $0x7a0] ss:$16 sps:$4 sm:$0xff]  }
 0x84e   : > { %5479 = vmatprep.subr.bf16.mxu0 %v10038_v35  ;;  %5519 = vmatpush1.bf16.msra.mxu1 %v10039_v16  ;;  %v10057_v35 = vld [vmem:[%s16569_s3 + $0x784] ss:$16 sps:$4 sm:$0xff]  }
 0x84f   : > { %5520 = vmatprep.subr.bf16.mxu1 %v10041_v57  ;;  %v10058_v16 = vld [vmem:[%s16569_s3 + $0x544] ss:$16 sps:$4 sm:$0xff]   ;;  %v10060_v57 = vld [vmem:[%s16569_s3 + $0x540] ss:$16 sps:$4 sm:$0xff]  }
 0x851   : > { %5480 = vmatpush2.bf16.msra.mxu0 %v10040_v24  ;;  %v10059_v24 = vld [vmem:[%s16569_s3 + $0x780] ss:$16 sps:$4 sm:$0xff]  }
 0x852   : > { %5481 = vmatprep.subr.bf16.mxu0 %v10042_v2  ;;  %5521 = vmatpush1.bf16.msra.mxu1 %v10043_v45  ;;  %v10061_v2 = vld [vmem:[%s16569_s3 + $0x764] ss:$16 sps:$4 sm:$0xff]  }
 0x853   : > { %5522 = vmatprep.subr.bf16.mxu1 %v10045_v29  ;;  %v10062_v45 = vld [vmem:[%s16569_s3 + $0x524] ss:$16 sps:$4 sm:$0xff]   ;;  %v5323_v29 = vrot.slane %v5321_v31, 5 }
 0x855   : > { %5482 = vmatpush2.bf16.msra.mxu0 %v10044_v51  ;;  %v5320_v51 = vrot.slane %v5318_v0, 4  ;;  %v10071_v0 = vld [vmem:[%s16569_s3 + $0x720] ss:$16 sps:$4 sm:$0xff]  }
 0x856   : > { %5483 = vmatprep.subr.bf16.mxu0 %v10046_v15  ;;  %5523 = vmatpush2.bf16.msra.mxu1 %v10047_v48  ;;  %v5281_v15 = vsel %vm844_vm7, %v13884_v28, %v13914_v55  ;;  %v10063_v48 = vld [vmem:[%s16569_s3 + $0x760] ss:$16 sps:$4 sm:$0xff]   ;;  %v10066_v28 = vld [vmem:[%s16569_s3 + $0x504] ss:$16 sps:$4 sm:$0xff]  }
 0x857   : > { %5524 = vmatprep.subr.bf16.mxu1 %v10049_v60  ;;  %v10065_v60 = vld [vmem:[%s16569_s3 + $0x744] ss:$16 sps:$4 sm:$0xff]   ;;  %v5324_v55 = vor.u32 %v5323_v29, %v5320_v51  ;;  %v10076_v51 = vld [vmem:[%s16569_s3 + $0x880] ss:$16 sps:$4 sm:$0xff]   ;;  %v10077_v29 = vld [vmem:[%s16569_s3 + $0xec] ss:$16 sps:$4 sm:$0xff]  }
 0x859   : > { %5484 = vmatpush2.bf16.msra.mxu0 %v10048_v25  ;;  %v10064_v25 = vld [vmem:[%s16569_s3 + $0x520] ss:$16 sps:$4 sm:$0xff]  }
 0x85a   : > { %5485 = vmatprep.subr.bf16.mxu0 %v10050_v50  ;;  %5525 = vmatpush2.bf16.msra.mxu1 %v10051_v58  ;;  %v5333_v50 = vshrl.u32 %v5281_v15, 16  ;;  %v5336_v58 = vshll.u32 %v5281_v15, 16 }
 0x85b   : > { %5526 = vmatprep.subr.bf16.mxu1 %v10053_v53  ;;  %v10068_v53 = vld [vmem:[%s16569_s3 + $0x500] ss:$16 sps:$4 sm:$0xff]  }
 0x85d   : > { %5486 = vmatpush2.bf16.msra.mxu0 %v10052_v19  ;;  %v10067_v19 = vld [vmem:[%s16569_s3 + $0x740] ss:$16 sps:$4 sm:$0xff]  }
 0x85e   : > { %5487 = vmatprep.subr.bf16.mxu0 %v10054_v38  ;;  %5527 = vmatpush2.bf16.msra.mxu1 %v10055_v39  ;;  %v10069_v38 = vld [vmem:[%s16569_s3 + $0x724] ss:$16 sps:$4 sm:$0xff]   ;;  %v5335_v39 = vrot.slane %v5333_v50, 4  ;;  %v10081_v50 = vld [vmem:[%s16569_s3 + $0xcc] ss:$16 sps:$4 sm:$0xff]  }
 0x85f   : > { %5528 = vmatprep.subr.bf16.mxu1 %v10057_v35  ;;  %v10070_v35 = vld [vmem:[%s16569_s3 + $0x8a4] ss:$16 sps:$4 sm:$0xff]  }
 0x861   : > { %5488 = vmatpush2.bf16.msra.mxu0 %v10056_v49  ;;  %v5338_v49 = vrot.slane %v5336_v58, 5 }
 0x862   : > { %5489 = vmatprep.subr.bf16.mxu0 %v10058_v16  ;;  %5529 = vmatpush2.bf16.msra.mxu1 %v10059_v24  ;;  %v14101_v16 = vsel %vm10856_vm5, %v5230_v42, %v5324_v55  ;;  %v5247_v24 = vpop.permute.xlu0 %5246  ;;  %v10084_v55 = vld [vmem:[%s16569_s3 + $0x840] ss:$16 sps:$4 sm:$0xff]  }
 0x863   : > { %5530 = vmatprep.subr.bf16.mxu1 %v10061_v2  ;;  %v5339_v31 = vor.u32 %v5338_v49, %v5335_v39  ;;  %v10075_v2 = vld [vmem:[%s16569_s3 + $0x700] ss:$16 sps:$4 sm:$0xff]   ;;  %v10087_v39 = vld [vmem:[%s16569_s3 + $0xa8] ss:$16 sps:$4 sm:$0xff]  }
 0x864   : > { %v10088_v49 = vld [vmem:[%s16569_s3 + $0x820] ss:$16 sps:$4 sm:$0xff]  }
 0x865   : > { %5490 = vmatpush2.bf16.msra.mxu0 %v10060_v57  ;;  %v10074_v57 = vld [vmem:[%s16569_s3 + $0x884] ss:$16 sps:$4 sm:$0xff]  }
 0x866   : > { %5491 = vmatprep.subr.bf16.mxu0 %v10062_v45  ;;  %5531 = vmatpush2.bf16.msra.mxu1 %v10063_v48  ;;  %v5248_v45 = vsel %vm844_vm7, %v13930_v37, %v5247_v24  ;;  %v10078_v48 = vld [vmem:[%s16569_s3 + $0x864] ss:$16 sps:$4 sm:$0xff]   ;;  %v5283_v37 = vrot.slane %v13783_v1, 1  ;;  %v10093_v24 = vld [vmem:[%s16569_s3 + $0x6c] ss:$16 sps:$4 sm:$0xff]  }
 0x867   : > { %5532 = vmatprep.subr.bf16.mxu1 %v10065_v60  ;;  %v14130_v15 = vsel %vm10856_vm5, %v5248_v45, %v5339_v31  ;;  %v10080_v60 = vld [vmem:[%s16569_s3 + $0x860] ss:$16 sps:$4 sm:$0xff]   ;;  %v10082_v1 = vld [vmem:[%s16569_s3 + $0x844] ss:$16 sps:$4 sm:$0xff]   ;;  %v10095_v45 = vld [vmem:[%s16569_s3 + $0x68] ss:$16 sps:$4 sm:$0xff]  }
 0x868   : > { %v5349_v58 = vshrl.u32 %v5283_v37, 16  ;;  %v10092_v31 = vld [vmem:[%s16569_s3 + $0x800] ss:$16 sps:$4 sm:$0xff]  }
 0x869   : > { %5492 = vmatpush2.bf16.msra.mxu0 %v10064_v25  ;;  %v10079_v25 = vld [vmem:[%s16569_s3 + $0xe8] ss:$16 sps:$4 sm:$0xff]  }
 0x86a   : > { %5493 = vmatprep.subr.bf16.mxu0 %v10066_v28  ;;  %5533 = vmatpush2.bf16.msra.mxu1 %v10067_v19  ;;  %v5352_v28 = vshll.u32 %v5283_v37, 16  ;;  %v10085_v19 = vld [vmem:[%s16569_s3 + $0xac] ss:$16 sps:$4 sm:$0xff]  }
 0x86b   : > { %5534 = vmatprep.subr.bf16.mxu1 %v10069_v38  ;;  %v5351_v38 = vrot.slane %v5349_v58, 4  ;;  %v10102_v37 = vld [vmem:[%s16569_s3 + $0x2ac] ss:$16 sps:$4 sm:$0xff]   ;;  %v10107_v58 = vld [vmem:[%s16569_s3 + $0x8] ss:$16 sps:$4 sm:$0xff]  }
 0x86c   : > { %v5354_v42 = vrot.slane %v5352_v28, 5  ;;  %v10108_v28 = vld [vmem:[%s16569_s3 + $0x288] ss:$16 sps:$4 sm:$0xff]  }
 0x86d   : > { %5494 = vmatpush2.bf16.msra.mxu0 %v10068_v53  ;;  %v10086_v53 = vld [vmem:[%s16569_s3 + $0x824] ss:$16 sps:$4 sm:$0xff]  }
 0x86e   : > { %5553 = vmatprep.subr.bf16.mxu0 %v10070_v35  ;;  %5535 = vmatpush2.bf16.msra.mxu1 %v10071_v0  ;;  %v10089_v35 = vld [vmem:[%s16569_s3 + $0x8c] ss:$16 sps:$4 sm:$0xff]   ;;  %v10090_v0 = vld [vmem:[%s16569_s3 + $0x804] ss:$16 sps:$4 sm:$0xff]  }
 0x86f   : > { %5536 = vmatprep.subr.bf16.mxu1 %v10073_v10  ;;  %v10091_v10 = vld [vmem:[%s16569_s3 + $0x88] ss:$16 sps:$4 sm:$0xff]  }
 0x870   : > { %5496 = vmatmul.mubr.bf16.vlgmr.msra.gmra.mxu0 %v14101_v16 }
 0x871   : > { %5554 = vmatpush1.bf16.msra.mxu0 %v10072_v18  ;;  %5581 = vmatprep.mubr.bf16.mxu0 %v10610_v13  ;;  %v5355_v18 = vor.u32 %v5354_v42, %v5351_v38  ;;  %v10113_v38 = vld [vmem:[%s16569_s3 + $0x1cc] ss:$16 sps:$4 sm:$0xff]  }
 0x872   : > { %5555 = vmatprep.subr.bf16.mxu0 %v10074_v57  ;;  %5537 = vmatpush2.bf16.msra.mxu1 %v10075_v2  ;;  %v10094_v57 = vld [vmem:[%s16569_s3 + $0x2ec] ss:$16 sps:$4 sm:$0xff]  }
 0x873   : > { %5592 = vmatprep.subr.bf16.mxu1 %v10077_v29  ;;  %v14190_v2 = vsel %vm10856_vm5, %v5253_v59, %v5355_v18  ;;  %v10098_v59 = vld [vmem:[%s16569_s3 + $0x2cc] ss:$16 sps:$4 sm:$0xff]   ;;  %v10099_v29 = vld [vmem:[%s16569_s3 + $0x48] ss:$16 sps:$4 sm:$0xff]  }
 0x874   : > { %v10114_v42 = vld [vmem:[%s16569_s3 + $0x24c] ss:$16 sps:$4 sm:$0xff]   ;;  %v10119_v18 = vld [vmem:[%s16569_s3 + $0x1a8] ss:$16 sps:$4 sm:$0xff]  }
 0x875   : > { %5556 = vmatpush1.bf16.msra.mxu0 %v10076_v51  ;;  %5539 = vmatmul.mubr.bf16.vlgmr.msra.gmra.mxu1 %v14130_v15  ;;  %v10096_v51 = vld [vmem:[%s16569_s3 + $0x2e8] ss:$16 sps:$4 sm:$0xff]  }
 0x876   : > { %5557 = vmatprep.subr.bf16.mxu0 %v10078_v48  ;;  %5593 = vmatpush1.bf16.msra.mxu1 %v10079_v25  ;;  %v10100_v48 = vld [vmem:[%s16569_s3 + $0x2c8] ss:$16 sps:$4 sm:$0xff]  }
 0x877   : > { %5624 = vmatprep.mubr.bf16.mxu1 %v13869_v56  ;;  %5594 = vmatprep.subr.bf16.mxu1 %v10081_v50  ;;  %v10083_v56 = vld [vmem:[%s16569_s3 + $0xc8] ss:$16 sps:$4 sm:$0xff]   ;;  %v10105_v50 = vld [vmem:[%s16569_s3 + $0xc] ss:$16 sps:$4 sm:$0xff]  }
 0x878   : > { %v10103_v25 = vld [vmem:[%s16569_s3 + $0x28] ss:$16 sps:$4 sm:$0xff]  }
 0x879   : > { %5558 = vmatpush1.bf16.msra.mxu0 %v10080_v60  ;;  %v10104_v60 = vld [vmem:[%s16569_s3 + $0x2a8] ss:$16 sps:$4 sm:$0xff]  }
 0x87a   : > { %5559 = vmatprep.subr.bf16.mxu0 %v10082_v1  ;;  %5595 = vmatpush1.bf16.msra.mxu1 %v10083_v56  ;;  %v10106_v1 = vld [vmem:[%s16569_s3 + $0x28c] ss:$16 sps:$4 sm:$0xff]  }
 0x87b   : > { %5596 = vmatprep.subr.bf16.mxu1 %v10085_v19  ;;  %v10109_v56 = vld [vmem:[%s16569_s3 + $0x1ec] ss:$16 sps:$4 sm:$0xff]   ;;  %v10111_v19 = vld [vmem:[%s16569_s3 + $0x1e8] ss:$16 sps:$4 sm:$0xff]  }
 0x87d   : > { %5560 = vmatpush1.bf16.msra.mxu0 %v10084_v55  ;;  %v10110_v55 = vld [vmem:[%s16569_s3 + $0x26c] ss:$16 sps:$4 sm:$0xff]  }
 0x87e   : > { %5561 = vmatprep.subr.bf16.mxu0 %v10086_v53  ;;  %5597 = vmatpush1.bf16.msra.mxu1 %v10087_v39  ;;  %v10112_v53 = vld [vmem:[%s16569_s3 + $0x268] ss:$16 sps:$4 sm:$0xff]  }
 0x87f   : > { %5598 = vmatprep.subr.bf16.mxu1 %v10089_v35  ;;  %v10115_v39 = vld [vmem:[%s16569_s3 + $0x1c8] ss:$16 sps:$4 sm:$0xff]   ;;  %v10117_v35 = vld [vmem:[%s16569_s3 + $0x1ac] ss:$16 sps:$4 sm:$0xff]  }
 0x881   : > { %5562 = vmatpush1.bf16.msra.mxu0 %v10088_v49  ;;  %v10116_v49 = vld [vmem:[%s16569_s3 + $0x248] ss:$16 sps:$4 sm:$0xff]  }
 0x882   : > { %5563 = vmatprep.subr.bf16.mxu0 %v10090_v0  ;;  %5599 = vmatpush1.bf16.msra.mxu1 %v10091_v10  ;;  %v10118_v0 = vld [vmem:[%s16569_s3 + $0x22c] ss:$16 sps:$4 sm:$0xff]   ;;  %v10120_v10 = vld [vmem:[%s16569_s3 + $0x228] ss:$16 sps:$4 sm:$0xff]  }
 0x883   : > { %5600 = vmatprep.subr.bf16.mxu1 %v10093_v24  ;;  %v10122_v24 = vld [vmem:[%s16569_s3 + $0x20c] ss:$16 sps:$4 sm:$0xff]  }
 0x885   : > { %5564 = vmatpush1.bf16.msra.mxu0 %v10092_v31  ;;  %v10121_v31 = vld [vmem:[%s16569_s3 + $0x18c] ss:$16 sps:$4 sm:$0xff]  }
 0x886   : > { %5635 = vmatprep.subr.bf16.mxu0 %v10094_v57  ;;  %5601 = vmatpush1.bf16.msra.mxu1 %v10095_v45  ;;  %v10123_v57 = vld [vmem:[%s16569_s3 + $0x188] ss:$16 sps:$4 sm:$0xff]  }
 0x887   : > { %5602 = vmatprep.subr.bf16.mxu1 %v10097_v11  ;;  %v10124_v45 = vld [vmem:[%s16569_s3 + $0x208] ss:$16 sps:$4 sm:$0xff]   ;;  %v10126_v11 = vld [vmem:[%s16569_s3 + $0x3ec] ss:$16 sps:$4 sm:$0xff]  }
 0x888   : > { %8570 = vmatmul.mubr.msk.bf16.vlgmr.msra.gmra.mxu0 %vm851_vm9, %v14190_v2 }
 0x889   : > { %5636 = vmatpush1.bf16.msra.mxu0 %v10096_v51  ;;  %5667 = vmatprep.mubr.bf16.mxu0 %v13893_v17  ;;  %v10101_v17 = vld [vmem:[%s16569_s3 + $0x2c] ss:$16 sps:$4 sm:$0xff]  }
 0x88a   : > { %5637 = vmatprep.subr.bf16.mxu0 %v10098_v59  ;;  %5603 = vmatpush1.bf16.msra.mxu1 %v10099_v29  ;;  %v10125_v51 = vld [vmem:[%s16569_s3 + $0x16c] ss:$16 sps:$4 sm:$0xff]   ;;  %v10127_v59 = vld [vmem:[%s16569_s3 + $0x168] ss:$16 sps:$4 sm:$0xff]  }
 0x88b   : > { %5604 = vmatprep.subr.bf16.mxu1 %v10101_v17  ;;  %v10128_v29 = vld [vmem:[%s16569_s3 + $0x3e8] ss:$16 sps:$4 sm:$0xff]   ;;  %v10130_v17 = vld [vmem:[%s16569_s3 + $0x3cc] ss:$16 sps:$4 sm:$0xff]  }
 0x88d   : > { %5638 = vmatpush1.bf16.msra.mxu0 %v10100_v48  ;;  %v10129_v48 = vld [vmem:[%s16569_s3 + $0x14c] ss:$16 sps:$4 sm:$0xff]  }
 0x88e   : > { %5639 = vmatprep.subr.bf16.mxu0 %v10102_v37  ;;  %5605 = vmatpush1.bf16.msra.mxu1 %v10103_v25  ;;  %v10131_v37 = vld [vmem:[%s16569_s3 + $0x148] ss:$16 sps:$4 sm:$0xff]  }
 0x88f   : > { %5606 = vmatprep.subr.bf16.mxu1 %v10105_v50  ;;  %v10132_v25 = vld [vmem:[%s16569_s3 + $0x3c8] ss:$16 sps:$4 sm:$0xff]   ;;  %v10134_v50 = vld [vmem:[%s16569_s3 + $0x3ac] ss:$16 sps:$4 sm:$0xff]  }
 0x891   : > { %5640 = vmatpush1.bf16.msra.mxu0 %v10104_v60  ;;  %v10133_v60 = vld [vmem:[%s16569_s3 + $0x12c] ss:$16 sps:$4 sm:$0xff]  }
 0x892   : > { %5641 = vmatprep.subr.bf16.mxu0 %v10106_v1  ;;  %5607 = vmatpush1.bf16.msra.mxu1 %v10107_v58  ;;  %v10135_v1 = vld [vmem:[%s16569_s3 + $0x128] ss:$16 sps:$4 sm:$0xff]  }
 0x893   : > { %5608 = vmatprep.subr.bf16.mxu1 %v10109_v56  ;;  %v10136_v58 = vld [vmem:[%s16569_s3 + $0x3a8] ss:$16 sps:$4 sm:$0xff]   ;;  %v10138_v56 = vld [vmem:[%s16569_s3 + $0x38c] ss:$16 sps:$4 sm:$0xff]  }
 0x895   : > { %5642 = vmatpush1.bf16.msra.mxu0 %v10108_v28  ;;  %v10137_v28 = vld [vmem:[%s16569_s3 + $0x10c] ss:$16 sps:$4 sm:$0xff]  }
 0x896   : > { %5643 = vmatprep.subr.bf16.mxu0 %v10110_v55  ;;  %5609 = vmatpush2.bf16.msra.mxu1 %v10111_v19  ;;  %v10139_v55 = vld [vmem:[%s16569_s3 + $0x108] ss:$16 sps:$4 sm:$0xff]  }
 0x897   : > { %5610 = vmatprep.subr.bf16.mxu1 %v10113_v38  ;;  %v10140_v19 = vld [vmem:[%s16569_s3 + $0x388] ss:$16 sps:$4 sm:$0xff]   ;;  %v10142_v38 = vld [vmem:[%s16569_s3 + $0x36c] ss:$16 sps:$4 sm:$0xff]  }
 0x899   : > { %5644 = vmatpush1.bf16.msra.mxu0 %v10112_v53  ;;  %v10141_v53 = vld [vmem:[%s16569_s3 + $0x4ec] ss:$16 sps:$4 sm:$0xff]  }
 0x89a   : > { %5645 = vmatprep.subr.bf16.mxu0 %v10114_v42  ;;  %5611 = vmatpush2.bf16.msra.mxu1 %v10115_v39  ;;  %v10143_v42 = vld [vmem:[%s16569_s3 + $0x4e8] ss:$16 sps:$4 sm:$0xff]  }
 0x89b   : > { %5612 = vmatprep.subr.bf16.mxu1 %v10117_v35  ;;  %v10144_v39 = vld [vmem:[%s16569_s3 + $0x368] ss:$16 sps:$4 sm:$0xff]  }
 0x89c   : > { %v10147_v35 = vld [vmem:[%s16569_s3 + $0x4c8] ss:$16 sps:$4 sm:$0xff]  }
 0x89d   : > { %5646 = vmatpush1.bf16.msra.mxu0 %v10116_v49  ;;  %v10145_v49 = vld [vmem:[%s16569_s3 + $0x4cc] ss:$16 sps:$4 sm:$0xff]  }
 0x89e   : > { %5647 = vmatprep.subr.bf16.mxu0 %v10118_v0  ;;  %5613 = vmatpush2.bf16.msra.mxu1 %v10119_v18  ;;  %v10149_v0 = vld [vmem:[%s16569_s3 + $0x4ac] ss:$16 sps:$4 sm:$0xff]  }
 0x89f   : > { %5614 = vmatprep.subr.bf16.mxu1 %v10121_v31  ;;  %v10150_v18 = vld [vmem:[%s16569_s3 + $0x32c] ss:$16 sps:$4 sm:$0xff]   ;;  %v10152_v31 = vld [vmem:[%s16569_s3 + $0x328] ss:$16 sps:$4 sm:$0xff]  }
 0x8a1   : > { %5648 = vmatpush1.bf16.msra.mxu0 %v10120_v10  ;;  %v10151_v10 = vld [vmem:[%s16569_s3 + $0x4a8] ss:$16 sps:$4 sm:$0xff]  }
 0x8a2   : > { %5649 = vmatprep.subr.bf16.mxu0 %v10122_v24  ;;  %5615 = vmatpush2.bf16.msra.mxu1 %v10123_v57  ;;  %v10153_v24 = vld [vmem:[%s16569_s3 + $0x48c] ss:$16 sps:$4 sm:$0xff]  }
 0x8a3   : > { %5616 = vmatprep.subr.bf16.mxu1 %v10125_v51  ;;  %v10154_v57 = vld [vmem:[%s16569_s3 + $0x30c] ss:$16 sps:$4 sm:$0xff]   ;;  %v10156_v51 = vld [vmem:[%s16569_s3 + $0x308] ss:$16 sps:$4 sm:$0xff]  }
 0x8a5   : > { %5650 = vmatpush1.bf16.msra.mxu0 %v10124_v45  ;;  %v10155_v45 = vld [vmem:[%s16569_s3 + $0x488] ss:$16 sps:$4 sm:$0xff]  }
 0x8a6   : > { %5651 = vmatprep.subr.bf16.mxu0 %v10126_v11  ;;  %5617 = vmatpush2.bf16.msra.mxu1 %v10127_v59  ;;  %v10157_v11 = vld [vmem:[%s16569_s3 + $0x46c] ss:$16 sps:$4 sm:$0xff]  }
 0x8a7   : > { %5618 = vmatprep.subr.bf16.mxu1 %v10129_v48  ;;  %v10158_v59 = vld [vmem:[%s16569_s3 + $0x6ec] ss:$16 sps:$4 sm:$0xff]   ;;  %v10160_v48 = vld [vmem:[%s16569_s3 + $0x6e8] ss:$16 sps:$4 sm:$0xff]  }
 0x8a9   : > { %5652 = vmatpush2.bf16.msra.mxu0 %v10128_v29  ;;  %v10159_v29 = vld [vmem:[%s16569_s3 + $0x468] ss:$16 sps:$4 sm:$0xff]  }
 0x8aa   : > { %5653 = vmatprep.subr.bf16.mxu0 %v10130_v17  ;;  %5619 = vmatpush2.bf16.msra.mxu1 %v10131_v37  ;;  %v10161_v17 = vld [vmem:[%s16569_s3 + $0x44c] ss:$16 sps:$4 sm:$0xff]  }
 0x8ab   : > { %5620 = vmatprep.subr.bf16.mxu1 %v10133_v60  ;;  %v10162_v37 = vld [vmem:[%s16569_s3 + $0x6cc] ss:$16 sps:$4 sm:$0xff]  }
 0x8ac   : > { %v10166_v60 = vld [vmem:[%s16569_s3 + $0x6ac] ss:$16 sps:$4 sm:$0xff]  }
 0x8ad   : > { %5654 = vmatpush2.bf16.msra.mxu0 %v10132_v25  ;;  %v10164_v25 = vld [vmem:[%s16569_s3 + $0x6c8] ss:$16 sps:$4 sm:$0xff]  }
 0x8ae   : > { %5655 = vmatprep.subr.bf16.mxu0 %v10134_v50  ;;  %5621 = vmatpush2.bf16.msra.mxu1 %v10135_v1  ;;  %v10167_v50 = vld [vmem:[%s16569_s3 + $0x428] ss:$16 sps:$4 sm:$0xff]  }
 0x8af   : > { %5622 = vmatprep.subr.bf16.mxu1 %v10137_v28  ;;  %v10168_v1 = vld [vmem:[%s16569_s3 + $0x6a8] ss:$16 sps:$4 sm:$0xff]   ;;  %v10170_v28 = vld [vmem:[%s16569_s3 + $0x68c] ss:$16 sps:$4 sm:$0xff]  }
 0x8b1   : > { %5656 = vmatpush2.bf16.msra.mxu0 %v10136_v58  ;;  %v10169_v58 = vld [vmem:[%s16569_s3 + $0x40c] ss:$16 sps:$4 sm:$0xff]  }
 0x8b2   : > { %5657 = vmatprep.subr.bf16.mxu0 %v10138_v56  ;;  %5623 = vmatpush2.bf16.msra.mxu1 %v10139_v55  ;;  %v10171_v56 = vld [vmem:[%s16569_s3 + $0x408] ss:$16 sps:$4 sm:$0xff]  }
 0x8b3   : > { %5678 = vmatprep.subr.bf16.mxu1 %v10141_v53  ;;  %v10172_v55 = vld [vmem:[%s16569_s3 + $0x688] ss:$16 sps:$4 sm:$0xff]   ;;  %v10174_v53 = vld [vmem:[%s16569_s3 + $0x66c] ss:$16 sps:$4 sm:$0xff]  }
 0x8b5   : > { %5658 = vmatpush2.bf16.msra.mxu0 %v10140_v19  ;;  %5625 = vmatmul.mubr.bf16.vlgmr.msra.gmra.mxu1 %v13790_v46  ;;  %v10146_v46 = vld [vmem:[%s16569_s3 + $0x34c] ss:$16 sps:$4 sm:$0xff]  }
 0x8b6   : > { %5659 = vmatprep.subr.bf16.mxu0 %v10142_v38  ;;  %5679 = vmatpush1.bf16.msra.mxu1 %v10143_v42  ;;  %v10173_v19 = vld [vmem:[%s16569_s3 + $0x5ec] ss:$16 sps:$4 sm:$0xff]   ;;  %v10175_v38 = vld [vmem:[%s16569_s3 + $0x5e8] ss:$16 sps:$4 sm:$0xff]  }
 0x8b7   : > { %5710 = vmatprep.mubr.bf16.mxu1 %v13943_v44  ;;  %5680 = vmatprep.subr.bf16.mxu1 %v10145_v49  ;;  %v10148_v44 = vld [vmem:[%s16569_s3 + $0x348] ss:$16 sps:$4 sm:$0xff]   ;;  %v10178_v49 = vld [vmem:[%s16569_s3 + $0x64c] ss:$16 sps:$4 sm:$0xff]  }
 0x8b8   : > { %v10176_v42 = vld [vmem:[%s16569_s3 + $0x668] ss:$16 sps:$4 sm:$0xff]  }
 0x8b9   : > { %5660 = vmatpush2.bf16.msra.mxu0 %v10144_v39  ;;  %v10177_v39 = vld [vmem:[%s16569_s3 + $0x5cc] ss:$16 sps:$4 sm:$0xff]  }
 0x8ba   : > { %5661 = vmatprep.subr.bf16.mxu0 %v10146_v46  ;;  %5681 = vmatpush1.bf16.msra.mxu1 %v10147_v35  ;;  %v10179_v46 = vld [vmem:[%s16569_s3 + $0x5c8] ss:$16 sps:$4 sm:$0xff]  }
 0x8bb   : > { %5682 = vmatprep.subr.bf16.mxu1 %v10149_v0  ;;  %v10180_v35 = vld [vmem:[%s16569_s3 + $0x648] ss:$16 sps:$4 sm:$0xff]   ;;  %v10182_v0 = vld [vmem:[%s16569_s3 + $0x62c] ss:$16 sps:$4 sm:$0xff]  }
 0x8bd   : > { %5662 = vmatpush2.bf16.msra.mxu0 %v10148_v44  ;;  %v10181_v44 = vld [vmem:[%s16569_s3 + $0x5ac] ss:$16 sps:$4 sm:$0xff]  }
 0x8be   : > { %5663 = vmatprep.subr.bf16.mxu0 %v10150_v18  ;;  %5683 = vmatpush1.bf16.msra.mxu1 %v10151_v10  ;;  %v10183_v18 = vld [vmem:[%s16569_s3 + $0x5a8] ss:$16 sps:$4 sm:$0xff]  }
 0x8bf   : > { %5684 = vmatprep.subr.bf16.mxu1 %v10153_v24  ;;  %v10184_v10 = vld [vmem:[%s16569_s3 + $0x628] ss:$16 sps:$4 sm:$0xff]   ;;  %v10186_v24 = vld [vmem:[%s16569_s3 + $0x60c] ss:$16 sps:$4 sm:$0xff]  }
 0x8c1   : > { %5664 = vmatpush2.bf16.msra.mxu0 %v10152_v31  ;;  %v10185_v31 = vld [vmem:[%s16569_s3 + $0x58c] ss:$16 sps:$4 sm:$0xff]  }
 0x8c2   : > { %5665 = vmatprep.subr.bf16.mxu0 %v10154_v57  ;;  %5685 = vmatpush1.bf16.msra.mxu1 %v10155_v45  ;;  %v10187_v57 = vld [vmem:[%s16569_s3 + $0x588] ss:$16 sps:$4 sm:$0xff]  }
 0x8c3   : > { %5686 = vmatprep.subr.bf16.mxu1 %v10157_v11  ;;  %v10188_v45 = vld [vmem:[%s16569_s3 + $0x608] ss:$16 sps:$4 sm:$0xff]   ;;  %v10190_v11 = vld [vmem:[%s16569_s3 + $0x7ec] ss:$16 sps:$4 sm:$0xff]  }
 0x8c5   : > { %5666 = vmatpush2.bf16.msra.mxu0 %v10156_v51  ;;  %v10189_v51 = vld [vmem:[%s16569_s3 + $0x56c] ss:$16 sps:$4 sm:$0xff]  }
 0x8c6   : > { %5721 = vmatprep.subr.bf16.mxu0 %v10158_v59  ;;  %5687 = vmatpush1.bf16.msra.mxu1 %v10159_v29  ;;  %v10191_v59 = vld [vmem:[%s16569_s3 + $0x568] ss:$16 sps:$4 sm:$0xff]  }
 0x8c7   : > { %5688 = vmatprep.subr.bf16.mxu1 %v10161_v17  ;;  %v10192_v29 = vld [vmem:[%s16569_s3 + $0x7e8] ss:$16 sps:$4 sm:$0xff]   ;;  %v10194_v17 = vld [vmem:[%s16569_s3 + $0x7cc] ss:$16 sps:$4 sm:$0xff]  }
 0x8c8   : > { %5668 = vmatmul.mubr.bf16.vlgmr.msra.gmra.mxu0 %v13897_v8  ;;  %v10163_v8 = vld [vmem:[%s16569_s3 + $0x448] ss:$16 sps:$4 sm:$0xff]  }
 0x8c9   : > { %5722 = vmatpush1.bf16.msra.mxu0 %v10160_v48  ;;  %5753 = vmatprep.mubr.bf16.mxu0 %v13795_v22  ;;  %v10165_v22 = vld [vmem:[%s16569_s3 + $0x42c] ss:$16 sps:$4 sm:$0xff]  }
 0x8ca   : > { %5723 = vmatprep.subr.bf16.mxu0 %v10162_v37  ;;  %5689 = vmatpush1.bf16.msra.mxu1 %v10163_v8  ;;  %v10193_v48 = vld [vmem:[%s16569_s3 + $0x54c] ss:$16 sps:$4 sm:$0xff]   ;;  %v10195_v37 = vld [vmem:[%s16569_s3 + $0x548] ss:$16 sps:$4 sm:$0xff]  }
 0x8cb   : > { %5690 = vmatprep.subr.bf16.mxu1 %v10165_v22  ;;  %v10196_v8 = vld [vmem:[%s16569_s3 + $0x7c8] ss:$16 sps:$4 sm:$0xff]   ;;  %v10198_v22 = vld [vmem:[%s16569_s3 + $0x7ac] ss:$16 sps:$4 sm:$0xff]  }
 0x8cd   : > { %5724 = vmatpush1.bf16.msra.mxu0 %v10164_v25  ;;  %v10197_v25 = vld [vmem:[%s16569_s3 + $0x52c] ss:$16 sps:$4 sm:$0xff]  }
 0x8ce   : > { %5725 = vmatprep.subr.bf16.mxu0 %v10166_v60  ;;  %5691 = vmatpush1.bf16.msra.mxu1 %v10167_v50  ;;  %v10199_v60 = vld [vmem:[%s16569_s3 + $0x528] ss:$16 sps:$4 sm:$0xff]  }
 0x8cf   : > { %5692 = vmatprep.subr.bf16.mxu1 %v10169_v58  ;;  %v10201_v58 = vld [vmem:[%s16569_s3 + $0x50c] ss:$16 sps:$4 sm:$0xff]  }
 0x8d1   : > { %5726 = vmatpush1.bf16.msra.mxu0 %v10168_v1  ;;  %v10200_v1 = vld [vmem:[%s16569_s3 + $0x7a8] ss:$16 sps:$4 sm:$0xff]  }
 0x8d2   : > { %5727 = vmatprep.subr.bf16.mxu0 %v10170_v28  ;;  %5693 = vmatpush1.bf16.msra.mxu1 %v10171_v56  ;;  %v10202_v56 = vld [vmem:[%s16569_s3 + $0x78c] ss:$16 sps:$4 sm:$0xff]  }
 0x8d3   : > { %5694 = vmatprep.subr.bf16.mxu1 %v10173_v19 }
 0x8d5   : > { %5728 = vmatpush1.bf16.msra.mxu0 %v10172_v55  ;;  %v10203_v55 = vld [vmem:[%s16569_s3 + $0x508] ss:$16 sps:$4 sm:$0xff]  }
 0x8d6   : > { %5729 = vmatprep.subr.bf16.mxu0 %v10174_v53  ;;  %5695 = vmatpush2.bf16.msra.mxu1 %v10175_v38  ;;  %v10204_v53 = vld [vmem:[%s16569_s3 + $0x788] ss:$16 sps:$4 sm:$0xff]   ;;  %v10205_v38 = vld [vmem:[%s16569_s3 + $0x8ac] ss:$16 sps:$4 sm:$0xff]  }
 0x8d7   : > { %5696 = vmatprep.subr.bf16.mxu1 %v10177_v39  ;;  %v10206_v39 = vld [vmem:[%s16569_s3 + $0x76c] ss:$16 sps:$4 sm:$0xff]  }
 0x8d9   : > { %5730 = vmatpush1.bf16.msra.mxu0 %v10176_v42 }
 0x8da   : > { %5731 = vmatprep.subr.bf16.mxu0 %v10178_v49  ;;  %5697 = vmatpush2.bf16.msra.mxu1 %v10179_v46 }
 0x8db   : > { %5698 = vmatprep.subr.bf16.mxu1 %v10181_v44  ;;  %v10207_v44 = vld [vmem:[%s16569_s3 + $0x8a8] ss:$16 sps:$4 sm:$0xff]  }
 0x8dd   : > { %5732 = vmatpush1.bf16.msra.mxu0 %v10180_v35 }
 0x8de   : > { %5733 = vmatprep.subr.bf16.mxu0 %v10182_v0  ;;  %5699 = vmatpush2.bf16.msra.mxu1 %v10183_v18  ;;  %v6019_v0 = vshrl.u32 %v13843_v30, 16  ;;  %v6022_v18 = vshll.u32 %v13843_v30, 16  ;;  %v10210_v30 = vld [vmem:[%s16569_s3 + $0x74c] ss:$16 sps:$4 sm:$0xff]  }
 0x8df   : > { %5700 = vmatprep.subr.bf16.mxu1 %v10185_v31 }
 0x8e1   : > { %5734 = vmatpush1.bf16.msra.mxu0 %v10184_v10 }
 0x8e2   : > { %5735 = vmatprep.subr.bf16.mxu0 %v10186_v24  ;;  %5701 = vmatpush2.bf16.msra.mxu1 %v10187_v57  ;;  %v10209_v24 = vld [vmem:[%s16569_s3 + $0x88c] ss:$16 sps:$4 sm:$0xff]  }
 0x8e3   : > { %5702 = vmatprep.subr.bf16.mxu1 %v10189_v51 }
 0x8e5   : > { %5736 = vmatpush1.bf16.msra.mxu0 %v10188_v45 }
 0x8e6   : > { %5737 = vmatprep.subr.bf16.mxu0 %v10190_v11  ;;  %5703 = vmatpush2.bf16.msra.mxu1 %v10191_v59 }
 0x8e7   : > { %5704 = vmatprep.subr.bf16.mxu1 %v10193_v48  ;;  %v6021_v48 = vrot.slane %v6019_v0, 4  ;;  %v10224_v0 = vld [vmem:[%s16567_s1 + $0xe0] ss:$16 sps:$4 sm:$0xff]  }
 0x8e9   : > { %5738 = vmatpush2.bf16.msra.mxu0 %v10192_v29  ;;  %v10211_v29 = vld [vmem:[%s16569_s3 + $0x888] ss:$16 sps:$4 sm:$0xff]  }
 0x8ea   : > { %5739 = vmatprep.subr.bf16.mxu0 %v10194_v17  ;;  %5705 = vmatpush2.bf16.msra.mxu1 %v10195_v37  ;;  %v6024_v17 = vrot.slane %v6022_v18, 5  ;;  %v10225_v18 = vld [vmem:[%s16569_s3 + $0x80c] ss:$16 sps:$4 sm:$0xff]  }
 0x8eb   : > { %5706 = vmatprep.subr.bf16.mxu1 %v10197_v25  ;;  %v10213_v25 = vld [vmem:[%s16569_s3 + $0x86c] ss:$16 sps:$4 sm:$0xff]  }
 0x8ed   : > { %5740 = vmatpush2.bf16.msra.mxu0 %v10196_v8  ;;  %v10212_v8 = vld [vmem:[%s16569_s3 + $0x748] ss:$16 sps:$4 sm:$0xff]  }
 0x8ee   : > { %5741 = vmatprep.subr.bf16.mxu0 %v10198_v22  ;;  %5707 = vmatpush2.bf16.msra.mxu1 %v10199_v60  ;;  %v10214_v60 = vld [vmem:[%s16569_s3 + $0x72c] ss:$16 sps:$4 sm:$0xff]  }
 0x8ef   : > { %5708 = vmatprep.subr.bf16.mxu1 %v10201_v58  ;;  %v10216_v58 = vld [vmem:[%s16569_s3 + $0x728] ss:$16 sps:$4 sm:$0xff]  }
 0x8f0   : > { %v5411_v50 = vpop.f32.mrf.mxu0 }
 0x8f1   : > { %5742 = vmatpush2.bf16.msra.mxu0 %v10200_v1  ;;  %v5412_v42 = vadd.f32 %v5411_v50, %v11983_v9  ;;  %v10215_v50 = vld [vmem:[%s16569_s3 + $0x868] ss:$16 sps:$4 sm:$0xff]   ;;  %v6025_v1 = vor.u32 %v6024_v17, %v6021_v48  ;;  %v10233_v48 = vld [vmem:[%s16567_s1 + $0xcc] ss:$16 sps:$4 sm:$0xff]  }
 0x8f2   : > { %v5413_v28 = vpop.f32.mrf.mxu0  ;;  %5743 = vmatprep.subr.bf16.mxu0 %v10202_v56  ;;  %5709 = vmatpush2.bf16.msra.mxu1 %v10203_v55  ;;  %v10218_v56 = vld [vmem:[%s16569_s3 + $0x70c] ss:$16 sps:$4 sm:$0xff]   ;;  %v6030_v55 = vrot.slane %v13857_v27, 1 }
 0x8f3   : > { %5768 = vmatprep.subr.bf16.mxu1 %v10205_v38  ;;  %v5414_v46 = vadd.f32 %v5413_v28, %v11991_v26  ;;  %v10217_v28 = vld [vmem:[%s16569_s3 + $0x84c] ss:$16 sps:$4 sm:$0xff]   ;;  %v6051_v38 = vsel %vm10856_vm5, %v13829_v6, %v6025_v1  ;;  %v6000_v1 = vshll.u32 %v13824_v14, 16 }
 0x8f4   : > { %v5415_v19 = vpop.f32.mrf.mxu0  ;;  %v6058_v6 = vsel %vm959_vm2, %v6051_v38, %v6030_v55  ;;  %v10241_v38 = vld [vmem:[%s16567_s1 + $0x8c] ss:$16 sps:$4 sm:$0xff]  }
 0x8f5   : > { %5744 = vmatpush2.bf16.msra.mxu0 %v10204_v53  ;;  %5711 = vmatmul.mubr.bf16.vlgmr.msra.gmra.mxu1 %v14101_v16  ;;  %v5454_v49 = vpop.f32.mrf.mxu1  ;;  %v10208_v16 = vld [vmem:[%s16569_s3 + $0x768] ss:$16 sps:$4 sm:$0xff]   ;;  %v5416_v57 = vadd.f32 %v5415_v19, %v11983_v9  ;;  %v5952_v53 = vpop.permute.xlu1 %5951 }
 0x8f6   : > { %5745 = vmatprep.subr.bf16.mxu0 %v10206_v39  ;;  %v14538_v35 = vadd.f32 %v5454_v49, %v5412_v42  ;;  %5769 = vmatpush1.bf16.msra.mxu1 %v10207_v44  ;;  %v5417_v10 = vpop.f32.mrf.mxu0  ;;  %v10219_v19 = vld [vmem:[%s16569_s3 + $0x848] ss:$16 sps:$4 sm:$0xff]   ;;  %v10221_v39 = vld [vmem:[%s16569_s3 + $0x82c] ss:$16 sps:$4 sm:$0xff]   ;;  %v10222_v49 = vld [vmem:[%s16567_s1 + $0xe4] ss:$16 sps:$4 sm:$0xff]  }
 0x8f7   : > { %5796 = vmatprep.mubr.bf16.mxu1 %v10610_v13  ;;  %v5456_v31 = vpop.f32.mrf.mxu1  ;;  %5770 = vmatprep.subr.bf16.mxu1 %v10209_v24  ;;  %v5418_v11 = vadd.f32 %v5417_v10, %v11991_v26  ;;  %v10220_v42 = vld [vmem:[%s16569_s3 + $0x708] ss:$16 sps:$4 sm:$0xff]   ;;  %v10226_v10 = vld [vmem:[%s16567_s1 + $0xc4] ss:$16 sps:$4 sm:$0xff]   ;;  %v10228_v24 = vld [vmem:[%s16567_s1 + $0xc0] ss:$16 sps:$4 sm:$0xff]  }
 0x8f8   : > { %v14553_v45 = vadd.f32 %v5456_v31, %v5414_v46  ;;  %v5954_v46 = vpop.permute.xlu0 %5953  ;;  %v10223_v44 = vld [vmem:[%s16569_s3 + $0x828] ss:$16 sps:$4 sm:$0xff]  }
 0x8f9   : > { %5746 = vmatpush2.bf16.msra.mxu0 %v10208_v16  ;;  %v5458_v51 = vpop.f32.mrf.mxu1  ;;  %v5956_v31 = vpop.permute.xlu1 %5955 }
 0x8fa   : > { %5747 = vmatprep.subr.bf16.mxu0 %v10210_v30  ;;  %v14559_v59 = vadd.f32 %v5458_v51, %v5416_v57  ;;  %5771 = vmatpush1.bf16.msra.mxu1 %v10211_v29  ;;  %v10229_v57 = vld [vmem:[%s16567_s1 + $0xec] ss:$16 sps:$4 sm:$0xff]   ;;  %v10230_v30 = vld [vmem:[%s16567_s1 + $0xa4] ss:$16 sps:$4 sm:$0xff]   ;;  %v10231_v51 = vld [vmem:[%s16567_s1 + $0xe8] ss:$16 sps:$4 sm:$0xff]  }
 0x8fb   : > { %v5460_v37 = vpop.f32.mrf.mxu1  ;;  %5772 = vmatprep.subr.bf16.mxu1 %v10213_v25  ;;  %v10232_v29 = vld [vmem:[%s16567_s1 + $0xa0] ss:$16 sps:$4 sm:$0xff]   ;;  %v10237_v25 = vld [vmem:[%s16567_s1 + $0xac] ss:$16 sps:$4 sm:$0xff]  }
 0x8fc   : > { %v14570_v22 = vadd.f32 %v5460_v37, %v5418_v11  ;;  %v14623_v16 = vpop.permute.xlu0 %5971  ;;  %v10235_v37 = vld [vmem:[%s16567_s1 + $0xc8] ss:$16 sps:$4 sm:$0xff]  }
 0x8fd   : > { %5748 = vmatpush2.bf16.msra.mxu0 %v10212_v8  ;;  %v5921_v11 = vpop.permute.xlu1 %5920  ;;  %v10236_v8 = vld [vmem:[%s16567_s1 + $0x80] ss:$16 sps:$4 sm:$0xff]  }
 0x8fe   : > { %5749 = vmatprep.subr.bf16.mxu0 %v10214_v60  ;;  %5773 = vmatpush1.bf16.msra.mxu1 %v10215_v50  ;;  %v10238_v50 = vld [vmem:[%s16567_s1 + $0x64] ss:$16 sps:$4 sm:$0xff]  }
 0x8ff   : > { %5774 = vmatprep.subr.bf16.mxu1 %v10217_v28  ;;  %v10239_v28 = vld [vmem:[%s16567_s1 + $0xa8] ss:$16 sps:$4 sm:$0xff]  }
 0x900   : > { %v5974_v17 = vpop.permute.xlu0 %5973 }
 0x901   : > { %5750 = vmatpush2.bf16.msra.mxu0 %v10216_v58  ;;  %v5926_v60 = vpop.permute.xlu1 %5925  ;;  %v5966_v58 = vsel %vm844_vm7, %v13834_v20, %v5952_v53  ;;  %v10242_v20 = vld [vmem:[%s16567_s1 + $0x44] ss:$16 sps:$4 sm:$0xff]   ;;  %v5998_v53 = vshrl.u32 %v13824_v14, 16 }
 0x902   : > { %5751 = vmatprep.subr.bf16.mxu0 %v10218_v56  ;;  %5775 = vmatpush1.bf16.msra.mxu1 %v10219_v19  ;;  %v10240_v19 = vld [vmem:[%s16567_s1 + $0x60] ss:$16 sps:$4 sm:$0xff]   ;;  %v10246_v14 = vld [vmem:[%s16567_s1 + $0x24] ss:$16 sps:$4 sm:$0xff]  }
 0x903   : > { %5776 = vmatprep.subr.bf16.mxu1 %v10221_v39  ;;  %v6002_v39 = vrot.slane %v6000_v1, 1 }
 0x904   : > { %v5976_v56 = vpop.permute.xlu0 %5975 }
 0x905   : > { %5752 = vmatpush2.bf16.msra.mxu0 %v10220_v42  ;;  %v5968_v42 = vsel %vm848_vm8, %v5966_v58, %v5954_v46  ;;  %v10244_v46 = vld [vmem:[%s16567_s1 + $0x40] ss:$16 sps:$4 sm:$0xff]  }
 0x906   : > { %6066 = vmatprep.subr.bf16.mxu0 %v10222_v49  ;;  %5777 = vmatpush1.bf16.msra.mxu1 %v10223_v44  ;;  %v5931_v49 = vpop.permute.xlu1 %5930  ;;  %v5970_v44 = vsel %vm851_vm9, %v5968_v42, %v5956_v31  ;;  %v10247_v31 = vld [vmem:[%s16567_s1 + $0x68] ss:$16 sps:$4 sm:$0xff]  }
 0x907   : > { %5778 = vmatprep.subr.bf16.mxu1 %v10225_v18  ;;  %v6003_v18 = vor.u32 %v6002_v39, %v5998_v53  ;;  %v10255_v39 = vld [vmem:[%s16567_s1 + $0x28] ss:$16 sps:$4 sm:$0xff]  }
 0x908   : > { %5754 = vmatmul.mubr.bf16.vlgmr.msra.gmra.mxu0 %v14130_v15  ;;  %v10227_v15 = vld [vmem:[%s16569_s3 + $0x808] ss:$16 sps:$4 sm:$0xff]  }
 0x909   : > { %6067 = vmatpush1.bf16.msra.mxu0 %v10224_v0  ;;  %8576 = vmatprep.mubr.msk.bf16.mxu0 %vm844_vm7, %v6058_v6  ;;  %v10245_v0 = vld [vmem:[%s16567_s1 + $0x6c] ss:$16 sps:$4 sm:$0xff]  }
 0x90a   : > { %6068 = vmatprep.subr.bf16.mxu0 %v10226_v10  ;;  %5779 = vmatpush1.bf16.msra.mxu1 %v10227_v15  ;;  %v5992_v10 = vpop.permute.xlu0 %5991  ;;  %v6011_v15 = vshrl.u32 %v5970_v44, 16 }
 0x90b   : > { %6119 = vmatprep.subr.bf16.mxu1 %v10229_v57  ;;  %v10248_v57 = vld [vmem:[%s16567_s1 + $0x20] ss:$16 sps:$4 sm:$0xff]  }
 0x90d   : > { %6069 = vmatpush1.bf16.msra.mxu0 %v10228_v24  ;;  %8571 = vmatmul.mubr.msk.bf16.vlgmr.msra.gmra.mxu1 %vm851_vm9, %v14190_v2  ;;  %v10234_v2 = vld [vmem:[%s16567_s1 + $0x84] ss:$16 sps:$4 sm:$0xff]   ;;  %v6014_v24 = vshll.u32 %v5970_v44, 16  ;;  %v10257_v44 = vld [vmem:[%s16567_s1 + $0xc] ss:$16 sps:$4 sm:$0xff]  }
 0x90e   : > { %6070 = vmatprep.subr.bf16.mxu0 %v10230_v30  ;;  %6120 = vmatpush1.bf16.msra.mxu1 %v10231_v51  ;;  %v10249_v30 = vld [vmem:[%s16567_s1 + $0x4c] ss:$16 sps:$4 sm:$0xff]   ;;  %v5986_v51 = vsel %vm844_vm7, %v13815_v4, %v14623_v16  ;;  %v10251_v4 = vld [vmem:[%s16567_s1 + $0x48] ss:$16 sps:$4 sm:$0xff]   ;;  %v5996_v58 = vpop.permute.xlu0 %5995 }
 0x90f   : > { %8578 = vmatprep.mubr.msk.bf16.mxu1 %vm844_vm7, %v6058_v6  ;;  %6121 = vmatprep.subr.bf16.mxu1 %v10233_v48  ;;  %v10243_v6 = vld [vmem:[%s16567_s1 + $0x88] ss:$16 sps:$4 sm:$0xff]   ;;  %v5994_v48 = vpop.permute.xlu1 %5993  ;;  %v6016_v1 = vrot.slane %v6014_v24, 5  ;;  %v10261_v24 = vld [vmem:[%s16567_s1 + $0x12c] ss:$16 sps:$4 sm:$0xff]  }
 0x911   : > { %6071 = vmatpush1.bf16.msra.mxu0 %v10232_v29  ;;  %v6006_v29 = vsel %vm844_vm7, %v13820_v36, %v5992_v10  ;;  %v5988_v36 = vsel %vm848_vm8, %v5986_v51, %v5974_v17  ;;  %v10259_v10 = vld [vmem:[%s16567_s1 + $0x8] ss:$16 sps:$4 sm:$0xff]  }
 0x912   : > { %6072 = vmatprep.subr.bf16.mxu0 %v10234_v2  ;;  %6122 = vmatpush1.bf16.msra.mxu1 %v10235_v37  ;;  %v10250_v2 = vld [vmem:[%s16567_s1 + $0x4] ss:$16 sps:$4 sm:$0xff]   ;;  %v6041_v37 = vshrl.u32 %v6003_v18, 16  ;;  %v6008_v16 = vsel %vm848_vm8, %v6006_v29, %v5994_v48  ;;  %v10263_v48 = vld [vmem:[%s16567_s1 + $0x128] ss:$16 sps:$4 sm:$0xff]  }
 0x913   : > { %6123 = vmatprep.subr.bf16.mxu1 %v10237_v25  ;;  %v5945_v25 = vsel %vm844_vm7, %v13810_v52, %v5921_v11  ;;  %v10253_v52 = vld [vmem:[%s16567_s1 + $0x2c] ss:$16 sps:$4 sm:$0xff]   ;;  %v6010_v53 = vsel %vm851_vm9, %v6008_v16, %v5996_v58  ;;  %v10268_v16 = vld [vmem:[%s16569_s3 + $0x2e4] ss:$16 sps:$4 sm:$0xff]  }
 0x914   : > { %v5947_v11 = vsel %vm848_vm8, %v5945_v25, %v5926_v60  ;;  %v6043_v17 = vrot.slane %v6041_v37, 5  ;;  %v10256_v60 = vld [vmem:[%s16567_s1 + $0x120] ss:$16 sps:$4 sm:$0xff]  }
 0x915   : > { %6073 = vmatpush1.bf16.msra.mxu0 %v10236_v8  ;;  %v6044_v8 = vshll.u32 %v6003_v18, 16  ;;  %v6036_v18 = vshll.u32 %v6010_v53, 16 }
 0x916   : > { %6074 = vmatprep.subr.bf16.mxu0 %v10238_v50  ;;  %6124 = vmatpush1.bf16.msra.mxu1 %v10239_v28  ;;  %v6013_v50 = vrot.slane %v6011_v15, 4  ;;  %v10252_v28 = vld [vmem:[%s16567_s1] ss:$16 sps:$4 sm:$0xff]  }
 0x917   : > { %6125 = vmatprep.subr.bf16.mxu1 %v10241_v38  ;;  %v6046_v38 = vrot.slane %v6044_v8, 6  ;;  %v10260_v15 = vld [vmem:[%s16567_s1 + $0x100] ss:$16 sps:$4 sm:$0xff]   ;;  %v6038_v51 = vrot.slane %v6036_v18, 6  ;;  %v10280_v18 = vld [vmem:[%s16569_s3 + $0x284] ss:$16 sps:$4 sm:$0xff]  }
 0x918   : > { %v6017_v42 = vor.u32 %v6016_v1, %v6013_v50  ;;  %v10265_v8 = vld [vmem:[%s16569_s3 + $0xe0] ss:$16 sps:$4 sm:$0xff]   ;;  %v10267_v1 = vld [vmem:[%s16567_s1 + $0x108] ss:$16 sps:$4 sm:$0xff]  }
 0x919   : > { %6075 = vmatpush1.bf16.msra.mxu0 %v10240_v19  ;;  %v10254_v19 = vld [vmem:[%s16567_s1 + $0x124] ss:$16 sps:$4 sm:$0xff]  }
 0x91a   : > { %6076 = vmatprep.subr.bf16.mxu0 %v10242_v20  ;;  %6126 = vmatpush1.bf16.msra.mxu1 %v10243_v6  ;;  %v5990_v20 = vsel %vm851_vm9, %v5988_v36, %v5976_v56  ;;  %v5949_v6 = vsel %vm851_vm9, %v5947_v11, %v5931_v49  ;;  %v10258_v56 = vld [vmem:[%s16567_s1 + $0x104] ss:$16 sps:$4 sm:$0xff]  }
 0x91b   : > { %6127 = vmatprep.subr.bf16.mxu1 %v10245_v0  ;;  %v6029_v0 = vrot.slane %v5990_v20, 1  ;;  %v6050_v49 = vsel %vm10856_vm5, %v5949_v6, %v6017_v42  ;;  %v10273_v42 = vld [vmem:[%s16569_s3 + $0xa0] ss:$16 sps:$4 sm:$0xff]  }
 0x91d   : > { %6077 = vmatpush1.bf16.msra.mxu0 %v10244_v46  ;;  %v6047_v46 = vor.u32 %v6046_v38, %v6043_v17  ;;  %v6054_v29 = vsel %vm959_vm2, %v6050_v49, %v6029_v0  ;;  %v10271_v38 = vld [vmem:[%s16569_s3 + $0x2e0] ss:$16 sps:$4 sm:$0xff]  }
 0x91e   : > { %6078 = vmatprep.subr.bf16.mxu0 %v10246_v14  ;;  %6128 = vmatpush1.bf16.msra.mxu1 %v10247_v31  ;;  %v6033_v14 = vshrl.u32 %v6010_v53, 16  ;;  %v10274_v53 = vld [vmem:[%s16569_s3 + $0x84] ss:$16 sps:$4 sm:$0xff]   ;;  %v10281_v49 = vld [vmem:[%s16569_s3 + $0x60] ss:$16 sps:$4 sm:$0xff]  }
 0x91f   : > { %6129 = vmatprep.subr.bf16.mxu1 %v10249_v30  ;;  %v6060_v31 = vsel %vm10869_vm6, %v6030_v55, %v6047_v46  ;;  %v10264_v55 = vld [vmem:[%s16567_s1 + $0x10c] ss:$16 sps:$4 sm:$0xff]   ;;  %v10277_v46 = vld [vmem:[%s16569_s3 + $0x80] ss:$16 sps:$4 sm:$0xff]  }
 0x920   : > { %v6035_v30 = vrot.slane %v6033_v14, 5  ;;  %v10279_v14 = vld [vmem:[%s16569_s3 + $0x2a0] ss:$16 sps:$4 sm:$0xff]  }
 0x921   : > { %6079 = vmatpush1.bf16.msra.mxu0 %v10248_v57  ;;  %v10262_v57 = vld [vmem:[%s16569_s3 + $0xe4] ss:$16 sps:$4 sm:$0xff]  }
 0x922   : > { %6080 = vmatprep.subr.bf16.mxu0 %v10250_v2  ;;  %6130 = vmatpush1.bf16.msra.mxu1 %v10251_v4  ;;  %v6039_v25 = vor.u32 %v6038_v51, %v6035_v30 }
 0x923   : > { %6131 = vmatprep.subr.bf16.mxu1 %v10253_v52 }
 0x924   : > { %v6059_v11 = vsel %vm10869_vm6, %v6029_v0, %v6039_v25  ;;  %v10278_v0 = vld [vmem:[%s16569_s3 + $0x64] ss:$16 sps:$4 sm:$0xff]  }
 0x925   : > { %6081 = vmatpush1.bf16.msra.mxu0 %v10252_v28 }
 0x926   : > { %6094 = vmatprep.subr.bf16.mxu0 %v10254_v19  ;;  %6132 = vmatpush1.bf16.msra.mxu1 %v10255_v39 }
 0x927   : > { %6133 = vmatprep.subr.bf16.mxu1 %v10257_v44 }
 0x929   : > { %6095 = vmatpush2.bf16.msra.mxu0 %v10256_v60  ;;  %v10275_v60 = vld [vmem:[%s16569_s3 + $0x2c0] ss:$16 sps:$4 sm:$0xff]  }
 0x92a   : > { %6096 = vmatprep.subr.bf16.mxu0 %v10258_v56  ;;  %6134 = vmatpush1.bf16.msra.mxu1 %v10259_v10  ;;  %v10276_v56 = vld [vmem:[%s16569_s3 + $0x2a4] ss:$16 sps:$4 sm:$0xff]  }
 0x92b   : > { %6147 = vmatprep.subr.bf16.mxu1 %v10261_v24  ;;  %v10282_v10 = vld [vmem:[%s16569_s3 + $0x44] ss:$16 sps:$4 sm:$0xff]  }
 0x92c   : > { %v10284_v24 = vld [vmem:[%s16569_s3 + $0x264] ss:$16 sps:$4 sm:$0xff]  }
 0x92d   : > { %6097 = vmatpush2.bf16.msra.mxu0 %v10260_v15  ;;  %v10283_v15 = vld [vmem:[%s16569_s3 + $0x280] ss:$16 sps:$4 sm:$0xff]  }
 0x92e   : > { %6519 = vmatprep.subr.bf16.mxu0 %v10262_v57  ;;  %6148 = vmatpush2.bf16.msra.mxu1 %v10263_v48  ;;  %v10286_v57 = vld [vmem:[%s16569_s3 + $0x24] ss:$16 sps:$4 sm:$0xff]  }
 0x92f   : > { %6149 = vmatprep.subr.bf16.mxu1 %v10264_v55 }
 0x930   : > { %v5497_v2 = vpop.f32.mrf.mxu0  ;;  %6099 = vmatmul.mubr.bf16.vlgmr.msra.gmra.mxu0 %v6054_v29 }
 0x931   : > { %v5498_v27 = vadd.f32 %v5497_v2, %v14538_v35  ;;  %8577 = vmatprep.mubr.msk.bf16.mxu0 %vm844_vm7, %v6060_v31  ;;  %6520 = vmatpush1.bf16.msra.mxu0 %v10265_v8  ;;  %v10266_v35 = vld [vmem:[%s16569_s3 + $0xc4] ss:$16 sps:$4 sm:$0xff]  }
 0x932   : > { %v5499_v37 = vpop.f32.mrf.mxu0  ;;  %6521 = vmatprep.subr.bf16.mxu0 %v10266_v35  ;;  %6150 = vmatpush2.bf16.msra.mxu1 %v10267_v1  ;;  %v10288_v2 = vld [vmem:[%s16569_s3 + $0x244] ss:$16 sps:$4 sm:$0xff]   ;;  %v10291_v35 = vld [vmem:[%s16569_s3 + $0x240] ss:$16 sps:$4 sm:$0xff]  }
 0x933   : > { %v5500_v50 = vadd.f32 %v5499_v37, %v14553_v45  ;;  %6562 = vmatprep.subr.bf16.mxu1 %v10268_v16  ;;  %v10269_v45 = vld [vmem:[%s16569_s3 + $0xc0] ss:$16 sps:$4 sm:$0xff]   ;;  %v10290_v37 = vld [vmem:[%s16569_s3 + $0x4] ss:$16 sps:$4 sm:$0xff]  }
 0x934   : > { %v5501_v4 = vpop.f32.mrf.mxu0 }
 0x935   : > { %v5502_v36 = vadd.f32 %v5501_v4, %v14559_v59  ;;  %6522 = vmatpush1.bf16.msra.mxu0 %v10269_v45  ;;  %v5540_v52 = vpop.f32.mrf.mxu1  ;;  %6152 = vmatmul.mubr.bf16.vlgmr.msra.gmra.mxu1 %v6054_v29  ;;  %v10270_v59 = vld [vmem:[%s16569_s3 + $0xa4] ss:$16 sps:$4 sm:$0xff]   ;;  %v10287_v29 = vld [vmem:[%s16569_s3 + $0x260] ss:$16 sps:$4 sm:$0xff]  }
 0x936   : > { %v5503_v58 = vpop.f32.mrf.mxu0  ;;  %6523 = vmatprep.subr.bf16.mxu0 %v10270_v59  ;;  %v5541_v19 = vadd.f32 %v5540_v52, %v5498_v27  ;;  %8579 = vmatprep.mubr.msk.bf16.mxu1 %vm844_vm7, %v6060_v31  ;;  %v10285_v31 = vld [vmem:[%s16569_s3 + $0x40] ss:$16 sps:$4 sm:$0xff]   ;;  %v10292_v4 = vld [vmem:[%s16569_s3 + $0x224] ss:$16 sps:$4 sm:$0xff]  }
 0x937   : > { %v5504_v28 = vadd.f32 %v5503_v58, %v14570_v22  ;;  %v5542_v17 = vpop.f32.mrf.mxu1  ;;  %6563 = vmatpush1.bf16.msra.mxu1 %v10271_v38  ;;  %v10289_v27 = vld [vmem:[%s16569_s3 + $0x20] ss:$16 sps:$4 sm:$0xff]  }
 0x938   : > { %6109 = vmatmul.mubr.bf16.gmra.mxu0 %v6059_v11  ;;  %v5543_v22 = vadd.f32 %v5542_v17, %v5500_v50  ;;  %6564 = vmatprep.subr.bf16.mxu1 %v10272_v7  ;;  %v10296_v17 = vld [vmem:[%s16569_s3 + $0x204] ss:$16 sps:$4 sm:$0xff]   ;;  %v10297_v38 = vld [vmem:[%s16569_s3 + $0x1e0] ss:$16 sps:$4 sm:$0xff]  }
 0x939   : > { %6524 = vmatpush1.bf16.msra.mxu0 %v10273_v42  ;;  %v5544_v20 = vpop.f32.mrf.mxu1 }
 0x93a   : > { %6525 = vmatprep.subr.bf16.mxu0 %v10274_v53  ;;  %v5545_v39 = vadd.f32 %v5544_v20, %v5502_v36  ;;  %v10293_v36 = vld [vmem:[%s16569_s3] ss:$16 sps:$4 sm:$0xff]   ;;  %v10298_v20 = vld [vmem:[%s16569_s3 + $0x1c4] ss:$16 sps:$4 sm:$0xff]  }
 0x93b   : > { %v5546_v6 = vpop.f32.mrf.mxu1  ;;  %6565 = vmatpush1.bf16.msra.mxu1 %v10275_v60 }
 0x93c   : > { %v5547_v44 = vadd.f32 %v5546_v6, %v5504_v28  ;;  %6566 = vmatprep.subr.bf16.mxu1 %v10276_v56  ;;  %v10294_v28 = vld [vmem:[%s16569_s3 + $0x1e4] ss:$16 sps:$4 sm:$0xff]   ;;  %v10299_v6 = vld [vmem:[%s16569_s3 + $0x200] ss:$16 sps:$4 sm:$0xff]  }
 0x93d   : > { %6526 = vmatpush1.bf16.msra.mxu0 %v10277_v46  ;;  %6162 = vmatmul.mubr.bf16.gmra.mxu1 %v6059_v11  ;;  %v10301_v56 = vld [vmem:[%s16569_s3 + $0x1c0] ss:$16 sps:$4 sm:$0xff]   ;;  %v10302_v46 = vld [vmem:[%s16569_s3 + $0x1a4] ss:$16 sps:$4 sm:$0xff]  }
 0x93e   : > { %6527 = vmatprep.subr.bf16.mxu0 %v10278_v0  ;;  %v10303_v0 = vld [vmem:[%s16569_s3 + $0x3e0] ss:$16 sps:$4 sm:$0xff]  }
 0x93f   : > { %6567 = vmatpush1.bf16.msra.mxu1 %v10279_v14  ;;  %v10304_v14 = vld [vmem:[%s16569_s3 + $0x3c4] ss:$16 sps:$4 sm:$0xff]  }
 0x940   : > { %6568 = vmatprep.subr.bf16.mxu1 %v10280_v18  ;;  %v10305_v18 = vld [vmem:[%s16569_s3 + $0x1a0] ss:$16 sps:$4 sm:$0xff]  }
 0x941   : > { %6528 = vmatpush1.bf16.msra.mxu0 %v10281_v49  ;;  %v10306_v49 = vld [vmem:[%s16569_s3 + $0x184] ss:$16 sps:$4 sm:$0xff]  }
 0x942   : > { %6529 = vmatprep.subr.bf16.mxu0 %v10282_v10  ;;  %v10307_v10 = vld [vmem:[%s16569_s3 + $0x3c0] ss:$16 sps:$4 sm:$0xff]  }
 0x943   : > { %6569 = vmatpush1.bf16.msra.mxu1 %v10283_v15  ;;  %v10308_v15 = vld [vmem:[%s16569_s3 + $0x3a4] ss:$16 sps:$4 sm:$0xff]  }
 0x944   : > { %6570 = vmatprep.subr.bf16.mxu1 %v10284_v24  ;;  %v10309_v24 = vld [vmem:[%s16569_s3 + $0x180] ss:$16 sps:$4 sm:$0xff]  }
 0x945   : > { %6530 = vmatpush1.bf16.msra.mxu0 %v10285_v31  ;;  %v10310_v31 = vld [vmem:[%s16569_s3 + $0x164] ss:$16 sps:$4 sm:$0xff]  }
 0x946   : > { %6531 = vmatprep.subr.bf16.mxu0 %v10286_v57  ;;  %v10311_v57 = vld [vmem:[%s16569_s3 + $0x3a0] ss:$16 sps:$4 sm:$0xff]  }
 0x947   : > { %6571 = vmatpush1.bf16.msra.mxu1 %v10287_v29  ;;  %v10314_v29 = vld [vmem:[%s16569_s3 + $0x144] ss:$16 sps:$4 sm:$0xff]  }
 0x948   : > { %v5583_v30 = vpop.f32.mrf.mxu0  ;;  %6572 = vmatprep.subr.bf16.mxu1 %v10288_v2  ;;  %v10316_v2 = vld [vmem:[%s16569_s3 + $0x364] ss:$16 sps:$4 sm:$0xff]  }
 0x949   : > { %v5584_v51 = vadd.f32 %v5583_v30, %v5541_v19  ;;  %6532 = vmatpush1.bf16.msra.mxu0 %v10289_v27  ;;  %v10295_v19 = vld [vmem:[%s16569_s3 + $0x220] ss:$16 sps:$4 sm:$0xff]   ;;  %v10312_v30 = vld [vmem:[%s16569_s3 + $0x384] ss:$16 sps:$4 sm:$0xff]  }
 0x94a   : > { %v5585_v48 = vpop.f32.mrf.mxu0  ;;  %6533 = vmatprep.subr.bf16.mxu0 %v10290_v37  ;;  %v10317_v27 = vld [vmem:[%s16569_s3 + $0x140] ss:$16 sps:$4 sm:$0xff]  }
 0x94b   : > { %v5586_v55 = vadd.f32 %v5585_v48, %v5543_v22  ;;  %v5807_v25 = vmax.f32 %v5584_v51, 0.0  ;;  %6573 = vmatpush1.bf16.msra.mxu1 %v10291_v35  ;;  %v10313_v51 = vld [vmem:[%s16569_s3 + $0x160] ss:$16 sps:$4 sm:$0xff]  }
 0x94c   : > { %v5587_v8 = vpop.f32.mrf.mxu0  ;;  %6574 = vmatprep.subr.bf16.mxu1 %v10292_v4  ;;  %v10315_v48 = vld [vmem:[%s16569_s3 + $0x380] ss:$16 sps:$4 sm:$0xff]  }
 0x94d   : > { %v5588_v50 = vadd.f32 %v5587_v8, %v5545_v39  ;;  %6534 = vmatpush1.bf16.msra.mxu0 %v10293_v36  ;;  %v5808_v16 = vmax.f32 %v5586_v55, 0.0  ;;  %v5823_v52 = vrot.slane %v5807_v25, 7  ;;  %v10318_v55 = vld [vmem:[%s16569_s3 + $0x124] ss:$16 sps:$4 sm:$0xff]   ;;  %v10319_v37 = vld [vmem:[%s16569_s3 + $0x360] ss:$16 sps:$4 sm:$0xff]  }
 0x94e   : > { %v5589_v1 = vpop.f32.mrf.mxu0  ;;  %6535 = vmatprep.subr.bf16.mxu0 %v10294_v28  ;;  %v10320_v8 = vld [vmem:[%s16569_s3 + $0x344] ss:$16 sps:$4 sm:$0xff]   ;;  %v10323_v35 = vld [vmem:[%s16569_s3 + $0x340] ss:$16 sps:$4 sm:$0xff]  }
 0x94f   : > { %v5811_v58 = vmax.f32 %v5588_v50, 0.0  ;;  %v5590_v45 = vadd.f32 %v5589_v1, %v5547_v44  ;;  %6575 = vmatpush1.bf16.msra.mxu1 %v10295_v19  ;;  %v5826_v22 = vrot.slane %v5808_v16, 7  ;;  %v10300_v44 = vld [vmem:[%s16569_s3 + $0x3e4] ss:$16 sps:$4 sm:$0xff]   ;;  %v10325_v4 = vld [vmem:[%s16569_s3 + $0x100] ss:$16 sps:$4 sm:$0xff]  }
 0x950   : > { %6576 = vmatprep.subr.bf16.mxu1 %v10296_v17  ;;  %v10322_v50 = vld [vmem:[%s16569_s3 + $0x104] ss:$16 sps:$4 sm:$0xff]  }
 0x951   : > { %v5824_v11 = vrot.slane %v5811_v58, 7  ;;  %v5812_v59 = vmax.f32 %v5590_v45, 0.0  ;;  %6536 = vmatpush2.bf16.msra.mxu0 %v10297_v38  ;;  %v10324_v1 = vld [vmem:[%s16569_s3 + $0x324] ss:$16 sps:$4 sm:$0xff]   ;;  %v10329_v45 = vld [vmem:[%s16569_s3 + $0x300] ss:$16 sps:$4 sm:$0xff]  }
 0x952   : > { %6537 = vmatprep.subr.bf16.mxu0 %v10298_v20  ;;  %v10326_v36 = vld [vmem:[%s16569_s3 + $0x4e4] ss:$16 sps:$4 sm:$0xff]  }
 0x953   : > { %v5825_v7 = vsel %vm1328_vm10, %v5823_v52, %v5824_v11  ;;  %v5827_v42 = vrot.slane %v5812_v59, 7  ;;  %6577 = vmatpush1.bf16.msra.mxu1 %v10299_v6  ;;  %v10328_v58 = vld [vmem:[%s16569_s3 + $0x304] ss:$16 sps:$4 sm:$0xff]  }
 0x954   : > { %v14876_v53 = vmax.f32 %v5807_v25, %v5825_v7  ;;  %6578 = vmatprep.subr.bf16.mxu1 %v10300_v44  ;;  %v10321_v25 = vld [vmem:[%s16569_s3 + $0x120] ss:$16 sps:$4 sm:$0xff]   ;;  %v10330_v28 = vld [vmem:[%s16569_s3 + $0x6e4] ss:$16 sps:$4 sm:$0xff]  }
 0x955   : > { %v5828_v39 = vsel %vm1328_vm10, %v5826_v22, %v5827_v42  ;;  %6538 = vmatpush2.bf16.msra.mxu0 %v10301_v56 }
 0x956   : > { %v14882_v60 = vmax.f32 %v5808_v16, %v5828_v39  ;;  %6539 = vmatprep.subr.bf16.mxu0 %v10302_v46  ;;  %v10327_v16 = vld [vmem:[%s16569_s3 + $0x320] ss:$16 sps:$4 sm:$0xff]  }
 0x957   : > { %6579 = vmatpush2.bf16.msra.mxu1 %v10303_v0 }
 0x958   : > { %6580 = vmatprep.subr.bf16.mxu1 %v10304_v14 }
 0x959   : > { %6540 = vmatpush2.bf16.msra.mxu0 %v10305_v18 }
 0x95a   : > { %6541 = vmatprep.subr.bf16.mxu0 %v10306_v49 }
 0x95b   : > { %6581 = vmatpush2.bf16.msra.mxu1 %v10307_v10 }
 0x95c   : > { %6582 = vmatprep.subr.bf16.mxu1 %v10308_v15 }
 0x95d   : > { %6542 = vmatpush2.bf16.msra.mxu0 %v10309_v24 }
 0x95e   : > { %6543 = vmatprep.subr.bf16.mxu0 %v10310_v31 }
 0x95f   : > { %6583 = vmatpush2.bf16.msra.mxu1 %v10311_v57 }
 0x960   : > { %6584 = vmatprep.subr.bf16.mxu1 %v10312_v30 }
 0x961   : > { %6544 = vmatpush2.bf16.msra.mxu0 %v10313_v51 }
 0x962   : > { %6545 = vmatprep.subr.bf16.mxu0 %v10314_v29 }
 0x963   : > { %6585 = vmatpush2.bf16.msra.mxu1 %v10315_v48 }
 0x964   : > { %6586 = vmatprep.subr.bf16.mxu1 %v10316_v2 }
 0x965   : > { %6546 = vmatpush2.bf16.msra.mxu0 %v10317_v27 }
 0x966   : > { %6547 = vmatprep.subr.bf16.mxu0 %v10318_v55 }
 0x967   : > { %6587 = vmatpush2.bf16.msra.mxu1 %v10319_v37 }
 0x968   : > { %6588 = vmatprep.subr.bf16.mxu1 %v10320_v8 }
 0x969   : > { %6548 = vmatpush2.bf16.msra.mxu0 %v10321_v25 }
 0x96a   : > { %6549 = vmatprep.subr.bf16.mxu0 %v10322_v50 }
 0x96b   : > { %6589 = vmatpush2.bf16.msra.mxu1 %v10323_v35 }
 0x96c   : > { %6590 = vmatprep.subr.bf16.mxu1 %v10324_v1 }
 0x96d   : > { %6550 = vmatpush2.bf16.msra.mxu0 %v10325_v4 }
 0x96e   : > { %6605 = vmatprep.subr.bf16.mxu0 %v10326_v36 }
 0x96f   : > { %6591 = vmatpush2.bf16.msra.mxu1 %v10327_v16 }
 0x970   : > { %6592 = vmatprep.subr.bf16.mxu1 %v10328_v58 }
 0x973   : > { %6593 = vmatpush2.bf16.msra.mxu1 %v10329_v45 }
 0x974   : > { %6648 = vmatprep.subr.bf16.mxu1 %v10330_v28 }
 0x975   : > { %v5626_v52 = vpop.f32.mrf.mxu1 }
 0x976   : > { %v5627_v19 = vadd.f32 %v5626_v52, %v12435_v34 }
 0x977   : > { %v5628_v11 = vpop.f32.mrf.mxu1 }
 0x978   : > { %v5629_v38 = vadd.f32 %v5628_v11, %v12440_v43 }
 0x979   : > { %v5630_v59 = vpop.f32.mrf.mxu1 }
 0x97a   : > { %v5631_v20 = vadd.f32 %v5630_v59, %v12435_v34 }
 0x97b   : > { %v5632_v7 = vpop.f32.mrf.mxu1 }
 0x97c   : > { %v5633_v44 = vadd.f32 %v5632_v7, %v12440_v43 }
 0x988   : > { %v5669_v17 = vpop.f32.mrf.mxu0 }
 0x989   : > { %v5670_v22 = vadd.f32 %v5669_v17, %v5627_v19 }
 0x98a   : > { %v5671_v42 = vpop.f32.mrf.mxu0 }
 0x98b   : > { %v5672_v39 = vadd.f32 %v5671_v42, %v5629_v38 }
 0x98c   : > { %v5673_v6 = vpop.f32.mrf.mxu0 }
 0x98d   : > { %v5674_v56 = vadd.f32 %v5673_v6, %v5631_v20 }
 0x98e   : > { %v5675_v46 = vpop.f32.mrf.mxu0 }
 0x98f   : > { %v5676_v0 = vadd.f32 %v5675_v46, %v5633_v44 }
 0x9b5   : > { %v5712_v14 = vpop.f32.mrf.mxu1 }
 0x9b6   : > { %v5713_v18 = vadd.f32 %v5712_v14, %v5670_v22 }
 0x9b7   : > { %v5714_v49 = vpop.f32.mrf.mxu1 }
 0x9b8   : > { %v5715_v10 = vadd.f32 %v5714_v49, %v5672_v39 }
 0x9b9   : > { %v5716_v15 = vpop.f32.mrf.mxu1 }
 0x9ba   : > { %v5717_v24 = vadd.f32 %v5716_v15, %v5674_v56 }
 0x9bb   : > { %v5718_v31 = vpop.f32.mrf.mxu1 }
 0x9bc   : > { %v5719_v57 = vadd.f32 %v5718_v31, %v5676_v0 }
 0x9c8   : > { %v5755_v30 = vpop.f32.mrf.mxu0 }
 0x9c9   : > { %v5756_v51 = vadd.f32 %v5755_v30, %v5713_v18 }
 0x9ca   : > { %v5757_v29 = vpop.f32.mrf.mxu0 }
 0x9cb   : > { %v5758_v48 = vadd.f32 %v5757_v29, %v5715_v10 }
 0x9cc   : > { %v5759_v2 = vpop.f32.mrf.mxu0 }
 0x9cd   : > { %v5760_v27 = vadd.f32 %v5759_v2, %v5717_v24  ;;  %v5798_v8 = vpop.f32.mrf.mxu1 }
 0x9ce   : > { %v5761_v55 = vpop.f32.mrf.mxu0  ;;  %v5799_v25 = vadd.f32 %v5798_v8, %v5756_v51 }
 0x9cf   : > { %v5762_v37 = vadd.f32 %v5761_v55, %v5719_v57  ;;  %v5800_v50 = vpop.f32.mrf.mxu1 }
 0x9d0   : > { %v5801_v35 = vadd.f32 %v5800_v50, %v5758_v48  ;;  %v5809_v4 = vmax.f32 %v5799_v25, 0.0 }
 0x9d1   : > { %v5802_v1 = vpop.f32.mrf.mxu1 }
 0x9d2   : > { %v5803_v36 = vadd.f32 %v5802_v1, %v5760_v27  ;;  %v5810_v58 = vmax.f32 %v5801_v35, 0.0  ;;  %v5829_v52 = vrot.slane %v5809_v4, 7 }
 0x9d3   : > { %v5804_v16 = vpop.f32.mrf.mxu1 }
 0x9d4   : > { %v5813_v45 = vmax.f32 %v5803_v36, 0.0  ;;  %v5805_v28 = vadd.f32 %v5804_v16, %v5762_v37  ;;  %v5832_v19 = vrot.slane %v5810_v58, 7 }
 0x9d6   : > { %v5830_v11 = vrot.slane %v5813_v45, 7  ;;  %v5814_v59 = vmax.f32 %v5805_v28, 0.0 }
 0x9d8   : > { %v5831_v17 = vsel %vm1328_vm10, %v5829_v52, %v5830_v11  ;;  %v5833_v38 = vrot.slane %v5814_v59, 7 }
 0x9d9   : > { %v14982_v22 = vmax.f32 %v5809_v4, %v5831_v17 }
 0x9da   : > { %v5834_v7 = vsel %vm1328_vm10, %v5832_v19, %v5833_v38 }
 0x9db   : > { %v14985_v42 = vmax.f32 %v5810_v58, %v5834_v7 }
 0x9dd   : > { %v8981_v20 = vpack.i.bf16 %v12450_v41, %v14985_v42  ;;  %v9486_v41 = vld [vmem:[%s16571_s5 + $0xf8] sm:$0xff]  }
 0x9de   : > { %v9487_v42 = vld [vmem:[%s16571_s5 + $0xb8] sm:$0xff]  }
 0x9f0   : > { %v6100_v39 = vpop.f32.mrf.mxu0 }
 0x9f1   : > { %v6101_v6 = vadd.f32 %v6100_v39, %v10927_v61 }
 0x9f2   : > { %v6102_v44 = vpop.f32.mrf.mxu0 }
 0x9f3   : > { %v6103_v56 = vadd.f32 %v6102_v44, %v10935_v63  ;;  %v6172_v0 = vmax.f32 %v6101_v6, 0.0 }
 0x9f4   : > { %v6104_v46 = vpop.f32.mrf.mxu0 }
 0x9f5   : > { %v6105_v14 = vadd.f32 %v6104_v46, %v10927_v61  ;;  %v6153_v15 = vpop.f32.mrf.mxu1  ;;  %v6173_v24 = vmax.f32 %v6103_v56, 0.0  ;;  %v6196_v30 = vrot.slane %v6172_v0, 7 }
 0x9f6   : > { %v6106_v18 = vpop.f32.mrf.mxu0  ;;  %v6154_v31 = vadd.f32 %v6153_v15, %v10931_v62 }
 0x9f7   : > { %v6176_v49 = vmax.f32 %v6105_v14, 0.0  ;;  %v6107_v10 = vadd.f32 %v6106_v18, %v10935_v63  ;;  %v6155_v2 = vpop.f32.mrf.mxu1  ;;  %v6199_v4 = vrot.slane %v6173_v24, 7 }
 0x9f8   : > { %v6110_v57 = vpop.f32.mrf.mxu0  ;;  %v6174_v27 = vmax.f32 %v6154_v31, 0.0  ;;  %v6156_v55 = vadd.f32 %v6155_v2, %v10943_v12 }
 0x9f9   : > { %v6197_v51 = vrot.slane %v6176_v49, 7  ;;  %v6177_v29 = vmax.f32 %v6107_v10, 0.0  ;;  %v6111_v48 = vadd.f32 %v6110_v57, %v10927_v61  ;;  %v6157_v1 = vpop.f32.mrf.mxu1 }
 0x9fa   : > { %v6112_v37 = vpop.f32.mrf.mxu0  ;;  %v6158_v16 = vadd.f32 %v6157_v1, %v10931_v62  ;;  %v6175_v28 = vmax.f32 %v6156_v55, 0.0  ;;  %v6202_v19 = vrot.slane %v6174_v27, 7 }
 0x9fb   : > { %v6198_v8 = vsel %vm1328_vm10, %v6196_v30, %v6197_v51  ;;  %v6200_v25 = vrot.slane %v6177_v29, 7  ;;  %v6180_v50 = vmax.f32 %v6111_v48, 0.0  ;;  %v6113_v35 = vadd.f32 %v6112_v37, %v10935_v63  ;;  %v6159_v59 = vpop.f32.mrf.mxu1 }
 0x9fc   : > { %v14998_v36 = vmax.f32 %v6172_v0, %v6198_v8  ;;  %v6114_v58 = vpop.f32.mrf.mxu0  ;;  %v6178_v17 = vmax.f32 %v6158_v16, 0.0  ;;  %v6160_v38 = vadd.f32 %v6159_v59, %v10943_v12 }
 0x9fd   : > { %v6224_v45 = vrot.slane %v6180_v50, 7  ;;  %v6181_v52 = vmax.f32 %v6113_v35, 0.0  ;;  %v6115_v11 = vadd.f32 %v6114_v58, %v10927_v61  ;;  %v6201_v39 = vsel %vm1328_vm10, %v6199_v4, %v6200_v25  ;;  %v6163_v46 = vpop.f32.mrf.mxu1 }
 0x9fe   : > { %v6116_v7 = vpop.f32.mrf.mxu0  ;;  %v6203_v14 = vrot.slane %v6178_v17, 7  ;;  %v6179_v18 = vmax.f32 %v6160_v38, 0.0  ;;  %v6164_v10 = vadd.f32 %v6163_v46, %v10931_v62  ;;  %v6205_v61 = vrot.slane %v6175_v28, 7 }
 0x9ff   : > { %v15004_v6 = vmax.f32 %v6176_v49, %v6224_v45  ;;  %v6184_v44 = vmax.f32 %v6115_v11, 0.0  ;;  %v6117_v56 = vadd.f32 %v6116_v7, %v10935_v63  ;;  %v6225_v0 = vrot.slane %v6181_v52, 7  ;;  %v6165_v57 = vpop.f32.mrf.mxu1 }
 0xa00   : > { %v6204_v30 = vsel %vm1328_vm10, %v6202_v19, %v6203_v14  ;;  %v6206_v51 = vrot.slane %v6179_v18, 7  ;;  %v6182_v48 = vmax.f32 %v6164_v10, 0.0  ;;  %v6166_v49 = vadd.f32 %v6165_v57, %v10943_v12 }
 0xa01   : > { %v6228_v15 = vrot.slane %v6184_v44, 7  ;;  %v6185_v31 = vmax.f32 %v6117_v56, 0.0  ;;  %v6213_v2 = vmax.f32 %v6173_v24, %v6201_v39  ;;  %v6214_v55 = vmax.f32 %v6174_v27, %v6204_v30  ;;  %v6167_v63 = vpop.f32.mrf.mxu1 }
 0xa02   : > { %v15011_v25 = vmax.f32 %v6177_v29, %v6225_v0  ;;  %v6207_v35 = vsel %vm1328_vm10, %v6205_v61, %v6206_v51  ;;  %v6226_v1 = vrot.slane %v6182_v48, 7  ;;  %v6168_v4 = vadd.f32 %v6167_v63, %v10931_v62 }
 0xa03   : > { %v6230_v37 = vrot.slane %v6185_v31, 7  ;;  %v6229_v8 = vsel %vm1328_vm10, %v6224_v45, %v6228_v15  ;;  %v6215_v16 = vmax.f32 %v6175_v28, %v6207_v35  ;;  %v6169_v11 = vpop.f32.mrf.mxu1  ;;  %v8936_v59 = vpack.i.bf16 %v6214_v55, %v6213_v2 }
 0xa04   : > { %v6248_v19 = vmax.f32 %v6180_v50, %v6229_v8  ;;  %v6246_v24 = vmax.f32 %v6178_v17, %v6226_v1  ;;  %v6183_v27 = vmax.f32 %v6166_v49, 0.0  ;;  %v6186_v7 = vmax.f32 %v6168_v4, 0.0 }
 0xa05   : > { %v6231_v58 = vsel %vm1328_vm10, %v6225_v0, %v6230_v37  ;;  %v6170_v45 = vadd.f32 %v6169_v11, %v10943_v12  ;;  %8937 = vrot.lane.b32.xlu1 %v8936_v59, %s16584_s29  ;;  %v8941_v29 = vpack.i.bf16 %v15011_v25, %v6215_v16 }
 0xa06   : > { %v15016_v38 = vmax.f32 %v6181_v52, %v6231_v58  ;;  %v6232_v62 = vrot.slane %v6186_v7, 7  ;;  %v6227_v44 = vrot.slane %v6183_v27, 7 }
 0xa07   : > { %v6187_v28 = vmax.f32 %v6170_v45, 0.0  ;;  %8942 = vrot.lane.b32.xlu0 %v8941_v29, %s16584_s29 }
 0xa08   : > { %v8946_v39 = vpack.i.bf16 %v15016_v38, %v6246_v24  ;;  %v6233_v50 = vsel %vm1328_vm10, %v6226_v1, %v6232_v62  ;;  %v6247_v12 = vmax.f32 %v6179_v18, %v6227_v44 }
 0xa09   : > { %v6250_v52 = vmax.f32 %v6182_v48, %v6233_v50  ;;  %v6234_v56 = vrot.slane %v6187_v28, 7 }
 0xa0a   : > { %8947 = vrot.lane.b32.xlu1 %v8946_v39, %s16584_s29 }
 0xa0b   : > { %v6235_v17 = vsel %vm1328_vm10, %v6227_v44, %v6234_v56  ;;  %6283 = vrot.lane.b32.xlu0 %v6250_v52, %s16584_s29 }
 0xa0c   : > { %v6251_v46 = vmax.f32 %v6183_v27, %v6235_v17 }
 0xa0e   : > { %v8951_v0 = vpack.i.bf16 %v6251_v46, %v6247_v12 }
 0xa10   : > { %8952 = vrot.lane.b32.xlu1 %v8951_v0, %s16584_s29 }
 0xa77   : > { %v8938_v14 = vpop.permute.xlu1 %8937 }
 0xa78   : > { %v8940_v10 = vunpack.i.h.bf16 %v8938_v14  ;;  %v8939_v61 = vunpack.i.l.bf16 %v8938_v14 }
 0xa79   : > { %v8943_v15 = vpop.permute.xlu0 %8942 }
 0xa7a   : > { %v6261_v31 = vsel %vm844_vm7, %v8939_v61, %v8940_v10  ;;  %v8944_v57 = vunpack.i.l.bf16 %v8943_v15  ;;  %v8945_v48 = vunpack.i.h.bf16 %v8943_v15 }
 0xa7b   : > { %v6265_v30 = vmax.f32 %v14998_v36, %v6261_v31 }
 0xa7c   : > { %v8948_v51 = vpop.permute.xlu1 %8947  ;;  %v6262_v49 = vsel %vm844_vm7, %v8940_v10, %v8944_v57 }
 0xa7d   : > { %v8950_v55 = vunpack.i.h.bf16 %v8948_v51  ;;  %v8949_v37 = vunpack.i.l.bf16 %v8948_v51  ;;  %v6267_v18 = vpack.c.bf16 %v6265_v30, %v6265_v30  ;;  %v6266_v63 = vmax.f32 %v6213_v2, %v6262_v49  ;;  %v6284_v8 = vpop.permute.xlu0 %6283 }
 0xa7f   : > { %v6287_v35 = vsel %vm844_vm7, %v8945_v48, %v8949_v37  ;;  %v6289_v1 = vsel %vm844_vm7, %v8950_v55, %v6284_v8  ;;  %v6302_v4 = vshrl.u32 %v6267_v18, 16  ;;  %v6268_v16 = vpack.c.bf16 %v6266_v63, %v6266_v63 }
 0xa80   : > { %v6295_v58 = vmax.f32 %v15004_v6, %v6287_v35  ;;  %v6297_v11 = vmax.f32 %v6248_v19, %v6289_v1  ;;  %v6305_v36 = vshll.u32 %v6267_v18, 16 }
 0xa81   : > { %v6304_v59 = vrot.slane %v6302_v4, 7  ;;  %v6309_v24 = vshrl.u32 %v6268_v16, 16  ;;  %v6312_v27 = vshll.u32 %v6268_v16, 16 }
 0xa82   : > { %v6299_v7 = vpack.c.bf16 %v6297_v11, %v6295_v58  ;;  %v8953_v45 = vpop.permute.xlu1 %8952 }
 0xa83   : > { %v6307_v29 = vor.u32 %v6305_v36, %v6304_v59  ;;  %v6311_v39 = vrot.slane %v6309_v24, 7  ;;  %v8955_v62 = vunpack.i.h.bf16 %v8953_v45  ;;  %v8954_v2 = vunpack.i.l.bf16 %v8953_v45 }
 0xa84   : > { %v6325_v28 = vshrl.u32 %v6299_v7, 16  ;;  %v6328_v44 = vshll.u32 %v6299_v7, 16 }
 0xa85   : > { %v6317_v50 = vsel %vm11161_vm12, 0, %v6307_v29  ;;  %v6314_v52 = vor.u32 %v6312_v27, %v6311_v39  ;;  %v6290_v56 = vsel %vm844_vm7, %v6284_v8, %v8955_v62  ;;  %v6288_v6 = vsel %vm844_vm7, %v8949_v37, %v8954_v2 }
 0xa86   : > { %v6327_v19 = vrot.slane %v6325_v28, 2  ;;  %v6330_v17 = vrot.slane %v6328_v44, 3  ;;  %v6298_v12 = vmax.f32 %v15016_v38, %v6290_v56  ;;  %v6296_v46 = vmax.f32 %v15011_v25, %v6288_v6 }
 0xa87   : > { %v6318_v0 = vsel %vm11161_vm12, 0, %v6314_v52  ;;  %v6320_v14 = vsel %vm954_vm1, %v6317_v50, 0 }
 0xa88   : > { %v6331_v10 = vor.u32 %v6330_v17, %v6327_v19  ;;  %v6300_v61 = vpack.c.bf16 %v6298_v12, %v6296_v46  ;;  %v6358_v15 = vshll.u32 %v6320_v14, 16  ;;  %v15044_v31 = vsel %vm954_vm1, %v6318_v0, 0 }
 0xa89   : > { %v6356_v30 = vshrl.u32 %v6320_v14, 16  ;;  %v6364_v38 = vshll.u32 %v15044_v31, 16  ;;  %v6362_v48 = vshrl.u32 %v15044_v31, 16  ;;  %v6394_v50 = vrot.slane %v6320_v14, 1 }
 0xa8a   : > { %v6342_v57 = vsel %vm11161_vm12, 0, %v6331_v10  ;;  %v6360_v51 = vrot.slane %v6358_v15, 1  ;;  %v6333_v49 = vshrl.u32 %v6300_v61, 16  ;;  %v6336_v55 = vshll.u32 %v6300_v61, 16 }
 0xa8b   : > { %v6345_v25 = vsel %vm954_vm1, %v6342_v57, 0  ;;  %v6366_v18 = vrot.slane %v6364_v38, 1  ;;  %v6395_v12 = vrot.slane %v15044_v31, 1  ;;  %v8956_v46 = vpack.i.bf16 %v13715_v23, %v13621_v21 }
 0xa8c   : > { %v6361_v37 = vor.u32 %v6360_v51, %v6356_v30  ;;  %v6374_v63 = vshrl.u32 %v6345_v25, 16  ;;  %v6376_v8 = vshll.u32 %v6345_v25, 16  ;;  %v6335_v35 = vrot.slane %v6333_v49, 2 }
 0xa8d   : > { %v6338_v1 = vrot.slane %v6336_v55, 3  ;;  %v6424_v4 = vrot.slane %v6345_v25, 1  ;;  %v6367_v16 = vor.u32 %v6366_v18, %v6362_v48  ;;  %v8961_v0 = vpack.i.bf16 %v14982_v22, %v14882_v60 }
 0xa8e   : > { %6409 = vrot.lane.b32.xlu0 %v6361_v37, %s10609_s19  ;;  %v6378_v58 = vrot.slane %v6376_v8, 1  ;;  %v6434_v11 = vrot.slane %v6374_v63, 4  ;;  %v6435_v59 = vrot.slane %v6376_v8, 5 }
 0xa8f   : > { %v6339_v36 = vor.u32 %v6338_v1, %v6335_v35  ;;  %v6483_v24 = vshrl.u32 %v6424_v4, 16  ;;  %v6486_v27 = vshll.u32 %v6424_v4, 16  ;;  %6411 = vrot.lane.b32.xlu1 %v6367_v16, %s10609_s19 }
 0xa90   : > { %v6379_v7 = vor.u32 %v6378_v58, %v6374_v63  ;;  %v6436_v45 = vor.u32 %v6435_v59, %v6434_v11 }
 0xa91   : > { %v6343_v29 = vsel %vm11161_vm12, 0, %v6339_v36  ;;  %v6485_v39 = vrot.slane %v6483_v24, 4  ;;  %v6488_v62 = vrot.slane %v6486_v27, 5 }
 0xa92   : > { %6414 = vrot.lane.b32.xlu0 %v6379_v7, %s10608_s9  ;;  %v15057_v2 = vsel %vm954_vm1, %v6343_v29, 0  ;;  %v15061_v28 = vsel %vm10856_vm5, %v6320_v14, %v6436_v45  ;;  %v10332_v29 = vld [vmem:[%s16569_s3 + $0x4c4] ss:$16 sps:$4 sm:$0xff]  }
 0xa93   : > { %v6382_v44 = vshll.u32 %v15057_v2, 16  ;;  %v6489_v52 = vor.u32 %v6488_v62, %v6485_v39  ;;  %6350 = vrot.lane.b32.xlu1 %v6345_v25, %s10609_s19  ;;  %v6380_v19 = vshrl.u32 %v15057_v2, 16 }
 0xa95   : > { %v6384_v56 = vrot.slane %v6382_v44, 1  ;;  %v15067_v6 = vsel %vm10856_vm5, %v6394_v50, %v6489_v52  ;;  %v10333_v52 = vld [vmem:[%s16569_s3 + $0x4c0] ss:$16 sps:$4 sm:$0xff]  }
 0xa96   : > { %6352 = vrot.lane.b32.xlu0 %v15057_v2, %s10609_s19 }
 0xa97   : > { %6368 = vrot.lane.b32.xlu1 %v6361_v37, %s10608_s9  ;;  %v6385_v17 = vor.u32 %v6384_v56, %v6380_v19 }
 0xa9a   : > { %6416 = vrot.lane.b32.xlu0 %v6385_v17, %s10608_s9 }
 0xa9b   : > { %6419 = vrot.lane.b32.xlu1 %v6394_v50, %s16584_s29 }
 0xa9e   : > { %6421 = vrot.lane.b32.xlu0 %v6395_v12, %s16584_s29 }
 0xa9f   : > { %6370 = vrot.lane.b32.xlu1 %v6367_v16, %s10608_s9 }
 0xaa2   : > { %6386 = vrot.lane.b32.xlu0 %v6379_v7, %s16584_s29  ;;  %v10331_v7 = vld [vmem:[%s16569_s3 + $0x4e0] ss:$16 sps:$4 sm:$0xff]  }
 0xaa3   : > { %6388 = vrot.lane.b32.xlu1 %v6385_v17, %s16584_s29  ;;  %v10334_v17 = vld [vmem:[%s16569_s3 + $0x6e0] ss:$16 sps:$4 sm:$0xff]  }
 0xaa6   : > { %8957 = vrot.lane.b32.xlu0 %v8956_v46, %s16584_s29 }
 0xaaa   : > { %8962 = vrot.lane.b32.xlu0 %v8961_v0, %s16584_s29  ;;  %v10335_v0 = vld [vmem:[%s16569_s3 + $0x4a4] ss:$16 sps:$4 sm:$0xff]  }
 0xb00   : > { %v6410_v14 = vpop.permute.xlu0 %6409 }
 0xb01   : > { %v6427_v10 = vsel %vm851_vm9, %v15057_v2, %v6410_v14  ;;  %v6412_v57 = vpop.permute.xlu1 %6411 }
 0xb02   : > { %v6437_v61 = vshrl.u32 %v6427_v10, 16  ;;  %v6440_v15 = vshll.u32 %v6427_v10, 16  ;;  %v6413_v30 = vsel %vm851_vm9, %v6410_v14, %v6412_v57  ;;  %v10336_v14 = vld [vmem:[%s16569_s3 + $0x6c4] ss:$16 sps:$4 sm:$0xff]  }
 0xb03   : > { %v6445_v25 = vshrl.u32 %v6413_v30, 16  ;;  %v6448_v23 = vshll.u32 %v6413_v30, 16 }
 0xb04   : > { %v6439_v51 = vrot.slane %v6437_v61, 4  ;;  %v6442_v38 = vrot.slane %v6440_v15, 5  ;;  %v15091_v48 = vpop.permute.xlu0 %6414  ;;  %v10337_v15 = vld [vmem:[%s16569_s3 + $0x4a0] ss:$16 sps:$4 sm:$0xff]  }
 0xb05   : > { %v6430_v22 = vsel %vm848_vm8, %v6412_v57, %v15091_v48  ;;  %v6447_v55 = vrot.slane %v6445_v25, 4  ;;  %v6450_v37 = vrot.slane %v6448_v23, 5  ;;  %v6351_v63 = vpop.permute.xlu1 %6350  ;;  %v10339_v25 = vld [vmem:[%s16569_s3 + $0x484] ss:$16 sps:$4 sm:$0xff]  }
 0xb06   : > { %v6443_v49 = vor.u32 %v6442_v38, %v6439_v51  ;;  %v6452_v18 = vshrl.u32 %v6430_v22, 16  ;;  %v6455_v8 = vshll.u32 %v6430_v22, 16  ;;  %v6399_v35 = vsel %vm851_vm9, %v15044_v31, %v6351_v63  ;;  %v10338_v51 = vld [vmem:[%s16569_s3 + $0x6c0] ss:$16 sps:$4 sm:$0xff]   ;;  %v10340_v22 = vld [vmem:[%s16569_s3 + $0x6a4] ss:$16 sps:$4 sm:$0xff]  }
 0xb07   : > { %v6451_v11 = vor.u32 %v6450_v37, %v6447_v55  ;;  %v10341_v55 = vld [vmem:[%s16569_s3 + $0x480] ss:$16 sps:$4 sm:$0xff]   ;;  %v10419_v31 = vld [vmem:[%s16569_s3 + $0x2cc] ss:$16 sps:$4 sm:$0xff]  }
 0xb08   : > { %v6454_v1 = vrot.slane %v6452_v18, 4  ;;  %v6353_v4 = vpop.permute.xlu0 %6352  ;;  %v15099_v16 = vsel %vm10856_vm5, %v6399_v35, %v6443_v49  ;;  %v6457_v58 = vrot.slane %v6455_v8, 5  ;;  %v10342_v37 = vld [vmem:[%s16569_s3 + $0x6a0] ss:$16 sps:$4 sm:$0xff]   ;;  %v10343_v18 = vld [vmem:[%s16569_s3 + $0x464] ss:$16 sps:$4 sm:$0xff]  }
 0xb09   : > { %6551 = vmatprep.mubr.bf16.mxu0 %v15099_v16  ;;  %v15102_v59 = vpop.permute.xlu1 %6368  ;;  %v6354_v24 = vsel %vm851_vm9, %v6351_v63, %v6353_v4  ;;  %v10344_v63 = vld [vmem:[%s16569_s3 + $0x684] ss:$16 sps:$4 sm:$0xff]   ;;  %v10345_v8 = vld [vmem:[%s16569_s3 + $0x460] ss:$16 sps:$4 sm:$0xff]  }
 0xb0a   : > { %6552 = vmatmul.mubr.bf16.vlgmr.msra.gmra.mxu0 %v15061_v28  ;;  %v6458_v36 = vor.u32 %v6457_v58, %v6454_v1  ;;  %v6403_v27 = vsel %vm848_vm8, %v6353_v4, %v15102_v59  ;;  %v15122_v62 = vsel %vm10856_vm5, %v6354_v24, %v6451_v11  ;;  %v10346_v35 = vld [vmem:[%s16569_s3 + $0x680] ss:$16 sps:$4 sm:$0xff]   ;;  %v10347_v1 = vld [vmem:[%s16569_s3 + $0x444] ss:$16 sps:$4 sm:$0xff]  }
 0xb0b   : > { %6606 = vmatpush1.bf16.msra.mxu0 %v10331_v7  ;;  %v10348_v4 = vld [vmem:[%s16569_s3 + $0x664] ss:$16 sps:$4 sm:$0xff]   ;;  %v10349_v58 = vld [vmem:[%s16569_s3 + $0x440] ss:$16 sps:$4 sm:$0xff]  }
 0xb0c   : > { %v15111_v45 = vpop.permute.xlu0 %6416  ;;  %6607 = vmatprep.subr.bf16.mxu0 %v10332_v29  ;;  %v15118_v39 = vsel %vm10856_vm5, %v6403_v27, %v6458_v36  ;;  %v10350_v11 = vld [vmem:[%s16569_s3 + $0x660] ss:$16 sps:$4 sm:$0xff]   ;;  %v10351_v36 = vld [vmem:[%s16569_s3 + $0x424] ss:$16 sps:$4 sm:$0xff]  }
 0xb0d   : > { %6594 = vmatprep.mubr.bf16.mxu1 %v15118_v39  ;;  %v15125_v44 = vpop.permute.xlu1 %6419  ;;  %v10352_v24 = vld [vmem:[%s16569_s3 + $0x644] ss:$16 sps:$4 sm:$0xff]   ;;  %v10353_v27 = vld [vmem:[%s16569_s3 + $0x420] ss:$16 sps:$4 sm:$0xff]  }
 0xb0e   : > { %v6433_v50 = vsel %vm844_vm7, %v15111_v45, %v15125_v44  ;;  %6595 = vmatmul.mubr.bf16.vlgmr.msra.gmra.mxu1 %v15122_v62  ;;  %v10354_v7 = vld [vmem:[%s16569_s3 + $0x640] ss:$16 sps:$4 sm:$0xff]   ;;  %v10355_v29 = vld [vmem:[%s16569_s3 + $0x404] ss:$16 sps:$4 sm:$0xff]  }
 0xb0f   : > { %6608 = vmatpush1.bf16.msra.mxu0 %v10333_v52  ;;  %v6467_v56 = vshrl.u32 %v6433_v50, 16  ;;  %v6470_v19 = vshll.u32 %v6433_v50, 16  ;;  %6649 = vmatpush1.bf16.msra.mxu1 %v10334_v17  ;;  %v10356_v50 = vld [vmem:[%s16569_s3 + $0x624] ss:$16 sps:$4 sm:$0xff]   ;;  %v10357_v52 = vld [vmem:[%s16569_s3 + $0x400] ss:$16 sps:$4 sm:$0xff]  }
 0xb10   : > { %6680 = vmatprep.mubr.bf16.mxu1 %v15067_v6  ;;  %v15138_v46 = vpop.permute.xlu0 %6421  ;;  %6609 = vmatprep.subr.bf16.mxu0 %v10335_v0  ;;  %v10360_v17 = vld [vmem:[%s16569_s3 + $0x604] ss:$16 sps:$4 sm:$0xff]   ;;  %v10361_v0 = vld [vmem:[%s16569_s3 + $0x5e0] ss:$16 sps:$4 sm:$0xff]  }
 0xb11   : > { %6650 = vmatprep.subr.bf16.mxu1 %v10336_v14  ;;  %v6469_v10 = vrot.slane %v6467_v56, 4  ;;  %v6472_v61 = vrot.slane %v6470_v19, 5  ;;  %v15149_v30 = vpop.permute.xlu1 %6370  ;;  %v10358_v56 = vld [vmem:[%s16569_s3 + $0x620] ss:$16 sps:$4 sm:$0xff]   ;;  %v10359_v19 = vld [vmem:[%s16569_s3 + $0x5e4] ss:$16 sps:$4 sm:$0xff]  }
 0xb12   : > { %v10362_v14 = vld [vmem:[%s16569_s3 + $0x600] ss:$16 sps:$4 sm:$0xff]  }
 0xb13   : > { %6610 = vmatpush1.bf16.msra.mxu0 %v10337_v15  ;;  %v6473_v57 = vor.u32 %v6472_v61, %v6469_v10  ;;  %6651 = vmatpush1.bf16.msra.mxu1 %v10338_v51  ;;  %v10363_v10 = vld [vmem:[%s16569_s3 + $0x5c4] ss:$16 sps:$4 sm:$0xff]   ;;  %v10365_v15 = vld [vmem:[%s16569_s3 + $0x5c0] ss:$16 sps:$4 sm:$0xff]  }
 0xb14   : > { %v15154_v38 = vpop.permute.xlu0 %6386  ;;  %6611 = vmatprep.subr.bf16.mxu0 %v10339_v25  ;;  %6652 = vmatprep.subr.bf16.mxu1 %v10340_v22  ;;  %v10364_v61 = vld [vmem:[%s16569_s3 + $0x7e4] ss:$16 sps:$4 sm:$0xff]   ;;  %v10370_v22 = vld [vmem:[%s16569_s3 + $0x7c0] ss:$16 sps:$4 sm:$0xff]  }
 0xb15   : > { %v6407_v23 = vsel %vm844_vm7, %v15149_v30, %v15154_v38  ;;  %v10367_v51 = vld [vmem:[%s16569_s3 + $0x5a4] ss:$16 sps:$4 sm:$0xff]  }
 0xb16   : > { %v15167_v49 = vsel %vm10856_vm5, %v6407_v23, %v6473_v57  ;;  %v10366_v57 = vld [vmem:[%s16569_s3 + $0x7e0] ss:$16 sps:$4 sm:$0xff]   ;;  %v10368_v25 = vld [vmem:[%s16569_s3 + $0x7c4] ss:$16 sps:$4 sm:$0xff]  }
 0xb17   : > { %6612 = vmatpush1.bf16.msra.mxu0 %v10341_v55  ;;  %6637 = vmatprep.mubr.bf16.mxu0 %v15167_v49  ;;  %v10369_v23 = vld [vmem:[%s16569_s3 + $0x5a0] ss:$16 sps:$4 sm:$0xff]   ;;  %v10371_v55 = vld [vmem:[%s16569_s3 + $0x584] ss:$16 sps:$4 sm:$0xff]  }
 0xb18   : > { %6653 = vmatpush1.bf16.msra.mxu1 %v10342_v37  ;;  %6613 = vmatprep.subr.bf16.mxu0 %v10343_v18  ;;  %v10372_v37 = vld [vmem:[%s16569_s3 + $0x7a4] ss:$16 sps:$4 sm:$0xff]   ;;  %v10373_v18 = vld [vmem:[%s16569_s3 + $0x580] ss:$16 sps:$4 sm:$0xff]  }
 0xb19   : > { %6654 = vmatprep.subr.bf16.mxu1 %v10344_v63  ;;  %v10374_v63 = vld [vmem:[%s16569_s3 + $0x7a0] ss:$16 sps:$4 sm:$0xff]  }
 0xb1b   : > { %6614 = vmatpush1.bf16.msra.mxu0 %v10345_v8  ;;  %v10375_v8 = vld [vmem:[%s16569_s3 + $0x564] ss:$16 sps:$4 sm:$0xff]  }
 0xb1c   : > { %6655 = vmatpush1.bf16.msra.mxu1 %v10346_v35  ;;  %6615 = vmatprep.subr.bf16.mxu0 %v10347_v1  ;;  %v10376_v35 = vld [vmem:[%s16569_s3 + $0x784] ss:$16 sps:$4 sm:$0xff]   ;;  %v6418_v1 = vsel %vm848_vm8, %v15091_v48, %v15111_v45  ;;  %v6423_v45 = vsel %vm844_vm7, %v15125_v44, %v15138_v46 }
 0xb1d   : > { %6656 = vmatprep.subr.bf16.mxu1 %v10348_v4  ;;  %v10377_v4 = vld [vmem:[%s16569_s3 + $0x560] ss:$16 sps:$4 sm:$0xff]   ;;  %v10380_v48 = vld [vmem:[%s16569_s3 + $0x764] ss:$16 sps:$4 sm:$0xff]   ;;  %v6475_v46 = vshrl.u32 %v6423_v45, 16 }
 0xb1e   : > { %v10384_v44 = vld [vmem:[%s16569_s3 + $0x744] ss:$16 sps:$4 sm:$0xff]  }
 0xb1f   : > { %6616 = vmatpush1.bf16.msra.mxu0 %v10349_v58  ;;  %v10378_v58 = vld [vmem:[%s16569_s3 + $0x780] ss:$16 sps:$4 sm:$0xff]  }
 0xb20   : > { %6657 = vmatpush1.bf16.msra.mxu1 %v10350_v11  ;;  %6617 = vmatprep.subr.bf16.mxu0 %v10351_v36  ;;  %v10379_v11 = vld [vmem:[%s16569_s3 + $0x544] ss:$16 sps:$4 sm:$0xff]   ;;  %v6460_v36 = vshrl.u32 %v6418_v1, 16 }
 0xb21   : > { %6658 = vmatprep.subr.bf16.mxu1 %v10352_v24  ;;  %v6463_v24 = vshll.u32 %v6418_v1, 16  ;;  %v10397_v1 = vld [vmem:[%s16569_s3 + $0x880] ss:$16 sps:$4 sm:$0xff]  }
 0xb23   : > { %6618 = vmatpush1.bf16.msra.mxu0 %v10353_v27  ;;  %v10381_v27 = vld [vmem:[%s16569_s3 + $0x540] ss:$16 sps:$4 sm:$0xff]  }
 0xb24   : > { %6659 = vmatpush1.bf16.msra.mxu1 %v10354_v7  ;;  %6619 = vmatprep.subr.bf16.mxu0 %v10355_v29  ;;  %v10382_v7 = vld [vmem:[%s16569_s3 + $0x760] ss:$16 sps:$4 sm:$0xff]   ;;  %v10383_v29 = vld [vmem:[%s16569_s3 + $0x524] ss:$16 sps:$4 sm:$0xff]  }
 0xb25   : > { %6660 = vmatprep.subr.bf16.mxu1 %v10356_v50  ;;  %v6462_v50 = vrot.slane %v6460_v36, 4  ;;  %v10400_v36 = vld [vmem:[%s16569_s3 + $0xcc] ss:$16 sps:$4 sm:$0xff]  }
 0xb27   : > { %6620 = vmatpush1.bf16.msra.mxu0 %v10357_v52  ;;  %v6465_v52 = vrot.slane %v6463_v24, 5  ;;  %v10401_v24 = vld [vmem:[%s16569_s3 + $0x860] ss:$16 sps:$4 sm:$0xff]  }
 0xb28   : > { %6661 = vmatpush1.bf16.msra.mxu1 %v10358_v56  ;;  %6621 = vmatprep.subr.bf16.mxu0 %v10359_v19  ;;  %v6478_v56 = vshll.u32 %v6423_v45, 16  ;;  %v10385_v19 = vld [vmem:[%s16569_s3 + $0x520] ss:$16 sps:$4 sm:$0xff]  }
 0xb29   : > { %6662 = vmatprep.subr.bf16.mxu1 %v10360_v17  ;;  %v10386_v17 = vld [vmem:[%s16569_s3 + $0x740] ss:$16 sps:$4 sm:$0xff]  }
 0xb2b   : > { %6622 = vmatpush2.bf16.msra.mxu0 %v10361_v0  ;;  %v10387_v0 = vld [vmem:[%s16569_s3 + $0x504] ss:$16 sps:$4 sm:$0xff]  }
 0xb2c   : > { %6663 = vmatpush1.bf16.msra.mxu1 %v10362_v14  ;;  %6623 = vmatprep.subr.bf16.mxu0 %v10363_v10  ;;  %v6466_v14 = vor.u32 %v6465_v52, %v6462_v50  ;;  %v10388_v10 = vld [vmem:[%s16569_s3 + $0x724] ss:$16 sps:$4 sm:$0xff]   ;;  %v10408_v52 = vld [vmem:[%s16569_s3 + $0x8c] ss:$16 sps:$4 sm:$0xff]  }
 0xb2d   : > { %6664 = vmatprep.subr.bf16.mxu1 %v10364_v61  ;;  %v6477_v61 = vrot.slane %v6475_v46, 4  ;;  %v10407_v50 = vld [vmem:[%s16569_s3 + $0x824] ss:$16 sps:$4 sm:$0xff]  }
 0xb2f   : > { %6624 = vmatpush2.bf16.msra.mxu0 %v10365_v15  ;;  %v6480_v15 = vrot.slane %v6478_v56, 5  ;;  %v10409_v56 = vld [vmem:[%s16569_s3 + $0x820] ss:$16 sps:$4 sm:$0xff]  }
 0xb30   : > { %6665 = vmatpush2.bf16.msra.mxu1 %v10366_v57  ;;  %6625 = vmatprep.subr.bf16.mxu0 %v10367_v51  ;;  %v6372_v57 = vsel %vm848_vm8, %v15102_v59, %v15149_v30  ;;  %v10389_v51 = vld [vmem:[%s16569_s3 + $0x500] ss:$16 sps:$4 sm:$0xff]   ;;  %v10392_v59 = vld [vmem:[%s16569_s3 + $0x704] ss:$16 sps:$4 sm:$0xff]  }
 0xb31   : > { %6666 = vmatprep.subr.bf16.mxu1 %v10368_v25  ;;  %v6389_v25 = vpop.permute.xlu1 %6388  ;;  %v6481_v30 = vor.u32 %v6480_v15, %v6477_v61  ;;  %v10414_v61 = vld [vmem:[%s16569_s3 + $0x68] ss:$16 sps:$4 sm:$0xff]   ;;  %v10415_v15 = vld [vmem:[%s16569_s3 + $0x2ec] ss:$16 sps:$4 sm:$0xff]  }
 0xb33   : > { %6626 = vmatpush2.bf16.msra.mxu0 %v10369_v23  ;;  %v10390_v23 = vld [vmem:[%s16569_s3 + $0x720] ss:$16 sps:$4 sm:$0xff]  }
 0xb34   : > { %6667 = vmatpush2.bf16.msra.mxu1 %v10370_v22  ;;  %6627 = vmatprep.subr.bf16.mxu0 %v10371_v55  ;;  %v10391_v22 = vld [vmem:[%s16569_s3 + $0x8a4] ss:$16 sps:$4 sm:$0xff]   ;;  %v15334_v55 = vsel %vm10856_vm5, %v6372_v57, %v6466_v14 }
 0xb35   : > { %6668 = vmatprep.subr.bf16.mxu1 %v10372_v37  ;;  %v6390_v37 = vsel %vm844_vm7, %v15154_v38, %v6389_v25  ;;  %v10396_v38 = vld [vmem:[%s16569_s3 + $0xec] ss:$16 sps:$4 sm:$0xff]   ;;  %v10417_v25 = vld [vmem:[%s16569_s3 + $0x2e8] ss:$16 sps:$4 sm:$0xff]  }
 0xb37   : > { %6628 = vmatpush2.bf16.msra.mxu0 %v10373_v18  ;;  %v10393_v18 = vld [vmem:[%s16569_s3 + $0x8a0] ss:$16 sps:$4 sm:$0xff]  }
 0xb38   : > { %6669 = vmatpush2.bf16.msra.mxu1 %v10374_v63  ;;  %6629 = vmatprep.subr.bf16.mxu0 %v10375_v8  ;;  %v10394_v63 = vld [vmem:[%s16569_s3 + $0x700] ss:$16 sps:$4 sm:$0xff]   ;;  %v10395_v8 = vld [vmem:[%s16569_s3 + $0x884] ss:$16 sps:$4 sm:$0xff]  }
 0xb39   : > { %6670 = vmatprep.subr.bf16.mxu1 %v10376_v35  ;;  %v15357_v35 = vsel %vm10856_vm5, %v6390_v37, %v6481_v30  ;;  %v10425_v30 = vld [vmem:[%s16569_s3 + $0x2a8] ss:$16 sps:$4 sm:$0xff]  }
 0xb3a   : > { %v10426_v37 = vld [vmem:[%s16569_s3 + $0x8] ss:$16 sps:$4 sm:$0xff]  }
 0xb3b   : > { %6630 = vmatpush2.bf16.msra.mxu0 %v10377_v4  ;;  %v10398_v4 = vld [vmem:[%s16569_s3 + $0xe8] ss:$16 sps:$4 sm:$0xff]  }
 0xb3c   : > { %6671 = vmatpush2.bf16.msra.mxu1 %v10378_v58  ;;  %6631 = vmatprep.subr.bf16.mxu0 %v10379_v11  ;;  %v6425_v58 = vrot.slane %v15057_v2, 1  ;;  %v10399_v11 = vld [vmem:[%s16569_s3 + $0x864] ss:$16 sps:$4 sm:$0xff]  }
 0xb3d   : > { %6672 = vmatprep.subr.bf16.mxu1 %v10380_v48  ;;  %v10403_v2 = vld [vmem:[%s16569_s3 + $0x844] ss:$16 sps:$4 sm:$0xff]   ;;  %v10404_v48 = vld [vmem:[%s16569_s3 + $0xac] ss:$16 sps:$4 sm:$0xff]  }
 0xb3e   : > { %v6491_v45 = vshrl.u32 %v6425_v58, 16 }
 0xb3f   : > { %6632 = vmatpush2.bf16.msra.mxu0 %v10381_v27  ;;  %v6494_v27 = vshll.u32 %v6425_v58, 16  ;;  %v10433_v58 = vld [vmem:[%s16569_s3 + $0x268] ss:$16 sps:$4 sm:$0xff]  }
 0xb40   : > { %6673 = vmatpush2.bf16.msra.mxu1 %v10382_v7  ;;  %6633 = vmatprep.subr.bf16.mxu0 %v10383_v29  ;;  %v10405_v7 = vld [vmem:[%s16569_s3 + $0x840] ss:$16 sps:$4 sm:$0xff]   ;;  %v10406_v29 = vld [vmem:[%s16569_s3 + $0xa8] ss:$16 sps:$4 sm:$0xff]  }
 0xb41   : > { %6674 = vmatprep.subr.bf16.mxu1 %v10384_v44  ;;  %v6493_v44 = vrot.slane %v6491_v45, 4  ;;  %v6496_v46 = vrot.slane %v6494_v27, 5  ;;  %v10440_v45 = vld [vmem:[%s16569_s3 + $0x18c] ss:$16 sps:$4 sm:$0xff]   ;;  %v10441_v27 = vld [vmem:[%s16569_s3 + $0x228] ss:$16 sps:$4 sm:$0xff]  }
 0xb43   : > { %6634 = vmatpush2.bf16.msra.mxu0 %v10385_v19  ;;  %v10410_v19 = vld [vmem:[%s16569_s3 + $0x88] ss:$16 sps:$4 sm:$0xff]   ;;  %v6497_v14 = vor.u32 %v6496_v46, %v6493_v44  ;;  %v10447_v46 = vld [vmem:[%s16569_s3 + $0x3ec] ss:$16 sps:$4 sm:$0xff]  }
 0xb44   : > { %6675 = vmatpush2.bf16.msra.mxu1 %v10386_v17  ;;  %6635 = vmatprep.subr.bf16.mxu0 %v10387_v0  ;;  %v10411_v17 = vld [vmem:[%s16569_s3 + $0x804] ss:$16 sps:$4 sm:$0xff]   ;;  %v10412_v0 = vld [vmem:[%s16569_s3 + $0x6c] ss:$16 sps:$4 sm:$0xff]   ;;  %v10446_v44 = vld [vmem:[%s16569_s3 + $0x168] ss:$16 sps:$4 sm:$0xff]  }
 0xb45   : > { %6676 = vmatprep.subr.bf16.mxu1 %v10388_v10  ;;  %v10413_v10 = vld [vmem:[%s16569_s3 + $0x800] ss:$16 sps:$4 sm:$0xff]   ;;  %v15423_v57 = vsel %vm10856_vm5, %v6395_v12, %v6497_v14  ;;  %v10420_v12 = vld [vmem:[%s16569_s3 + $0x2c] ss:$16 sps:$4 sm:$0xff]  }
 0xb46   : > { %v10452_v14 = vld [vmem:[%s16569_s3 + $0x12c] ss:$16 sps:$4 sm:$0xff]  }
 0xb47   : > { %6636 = vmatpush2.bf16.msra.mxu0 %v10389_v51  ;;  %v10416_v51 = vld [vmem:[%s16569_s3 + $0x4c] ss:$16 sps:$4 sm:$0xff]  }
 0xb48   : > { %6677 = vmatpush2.bf16.msra.mxu1 %v10390_v23  ;;  %6695 = vmatprep.subr.bf16.mxu0 %v10391_v22  ;;  %v10421_v23 = vld [vmem:[%s16569_s3 + $0x2c8] ss:$16 sps:$4 sm:$0xff]   ;;  %v10423_v22 = vld [vmem:[%s16569_s3 + $0x2ac] ss:$16 sps:$4 sm:$0xff]  }
 0xb49   : > { %6678 = vmatprep.subr.bf16.mxu1 %v10392_v59  ;;  %v10424_v59 = vld [vmem:[%s16569_s3 + $0xc] ss:$16 sps:$4 sm:$0xff]  }
 0xb4a   : > { %6638 = vmatmul.mubr.bf16.vlgmr.msra.gmra.mxu0 %v15334_v55 }
 0xb4b   : > { %6696 = vmatpush1.bf16.msra.mxu0 %v10393_v18  ;;  %6723 = vmatprep.mubr.bf16.mxu0 %v10610_v13  ;;  %v10427_v18 = vld [vmem:[%s16569_s3 + $0x28c] ss:$16 sps:$4 sm:$0xff]  }
 0xb4c   : > { %6679 = vmatpush2.bf16.msra.mxu1 %v10394_v63  ;;  %6697 = vmatprep.subr.bf16.mxu0 %v10395_v8  ;;  %v10428_v63 = vld [vmem:[%s16569_s3 + $0x1ec] ss:$16 sps:$4 sm:$0xff]   ;;  %v10429_v8 = vld [vmem:[%s16569_s3 + $0x288] ss:$16 sps:$4 sm:$0xff]  }
 0xb4d   : > { %6734 = vmatprep.subr.bf16.mxu1 %v10396_v38  ;;  %v10430_v38 = vld [vmem:[%s16569_s3 + $0x1e8] ss:$16 sps:$4 sm:$0xff]  }
 0xb4f   : > { %6681 = vmatmul.mubr.bf16.vlgmr.msra.gmra.mxu1 %v15357_v35  ;;  %6698 = vmatpush1.bf16.msra.mxu0 %v10397_v1  ;;  %v10431_v1 = vld [vmem:[%s16569_s3 + $0x26c] ss:$16 sps:$4 sm:$0xff]  }
 0xb50   : > { %6735 = vmatpush1.bf16.msra.mxu1 %v10398_v4  ;;  %6766 = vmatprep.mubr.bf16.mxu1 %v15099_v16  ;;  %v10402_v16 = vld [vmem:[%s16569_s3 + $0xc8] ss:$16 sps:$4 sm:$0xff]   ;;  %v10432_v4 = vld [vmem:[%s16569_s3 + $0x1cc] ss:$16 sps:$4 sm:$0xff]  }
 0xb51   : > { %6699 = vmatprep.subr.bf16.mxu0 %v10399_v11  ;;  %6736 = vmatprep.subr.bf16.mxu1 %v10400_v36  ;;  %v10434_v11 = vld [vmem:[%s16569_s3 + $0x1c8] ss:$16 sps:$4 sm:$0xff]   ;;  %v10435_v36 = vld [vmem:[%s16569_s3 + $0x24c] ss:$16 sps:$4 sm:$0xff]  }
 0xb53   : > { %6700 = vmatpush1.bf16.msra.mxu0 %v10401_v24  ;;  %v10436_v24 = vld [vmem:[%s16569_s3 + $0x1ac] ss:$16 sps:$4 sm:$0xff]  }
 0xb54   : > { %6737 = vmatpush1.bf16.msra.mxu1 %v10402_v16  ;;  %6701 = vmatprep.subr.bf16.mxu0 %v10403_v2  ;;  %v10437_v16 = vld [vmem:[%s16569_s3 + $0x248] ss:$16 sps:$4 sm:$0xff]  }
 0xb55   : > { %6738 = vmatprep.subr.bf16.mxu1 %v10404_v48  ;;  %v10438_v2 = vld [vmem:[%s16569_s3 + $0x1a8] ss:$16 sps:$4 sm:$0xff]   ;;  %v10439_v48 = vld [vmem:[%s16569_s3 + $0x22c] ss:$16 sps:$4 sm:$0xff]  }
 0xb57   : > { %6702 = vmatpush1.bf16.msra.mxu0 %v10405_v7  ;;  %v10442_v7 = vld [vmem:[%s16569_s3 + $0x188] ss:$16 sps:$4 sm:$0xff]  }
 0xb58   : > { %6739 = vmatpush1.bf16.msra.mxu1 %v10406_v29  ;;  %6703 = vmatprep.subr.bf16.mxu0 %v10407_v50  ;;  %v10443_v29 = vld [vmem:[%s16569_s3 + $0x20c] ss:$16 sps:$4 sm:$0xff]  }
 0xb59   : > { %6740 = vmatprep.subr.bf16.mxu1 %v10408_v52  ;;  %v10444_v50 = vld [vmem:[%s16569_s3 + $0x16c] ss:$16 sps:$4 sm:$0xff]   ;;  %v10445_v52 = vld [vmem:[%s16569_s3 + $0x208] ss:$16 sps:$4 sm:$0xff]  }
 0xb5b   : > { %6704 = vmatpush1.bf16.msra.mxu0 %v10409_v56  ;;  %v10448_v56 = vld [vmem:[%s16569_s3 + $0x14c] ss:$16 sps:$4 sm:$0xff]  }
 0xb5c   : > { %6741 = vmatpush1.bf16.msra.mxu1 %v10410_v19  ;;  %6705 = vmatprep.subr.bf16.mxu0 %v10411_v17  ;;  %v10449_v19 = vld [vmem:[%s16569_s3 + $0x3e8] ss:$16 sps:$4 sm:$0xff]  }
 0xb5d   : > { %6742 = vmatprep.subr.bf16.mxu1 %v10412_v0  ;;  %v10450_v17 = vld [vmem:[%s16569_s3 + $0x148] ss:$16 sps:$4 sm:$0xff]   ;;  %v10451_v0 = vld [vmem:[%s16569_s3 + $0x3cc] ss:$16 sps:$4 sm:$0xff]  }
 0xb5f   : > { %6706 = vmatpush1.bf16.msra.mxu0 %v10413_v10  ;;  %v10453_v10 = vld [vmem:[%s16569_s3 + $0x3c8] ss:$16 sps:$4 sm:$0xff]  }
 0xb60   : > { %6743 = vmatpush1.bf16.msra.mxu1 %v10414_v61  ;;  %6777 = vmatprep.subr.bf16.mxu0 %v10415_v15  ;;  %v10454_v61 = vld [vmem:[%s16569_s3 + $0x128] ss:$16 sps:$4 sm:$0xff]   ;;  %v10455_v15 = vld [vmem:[%s16569_s3 + $0x3ac] ss:$16 sps:$4 sm:$0xff]  }
 0xb61   : > { %6744 = vmatprep.subr.bf16.mxu1 %v10416_v51  ;;  %v10456_v51 = vld [vmem:[%s16569_s3 + $0x10c] ss:$16 sps:$4 sm:$0xff]  }
 0xb62   : > { %8580 = vmatmul.mubr.msk.bf16.vlgmr.msra.gmra.mxu0 %vm851_vm9, %v15423_v57 }
 0xb63   : > { %6778 = vmatpush1.bf16.msra.mxu0 %v10417_v25  ;;  %6809 = vmatprep.mubr.bf16.mxu0 %v15118_v39  ;;  %v10422_v39 = vld [vmem:[%s16569_s3 + $0x28] ss:$16 sps:$4 sm:$0xff]  }
 0xb64   : > { %6745 = vmatpush1.bf16.msra.mxu1 %v10418_v3  ;;  %6779 = vmatprep.subr.bf16.mxu0 %v10419_v31  ;;  %v10457_v25 = vld [vmem:[%s16569_s3 + $0x3a8] ss:$16 sps:$4 sm:$0xff]   ;;  %v10459_v31 = vld [vmem:[%s16569_s3 + $0x38c] ss:$16 sps:$4 sm:$0xff]  }
 0xb65   : > { %6746 = vmatprep.subr.bf16.mxu1 %v10420_v12  ;;  %v10458_v3 = vld [vmem:[%s16569_s3 + $0x108] ss:$16 sps:$4 sm:$0xff]   ;;  %v10460_v12 = vld [vmem:[%s16569_s3 + $0x4ec] ss:$16 sps:$4 sm:$0xff]  }
 0xb67   : > { %6780 = vmatpush1.bf16.msra.mxu0 %v10421_v23  ;;  %v10461_v23 = vld [vmem:[%s16569_s3 + $0x388] ss:$16 sps:$4 sm:$0xff]  }
 0xb68   : > { %6747 = vmatpush1.bf16.msra.mxu1 %v10422_v39  ;;  %6781 = vmatprep.subr.bf16.mxu0 %v10423_v22  ;;  %v10462_v39 = vld [vmem:[%s16569_s3 + $0x4e8] ss:$16 sps:$4 sm:$0xff]   ;;  %v10463_v22 = vld [vmem:[%s16569_s3 + $0x36c] ss:$16 sps:$4 sm:$0xff]  }
 0xb69   : > { %6748 = vmatprep.subr.bf16.mxu1 %v10424_v59  ;;  %v10465_v59 = vld [vmem:[%s16569_s3 + $0x368] ss:$16 sps:$4 sm:$0xff]  }
 0xb6b   : > { %6782 = vmatpush1.bf16.msra.mxu0 %v10425_v30  ;;  %v10466_v30 = vld [vmem:[%s16569_s3 + $0x4c8] ss:$16 sps:$4 sm:$0xff]  }
 0xb6c   : > { %6749 = vmatpush1.bf16.msra.mxu1 %v10426_v37  ;;  %6783 = vmatprep.subr.bf16.mxu0 %v10427_v18  ;;  %v10468_v37 = vld [vmem:[%s16569_s3 + $0x4ac] ss:$16 sps:$4 sm:$0xff]   ;;  %v10469_v18 = vld [vmem:[%s16569_s3 + $0x348] ss:$16 sps:$4 sm:$0xff]  }
 0xb6d   : > { %6750 = vmatprep.subr.bf16.mxu1 %v10428_v63  ;;  %v10470_v63 = vld [vmem:[%s16569_s3 + $0x4a8] ss:$16 sps:$4 sm:$0xff]  }
 0xb6f   : > { %6784 = vmatpush1.bf16.msra.mxu0 %v10429_v8  ;;  %v10471_v8 = vld [vmem:[%s16569_s3 + $0x32c] ss:$16 sps:$4 sm:$0xff]  }
 0xb70   : > { %6751 = vmatpush2.bf16.msra.mxu1 %v10430_v38  ;;  %6785 = vmatprep.subr.bf16.mxu0 %v10431_v1  ;;  %v10472_v38 = vld [vmem:[%s16569_s3 + $0x48c] ss:$16 sps:$4 sm:$0xff]   ;;  %v10473_v1 = vld [vmem:[%s16569_s3 + $0x328] ss:$16 sps:$4 sm:$0xff]  }
 0xb71   : > { %6752 = vmatprep.subr.bf16.mxu1 %v10432_v4  ;;  %v10474_v4 = vld [vmem:[%s16569_s3 + $0x488] ss:$16 sps:$4 sm:$0xff]  }
 0xb73   : > { %6786 = vmatpush1.bf16.msra.mxu0 %v10433_v58  ;;  %v10475_v58 = vld [vmem:[%s16569_s3 + $0x30c] ss:$16 sps:$4 sm:$0xff]  }
 0xb74   : > { %6753 = vmatpush2.bf16.msra.mxu1 %v10434_v11  ;;  %6787 = vmatprep.subr.bf16.mxu0 %v10435_v36  ;;  %v10476_v11 = vld [vmem:[%s16569_s3 + $0x46c] ss:$16 sps:$4 sm:$0xff]   ;;  %v10477_v36 = vld [vmem:[%s16569_s3 + $0x308] ss:$16 sps:$4 sm:$0xff]  }
 0xb75   : > { %6754 = vmatprep.subr.bf16.mxu1 %v10436_v24  ;;  %v10478_v24 = vld [vmem:[%s16569_s3 + $0x468] ss:$16 sps:$4 sm:$0xff]  }
 0xb77   : > { %6788 = vmatpush1.bf16.msra.mxu0 %v10437_v16  ;;  %v10479_v16 = vld [vmem:[%s16569_s3 + $0x6ec] ss:$16 sps:$4 sm:$0xff]  }
 0xb78   : > { %6755 = vmatpush2.bf16.msra.mxu1 %v10438_v2  ;;  %6789 = vmatprep.subr.bf16.mxu0 %v10439_v48  ;;  %v10480_v2 = vld [vmem:[%s16569_s3 + $0x44c] ss:$16 sps:$4 sm:$0xff]   ;;  %v10481_v48 = vld [vmem:[%s16569_s3 + $0x6e8] ss:$16 sps:$4 sm:$0xff]  }
 0xb79   : > { %6756 = vmatprep.subr.bf16.mxu1 %v10440_v45  ;;  %v10482_v45 = vld [vmem:[%s16569_s3 + $0x448] ss:$16 sps:$4 sm:$0xff]  }
 0xb7b   : > { %6790 = vmatpush1.bf16.msra.mxu0 %v10441_v27  ;;  %v10483_v27 = vld [vmem:[%s16569_s3 + $0x6cc] ss:$16 sps:$4 sm:$0xff]  }
 0xb7c   : > { %6757 = vmatpush2.bf16.msra.mxu1 %v10442_v7  ;;  %6791 = vmatprep.subr.bf16.mxu0 %v10443_v29  ;;  %v10485_v7 = vld [vmem:[%s16569_s3 + $0x6c8] ss:$16 sps:$4 sm:$0xff]   ;;  %v10487_v29 = vld [vmem:[%s16569_s3 + $0x6ac] ss:$16 sps:$4 sm:$0xff]  }
 0xb7d   : > { %6758 = vmatprep.subr.bf16.mxu1 %v10444_v50  ;;  %v10488_v50 = vld [vmem:[%s16569_s3 + $0x40c] ss:$16 sps:$4 sm:$0xff]  }
 0xb7f   : > { %6792 = vmatpush1.bf16.msra.mxu0 %v10445_v52  ;;  %v10489_v52 = vld [vmem:[%s16569_s3 + $0x6a8] ss:$16 sps:$4 sm:$0xff]  }
 0xb80   : > { %6759 = vmatpush2.bf16.msra.mxu1 %v10446_v44  ;;  %6793 = vmatprep.subr.bf16.mxu0 %v10447_v46  ;;  %v10490_v44 = vld [vmem:[%s16569_s3 + $0x408] ss:$16 sps:$4 sm:$0xff]   ;;  %v10491_v46 = vld [vmem:[%s16569_s3 + $0x68c] ss:$16 sps:$4 sm:$0xff]  }
 0xb81   : > { %6760 = vmatprep.subr.bf16.mxu1 %v10448_v56  ;;  %v10492_v56 = vld [vmem:[%s16569_s3 + $0x5ec] ss:$16 sps:$4 sm:$0xff]  }
 0xb83   : > { %6794 = vmatpush2.bf16.msra.mxu0 %v10449_v19  ;;  %v10493_v19 = vld [vmem:[%s16569_s3 + $0x688] ss:$16 sps:$4 sm:$0xff]  }
 0xb84   : > { %6761 = vmatpush2.bf16.msra.mxu1 %v10450_v17  ;;  %6795 = vmatprep.subr.bf16.mxu0 %v10451_v0  ;;  %v10494_v17 = vld [vmem:[%s16569_s3 + $0x5e8] ss:$16 sps:$4 sm:$0xff]   ;;  %v10495_v0 = vld [vmem:[%s16569_s3 + $0x66c] ss:$16 sps:$4 sm:$0xff]  }
 0xb85   : > { %6762 = vmatprep.subr.bf16.mxu1 %v10452_v14  ;;  %v10496_v14 = vld [vmem:[%s16569_s3 + $0x5cc] ss:$16 sps:$4 sm:$0xff]  }
 0xb87   : > { %6796 = vmatpush2.bf16.msra.mxu0 %v10453_v10  ;;  %v10497_v10 = vld [vmem:[%s16569_s3 + $0x668] ss:$16 sps:$4 sm:$0xff]  }
 0xb88   : > { %6763 = vmatpush2.bf16.msra.mxu1 %v10454_v61  ;;  %6797 = vmatprep.subr.bf16.mxu0 %v10455_v15  ;;  %v10498_v61 = vld [vmem:[%s16569_s3 + $0x5c8] ss:$16 sps:$4 sm:$0xff]   ;;  %v10499_v15 = vld [vmem:[%s16569_s3 + $0x64c] ss:$16 sps:$4 sm:$0xff]  }
 0xb89   : > { %6764 = vmatprep.subr.bf16.mxu1 %v10456_v51  ;;  %v10500_v51 = vld [vmem:[%s16569_s3 + $0x5ac] ss:$16 sps:$4 sm:$0xff]  }
 0xb8b   : > { %6798 = vmatpush2.bf16.msra.mxu0 %v10457_v25  ;;  %v10501_v25 = vld [vmem:[%s16569_s3 + $0x648] ss:$16 sps:$4 sm:$0xff]  }
 0xb8c   : > { %6765 = vmatpush2.bf16.msra.mxu1 %v10458_v3  ;;  %6799 = vmatprep.subr.bf16.mxu0 %v10459_v31  ;;  %v10502_v3 = vld [vmem:[%s16569_s3 + $0x5a8] ss:$16 sps:$4 sm:$0xff]   ;;  %v10503_v31 = vld [vmem:[%s16569_s3 + $0x62c] ss:$16 sps:$4 sm:$0xff]  }
 0xb8d   : > { %6820 = vmatprep.subr.bf16.mxu1 %v10460_v12  ;;  %v10504_v12 = vld [vmem:[%s16569_s3 + $0x58c] ss:$16 sps:$4 sm:$0xff]  }
 0xb8f   : > { %6767 = vmatmul.mubr.bf16.vlgmr.msra.gmra.mxu1 %v15061_v28  ;;  %6800 = vmatpush2.bf16.msra.mxu0 %v10461_v23  ;;  %v10464_v28 = vld [vmem:[%s16569_s3 + $0x4cc] ss:$16 sps:$4 sm:$0xff]   ;;  %v10505_v23 = vld [vmem:[%s16569_s3 + $0x628] ss:$16 sps:$4 sm:$0xff]  }
 0xb90   : > { %6821 = vmatpush1.bf16.msra.mxu1 %v10462_v39  ;;  %6852 = vmatprep.mubr.bf16.mxu1 %v15167_v49  ;;  %v10467_v49 = vld [vmem:[%s16569_s3 + $0x34c] ss:$16 sps:$4 sm:$0xff]   ;;  %v10506_v39 = vld [vmem:[%s16569_s3 + $0x588] ss:$16 sps:$4 sm:$0xff]  }
 0xb91   : > { %6801 = vmatprep.subr.bf16.mxu0 %v10463_v22  ;;  %6822 = vmatprep.subr.bf16.mxu1 %v10464_v28  ;;  %v10507_v22 = vld [vmem:[%s16569_s3 + $0x60c] ss:$16 sps:$4 sm:$0xff]  }
 0xb92   : > { %v10508_v28 = vld [vmem:[%s16569_s3 + $0x56c] ss:$16 sps:$4 sm:$0xff]  }
 0xb93   : > { %6802 = vmatpush2.bf16.msra.mxu0 %v10465_v59  ;;  %v10509_v59 = vld [vmem:[%s16569_s3 + $0x608] ss:$16 sps:$4 sm:$0xff]  }
 0xb94   : > { %6823 = vmatpush1.bf16.msra.mxu1 %v10466_v30  ;;  %6803 = vmatprep.subr.bf16.mxu0 %v10467_v49  ;;  %v10510_v30 = vld [vmem:[%s16569_s3 + $0x568] ss:$16 sps:$4 sm:$0xff]   ;;  %v10511_v49 = vld [vmem:[%s16569_s3 + $0x7ec] ss:$16 sps:$4 sm:$0xff]  }
 0xb95   : > { %6824 = vmatprep.subr.bf16.mxu1 %v10468_v37  ;;  %v10512_v37 = vld [vmem:[%s16569_s3 + $0x54c] ss:$16 sps:$4 sm:$0xff]  }
 0xb97   : > { %6804 = vmatpush2.bf16.msra.mxu0 %v10469_v18  ;;  %v10513_v18 = vld [vmem:[%s16569_s3 + $0x7e8] ss:$16 sps:$4 sm:$0xff]  }
 0xb98   : > { %6825 = vmatpush1.bf16.msra.mxu1 %v10470_v63  ;;  %6805 = vmatprep.subr.bf16.mxu0 %v10471_v8  ;;  %v10514_v63 = vld [vmem:[%s16569_s3 + $0x548] ss:$16 sps:$4 sm:$0xff]   ;;  %v10515_v8 = vld [vmem:[%s16569_s3 + $0x7cc] ss:$16 sps:$4 sm:$0xff]  }
 0xb99   : > { %6826 = vmatprep.subr.bf16.mxu1 %v10472_v38  ;;  %v10516_v38 = vld [vmem:[%s16569_s3 + $0x52c] ss:$16 sps:$4 sm:$0xff]  }
 0xb9b   : > { %6806 = vmatpush2.bf16.msra.mxu0 %v10473_v1  ;;  %v10517_v1 = vld [vmem:[%s16569_s3 + $0x7c8] ss:$16 sps:$4 sm:$0xff]  }
 0xb9c   : > { %6827 = vmatpush1.bf16.msra.mxu1 %v10474_v4  ;;  %6807 = vmatprep.subr.bf16.mxu0 %v10475_v58  ;;  %v10518_v4 = vld [vmem:[%s16569_s3 + $0x528] ss:$16 sps:$4 sm:$0xff]   ;;  %v10519_v58 = vld [vmem:[%s16569_s3 + $0x7ac] ss:$16 sps:$4 sm:$0xff]  }
 0xb9d   : > { %6828 = vmatprep.subr.bf16.mxu1 %v10476_v11  ;;  %v10520_v11 = vld [vmem:[%s16569_s3 + $0x50c] ss:$16 sps:$4 sm:$0xff]  }
 0xb9f   : > { %6808 = vmatpush2.bf16.msra.mxu0 %v10477_v36 }
 0xba0   : > { %6829 = vmatpush1.bf16.msra.mxu1 %v10478_v24  ;;  %6863 = vmatprep.subr.bf16.mxu0 %v10479_v16  ;;  %v10521_v24 = vld [vmem:[%s16569_s3 + $0x7a8] ss:$16 sps:$4 sm:$0xff]  }
 0xba1   : > { %6830 = vmatprep.subr.bf16.mxu1 %v10480_v2  ;;  %v10522_v16 = vld [vmem:[%s16569_s3 + $0x508] ss:$16 sps:$4 sm:$0xff]  }
 0xba2   : > { %6810 = vmatmul.mubr.bf16.vlgmr.msra.gmra.mxu0 %v15122_v62  ;;  %v10484_v62 = vld [vmem:[%s16569_s3 + $0x42c] ss:$16 sps:$4 sm:$0xff]  }
 0xba3   : > { %6864 = vmatpush1.bf16.msra.mxu0 %v10481_v48  ;;  %6895 = vmatprep.mubr.bf16.mxu0 %v15067_v6  ;;  %v10486_v6 = vld [vmem:[%s16569_s3 + $0x428] ss:$16 sps:$4 sm:$0xff]   ;;  %v10523_v48 = vld [vmem:[%s16569_s3 + $0x78c] ss:$16 sps:$4 sm:$0xff]  }
 0xba4   : > { %6831 = vmatpush1.bf16.msra.mxu1 %v10482_v45  ;;  %6865 = vmatprep.subr.bf16.mxu0 %v10483_v27  ;;  %v10524_v45 = vld [vmem:[%s16569_s3 + $0x8ac] ss:$16 sps:$4 sm:$0xff]  }
 0xba5   : > { %6832 = vmatprep.subr.bf16.mxu1 %v10484_v62 }
 0xba7   : > { %6866 = vmatpush1.bf16.msra.mxu0 %v10485_v7 }
 0xba8   : > { %6833 = vmatpush1.bf16.msra.mxu1 %v10486_v6  ;;  %6867 = vmatprep.subr.bf16.mxu0 %v10487_v29  ;;  %v10525_v6 = vld [vmem:[%s16569_s3 + $0x788] ss:$16 sps:$4 sm:$0xff]  }
 0xba9   : > { %6834 = vmatprep.subr.bf16.mxu1 %v10488_v50  ;;  %v10526_v50 = vld [vmem:[%s16569_s3 + $0x8a8] ss:$16 sps:$4 sm:$0xff]  }
 0xbab   : > { %6868 = vmatpush1.bf16.msra.mxu0 %v10489_v52  ;;  %v10527_v52 = vld [vmem:[%s16569_s3 + $0x76c] ss:$16 sps:$4 sm:$0xff]  }
 0xbac   : > { %6835 = vmatpush1.bf16.msra.mxu1 %v10490_v44  ;;  %6869 = vmatprep.subr.bf16.mxu0 %v10491_v46 }
 0xbad   : > { %6836 = vmatprep.subr.bf16.mxu1 %v10492_v56 }
 0xbaf   : > { %6870 = vmatpush1.bf16.msra.mxu0 %v10493_v19  ;;  %v10529_v19 = vld [vmem:[%s16569_s3 + $0x768] ss:$16 sps:$4 sm:$0xff]  }
 0xbb0   : > { %6837 = vmatpush2.bf16.msra.mxu1 %v10494_v17  ;;  %6871 = vmatprep.subr.bf16.mxu0 %v10495_v0  ;;  %v10530_v0 = vld [vmem:[%s16569_s3 + $0x888] ss:$16 sps:$4 sm:$0xff]  }
 0xbb1   : > { %6838 = vmatprep.subr.bf16.mxu1 %v10496_v14  ;;  %v10531_v14 = vld [vmem:[%s16569_s3 + $0x74c] ss:$16 sps:$4 sm:$0xff]  }
 0xbb3   : > { %6872 = vmatpush1.bf16.msra.mxu0 %v10497_v10  ;;  %v10534_v10 = vld [vmem:[%s16569_s3 + $0x868] ss:$16 sps:$4 sm:$0xff]  }
 0xbb4   : > { %6839 = vmatpush2.bf16.msra.mxu1 %v10498_v61  ;;  %6873 = vmatprep.subr.bf16.mxu0 %v10499_v15  ;;  %v10535_v61 = vld [vmem:[%s16569_s3 + $0x72c] ss:$16 sps:$4 sm:$0xff]  }
 0xbb5   : > { %6840 = vmatprep.subr.bf16.mxu1 %v10500_v51  ;;  %v10536_v15 = vld [vmem:[%s16569_s3 + $0x84c] ss:$16 sps:$4 sm:$0xff]   ;;  %v10537_v51 = vld [vmem:[%s16569_s3 + $0x728] ss:$16 sps:$4 sm:$0xff]  }
 0xbb7   : > { %6874 = vmatpush1.bf16.msra.mxu0 %v10501_v25  ;;  %v10538_v25 = vld [vmem:[%s16569_s3 + $0x848] ss:$16 sps:$4 sm:$0xff]  }
 0xbb8   : > { %6841 = vmatpush2.bf16.msra.mxu1 %v10502_v3  ;;  %6875 = vmatprep.subr.bf16.mxu0 %v10503_v31  ;;  %v10539_v3 = vld [vmem:[%s16569_s3 + $0x70c] ss:$16 sps:$4 sm:$0xff]  }
 0xbb9   : > { %6842 = vmatprep.subr.bf16.mxu1 %v10504_v12  ;;  %v10540_v31 = vld [vmem:[%s16569_s3 + $0x82c] ss:$16 sps:$4 sm:$0xff]   ;;  %v10541_v12 = vld [vmem:[%s16569_s3 + $0x708] ss:$16 sps:$4 sm:$0xff]  }
 0xbbb   : > { %6876 = vmatpush1.bf16.msra.mxu0 %v10505_v23  ;;  %v10542_v23 = vld [vmem:[%s16569_s3 + $0x828] ss:$16 sps:$4 sm:$0xff]  }
 0xbbc   : > { %6843 = vmatpush2.bf16.msra.mxu1 %v10506_v39  ;;  %6877 = vmatprep.subr.bf16.mxu0 %v10507_v22  ;;  %v10543_v39 = vld [vmem:[%s16569_s3 + $0x80c] ss:$16 sps:$4 sm:$0xff]   ;;  %v10544_v22 = vld [vmem:[%s16569_s3 + $0x808] ss:$16 sps:$4 sm:$0xff]  }
 0xbbd   : > { %6844 = vmatprep.subr.bf16.mxu1 %v10508_v28 }
 0xbbf   : > { %6878 = vmatpush1.bf16.msra.mxu0 %v10509_v59 }
 0xbc0   : > { %6845 = vmatpush2.bf16.msra.mxu1 %v10510_v30  ;;  %6879 = vmatprep.subr.bf16.mxu0 %v10511_v49 }
 0xbc1   : > { %6846 = vmatprep.subr.bf16.mxu1 %v10512_v37 }
 0xbc3   : > { %6880 = vmatpush2.bf16.msra.mxu0 %v10513_v18 }
 0xbc4   : > { %6847 = vmatpush2.bf16.msra.mxu1 %v10514_v63  ;;  %6881 = vmatprep.subr.bf16.mxu0 %v10515_v8 }
 0xbc5   : > { %6848 = vmatprep.subr.bf16.mxu1 %v10516_v38 }
 0xbc7   : > { %6882 = vmatpush2.bf16.msra.mxu0 %v10517_v1 }
 0xbc8   : > { %6849 = vmatpush2.bf16.msra.mxu1 %v10518_v4  ;;  %6883 = vmatprep.subr.bf16.mxu0 %v10519_v58 }
 0xbc9   : > { %6850 = vmatprep.subr.bf16.mxu1 %v10520_v11 }
 0xbca   : > { %v6553_v36 = vpop.f32.mrf.mxu0 }
 0xbcb   : > { %6884 = vmatpush2.bf16.msra.mxu0 %v10521_v24  ;;  %v6554_v27 = vadd.f32 %v6553_v36, %v11983_v9 }
 0xbcc   : > { %6851 = vmatpush2.bf16.msra.mxu1 %v10522_v16  ;;  %v15753_v2 = vpop.f32.mrf.mxu0  ;;  %6885 = vmatprep.subr.bf16.mxu0 %v10523_v48 }
 0xbcd   : > { %6910 = vmatprep.subr.bf16.mxu1 %v10524_v45 }
 0xbce   : > { %v6557_v62 = vpop.f32.mrf.mxu0  ;;  %v6596_v7 = vpop.f32.mrf.mxu1 }
 0xbcf   : > { %6853 = vmatmul.mubr.bf16.vlgmr.msra.gmra.mxu1 %v15334_v55  ;;  %6886 = vmatpush2.bf16.msra.mxu0 %v10525_v6  ;;  %v6597_v29 = vadd.f32 %v6596_v7, %v6554_v27  ;;  %v10528_v55 = vld [vmem:[%s16569_s3 + $0x88c] ss:$16 sps:$4 sm:$0xff]   ;;  %v6558_v46 = vadd.f32 %v6557_v62, %v11983_v9  ;;  %v10533_v9 = vld [vmem:[%s16569_s3 + $0x748] ss:$16 sps:$4 sm:$0xff]  }
 0xbd0   : > { %6911 = vmatpush1.bf16.msra.mxu1 %v10526_v50  ;;  %6887 = vmatprep.subr.bf16.mxu0 %v10527_v52  ;;  %v15772_v44 = vpop.f32.mrf.mxu1  ;;  %v6559_v28 = vpop.f32.mrf.mxu0 }
 0xbd1   : > { %6912 = vmatprep.subr.bf16.mxu1 %v10528_v55  ;;  %6938 = vmatprep.mubr.bf16.mxu1 %v10610_v13  ;;  %v10532_v13 = vld [vmem:[%s16569_s3 + $0x86c] ss:$16 sps:$4 sm:$0xff]  }
 0xbd2   : > { %v6600_v56 = vpop.f32.mrf.mxu1 }
 0xbd3   : > { %6888 = vmatpush2.bf16.msra.mxu0 %v10529_v19  ;;  %v6601_v17 = vadd.f32 %v6600_v56, %v6558_v46 }
 0xbd4   : > { %6913 = vmatpush1.bf16.msra.mxu1 %v10530_v0  ;;  %6889 = vmatprep.subr.bf16.mxu0 %v10531_v14  ;;  %v6602_v37 = vpop.f32.mrf.mxu1  ;;  %v6560_v14 = vadd.f32 %v6559_v28, %v11991_v26 }
 0xbd5   : > { %6914 = vmatprep.subr.bf16.mxu1 %v10532_v13 }
 0xbd7   : > { %6890 = vmatpush2.bf16.msra.mxu0 %v10533_v9  ;;  %v6556_v9 = vadd.f32 %v15753_v2, %v11991_v26 }
 0xbd8   : > { %6915 = vmatpush1.bf16.msra.mxu1 %v10534_v10  ;;  %6891 = vmatprep.subr.bf16.mxu0 %v10535_v61  ;;  %v6603_v10 = vadd.f32 %v6602_v37, %v6560_v14 }
 0xbd9   : > { %6916 = vmatprep.subr.bf16.mxu1 %v10536_v15  ;;  %v6599_v15 = vadd.f32 %v15772_v44, %v6556_v9 }
 0xbdb   : > { %6892 = vmatpush2.bf16.msra.mxu0 %v10537_v51 }
 0xbdc   : > { %6917 = vmatpush1.bf16.msra.mxu1 %v10538_v25  ;;  %6893 = vmatprep.subr.bf16.mxu0 %v10539_v3 }
 0xbdd   : > { %6918 = vmatprep.subr.bf16.mxu1 %v10540_v31 }
 0xbdf   : > { %6894 = vmatpush2.bf16.msra.mxu0 %v10541_v12 }
 0xbe0   : > { %6919 = vmatpush1.bf16.msra.mxu1 %v10542_v23 }
 0xbe1   : > { %6920 = vmatprep.subr.bf16.mxu1 %v10543_v39 }
 0xbe2   : > { %6896 = vmatmul.mubr.bf16.vlgmr.msra.gmra.mxu0 %v15357_v35 }
 0xbe4   : > { %6921 = vmatpush1.bf16.msra.mxu1 %v10544_v22 }
 0xbe5   : > { %8710 = vmatprep.subr.bf16.mxu1 %v9486_v41 }
 0xbe7   : > { %8581 = vmatmul.mubr.msk.bf16.vlgmr.msra.gmra.mxu1 %vm851_vm9, %v15423_v57 }
 0xbe8   : > { %8711 = vmatpush3.bf16.msra.mxu1 %v9487_v42 }
 0xc0a   : > { %v6639_v59 = vpop.f32.mrf.mxu0 }
 0xc0b   : > { %v6640_v30 = vadd.f32 %v6639_v59, %v6597_v29 }
 0xc0c   : > { %v6641_v49 = vpop.f32.mrf.mxu0 }
 0xc0d   : > { %v6642_v31 = vadd.f32 %v6641_v49, %v6599_v15 }
 0xc0e   : > { %v6643_v18 = vpop.f32.mrf.mxu0 }
 0xc0f   : > { %v6644_v63 = vadd.f32 %v6643_v18, %v6601_v17  ;;  %v6682_v8 = vpop.f32.mrf.mxu1 }
 0xc10   : > { %v6683_v38 = vadd.f32 %v6682_v8, %v6640_v30  ;;  %v6645_v58 = vpop.f32.mrf.mxu0  ;;  %v15840_v8 = vpop.permute.xlu0 %8957 }
 0xc11   : > { %v6684_v1 = vpop.f32.mrf.mxu1  ;;  %v6646_v51 = vadd.f32 %v6645_v58, %v6603_v10 }
 0xc12   : > { %v6685_v28 = vadd.f32 %v6684_v1, %v6642_v31 }
 0xc13   : > { %v6686_v4 = vpop.f32.mrf.mxu1 }
 0xc14   : > { %v6687_v35 = vadd.f32 %v6686_v4, %v6644_v63 }
 0xc15   : > { %v6688_v29 = vpop.f32.mrf.mxu1 }
 0xc16   : > { %v6689_v12 = vadd.f32 %v6688_v29, %v6646_v51  ;;  %v8960_v29 = vunpack.i.h.bf16 %v15840_v8 }
 0xc22   : > { %v6725_v11 = vpop.f32.mrf.mxu0 }
 0xc23   : > { %v6726_v36 = vadd.f32 %v6725_v11, %v6683_v38 }
 0xc24   : > { %v6727_v24 = vpop.f32.mrf.mxu0 }
 0xc25   : > { %v6949_v48 = vmax.f32 %v6726_v36, 0.0  ;;  %v6728_v63 = vadd.f32 %v6727_v24, %v6685_v28 }
 0xc26   : > { %v6729_v16 = vpop.f32.mrf.mxu0 }
 0xc27   : > { %v6730_v45 = vadd.f32 %v6729_v16, %v6687_v35  ;;  %v6965_v27 = vrot.slane %v6949_v48, 7 }
 0xc28   : > { %v6731_v55 = vpop.f32.mrf.mxu0 }
 0xc29   : > { %v6953_v57 = vmax.f32 %v6730_v45, 0.0  ;;  %v6732_v30 = vadd.f32 %v6731_v55, %v6689_v12 }
 0xc2b   : > { %v6966_v62 = vrot.slane %v6953_v57, 7  ;;  %v6954_v11 = vmax.f32 %v6732_v30, 0.0 }
 0xc2d   : > { %v6967_v7 = vsel %vm1328_vm10, %v6965_v27, %v6966_v62  ;;  %v6950_v27 = vmax.f32 %v6728_v63, 0.0  ;;  %v6969_v55 = vrot.slane %v6954_v11, 7  ;;  %v9491_v11 = vld [vmem:[%s16571_s5 + $0xb0] sm:$0xff]  }
 0xc2e   : > { %v15831_v6 = vmax.f32 %v6949_v48, %v6967_v7 }
 0xc4f   : > { %v6768_v50 = vpop.f32.mrf.mxu1 }
 0xc50   : > { %v6769_v25 = vadd.f32 %v6768_v50, %v12435_v34 }
 0xc51   : > { %v6770_v52 = vpop.f32.mrf.mxu1 }
 0xc52   : > { %v6771_v39 = vadd.f32 %v6770_v52, %v12440_v43  ;;  %v15845_v52 = vpop.permute.xlu0 %8962 }
 0xc53   : > { %v6772_v46 = vpop.f32.mrf.mxu1  ;;  %v8964_v15 = vunpack.i.l.bf16 %v15845_v52 }
 0xc54   : > { %v6773_v18 = vadd.f32 %v6772_v46, %v12435_v34 }
 0xc55   : > { %v6774_v19 = vpop.f32.mrf.mxu1 }
 0xc56   : > { %v6775_v38 = vadd.f32 %v6774_v19, %v12440_v43  ;;  %v8959_v43 = vunpack.i.l.bf16 %v15840_v8 }
 0xc58   : > { %v4710_v10 = vsel %vm844_vm7, %v8959_v43, %v8960_v29  ;;  %v9497_v43 = vld [vmem:[%s16571_s5 + $0x18] sm:$0xff]  }
 0xc62   : > { %v6811_v56 = vpop.f32.mrf.mxu0 }
 0xc63   : > { %v6812_v22 = vadd.f32 %v6811_v56, %v6769_v25 }
 0xc64   : > { %v6813_v17 = vpop.f32.mrf.mxu0 }
 0xc65   : > { %v6814_v26 = vadd.f32 %v6813_v17, %v6771_v39 }
 0xc66   : > { %v6815_v13 = vpop.f32.mrf.mxu0 }
 0xc67   : > { %v6816_v49 = vadd.f32 %v6815_v13, %v6773_v18 }
 0xc68   : > { %v6817_v3 = vpop.f32.mrf.mxu0 }
 0xc69   : > { %v6818_v16 = vadd.f32 %v6817_v3, %v6775_v38 }
 0xc8f   : > { %v6854_v0 = vpop.f32.mrf.mxu1 }
 0xc90   : > { %v6855_v2 = vadd.f32 %v6854_v0, %v6812_v22  ;;  %v6968_v0 = vrot.slane %v6950_v27, 7  ;;  %v4714_v22 = vmax.f32 %v13615_v33, %v4710_v10 }
 0xc91   : > { %v6856_v61 = vpop.f32.mrf.mxu1 }
 0xc92   : > { %v6857_v4 = vadd.f32 %v6856_v61, %v6814_v26  ;;  %v8965_v61 = vunpack.i.h.bf16 %v15845_v52  ;;  %v6970_v51 = vsel %vm1328_vm10, %v6968_v0, %v6969_v55  ;;  %v9498_v0 = vld [vmem:[%s16571_s5 + $0xe0] sm:$0xff]  }
 0xc93   : > { %v6858_v23 = vpop.f32.mrf.mxu1 }
 0xc94   : > { %v6859_v1 = vadd.f32 %v6858_v23, %v6816_v49  ;;  %v5852_v30 = vsel %vm844_vm7, %v8964_v15, %v8965_v61 }
 0xc95   : > { %v6860_v44 = vpop.f32.mrf.mxu1  ;;  %v5856_v63 = vmax.f32 %v14876_v53, %v5852_v30  ;;  %v9483_v53 = vld [vmem:[%s16571_s5 + $0x38] sm:$0xff]  }
 0xc96   : > { %v6861_v62 = vadd.f32 %v6860_v44, %v6818_v16  ;;  %v8971_v44 = vpack.i.bf16 %v12447_v32, %v12337_v40  ;;  %v9482_v32 = vld [vmem:[%s16571_s5 + $0x78] sm:$0xff]  }
 0xc97   : > { %v15870_v38 = vpack.c.bf16 %v5856_v63, %v5856_v63  ;;  %8688 = vmatprep.subr.bf16.mxu0 %v9482_v32  ;;  %v9506_v32 = vld [vmem:[%s16571_s5 + $0xd0] sm:$0xff]  }
 0xc98   : > { %8689 = vmatpush3.bf16.msra.mxu0 %v9483_v53  ;;  %v9507_v53 = vld [vmem:[%s16571_s5 + $0x90] sm:$0xff]  }
 0xc99   : > { %v7110_v42 = vrot.slane %v15870_v38, 7 }
 0xca2   : > { %v6897_v59 = vpop.f32.mrf.mxu0 }
 0xca3   : > { %v6898_v35 = vadd.f32 %v6897_v59, %v6855_v2  ;;  %v15855_v59 = vmax.f32 %v6950_v27, %v6970_v51  ;;  %v9496_v27 = vld [vmem:[%s16571_s5 + $0x58] sm:$0xff]  }
 0xca4   : > { %v6899_v37 = vpop.f32.mrf.mxu0 }
 0xca5   : > { %v6900_v48 = vadd.f32 %v6899_v37, %v6857_v4  ;;  %v15862_v37 = vpack.c.bf16 %v4714_v22, %v4714_v22  ;;  %v9484_v4 = vld [vmem:[%s16571_s5 + $0x70] sm:$0xff]  }
 0xca6   : > { %v6901_v58 = vpop.f32.mrf.mxu0  ;;  %8690 = vmatprep.subr.bf16.mxu0 %v9484_v4  ;;  %v9508_v4 = vld [vmem:[%s16571_s5 + $0x40] sm:$0xff]  }
 0xca7   : > { %v6940_v36 = vpop.f32.mrf.mxu1  ;;  %v6902_v24 = vadd.f32 %v6901_v58, %v6859_v1  ;;  %v15874_v49 = vshrl.u32 %v15862_v37, 16  ;;  %v9488_v58 = vld [vmem:[%s16571_s5 + $0x68] sm:$0xff]   ;;  %v9492_v1 = vld [vmem:[%s16571_s5 + $0x60] sm:$0xff]   ;;  %v4731_v63 = vrot.slane %v15862_v37, 1  ;;  %v7059_v41 = vshll.u32 %v15862_v37, 16 }
 0xca8   : > { %v6941_v45 = vadd.f32 %v6940_v36, %v6898_v35  ;;  %v6903_v34 = vpop.f32.mrf.mxu0  ;;  %v9485_v35 = vld [vmem:[%s16571_s5 + $0x30] sm:$0xff]   ;;  %v9489_v36 = vld [vmem:[%s16571_s5 + $0x28] sm:$0xff]  }
 0xca9   : > { %v6942_v57 = vpop.f32.mrf.mxu1  ;;  %v6904_v56 = vadd.f32 %v6903_v34, %v6861_v62  ;;  %8691 = vmatpush3.bf16.msra.mxu0 %v9485_v35  ;;  %v9494_v34 = vld [vmem:[%s16571_s5 + $0xe8] sm:$0xff]   ;;  %v5873_v35 = vrot.slane %v15870_v38, 1 }
 0xcaa   : > { %v6943_v7 = vadd.f32 %v6942_v57, %v6900_v48  ;;  %v6951_v46 = vmax.f32 %v6941_v45, 0.0  ;;  %8692 = vmatprep.subr.bf16.mxu0 %v9488_v58  ;;  %v9493_v48 = vld [vmem:[%s16571_s5 + $0x20] sm:$0xff]   ;;  %v9495_v57 = vld [vmem:[%s16571_s5 + $0xa8] sm:$0xff]  }
 0xcab   : > { %v6944_v50 = vpop.f32.mrf.mxu1 }
 0xcac   : > { %v6945_v19 = vadd.f32 %v6944_v50, %v6902_v24  ;;  %v6952_v14 = vmax.f32 %v6943_v7, 0.0  ;;  %v6971_v25 = vrot.slane %v6951_v46, 7 }
 0xcad   : > { %v6946_v17 = vpop.f32.mrf.mxu1  ;;  %8693 = vmatpush3.bf16.msra.mxu0 %v9489_v36 }
 0xcae   : > { %v6955_v13 = vmax.f32 %v6945_v19, 0.0  ;;  %v6947_v9 = vadd.f32 %v6946_v17, %v6904_v56  ;;  %v6974_v12 = vrot.slane %v6952_v14, 7  ;;  %8694 = vmatprep.subr.bf16.mxu0 %v9492_v1 }
 0xcb0   : > { %v6972_v3 = vrot.slane %v6955_v13, 7  ;;  %v6956_v31 = vmax.f32 %v6947_v9, 0.0  ;;  %v9500_v13 = vld [vmem:[%s16571_s5 + $0x50] sm:$0xff]  }
 0xcb1   : > { %8695 = vmatpush3.bf16.msra.mxu0 %v9493_v48  ;;  %v9510_v48 = vld [vmem:[%s16571_s5 + $0xc8] sm:$0xff]  }
 0xcb2   : > { %v6973_v23 = vsel %vm1328_vm10, %v6971_v25, %v6972_v3  ;;  %v6975_v39 = vrot.slane %v6956_v31, 7  ;;  %8696 = vmatprep.subr.bf16.mxu0 %v9496_v27 }
 0xcb3   : > { %v6983_v28 = vmax.f32 %v6951_v46, %v6973_v23  ;;  %v9502_v23 = vld [vmem:[%s16571_s5 + $0xd8] sm:$0xff]  }
 0xcb4   : > { %v6976_v18 = vsel %vm1328_vm10, %v6974_v12, %v6975_v39  ;;  %v9503_v39 = vld [vmem:[%s16571_s5 + $0x98] sm:$0xff]  }
 0xcb5   : > { %v6984_v26 = vmax.f32 %v6952_v14, %v6976_v18  ;;  %v8966_v2 = vpack.i.bf16 %v6983_v28, %v15855_v59  ;;  %v9499_v14 = vld [vmem:[%s16571_s5 + $0xa0] sm:$0xff]   ;;  %8697 = vmatpush3.bf16.msra.mxu0 %v9497_v43  ;;  %v9505_v18 = vld [vmem:[%s16571_s5 + $0x8] sm:$0xff]  }
 0xcb6   : > { %8698 = vmatprep.subr.bf16.mxu0 %v9500_v13  ;;  %v9514_v43 = vld [vmem:[%s16571_s5 + $0xc0] sm:$0xff]  }
 0xcb7   : > { %8967 = vrot.lane.b32.xlu1 %v8966_v2, %s16584_s29  ;;  %v8976_v33 = vpack.i.bf16 %v6984_v26, %v13718_v54  ;;  %v15883_v54 = vshrl.u32 %v15870_v38, 16 }
 0xcb9   : > { %8977 = vrot.lane.b32.xlu0 %v8976_v33, %s16584_s29 }
 0xcbb   : > { %8972 = vrot.lane.b32.xlu1 %v8971_v44, %s16584_s29 }
 0xcbd   : > { %4724 = vrot.lane.b32.xlu0 %v15874_v49, %s10609_s19 }
 0xcbf   : > { %8982 = vrot.lane.b32.xlu1 %v8981_v20, %s16584_s29  ;;  %v9490_v20 = vld [vmem:[%s16571_s5 + $0xf0] sm:$0xff]  }
 0xcc0   : > { %8712 = vmatprep.subr.bf16.mxu1 %v9490_v20 }
 0xcc1   : > { %5866 = vrot.lane.b32.xlu0 %v15883_v54, %s10609_s19  ;;  %8713 = vmatpush3.bf16.msra.mxu1 %v9491_v11 }
 0xcc2   : > { %8714 = vmatprep.subr.bf16.mxu1 %v9494_v34  ;;  %v9512_v34 = vld [vmem:[%s16571_s5 + $0x178] sm:$0xff]  }
 0xcc5   : > { %8715 = vmatpush3.bf16.msra.mxu1 %v9495_v57 }
 0xcc6   : > { %8716 = vmatprep.subr.bf16.mxu1 %v9498_v0  ;;  %v9515_v0 = vld [vmem:[%s16571_s5 + $0x80] sm:$0xff]  }
 0xcc9   : > { %8717 = vmatpush3.bf16.msra.mxu1 %v9499_v14 }
 0xcca   : > { %8718 = vmatprep.subr.bf16.mxu1 %v9502_v23  ;;  %v5880_v23 = vrot.slane %v15883_v54, 1 }
 0xccd   : > { %8719 = vmatpush3.bf16.msra.mxu1 %v9503_v39 }
 0xcce   : > { %8720 = vmatprep.subr.bf16.mxu1 %v9506_v32  ;;  %v4754_v32 = vrot.slane %v15862_v37, 3 }
 0xcd1   : > { %8721 = vmatpush3.bf16.msra.mxu1 %v9507_v53 }
 0xcd2   : > { %8722 = vmatprep.subr.bf16.mxu1 %v9510_v48 }
 0xd29   : > { %v8968_v16 = vpop.permute.xlu1 %8967 }
 0xd2a   : > { %v8970_v62 = vunpack.i.h.bf16 %v8968_v16  ;;  %v8969_v24 = vunpack.i.l.bf16 %v8968_v16 }
 0xd2b   : > { %v8978_v45 = vpop.permute.xlu0 %8977 }
 0xd2c   : > { %v8979_v7 = vunpack.i.l.bf16 %v8978_v45  ;;  %v8980_v50 = vunpack.i.h.bf16 %v8978_v45  ;;  %v6994_v8 = vsel %vm844_vm7, %v8969_v24, %v8970_v62  ;;  %v9511_v45 = vld [vmem:[%s16571_s5 + $0x88] sm:$0xff]  }
 0xd2d   : > { %v8973_v55 = vpop.permute.xlu1 %8972  ;;  %v6998_v22 = vmax.f32 %v15831_v6, %v6994_v8  ;;  %8723 = vmatpush3.bf16.msra.mxu1 %v9511_v45  ;;  %v9518_v8 = vld [vmem:[%s16571_s5 + $0x1f8] sm:$0xff]  }
 0xd2e   : > { %v4711_v46 = vsel %vm844_vm7, %v8960_v29, %v8979_v7  ;;  %v8975_v56 = vunpack.i.h.bf16 %v8973_v55  ;;  %v8974_v19 = vunpack.i.l.bf16 %v8973_v55  ;;  %v6995_v9 = vsel %vm844_vm7, %v8970_v62, %v8980_v50  ;;  %8724 = vmatprep.subr.bf16.mxu1 %v9514_v43 }
 0xd2f   : > { %v4715_v17 = vmax.f32 %v13621_v21, %v4711_v46  ;;  %v9501_v21 = vld [vmem:[%s16571_s5 + $0x10] sm:$0xff]   ;;  %v6999_v28 = vmax.f32 %v15855_v59, %v6995_v9  ;;  %v15991_v59 = vpack.c.bf16 %v6998_v22, %v6998_v22  ;;  %v8582_v7 = vrot.slane %v15870_v38, 9 }
 0xd30   : > { %v3556_v29 = vsel %vm844_vm7, %v8974_v19, %v8975_v56  ;;  %8699 = vmatpush3.bf16.msra.mxu0 %v9501_v21 }
 0xd31   : > { %v15954_v10 = vpack.c.bf16 %v4715_v17, %v4715_v17  ;;  %v3560_v15 = vmax.f32 %v12331_v47, %v3556_v29  ;;  %v8983_v51 = vpop.permute.xlu1 %8982  ;;  %v9504_v47 = vld [vmem:[%s16571_s5 + $0x48] sm:$0xff]   ;;  %v7123_v36 = vshll.u32 %v15991_v59, 16  ;;  %v7029_v62 = vrot.slane %v15991_v59, 2  ;;  %8725 = vmatpush3.bf16.msra.mxu1 %v9515_v0 }
 0xd32   : > { %v8985_v25 = vunpack.i.h.bf16 %v8983_v51  ;;  %v8984_v3 = vunpack.i.l.bf16 %v8983_v51  ;;  %8700 = vmatprep.subr.bf16.mxu0 %v9504_v47  ;;  %v7003_v19 = vshrl.u32 %v15991_v59, 16  ;;  %v7015_v29 = vrot.slane %v15991_v59, 1  ;;  %8754 = vmatprep.subr.bf16.mxu1 %v9518_v8 }
 0xd33   : > { %v15957_v31 = vpack.c.bf16 %v3560_v15, %v3560_v15  ;;  %v15960_v12 = vshrl.u32 %v15954_v10, 16  ;;  %v16046_v24 = vrot.slane %v7123_v36, 7  ;;  %v7148_v50 = vshll.u32 %v7029_v62, 16 }
 0xd34   : > { %v5853_v30 = vsel %vm844_vm7, %v8965_v61, %v8984_v3  ;;  %v3557_v6 = vsel %vm844_vm7, %v8975_v56, %v8985_v25  ;;  %v4745_v61 = vrot.slane %v15862_v37, 2  ;;  %8701 = vmatpush3.bf16.msra.mxu0 %v9505_v18  ;;  %v4732_v21 = vrot.slane %v15954_v10, 1 }
 0xd35   : > { %v5857_v26 = vmax.f32 %v14882_v60, %v5853_v30  ;;  %4726 = vrot.lane.b32.xlu0 %v15960_v12, %s10609_s19  ;;  %v15983_v2 = vshrl.u32 %v15957_v31, 16  ;;  %v15993_v60 = vpack.c.bf16 %v6999_v28, %v6999_v28  ;;  %v3561_v33 = vmax.f32 %v12337_v40, %v3557_v6  ;;  %v9509_v40 = vld [vmem:[%s16571_s5] sm:$0xff]   ;;  %8702 = vmatprep.subr.bf16.mxu0 %v9508_v4 }
 0xd36   : > { %v7077_v20 = vshll.u32 %v4745_v61, 16  ;;  %v7182_v16 = vsel %vm11161_vm12, %v15957_v31, %v7059_v41  ;;  %v3594_v27 = vrot.slane %v15957_v31, 2  ;;  %v7150_v14 = vrot.slane %v7148_v50, 7 }
 0xd37   : > { %v15986_v52 = vpack.c.bf16 %v5857_v26, %v5857_v26  ;;  %3570 = vrot.lane.b32.xlu1 %v15983_v2, %s10609_s19  ;;  %v16019_v58 = vshrl.u32 %v15993_v60, 16  ;;  %v16030_v1 = vpack.c.bf16 %v3561_v33, %v3561_v33  ;;  %v16042_v57 = vsel %vm1328_vm10, %v7182_v16, %v7110_v42 }
 0xd38   : > { %8703 = vmatpush3.bf16.msra.mxu0 %v9509_v40  ;;  %v7189_v55 = vsel %vm11161_vm12, %v3594_v27, %v7077_v20  ;;  %v7250_v46 = vsel %vm16022_vm15, %v16042_v57, %v16046_v24  ;;  %v3578_v9 = vrot.slane %v15957_v31, 1  ;;  %v4738_v25 = vrot.slane %v15874_v49, 1  ;;  %v4725_v40 = vpop.permute.xlu0 %4724  ;;  %v9520_v24 = vld [vmem:[%s16571_s5 + $0x168] sm:$0xff]  }
 0xd39   : > { %v15998_v44 = vshrl.u32 %v15986_v52, 16  ;;  %8732 = vmatprep.subr.bf16.mxu0 %v9512_v34  ;;  %v7225_v56 = vsel %vm1328_vm10, %v7189_v55, %v8582_v7  ;;  %v3568_v17 = vshrl.u32 %v16030_v1, 16  ;;  %v5874_v15 = vrot.slane %v15986_v52, 1 }
 0xd3a   : > { %v16071_v13 = vsel %vm16022_vm15, %v7225_v56, %v7150_v14  ;;  %v3579_v51 = vrot.slane %v16030_v1, 1  ;;  %v7016_v3 = vrot.slane %v15993_v60, 1  ;;  %v4739_v39 = vrot.slane %v15960_v12, 1 }
 0xd3b   : > { %4733 = vrot.lane.b32.xlu1 %v4731_v63, %s10608_s9  ;;  %5868 = vrot.lane.b32.xlu0 %v15998_v44, %s10609_s19  ;;  %v3586_v47 = vrot.slane %v15983_v2, 1  ;;  %v5881_v22 = vrot.slane %v15998_v44, 1  ;;  %v7022_v28 = vrot.slane %v7003_v19, 1  ;;  %v4747_v30 = vrot.slane %v15874_v49, 2 }
 0xd3c   : > { %v3587_v18 = vrot.slane %v3568_v17, 1  ;;  %v7031_v26 = vrot.slane %v7003_v19, 2  ;;  %v7023_v6 = vrot.slane %v16019_v58, 1  ;;  %v5889_v61 = vrot.slane %v15883_v54, 2  ;;  %v5867_v41 = vpop.permute.xlu0 %5866 }
 0xd3d   : > { %v4748_v63 = vrot.slane %v15960_v12, 2  ;;  %v3597_v49 = vrot.slane %v15983_v2, 2  ;;  %v5890_v33 = vrot.slane %v15998_v44, 2  ;;  %v3598_v53 = vrot.slane %v3568_v17, 2 }
 0xd3e   : > { %v7038_v54 = vrot.slane %v15991_v59, 3  ;;  %v4755_v12 = vrot.slane %v15954_v10, 3  ;;  %v5896_v2 = vrot.slane %v15870_v38, 3  ;;  %v7039_v44 = vrot.slane %v15993_v60, 3 }
 0xd3f   : > { %5875 = vrot.lane.b32.xlu1 %v5873_v35, %s10608_s9  ;;  %7010 = vrot.lane.b32.xlu0 %v16019_v58, %s10609_s19  ;;  %v3605_v37 = vrot.slane %v15957_v31, 3  ;;  %v7032_v4 = vrot.slane %v16019_v58, 2  ;;  %v5897_v59 = vrot.slane %v15986_v52, 3  ;;  %v3606_v38 = vrot.slane %v16030_v1, 3 }
 0xd40   : > { %v4762_v42 = vsel %vm851_vm9, %v15954_v10, %v4725_v40  ;;  %v5904_v31 = vsel %vm851_vm9, %v15986_v52, %v5867_v41 }
 0xd41   : > { %v7061_v20 = vshll.u32 %v4762_v42, 16  ;;  %v7111_v36 = vrot.slane %v5904_v31, 7  ;;  %v9526_v31 = vld [vmem:[%s16571_s5 + $0x1e8] sm:$0xff]  }
 0xd43   : > { %7008 = vrot.lane.b32.xlu1 %v7003_v19, %s10609_s19  ;;  %3572 = vrot.lane.b32.xlu0 %v3568_v17, %s10609_s19 }
 0xd47   : > { %7017 = vrot.lane.b32.xlu1 %v7015_v29, %s10608_s9  ;;  %4735 = vrot.lane.b32.xlu0 %v4732_v21, %s10608_s9 }
 0xd4b   : > { %3580 = vrot.lane.b32.xlu1 %v3578_v9, %s10608_s9  ;;  %5877 = vrot.lane.b32.xlu0 %v5874_v15, %s10608_s9  ;;  %v9513_v15 = vld [vmem:[%s16571_s5 + $0x138] sm:$0xff]  }
 0xd4f   : > { %3582 = vrot.lane.b32.xlu0 %v3579_v51, %s10608_s9  ;;  %4740 = vrot.lane.b32.xlu1 %v4738_v25, %s16584_s29 }
 0xd53   : > { %7019 = vrot.lane.b32.xlu0 %v7016_v3, %s10608_s9  ;;  %5882 = vrot.lane.b32.xlu1 %v5880_v23, %s16584_s29 }
 0xd57   : > { %4742 = vrot.lane.b32.xlu0 %v4739_v39, %s16584_s29  ;;  %3588 = vrot.lane.b32.xlu1 %v3586_v47, %s16584_s29  ;;  %v9516_v39 = vld [vmem:[%s16571_s5 + $0x170] sm:$0xff]  }
 0xd5b   : > { %5884 = vrot.lane.b32.xlu0 %v5881_v22, %s16584_s29  ;;  %7024 = vrot.lane.b32.xlu1 %v7022_v28, %s16584_s29 }
 0xd5f   : > { %4749 = vrot.lane.b32.xlu0 %v4747_v30, %s10609_s19  ;;  %3590 = vrot.lane.b32.xlu1 %v3587_v18, %s16584_s29 }
 0xd63   : > { %7033 = vrot.lane.b32.xlu0 %v7031_v26, %s10609_s19  ;;  %7026 = vrot.lane.b32.xlu1 %v7023_v6, %s16584_s29 }
 0xd67   : > { %5891 = vrot.lane.b32.xlu0 %v5889_v61, %s10609_s19  ;;  %4751 = vrot.lane.b32.xlu1 %v4748_v63, %s10609_s19 }
 0xd6b   : > { %3599 = vrot.lane.b32.xlu0 %v3597_v49, %s10609_s19  ;;  %5893 = vrot.lane.b32.xlu1 %v5890_v33, %s10609_s19  ;;  %v9517_v49 = vld [vmem:[%s16571_s5 + $0x130] sm:$0xff]  }
 0xd6f   : > { %4756 = vrot.lane.b32.xlu0 %v4754_v32, %s10608_s9  ;;  %3601 = vrot.lane.b32.xlu1 %v3598_v53, %s10609_s19  ;;  %v9519_v53 = vld [vmem:[%s16571_s5 + $0x1b8] sm:$0xff]  }
 0xd73   : > { %7040 = vrot.lane.b32.xlu0 %v7038_v54, %s10608_s9  ;;  %4758 = vrot.lane.b32.xlu1 %v4755_v12, %s10608_s9 }
 0xd77   : > { %5898 = vrot.lane.b32.xlu0 %v5896_v2, %s10608_s9  ;;  %7042 = vrot.lane.b32.xlu1 %v7039_v44, %s10608_s9 }
 0xd7b   : > { %3607 = vrot.lane.b32.xlu0 %v3605_v37, %s10608_s9  ;;  %7035 = vrot.lane.b32.xlu1 %v7032_v4, %s10609_s19  ;;  %v9522_v37 = vld [vmem:[%s16571_s5 + $0x1f0] sm:$0xff]  }
 0xd7f   : > { %5900 = vrot.lane.b32.xlu1 %v5897_v59, %s10608_s9  ;;  %v9521_v59 = vld [vmem:[%s16571_s5 + $0x128] sm:$0xff]  }
 0xd83   : > { %3609 = vrot.lane.b32.xlu1 %v3606_v38, %s10608_s9  ;;  %v9524_v38 = vld [vmem:[%s16571_s5 + $0x160] sm:$0xff]   ;;  %s10549_s9 = sshll.u32 %s10613_s28, 4  ;;  %s10550_s9 = int_to_ptr.vmem [resolvable:$false] %s10549_s9 }
 0xd84   : > { %s10551_s19 = scalar_lea.vmem %s10550_s9, 128  ;;  %p10552_p0 = scmp.lt.s32.totalorder %s8156_s23, %s10550_s9 }
 0xd85   : > { %p10553_p1 = scmp.lt.s32.totalorder %s10551_s19, %s10545_s17 }
 0xd87   : > { %p10554_p2 = por %p10553_p1, %p10552_p0 }
 0xd89   : > { %p10555_p3 = pnand %p10554_p2, %p10548_p13 }
 0xda7   : > { %v4727_v35 = vpop.permute.xlu0 %4726 }
 0xda8   : > { %v4728_v17 = vsel %vm851_vm9, %v4725_v40, %v4727_v35  ;;  %v9523_v40 = vld [vmem:[%s16571_s5 + $0x1b0] sm:$0xff]  }
 0xda9   : > { %v3571_v58 = vpop.permute.xlu1 %3570  ;;  %v7064_v47 = vshll.u32 %v4728_v17, 16  ;;  %v9534_v17 = vld [vmem:[%s16571_s5 + $0x1d8] sm:$0xff]  }
 0xdaa   : > { %v3615_v16 = vsel %vm851_vm9, %v16030_v1, %v3571_v58 }
 0xdab   : > { %v7183_v48 = vsel %vm11161_vm12, %v3615_v16, %v7061_v20  ;;  %v9525_v20 = vld [vmem:[%s16571_s5 + $0x120] sm:$0xff]  }
 0xdac   : > { %v7201_v45 = vsel %vm1328_vm10, %v7183_v48, %v7111_v36  ;;  %v9530_v16 = vld [vmem:[%s16571_s5 + $0x1e0] sm:$0xff]  }
 0xdad   : > { %v16141_v34 = vpop.permute.xlu1 %4733  ;;  %v5869_v27 = vpop.permute.xlu0 %5868 }
 0xdae   : > { %v4765_v29 = vsel %vm848_vm8, %v4727_v35, %v16141_v34  ;;  %v5870_v22 = vsel %vm851_vm9, %v5867_v41, %v5869_v27  ;;  %v9527_v35 = vld [vmem:[%s16571_s5 + $0x1a8] sm:$0xff]  }
 0xdaf   : > { %v7066_v28 = vshll.u32 %v4765_v29, 16  ;;  %v7112_v33 = vrot.slane %v5870_v22, 7  ;;  %v9533_v29 = vld [vmem:[%s16571_s5 + $0x110] sm:$0xff]  }
 0xdb0   : > { %v9538_v22 = vld [vmem:[%s16571_s5 + $0x1d0] sm:$0xff]  }
 0xdb1   : > { %v16143_v62 = vpop.permute.xlu1 %5875  ;;  %v7011_v7 = vpop.permute.xlu0 %7010 }
 0xdb2   : > { %v5907_v51 = vsel %vm848_vm8, %v5869_v27, %v16143_v62  ;;  %v9532_v27 = vld [vmem:[%s16571_s5 + $0x150] sm:$0xff]  }
 0xdb3   : > { %v7113_v26 = vrot.slane %v5907_v51, 7 }
 0xdb5   : > { %v7009_v43 = vpop.permute.xlu1 %7008  ;;  %v3573_v50 = vpop.permute.xlu0 %3572 }
 0xdb6   : > { %v7046_v55 = vsel %vm851_vm9, %v15993_v60, %v7009_v43  ;;  %v7012_v56 = vsel %vm851_vm9, %v7009_v43, %v7011_v7  ;;  %v3574_v25 = vsel %vm851_vm9, %v3571_v58, %v3573_v50  ;;  %v9531_v43 = vld [vmem:[%s16571_s5 + $0x1a0] sm:$0xff]  }
 0xdb7   : > { %v7126_v19 = vshll.u32 %v7046_v55, 16  ;;  %v7130_v21 = vshll.u32 %v7012_v56, 16  ;;  %v7184_v61 = vsel %vm11161_vm12, %v3574_v25, %v7064_v47  ;;  %v9535_v25 = vld [vmem:[%s16571_s5 + $0x198] sm:$0xff]  }
 0xdb8   : > { %v7205_v54 = vsel %vm1328_vm10, %v7184_v61, %v7112_v33  ;;  %v9540_v61 = vld [vmem:[%s16571_s5 + $0x140] sm:$0xff]  }
 0xdb9   : > { %v7128_v0 = vrot.slane %v7126_v19, 7  ;;  %v16149_v14 = vpop.permute.xlu1 %7017  ;;  %v16151_v8 = vpop.permute.xlu0 %4735  ;;  %v7132_v6 = vrot.slane %v7130_v21, 7 }
 0xdba   : > { %v7049_v9 = vsel %vm848_vm8, %v7011_v7, %v16149_v14 }
 0xdbb   : > { %v7133_v3 = vshll.u32 %v7049_v9, 16  ;;  %v7251_v23 = vsel %vm16022_vm15, %v7201_v45, %v7128_v0  ;;  %v7252_v4 = vsel %vm16022_vm15, %v7205_v54, %v7132_v6  ;;  %v9529_v45 = vld [vmem:[%s16571_s5 + $0x118] sm:$0xff]  }
 0xdbc   : > { %7892 = vmatprep.mubr.bf16.mxu0 %v7251_v23 }
 0xdbd   : > { %v16169_v30 = vpop.permute.xlu1 %3580  ;;  %7893 = vmatmul.mubr.bf16.vlgmr.msra.gmra.mxu0 %v7250_v46  ;;  %v16176_v18 = vpop.permute.xlu0 %5877  ;;  %v7135_v32 = vrot.slane %v7133_v3, 7 }
 0xdbe   : > { %v3619_v63 = vsel %vm848_vm8, %v3573_v50, %v16169_v30  ;;  %8733 = vmatpush3.bf16.msra.mxu0 %v9513_v15  ;;  %v9536_v15 = vld [vmem:[%s16571_s5 + $0x148] sm:$0xff]  }
 0xdbf   : > { %v7185_v57 = vsel %vm11161_vm12, %v3619_v63, %v7066_v28  ;;  %8734 = vmatprep.subr.bf16.mxu0 %v9516_v39 }
 0xdc0   : > { %v7209_v46 = vsel %vm1328_vm10, %v7185_v57, %v7113_v26  ;;  %v9537_v26 = vld [vmem:[%s16571_s5 + $0x108] sm:$0xff]  }
 0xdc1   : > { %v16195_v12 = vpop.permute.xlu0 %3582  ;;  %v16197_v2 = vpop.permute.xlu1 %4740  ;;  %v7253_v44 = vsel %vm16022_vm15, %v7209_v46, %v7135_v32  ;;  %v9542_v32 = vld [vmem:[%s16571_s5 + $0x1c8] sm:$0xff]   ;;  %v9541_v46 = vld [vmem:[%s16571_s5 + $0x100] sm:$0xff]  }
 0xdc2   : > { %8735 = vmatpush3.bf16.msra.mxu0 %v9517_v49  ;;  %7932 = vmatprep.mubr.bf16.mxu1 %v7253_v44  ;;  %v4768_v48 = vsel %vm844_vm7, %v16151_v8, %v16197_v2  ;;  %v9539_v49 = vld [vmem:[%s16571_s5 + $0x190] sm:$0xff]   ;;  %v3584_v33 = vsel %vm848_vm8, %v16169_v30, %v16195_v12  ;;  %v4746_v44 = vrot.slane %v15954_v10, 2  ;;  %v9546_v10 = vld [vmem:[%s16571_s5 + $0x1c0] sm:$0xff]  }
 0xdc3   : > { %7933 = vmatmul.mubr.bf16.vlgmr.msra.gmra.mxu1 %v7252_v4  ;;  %8736 = vmatprep.subr.bf16.mxu0 %v9520_v24  ;;  %v7071_v50 = vshll.u32 %v4768_v48, 16  ;;  %v5879_v24 = vsel %vm848_vm8, %v16143_v62, %v16176_v18  ;;  %v9543_v62 = vld [vmem:[%s16571_s5 + $0x188] sm:$0xff]   ;;  %v5888_v4 = vrot.slane %v15986_v52, 2  ;;  %v3595_v48 = vrot.slane %v16030_v1, 2 }
 0xdc4   : > { %8755 = vmatpush3.bf16.msra.mxu1 %v9519_v53  ;;  %8012 = vmatprep.mubr.bf16.mxu1 %v16071_v13  ;;  %v9528_v13 = vld [vmem:[%s16571_s5 + $0x158] sm:$0xff]  }
 0xdc5   : > { %v7020_v41 = vpop.permute.xlu0 %7019  ;;  %v16216_v42 = vpop.permute.xlu1 %5882  ;;  %8756 = vmatprep.subr.bf16.mxu1 %v9522_v37  ;;  %v9544_v53 = vld [vmem:[%s16571_s5 + $0x278] sm:$0xff]  }
 0xdc6   : > { %8737 = vmatpush3.bf16.msra.mxu0 %v9521_v59  ;;  %v5910_v55 = vsel %vm844_vm7, %v16176_v18, %v16216_v42  ;;  %v7021_v3 = vsel %vm848_vm8, %v16149_v14, %v7020_v41  ;;  %v4737_v14 = vsel %vm848_vm8, %v16141_v34, %v16151_v8  ;;  %v7114_v18 = vrot.slane %v5879_v24, 7 }
 0xdc7   : > { %8738 = vmatprep.subr.bf16.mxu0 %v9524_v38  ;;  %v7115_v51 = vrot.slane %v5910_v55, 7  ;;  %v7137_v63 = vshll.u32 %v7021_v3, 16  ;;  %v7069_v57 = vshll.u32 %v4737_v14, 16  ;;  %v9553_v3 = vld [vmem:[%s16571_s5 + $0x228] sm:$0xff]   ;;  %v9557_v14 = vld [vmem:[%s16571_s5 + $0x220] sm:$0xff]  }
 0xdc8   : > { %8757 = vmatpush3.bf16.msra.mxu1 %v9523_v40 }
 0xdc9   : > { %v16230_v58 = vpop.permute.xlu0 %4742  ;;  %v16232_v36 = vpop.permute.xlu1 %3588  ;;  %8758 = vmatprep.subr.bf16.mxu1 %v9526_v31  ;;  %v7186_v54 = vsel %vm11161_vm12, %v3584_v33, %v7069_v57  ;;  %v9562_v33 = vld [vmem:[%s16571_s5 + $0x2e0] sm:$0xff]   ;;  %v9564_v57 = vld [vmem:[%s16571_s5 + $0x250] sm:$0xff]  }
 0xdca   : > { %8739 = vmatpush3.bf16.msra.mxu0 %v9525_v20  ;;  %v3623_v7 = vsel %vm844_vm7, %v16195_v12, %v16232_v36  ;;  %v7139_v12 = vrot.slane %v7137_v63, 7  ;;  %v4744_v37 = vsel %vm844_vm7, %v16197_v2, %v16230_v58  ;;  %v9545_v2 = vld [vmem:[%s16571_s5 + $0x238] sm:$0xff]   ;;  %v7213_v52 = vsel %vm1328_vm10, %v7186_v54, %v7114_v18 }
 0xdcb   : > { %8740 = vmatprep.subr.bf16.mxu0 %v9528_v13  ;;  %v7187_v21 = vsel %vm11161_vm12, %v3623_v7, %v7071_v50  ;;  %v9548_v13 = vld [vmem:[%s16571_s5 + $0x270] sm:$0xff]   ;;  %v9566_v54 = vld [vmem:[%s16571_s5 + $0x2d8] sm:$0xff]  }
 0xdcc   : > { %8759 = vmatpush3.bf16.msra.mxu1 %v9527_v35  ;;  %v7217_v28 = vsel %vm1328_vm10, %v7187_v21, %v7115_v51  ;;  %v7074_v35 = vshll.u32 %v4744_v37, 16  ;;  %v9551_v21 = vld [vmem:[%s16571_s5 + $0x2b8] sm:$0xff]   ;;  %v9554_v51 = vld [vmem:[%s16571_s5 + $0x2f0] sm:$0xff]  }
 0xdcd   : > { %v16255_v56 = vpop.permute.xlu0 %5884  ;;  %v7025_v19 = vpop.permute.xlu1 %7024  ;;  %8760 = vmatprep.subr.bf16.mxu1 %v9530_v16  ;;  %v7254_v16 = vsel %vm16022_vm15, %v7213_v52, %v7139_v12 }
 0xdce   : > { %8741 = vmatpush3.bf16.msra.mxu0 %v9529_v45  ;;  %v7052_v0 = vsel %vm844_vm7, %v7020_v41, %v7025_v19  ;;  %v5886_v58 = vsel %vm844_vm7, %v16216_v42, %v16255_v56  ;;  %v9550_v42 = vld [vmem:[%s16571_s5 + $0x2f8] sm:$0xff]   ;;  %v9549_v56 = vld [vmem:[%s16571_s5 + $0x230] sm:$0xff]  }
 0xdcf   : > { %v7140_v9 = vshll.u32 %v7052_v0, 16  ;;  %8742 = vmatprep.subr.bf16.mxu0 %v9532_v27  ;;  %v9552_v0 = vld [vmem:[%s16571_s5 + $0x268] sm:$0xff]  }
 0xdd0   : > { %8761 = vmatpush3.bf16.msra.mxu1 %v9531_v43 }
 0xdd1   : > { %v7142_v23 = vrot.slane %v7140_v9, 7  ;;  %v16274_v39 = vpop.permute.xlu0 %4749  ;;  %v3591_v47 = vpop.permute.xlu1 %3590  ;;  %8762 = vmatprep.subr.bf16.mxu1 %v9534_v17 }
 0xdd2   : > { %8743 = vmatpush3.bf16.msra.mxu0 %v9533_v29  ;;  %v4771_v40 = vsel %vm851_vm9, %v4746_v44, %v16274_v39  ;;  %v3592_v31 = vsel %vm844_vm7, %v16232_v36, %v3591_v47  ;;  %v9547_v36 = vld [vmem:[%s16571_s5 + $0x180] sm:$0xff]   ;;  %v9565_v44 = vld [vmem:[%s16571_s5 + $0x210] sm:$0xff]  }
 0xdd3   : > { %8744 = vmatprep.subr.bf16.mxu0 %v9536_v15  ;;  %v7255_v6 = vsel %vm16022_vm15, %v7217_v28, %v7142_v23  ;;  %v7079_v45 = vshll.u32 %v4771_v40, 16  ;;  %v7188_v43 = vsel %vm11161_vm12, %v3592_v31, %v7074_v35  ;;  %v9556_v47 = vld [vmem:[%s16571_s5 + $0x260] sm:$0xff]   ;;  %v9567_v40 = vld [vmem:[%s16571_s5 + $0x298] sm:$0xff]   ;;  %v9570_v31 = vld [vmem:[%s16571_s5 + $0x2d0] sm:$0xff]  }
 0xdd4   : > { %8763 = vmatpush3.bf16.msra.mxu1 %v9535_v25  ;;  %7972 = vmatprep.mubr.bf16.mxu0 %v7255_v6  ;;  %v9560_v6 = vld [vmem:[%s16571_s5 + $0x258] sm:$0xff]   ;;  %v9569_v35 = vld [vmem:[%s16571_s5 + $0x208] sm:$0xff]  }
 0xdd5   : > { %v16297_v34 = vpop.permute.xlu0 %7033  ;;  %v7027_v8 = vpop.permute.xlu1 %7026  ;;  %8764 = vmatprep.subr.bf16.mxu1 %v9538_v22  ;;  %v9555_v22 = vld [vmem:[%s16571_s5 + $0x2b0] sm:$0xff]  }
 0xdd6   : > { %8745 = vmatpush3.bf16.msra.mxu0 %v9537_v26  ;;  %v7028_v30 = vsel %vm844_vm7, %v7025_v19, %v7027_v8  ;;  %v7116_v19 = vrot.slane %v5886_v58, 7  ;;  %v9558_v26 = vld [vmem:[%s16571_s5 + $0x2e8] sm:$0xff]  }
 0xdd7   : > { %8746 = vmatprep.subr.bf16.mxu0 %v9540_v61  ;;  %v7144_v41 = vshll.u32 %v7028_v30, 16  ;;  %v9559_v61 = vld [vmem:[%s16571_s5 + $0x2a8] sm:$0xff]  }
 0xdd8   : > { %8765 = vmatpush3.bf16.msra.mxu1 %v9539_v49  ;;  %v7221_v9 = vsel %vm1328_vm10, %v7188_v43, %v7116_v19  ;;  %v9574_v43 = vld [vmem:[%s16571_s5 + $0x2c8] sm:$0xff]  }
 0xdd9   : > { %v16322_v59 = vpop.permute.xlu0 %5891  ;;  %v16324_v38 = vpop.permute.xlu1 %4751  ;;  %8766 = vmatprep.subr.bf16.mxu1 %v9542_v32  ;;  %v7146_v50 = vrot.slane %v7144_v41, 7  ;;  %v9561_v32 = vld [vmem:[%s16571_s5 + $0x218] sm:$0xff]   ;;  %v7030_v41 = vrot.slane %v15993_v60, 2 }
 0xdda   : > { %8747 = vmatpush3.bf16.msra.mxu0 %v9541_v46  ;;  %v5913_v20 = vsel %vm851_vm9, %v5888_v4, %v16322_v59  ;;  %v4753_v8 = vsel %vm851_vm9, %v16274_v39, %v16324_v38  ;;  %v9563_v46 = vld [vmem:[%s16571_s5 + $0x2a0] sm:$0xff]   ;;  %v9568_v4 = vld [vmem:[%s16571_s5 + $0x248] sm:$0xff]  }
 0xddb   : > { %8776 = vmatprep.subr.bf16.mxu0 %v9544_v53  ;;  %v7118_v55 = vrot.slane %v5913_v20, 7  ;;  %v7256_v25 = vsel %vm16022_vm15, %v7221_v9, %v7146_v50  ;;  %v7082_v30 = vshll.u32 %v4753_v8, 16  ;;  %v7055_v60 = vsel %vm851_vm9, %v7030_v41, %v16297_v34  ;;  %v9575_v9 = vld [vmem:[%s16571_s5 + $0x288] sm:$0xff]  }
 0xddc   : > { %8767 = vmatpush3.bf16.msra.mxu1 %v9543_v62  ;;  %v7151_v50 = vshll.u32 %v7055_v60, 16 }
 0xddd   : > { %7973 = vmatmul.mubr.bf16.vlgmr.msra.gmra.mxu0 %v7254_v16  ;;  %v3600_v27 = vpop.permute.xlu0 %3599  ;;  %v16351_v7 = vpop.permute.xlu1 %5893  ;;  %8768 = vmatprep.subr.bf16.mxu1 %v9546_v10 }
 0xdde   : > { %v3627_v1 = vsel %vm851_vm9, %v3595_v48, %v3600_v27  ;;  %8777 = vmatpush3.bf16.msra.mxu0 %v9545_v2  ;;  %v5895_v39 = vsel %vm851_vm9, %v16322_v59, %v16351_v7 }
 0xddf   : > { %v7190_v17 = vsel %vm11161_vm12, %v3627_v1, %v7079_v45  ;;  %8778 = vmatprep.subr.bf16.mxu0 %v9548_v13  ;;  %v7119_v59 = vrot.slane %v5895_v39, 7  ;;  %v9571_v45 = vld [vmem:[%s16571_s5 + $0x290] sm:$0xff]  }
 0xde0   : > { %v16368_v29 = vsel %vm1328_vm10, %v7190_v17, %v7118_v55  ;;  %8769 = vmatpush3.bf16.msra.mxu1 %v9547_v36  ;;  %v9572_v36 = vld [vmem:[%s16571_s5 + $0x240] sm:$0xff]  }
 0xde1   : > { %v16374_v15 = vpop.permute.xlu1 %3601  ;;  %8798 = vmatprep.subr.bf16.mxu1 %v9550_v42  ;;  %v16384_v23 = vpop.permute.xlu0 %4756 }
 0xde2   : > { %8779 = vmatpush3.bf16.msra.mxu0 %v9549_v56  ;;  %v3603_v24 = vsel %vm851_vm9, %v3600_v27, %v16374_v15  ;;  %v9573_v56 = vld [vmem:[%s16571_s5 + $0x200] sm:$0xff]  }
 0xde3   : > { %8013 = vmatmul.mubr.bf16.vlgmr.msra.gmra.mxu1 %v7256_v25  ;;  %8780 = vmatprep.subr.bf16.mxu0 %v9552_v0  ;;  %v7191_v62 = vsel %vm11161_vm12, %v3603_v24, %v7082_v30 }
 0xde4   : > { %8799 = vmatpush3.bf16.msra.mxu1 %v9551_v21  ;;  %v7233_v13 = vsel %vm1328_vm10, %v7191_v62, %v7119_v59 }
 0xde5   : > { %v16392_v28 = vpop.permute.xlu1 %4758  ;;  %8800 = vmatprep.subr.bf16.mxu1 %v9554_v51  ;;  %v7041_v63 = vpop.permute.xlu0 %7040  ;;  %v4774_v51 = vsel %vm848_vm8, %v16324_v38, %v16384_v23  ;;  %v10611_v38 = vmov 0.0  }
 0xde6   : > { %8781 = vmatpush3.bf16.msra.mxu0 %v9553_v3  ;;  %v4760_v20 = vsel %vm848_vm8, %v16384_v23, %v16392_v28  ;;  %v9577_v3 = vld [vmem:[%s16571_s5 + $0x2c0] sm:$0xff]   ;;  %v7084_v23 = vshll.u32 %v4774_v51, 16 }
 0xde7   : > { %8782 = vmatprep.subr.bf16.mxu0 %v9556_v47  ;;  %v7087_v27 = vshll.u32 %v4760_v20, 16  ;;  %v7153_v47 = vrot.slane %v7151_v50, 7  ;;  %v8583_v20 = vld [vmem:[%s16572_s6] ss:$0 sm:$0xff] }
 0xde8   : > { %8801 = vmatpush3.bf16.msra.mxu1 %v9555_v22 }
 0xde9   : > { %v16406_v49 = vpop.permute.xlu1 %7042  ;;  %8802 = vmatprep.subr.bf16.mxu1 %v9558_v26  ;;  %v5899_v18 = vpop.permute.xlu0 %5898  ;;  %v9576_v26 = vld [vmem:[%s16571_s5 + $0x308] sm:$0xff]  }
 0xdea   : > { %8783 = vmatpush3.bf16.msra.mxu0 %v9557_v14  ;;  %v7044_v10 = vsel %vm848_vm8, %v7041_v63, %v16406_v49 }
 0xdeb   : > { %8784 = vmatprep.subr.bf16.mxu0 %v9560_v6  ;;  %v7162_v58 = vshll.u32 %v7044_v10, 16  ;;  %v7090_v6 = vshll.u32 %v16392_v28, 16 }
 0xdec   : > { %8803 = vmatpush3.bf16.msra.mxu1 %v9559_v61  ;;  %v5916_v61 = vsel %vm848_vm8, %v16351_v7, %v5899_v18 }
 0xded   : > { %v7036_v53 = vpop.permute.xlu1 %7035  ;;  %8804 = vmatprep.subr.bf16.mxu1 %v9562_v33  ;;  %v7164_v19 = vrot.slane %v7162_v58, 7  ;;  %v9578_v33 = vld [vmem:[%s16571_s5 + $0x280] sm:$0xff]  }
 0xdee   : > { %8785 = vmatpush3.bf16.msra.mxu0 %v9561_v32  ;;  %v7037_v12 = vsel %vm851_vm9, %v16297_v34, %v7036_v53  ;;  %v3608_v34 = vpop.permute.xlu0 %3607  ;;  %v7058_v17 = vsel %vm848_vm8, %v7036_v53, %v7041_v63  ;;  %v7258_v63 = vsel %vm16022_vm15, %v16368_v29, %v7153_v47  ;;  %v9579_v29 = vld [vmem:[%s16571_s5 + $0x300] sm:$0xff]   ;;  %v7120_v32 = vrot.slane %v5916_v61, 7 }
 0xdef   : > { %v7155_v37 = vshll.u32 %v7037_v12, 16  ;;  %8786 = vmatprep.subr.bf16.mxu0 %v9564_v57  ;;  %v7158_v22 = vshll.u32 %v7058_v17, 16  ;;  %v3631_v14 = vsel %vm848_vm8, %v16374_v15, %v3608_v34  ;;  %v7166_v15 = vshll.u32 %v16406_v49, 16 }
 0xdf0   : > { %8805 = vmatpush3.bf16.msra.mxu1 %v9563_v46  ;;  %v7192_v8 = vsel %vm11161_vm12, %v3631_v14, %v7084_v23 }
 0xdf1   : > { %v7157_v2 = vrot.slane %v7155_v37, 7  ;;  %v16447_v52 = vpop.permute.xlu1 %5900  ;;  %8806 = vmatprep.subr.bf16.mxu1 %v9566_v54  ;;  %v7160_v28 = vrot.slane %v7158_v22, 7  ;;  %v7237_v49 = vsel %vm1328_vm10, %v7192_v8, %v7120_v32  ;;  %v7168_v46 = vrot.slane %v7166_v15, 7 }
 0xdf2   : > { %8787 = vmatpush3.bf16.msra.mxu0 %v9565_v44  ;;  %v5902_v16 = vsel %vm848_vm8, %v5899_v18, %v16447_v52  ;;  %v7122_v57 = vrot.slane %v16447_v52, 7 }
 0xdf3   : > { %8788 = vmatprep.subr.bf16.mxu0 %v9568_v4  ;;  %v7259_v48 = vsel %vm16022_vm15, %v7233_v13, %v7157_v2  ;;  %v7121_v55 = vrot.slane %v5902_v16, 7  ;;  %v7260_v5 = vsel %vm16022_vm15, %v7237_v49, %v7160_v28 }
 0xdf4   : > { %8807 = vmatpush3.bf16.msra.mxu1 %v9567_v40  ;;  %8052 = vmatprep.mubr.bf16.mxu0 %v7259_v48 }
 0xdf5   : > { %v3610_v42 = vpop.permute.xlu1 %3609  ;;  %8808 = vmatprep.subr.bf16.mxu1 %v9570_v31 }
 0xdf6   : > { %8789 = vmatpush3.bf16.msra.mxu0 %v9569_v35  ;;  %v3611_v1 = vsel %vm848_vm8, %v3608_v34, %v3610_v42  ;;  %v7194_v7 = vsel %vm11161_vm12, %v3610_v42, %v7090_v6 }
 0xdf7   : > { %v7193_v0 = vsel %vm11161_vm12, %v3611_v1, %v7087_v27  ;;  %8790 = vmatprep.subr.bf16.mxu0 %v9572_v36  ;;  %v7245_v24 = vsel %vm1328_vm10, %v7194_v7, %v7122_v57 }
 0xdf8   : > { %8809 = vmatpush3.bf16.msra.mxu1 %v9571_v45  ;;  %v7241_v21 = vsel %vm1328_vm10, %v7193_v0, %v7121_v55  ;;  %v7262_v30 = vsel %vm16022_vm15, %v7245_v24, %v7168_v46 }
 0xdf9   : > { %8810 = vmatprep.subr.bf16.mxu1 %v9574_v43  ;;  %v7261_v25 = vsel %vm16022_vm15, %v7241_v21, %v7164_v19 }
 0xdfa   : > { %8791 = vmatpush3.bf16.msra.mxu0 %v9573_v56  ;;  %8092 = vmatprep.mubr.bf16.mxu1 %v7261_v25 }
 0xdfb   : > { %8823 = vmatprep.subr.bf16.mxu0 %v10611_v38 }
 0xdfc   : > { %8811 = vmatpush3.bf16.msra.mxu1 %v9575_v9 }
 0xdfd   : > { %8053 = vmatmul.mubr.bf16.vlgmr.msra.gmra.mxu0 %v7258_v63  ;;  %8812 = vmatprep.subr.bf16.mxu1 %v9577_v3 }
 0xdfe   : > { %8824 = vmatpush3.bf16.msra.mxu0 %v9576_v26  ;;  %8827 = vmatprep.mubr.msk.bf16.mxu0 %vm10612_vm0, %v10611_v38 }
 0xdff   : > { %8825 = vmatprep.subr.bf16.mxu0 %v10611_v38 }
 0xe00   : > { %8813 = vmatpush3.bf16.msra.mxu1 %v9578_v33 }
 0xe02   : > { %8826 = vmatpush3.bf16.msra.mxu0 %v9579_v29 }
 0xe03   : > { %8093 = vmatmul.mubr.bf16.vlgmr.msra.gmra.mxu1 %v7260_v5 }
 0xe05   : > { %8828 = vmatmul.mubr.msk.bf16.vlgmr.msra.gmra.mxu0 %vm844_vm7, %v7262_v30 }
 0xe7d   : > { %v8704_v39 = vpop.f32.mrf.mxu0 }
 0xe7f   : > { %v8705_v53 = vpop.f32.mrf.mxu0 }
 0xe80   : > { %v8706_v31 = vadd.f32 %v8705_v53, %v8704_v39 }
 0xe81   : > { %v8707_v54 = vpop.f32.mrf.mxu0 }
 0xe82   : > { %v7895_v60 = vadd.f32 %v8706_v31, %v8583_v20 }
 0xe83   : > { %v8708_v12 = vpop.f32.mrf.mxu0  ;;  %v8726_v44 = vpop.f32.mrf.mxu1 }
 0xe85   : > { %v8727_v62 = vpop.f32.mrf.mxu1 }
 0xe86   : > { %v8728_v13 = vadd.f32 %v8727_v62, %v8726_v44 }
 0xe87   : > { %v8729_v18 = vpop.f32.mrf.mxu1 }
 0xe88   : > { %v7935_v48 = vadd.f32 %v8728_v13, %v7895_v60 }
 0xe89   : > { %v8730_v37 = vpop.f32.mrf.mxu1 }
 0xe9d   : > { %v8748_v4 = vpop.f32.mrf.mxu0 }
 0xe9f   : > { %v8749_v59 = vpop.f32.mrf.mxu0 }
 0xea0   : > { %v8750_v58 = vadd.f32 %v8749_v59, %v8748_v4 }
 0xea1   : > { %v8751_v10 = vpop.f32.mrf.mxu0 }
 0xea2   : > { %v7975_v27 = vadd.f32 %v8750_v58, %v7935_v48 }
 0xea3   : > { %v8752_v40 = vpop.f32.mrf.mxu0  ;;  %v8770_v41 = vpop.f32.mrf.mxu1 }
 0xea5   : > { %v8771_v2 = vpop.f32.mrf.mxu1 }
 0xea6   : > { %v8772_v36 = vadd.f32 %v8771_v2, %v8770_v41 }
 0xea7   : > { %v8773_v52 = vpop.f32.mrf.mxu1 }
 0xea8   : > { %v8015_v50 = vadd.f32 %v8772_v36, %v7975_v27 }
 0xea9   : > { %v8774_v11 = vpop.f32.mrf.mxu1 }
 0xebd   : > { %v8792_v35 = vpop.f32.mrf.mxu0 }
 0xebf   : > { %v8793_v16 = vpop.f32.mrf.mxu0 }
 0xec0   : > { %v8794_v34 = vadd.f32 %v8793_v16, %v8792_v35 }
 0xec1   : > { %v8795_v45 = vpop.f32.mrf.mxu0 }
 0xec2   : > { %v8055_v56 = vadd.f32 %v8794_v34, %v8015_v50 }
 0xec3   : > { %v8796_v42 = vpop.f32.mrf.mxu0  ;;  %v8814_v43 = vpop.f32.mrf.mxu1 }
 0xec5   : > { %v8815_v55 = vpop.f32.mrf.mxu1  ;;  %v8134_v1 = vpop.f32.mrf.mxu0 }
 0xec6   : > { %v8816_v19 = vadd.f32 %v8815_v55, %v8814_v43 }
 0xec7   : > { %v8817_v17 = vpop.f32.mrf.mxu1  ;;  %v8829_v0 = vpop.f32.mrf.mxu0 }
 0xec8   : > { %v8095_v21 = vadd.f32 %v8816_v19, %v8055_v56 }
 0xec9   : > { %v8818_v9 = vpop.f32.mrf.mxu1  ;;  %v8137_v51 = vpop.f32.mrf.mxu0 }
 0xeca   : > { %v8135_v25 = vadd.f32 %v8134_v1, %v8095_v21 }
 0xecb   : > { %v8830_v3 = vpop.f32.mrf.mxu0 }
 0xecc   : > { %8140 = vst [vmem:[%s274_s13] sm:$0xf] %v8135_v25 }
 0xecd   : > { %10558 = shalt.err (!%p10555_p3)
}
 0xece   : > { %s10559_s29 = scalar_lea.hbm %s16531_s20, 64  ;;  %s10563_s22 = scalar_lea.hbm %s16573_s7, 128 }
 0xecf   : > { %p10560_p4 = scmp.ne.s32.totalorder %s16531_s20, %s10559_s29  ;;  %p10564_p9 = scmp.lt.s32.totalorder %s16531_s20, %s16573_s7 }
 0xed0   : > { %p10565_p10 = scmp.lt.s32.totalorder %s10563_s22, %s10559_s29 }
 0xed1   : > { %p10561_p7 = pnand %p10560_p4, %p10692_p5 }
 0xed2   : > { %p10566_p11 = por %p10565_p10, %p10564_p9 }
 0xed3   : > { %p10562_p8 = pneg %p10561_p7 }
 0xed5   : > { %p10567_p12 = pnand %p10566_p11, %p10562_p8 }
 0xed7   : > { %10570 = shalt.err (!%p10567_p12)
}
 0xed8   : > { %8831 = dma.vmem_to_hbm [thread:$0]  (%p10692_p5), %s8156_s23, 64, %s16531_s20, %s8142_s16  }
 0xed9 PF: > { %p8837_p13 = scmp.ge.s32.totalorder %s10605_s27, 2  ;;  %s8167_s8 = sand.u32 1, %s10593_s24  }
 0xeda   : > { %s8168_s14 = scalar_lea.sflag [#allocation3], %s8167_s8 }
 0xedb   : > { %p8834_p0 = pnand %p8837_p13, %p10696_p6 }
 0xedd   : > { %p8835_p1 = pneg %p8834_p0 }
 0xedf   : > { %10588 = dma.done.wait (%p8835_p1), %s8168_s14, 64  }
 0xee0   : > { %10590 = vsyncadd (%p8835_p1), %s8168_s14, 4294967232  ;;  %p17_p2 = scmp.ge.s32.totalorder %s10679_s30, 4   ;;  %s16587_s24 = smov %s10597_s25 }
 0xee1   : > { %s16588_s25 = smov %s10601_s26  ;;  %s16589_s26 = smov %s10690_s10 }
 0xee2   : > { %s16590_s27 = smov %s10679_s30  ;;  %19 = sbr.rel (!%p17_p2) target bundleno = 3 (0x3), region = 83 }
 0xee7   :  { %8173 = vsyncpa [#allocation3], 1 }
 0xee8   :  { %8175 = vsyncpa [#allocation3 + $0x1], 1 }

</bundles_post_ra>
